<compile_context>
chip_gen: v5e
topology: v5e:2x2
jax: 0.10.0
libtpu: 0.0.40
codegen_flags: <defaults>
</compile_context>

<pallas_src>
import functools

import jax
import jax.numpy as jnp
from jax.experimental import pallas as pl
from jax.experimental.pallas import tpu as pltpu

BN_EPS = 1e-5
LRELU_SLOPE = 0.2
CP = 128                 # lane-dense padded channel width for kernel outputs


def _round8(c):
    return -(-c // 8) * 8


# ----------------------------------------------------------------------------
# Fused conv(5x5, s2, p2) [+ BatchNorm(batch stats)] + LeakyReLU kernel
# ----------------------------------------------------------------------------
def _conv_block_kernel(*refs, k, n_imgs, oh, ow, hp2, use_bn):
    """refs (no BN):  p_ref, w_ref, b_ref, o_ref
       refs (BN):     p_ref, w_ref, g_ref, bt_ref, o_ref, acc_ref
         p_ref   (n_imgs * 2*hp2*ow, k*cin_pad)  bf16  phase-split input rows
         w_ref   (k, k*cin_pad, CP)              bf16  per-row-tap weights
         b_ref   (1, CP) f32 conv bias            (no-BN layer only)
         g_ref, bt_ref (1, CP) f32 BN gamma/beta  (BN layers only)
         o_ref   (n_imgs * oh*ow, CP)            bf16
         acc_ref VMEM (n_imgs * oh*ow, CP) f32   (BN layers only)
    """
    if use_bn:
        p_ref, w_ref, g_ref, bt_ref, o_ref, acc_ref = refs
    else:
        p_ref, w_ref, b_ref, o_ref = refs

    m_img = oh * ow
    for n in range(n_imgs):
        acc = None
        for kh in range(k):
            # rows of P holding x_pad[n, 2*oh_idx + kh, kw + 2*ow_idx, :]
            # for all (oh_idx, ow_idx), all kw concatenated along lanes.
            r0 = ((n * 2 + (kh % 2)) * hp2 + kh // 2) * ow
            a = p_ref[r0:r0 + m_img, :]                 # (m_img, k*cin_pad)
            contrib = jnp.dot(a, w_ref[kh],
                              preferred_element_type=jnp.float32)
            acc = contrib if acc is None else acc + contrib
        if use_bn:
            acc_ref[n * m_img:(n + 1) * m_img, :] = acc
        else:
            y = acc + b_ref[...]
            y = jnp.where(y >= 0, y, LRELU_SLOPE * y)
            o_ref[n * m_img:(n + 1) * m_img, :] = y.astype(o_ref.dtype)

    if use_bn:
        # Batch stats over all N*OH*OW rows (biased var, PyTorch train mode).
        acc_all = acc_ref[...]
        mean = jnp.mean(acc_all, axis=0, keepdims=True)
        d = acc_all - mean
        var = jnp.mean(d * d, axis=0, keepdims=True)
        scale = g_ref[...] * jax.lax.rsqrt(var + BN_EPS)
        y = d * scale + bt_ref[...]
        y = jnp.where(y >= 0, y, LRELU_SLOPE * y)
        o_ref[...] = y.astype(o_ref.dtype)


def conv_s2_block(P, w_taps, b, gamma, beta, *, k, n_total, oh, ow, hp2,
                  use_bn):
    """P: (n_total*2*hp2*ow, k*cin_pad) bf16 -> (n_total*oh*ow, CP) bf16."""
    kc = P.shape[1]
    rows_per_img = 2 * hp2 * ow
    m_img = oh * ow

    if use_bn:
        grid = (1,)              # batch stats need the whole batch in-block
        n_in_block = n_total
        sem = ("arbitrary",)
    else:
        grid = (n_total,)        # independent images -> parallel (v7x 2 TCs)
        n_in_block = 1
        sem = ("parallel",)

    p_block = n_in_block * rows_per_img
    m_block = n_in_block * m_img

    kern = functools.partial(_conv_block_kernel, k=k, n_imgs=n_in_block,
                             oh=oh, ow=ow, hp2=hp2, use_bn=use_bn)

    in_specs = [
        pl.BlockSpec((p_block, kc), lambda i: (i, 0)),
        pl.BlockSpec(w_taps.shape, lambda i: (0, 0, 0)),
    ]
    args = [P, w_taps]
    if use_bn:
        in_specs += [pl.BlockSpec((1, CP), lambda i: (0, 0)),
                     pl.BlockSpec((1, CP), lambda i: (0, 0))]
        args += [gamma, beta]
        scratch = [pltpu.VMEM((m_block, CP), jnp.float32)]
    else:
        in_specs += [pl.BlockSpec((1, CP), lambda i: (0, 0))]
        args += [b]
        scratch = []

    return pl.pallas_call(
        kern,
        out_shape=jax.ShapeDtypeStruct((n_total * m_img, CP), jnp.bfloat16),
        grid_spec=pltpu.PrefetchScalarGridSpec(
            num_scalar_prefetch=0,
            grid=grid,
            in_specs=in_specs,
            out_specs=pl.BlockSpec((m_block, CP), lambda i: (i, 0)),
            scratch_shapes=scratch,
        ),
        compiler_params=pltpu.CompilerParams(dimension_semantics=sem),
    )(*args)


# ----------------------------------------------------------------------------
# Final 4x4 valid conv (-> 1 channel) + sigmoid head kernel
# ----------------------------------------------------------------------------
def _head_kernel(a_ref, w_ref, b_ref, o_ref):
    z = jnp.dot(a_ref[...], w_ref[...],
                preferred_element_type=jnp.float32) + b_ref[...]
    o_ref[...] = pl.reciprocal(1.0 + jnp.exp(-z), approx=True)


def head_call(a, w, b):
    n, kdim = a.shape
    return pl.pallas_call(
        _head_kernel,
        out_shape=jax.ShapeDtypeStruct((n, CP), jnp.float32),
        grid_spec=pltpu.PrefetchScalarGridSpec(
            num_scalar_prefetch=0,
            grid=(1,),
            in_specs=[pl.BlockSpec((n, kdim), lambda i: (0, 0)),
                      pl.BlockSpec(w.shape, lambda i: (0, 0)),
                      pl.BlockSpec((1, CP), lambda i: (0, 0))],
            out_specs=pl.BlockSpec((n, CP), lambda i: (0, 0)),
        ),
        compiler_params=pltpu.CompilerParams(
            dimension_semantics=("arbitrary",)),
    )(a, w, b)


# ----------------------------------------------------------------------------
# JAX glue: compact phase-split tap layout, parameters, forward
# ----------------------------------------------------------------------------
def build_tap_rows(x, k, pad, cin_pad):
    """x: (N, H, W, C) -> P (N*2*hp2*OW, k*cin_pad) bf16, row order
    (n, h_parity, h_half, ow), lane order (kw, c), with
    P[row, kw*cin_pad + c] = x_pad[n, 2*h_half + h_parity, kw + 2*ow, c].
    For each vertical tap kh, the needed rows form one contiguous range and
    the 5 horizontal taps are already concatenated along K."""
    N, H, W, C = x.shape
    OH = (H + 2 * pad - k) // 2 + 1
    OW = (W + 2 * pad - k) // 2 + 1
    hp2 = (H + 2 * pad) // 2                      # H + 2*pad is even here
    xp = jnp.pad(x, ((0, 0), (pad, pad), (pad, pad), (0, cin_pad - C)))
    xh = xp.reshape(N, hp2, 2, W + 2 * pad, cin_pad)
    cols = [xh[:, :, :, kw:kw + 2 * OW:2, :] for kw in range(k)]
    P = jnp.stack(cols, axis=4)                   # (N, hp2, 2, OW, k, Cp)
    P = jnp.transpose(P, (0, 2, 1, 3, 4, 5))      # (N, 2, hp2, OW, k, Cp)
    P = P.reshape(N * 2 * hp2 * OW, k * cin_pad)
    return P.astype(jnp.bfloat16), hp2, OH, OW


def init_params(key, in_dim=3, dim=8):
    """Raw f32 parameters: conv weights ~ N(0, 0.02) (HWIO), BN gamma ~
    N(1, 0.02), BN beta = 0, matching `weights_init`."""
    keys = jax.random.split(key, 16)
    it = iter(range(16))

    def conv_wb(cin, cout, k):
        w = 0.02 * jax.random.normal(keys[next(it)], (k, k, cin, cout),
                                     jnp.float32)
        bound = (cin * k * k) ** -0.5
        b = jax.random.uniform(keys[next(it)], (cout,), jnp.float32,
                               -bound, bound)
        return w, b

    chans = [in_dim, dim, dim * 2, dim * 4, dim * 8]
    p = {}
    for li in range(1, 5):                        # four 5x5 stride-2 convs
        p[f"w{li}"], p[f"b{li}"] = conv_wb(chans[li - 1], chans[li], 5)
    for li in (2, 3, 4):                          # BatchNorm affine params
        p[f"g{li}"] = 1.0 + 0.02 * jax.random.normal(
            keys[next(it)], (chans[li],), jnp.float32)
        p[f"be{li}"] = jnp.zeros((chans[li],), jnp.float32)
    p["w5"], p["b5"] = conv_wb(dim * 8, 1, 4)     # final 4x4 conv -> 1 channel
    return p


def pack_params(p, in_dim=3, dim=8):
    """Kernel-ready parameters: bf16 per-vertical-tap weights of shape
    (k, k*cin_pad, CP) (cin padded to a multiple of 8, cout padded to 128
    lanes), f32 (1, 128) bias / gamma / beta."""
    chans = [in_dim, dim, dim * 2, dim * 4, dim * 8]
    kp = {}
    for li in range(1, 5):
        cin, cout, k = chans[li - 1], chans[li], 5
        cin_p = _round8(cin)
        w = jnp.pad(p[f"w{li}"],
                    ((0, 0), (0, 0), (0, cin_p - cin), (0, CP - cout)))
        kp[f"w{li}"] = w.reshape(k, k * cin_p, CP).astype(jnp.bfloat16)
        kp[f"b{li}"] = jnp.pad(p[f"b{li}"], (0, CP - cout)).reshape(1, CP)
    for li in (2, 3, 4):
        cout = chans[li]
        kp[f"g{li}"] = jnp.pad(p[f"g{li}"], (0, CP - cout)).reshape(1, CP)
        kp[f"be{li}"] = jnp.pad(p[f"be{li}"], (0, CP - cout)).reshape(1, CP)
    # Head consumes the lane-dense (CP-channel) layer-4 activation directly.
    w5 = jnp.zeros((4, 4, CP, CP), jnp.float32)
    w5 = w5.at[:, :, :chans[4], :1].set(p["w5"])
    kp["w5"] = w5.reshape(4 * 4 * CP, CP).astype(jnp.bfloat16)
    kp["b5"] = jnp.pad(p["b5"], (0, CP - 1)).reshape(1, CP)
    return kp


def discriminator_forward(x_nchw, kp, in_dim=3, dim=8):
    """input (N, in_dim, 64, 64) -> output (N,)  [sigmoid scores]."""
    chans = [in_dim, dim, dim * 2, dim * 4, dim * 8]
    N = x_nchw.shape[0]
    x = jnp.transpose(x_nchw, (0, 2, 3, 1)).astype(jnp.float32)   # NHWC

    y = None
    OH = OW = None
    for li in range(1, 5):
        cin = chans[li - 1]
        P, hp2, OH, OW = build_tap_rows(x, 5, 2, _round8(cin))
        y = conv_s2_block(
            P, kp[f"w{li}"], kp[f"b{li}"],
            kp.get(f"g{li}"), kp.get(f"be{li}"),
            k=5, n_total=N, oh=OH, ow=OW, hp2=hp2, use_bn=(li != 1))
        if li < 4:
            x = y.reshape(N, OH, OW, CP)[:, :, :, :chans[li]]

    assert OH == 4 and OW == 4                    # 64x64 input -> 4x4 here
    a = y.reshape(N, 4 * 4 * CP)                  # lane-dense head input
    out = head_call(a, kp["w5"], kp["b5"])        # (N, CP) f32
    return out[:, 0]


# ----------------------------------------------------------------------------
# Pure-JAX reference (lax.conv, f32) for a correctness spot-check
# ----------------------------------------------------------------------------
def reference_forward(x_nchw, params, in_dim=3, dim=8):
    def conv(x, w, b, stride, pad):
        y = jax.lax.conv_general_dilated(
            x, w, (stride, stride), [(pad, pad), (pad, pad)],
            dimension_numbers=("NHWC", "HWIO", "NHWC"))
        return y + b

    x = jnp.transpose(x_nchw, (0, 2, 3, 1)).astype(jnp.float32)
    x = conv(x, params["w1"], params["b1"], 2, 2)
    x = jnp.where(x >= 0, x, LRELU_SLOPE * x)
    for li in (2, 3, 4):
        x = conv(x, params[f"w{li}"], params[f"b{li}"], 2, 2)
        mean = jnp.mean(x, axis=(0, 1, 2))
        var = jnp.var(x, axis=(0, 1, 2))
        x = (x - mean) * jax.lax.rsqrt(var + BN_EPS) * params[f"g{li}"] \
            + params[f"be{li}"]
        x = jnp.where(x >= 0, x, LRELU_SLOPE * x)
    x = conv(x, params["w5"], params["b5"], 1, 0)
    return jax.nn.sigmoid(x).reshape(-1)


if __name__ == "__main__":
    IN_DIM, DIM, BATCH = 3, 8, 2      # small dim; spatial must be 64 so the
                                      # final 4x4 valid conv reduces to 1x1
    key = jax.random.PRNGKey(0)
    k_x, k_p = jax.random.split(key)
    x = jax.random.normal(k_x, (BATCH, IN_DIM, 64, 64), jnp.float32)
    params = init_params(k_p, in_dim=IN_DIM, dim=DIM)
    kparams = pack_params(params, in_dim=IN_DIM, dim=DIM)

    fwd = jax.jit(functools.partial(discriminator_forward,
                                    in_dim=IN_DIM, dim=DIM))
    out = jax.block_until_ready(fwd(x, kparams))
    assert out.shape == (BATCH,), out.shape

    ref = jax.block_until_ready(reference_forward(x, params, IN_DIM, DIM))
    # bf16 matmul operands vs the pure-f32 reference -> loose tolerance.
    assert jnp.allclose(out, ref, atol=2e-2, rtol=2e-2), (out, ref)

    print("KERNEL_OK")
</pallas_src>

<mosaic_0001>
module attributes {stable_mosaic.version = 11 : i64} {
  func.func @_conv_block_kernel(%arg0: i32, %arg1: memref<2176x40xbf16, #tpu.memory_space<vmem>>, %arg2: memref<5x40x128xbf16, #tpu.memory_space<vmem>>, %arg3: memref<1x128xf32, #tpu.memory_space<vmem>>, %arg4: memref<1024x128xbf16, #tpu.memory_space<vmem>>) attributes {dimension_semantics = [#tpu.dimension_semantics<parallel>], iteration_bounds = array<i64: 2>, scalar_prefetch = 0 : i64, scratch_operands = 0 : i64, tpu.core_type = #tpu.core_type<tc>, window_params = [{transform_indices = @transform_0, window_bounds = array<i64: 2176, 40>}, {pipeline_mode = #tpu.pipeline_mode<synchronous>, transform_indices = @transform_1, window_bounds = array<i64: 5, 40, 128>}, {pipeline_mode = #tpu.pipeline_mode<synchronous>, transform_indices = @transform_2, window_bounds = array<i64: 1, 128>}, {transform_indices = @transform_3, window_bounds = array<i64: 1024, 128>}]} {
    %c0 = arith.constant 0 : index
    %c0_0 = arith.constant 0 : index
    %0 = vector.load %arg1[%c0, %c0_0] : memref<2176x40xbf16, #tpu.memory_space<vmem>>, vector<1024x40xbf16>
    %c0_1 = arith.constant 0 : index
    %c0_2 = arith.constant 0 : index
    %c0_3 = arith.constant 0 : index
    %1 = vector.load %arg2[%c0_1, %c0_2, %c0_3] : memref<5x40x128xbf16, #tpu.memory_space<vmem>>, vector<1x40x128xbf16>
    %2 = vector.shape_cast %1 : vector<1x40x128xbf16> to vector<40x128xbf16>
    %cst = arith.constant dense<0.000000e+00> : vector<1024x128xf32>
    %3 = tpu.matmul %0, %2, %cst {dimension_numbers = #tpu.dot_dimension_numbers<[1], [0], [0], [1], [0, 0, 1, 1], [], []>} : vector<1024x40xbf16>, vector<40x128xbf16>, vector<1024x128xf32> -> vector<1024x128xf32>
    %c1088 = arith.constant 1088 : index
    %c0_4 = arith.constant 0 : index
    %4 = vector.load %arg1[%c1088, %c0_4] : memref<2176x40xbf16, #tpu.memory_space<vmem>>, vector<1024x40xbf16>
    %c1 = arith.constant 1 : index
    %c0_5 = arith.constant 0 : index
    %c0_6 = arith.constant 0 : index
    %5 = vector.load %arg2[%c1, %c0_5, %c0_6] : memref<5x40x128xbf16, #tpu.memory_space<vmem>>, vector<1x40x128xbf16>
    %6 = vector.shape_cast %5 : vector<1x40x128xbf16> to vector<40x128xbf16>
    %cst_7 = arith.constant dense<0.000000e+00> : vector<1024x128xf32>
    %7 = tpu.matmul %4, %6, %cst_7 {dimension_numbers = #tpu.dot_dimension_numbers<[1], [0], [0], [1], [0, 0, 1, 1], [], []>} : vector<1024x40xbf16>, vector<40x128xbf16>, vector<1024x128xf32> -> vector<1024x128xf32>
    %8 = arith.addf %3, %7 : vector<1024x128xf32>
    %c32 = arith.constant 32 : index
    %c0_8 = arith.constant 0 : index
    %9 = vector.load %arg1[%c32, %c0_8] : memref<2176x40xbf16, #tpu.memory_space<vmem>>, vector<1024x40xbf16>
    %c2 = arith.constant 2 : index
    %c0_9 = arith.constant 0 : index
    %c0_10 = arith.constant 0 : index
    %10 = vector.load %arg2[%c2, %c0_9, %c0_10] : memref<5x40x128xbf16, #tpu.memory_space<vmem>>, vector<1x40x128xbf16>
    %11 = vector.shape_cast %10 : vector<1x40x128xbf16> to vector<40x128xbf16>
    %cst_11 = arith.constant dense<0.000000e+00> : vector<1024x128xf32>
    %12 = tpu.matmul %9, %11, %cst_11 {dimension_numbers = #tpu.dot_dimension_numbers<[1], [0], [0], [1], [0, 0, 1, 1], [], []>} : vector<1024x40xbf16>, vector<40x128xbf16>, vector<1024x128xf32> -> vector<1024x128xf32>
    %13 = arith.addf %8, %12 : vector<1024x128xf32>
    %c1120 = arith.constant 1120 : index
    %c0_12 = arith.constant 0 : index
    %14 = vector.load %arg1[%c1120, %c0_12] : memref<2176x40xbf16, #tpu.memory_space<vmem>>, vector<1024x40xbf16>
    %c3 = arith.constant 3 : index
    %c0_13 = arith.constant 0 : index
    %c0_14 = arith.constant 0 : index
    %15 = vector.load %arg2[%c3, %c0_13, %c0_14] : memref<5x40x128xbf16, #tpu.memory_space<vmem>>, vector<1x40x128xbf16>
    %16 = vector.shape_cast %15 : vector<1x40x128xbf16> to vector<40x128xbf16>
    %cst_15 = arith.constant dense<0.000000e+00> : vector<1024x128xf32>
    %17 = tpu.matmul %14, %16, %cst_15 {dimension_numbers = #tpu.dot_dimension_numbers<[1], [0], [0], [1], [0, 0, 1, 1], [], []>} : vector<1024x40xbf16>, vector<40x128xbf16>, vector<1024x128xf32> -> vector<1024x128xf32>
    %18 = arith.addf %13, %17 : vector<1024x128xf32>
    %c64 = arith.constant 64 : index
    %c0_16 = arith.constant 0 : index
    %19 = vector.load %arg1[%c64, %c0_16] : memref<2176x40xbf16, #tpu.memory_space<vmem>>, vector<1024x40xbf16>
    %c4 = arith.constant 4 : index
    %c0_17 = arith.constant 0 : index
    %c0_18 = arith.constant 0 : index
    %20 = vector.load %arg2[%c4, %c0_17, %c0_18] : memref<5x40x128xbf16, #tpu.memory_space<vmem>>, vector<1x40x128xbf16>
    %21 = vector.shape_cast %20 : vector<1x40x128xbf16> to vector<40x128xbf16>
    %cst_19 = arith.constant dense<0.000000e+00> : vector<1024x128xf32>
    %22 = tpu.matmul %19, %21, %cst_19 {dimension_numbers = #tpu.dot_dimension_numbers<[1], [0], [0], [1], [0, 0, 1, 1], [], []>} : vector<1024x40xbf16>, vector<40x128xbf16>, vector<1024x128xf32> -> vector<1024x128xf32>
    %23 = arith.addf %18, %22 : vector<1024x128xf32>
    %c0_20 = arith.constant 0 : index
    %c0_21 = arith.constant 0 : index
    %24 = vector.load %arg3[%c0_20, %c0_21] : memref<1x128xf32, #tpu.memory_space<vmem>>, vector<1x128xf32>
    %25 = vector.broadcast %24 : vector<1x128xf32> to vector<1024x128xf32>
    %26 = arith.addf %23, %25 : vector<1024x128xf32>
    %cst_22 = arith.constant 0.000000e+00 : f32
    %27 = vector.broadcast %cst_22 : f32 to vector<1024x128xf32>
    %28 = arith.cmpf oge, %26, %27 : vector<1024x128xf32>
    %cst_23 = arith.constant 2.000000e-01 : f32
    %29 = vector.broadcast %cst_23 : f32 to vector<1024x128xf32>
    %30 = arith.mulf %29, %26 : vector<1024x128xf32>
    %31 = arith.select %28, %26, %30 : vector<1024x128xi1>, vector<1024x128xf32>
    %32 = arith.truncf %31 : vector<1024x128xf32> to vector<1024x128xbf16>
    %c0_24 = arith.constant 0 : index
    %c0_25 = arith.constant 0 : index
    %33 = vector.load %arg4[%c0_24, %c0_25] : memref<1024x128xbf16, #tpu.memory_space<vmem>>, vector<1024x128xbf16>
    tpu.vector_store %arg4[%c0_24, %c0_25], %32 {strides = array<i32>} : memref<1024x128xbf16, #tpu.memory_space<vmem>>, vector<1024x128xbf16>,
    return
  }
  func.func @transform_0(%arg0: i32) -> (i32, i32) {
    %c0_i32 = arith.constant 0 : i32
    %c0_i32_0 = arith.constant 0 : i32
    return %arg0, %c0_i32 : i32, i32
  }
  func.func @transform_1(%arg0: i32) -> (i32, i32, i32) {
    %c0_i32 = arith.constant 0 : i32
    %c0_i32_0 = arith.constant 0 : i32
    %c0_i32_1 = arith.constant 0 : i32
    %c0_i32_2 = arith.constant 0 : i32
    return %c0_i32, %c0_i32_0, %c0_i32_1 : i32, i32, i32
  }
  func.func @transform_2(%arg0: i32) -> (i32, i32) {
    %c0_i32 = arith.constant 0 : i32
    %c0_i32_0 = arith.constant 0 : i32
    %c0_i32_1 = arith.constant 0 : i32
    return %c0_i32, %c0_i32_0 : i32, i32
  }
  func.func @transform_3(%arg0: i32) -> (i32, i32) {
    %c0_i32 = arith.constant 0 : i32
    %c0_i32_0 = arith.constant 0 : i32
    return %arg0, %c0_i32 : i32, i32
  }
}

module attributes {stable_mosaic.version = 11 : i64} {
  func.func @_conv_block_kernel(%arg0: i32, %arg1: memref<1152x40xbf16, #tpu.memory_space<vmem>>, %arg2: memref<5x40x128xbf16, #tpu.memory_space<vmem>>, %arg3: memref<1x128xf32, #tpu.memory_space<vmem>>, %arg4: memref<1x128xf32, #tpu.memory_space<vmem>>, %arg5: memref<512x128xbf16, #tpu.memory_space<vmem>>, %arg6: memref<512x128xf32, #tpu.memory_space<vmem>>) attributes {dimension_semantics = [#tpu.dimension_semantics<arbitrary>], iteration_bounds = array<i64: 1>, scalar_prefetch = 0 : i64, scratch_operands = 1 : i64, tpu.core_type = #tpu.core_type<tc>, window_params = [{transform_indices = @transform_0, window_bounds = array<i64: 1152, 40>}, {pipeline_mode = #tpu.pipeline_mode<synchronous>, transform_indices = @transform_1, window_bounds = array<i64: 5, 40, 128>}, {pipeline_mode = #tpu.pipeline_mode<synchronous>, transform_indices = @transform_2, window_bounds = array<i64: 1, 128>}, {pipeline_mode = #tpu.pipeline_mode<synchronous>, transform_indices = @transform_3, window_bounds = array<i64: 1, 128>}, {transform_indices = @transform_4, window_bounds = array<i64: 512, 128>}]} {
    %c0 = arith.constant 0 : index
    %c0_0 = arith.constant 0 : index
    %0 = vector.load %arg1[%c0, %c0_0] : memref<1152x40xbf16, #tpu.memory_space<vmem>>, vector<256x40xbf16>
    %c0_1 = arith.constant 0 : index
    %c0_2 = arith.constant 0 : index
    %c0_3 = arith.constant 0 : index
    %1 = vector.load %arg2[%c0_1, %c0_2, %c0_3] : memref<5x40x128xbf16, #tpu.memory_space<vmem>>, vector<1x40x128xbf16>
    %2 = vector.shape_cast %1 : vector<1x40x128xbf16> to vector<40x128xbf16>
    %cst = arith.constant dense<0.000000e+00> : vector<256x128xf32>
    %3 = tpu.matmul %0, %2, %cst {dimension_numbers = #tpu.dot_dimension_numbers<[1], [0], [0], [1], [0, 0, 1, 1], [], []>} : vector<256x40xbf16>, vector<40x128xbf16>, vector<256x128xf32> -> vector<256x128xf32>
    %c288 = arith.constant 288 : index
    %c0_4 = arith.constant 0 : index
    %4 = vector.load %arg1[%c288, %c0_4] : memref<1152x40xbf16, #tpu.memory_space<vmem>>, vector<256x40xbf16>
    %c1 = arith.constant 1 : index
    %c0_5 = arith.constant 0 : index
    %c0_6 = arith.constant 0 : index
    %5 = vector.load %arg2[%c1, %c0_5, %c0_6] : memref<5x40x128xbf16, #tpu.memory_space<vmem>>, vector<1x40x128xbf16>
    %6 = vector.shape_cast %5 : vector<1x40x128xbf16> to vector<40x128xbf16>
    %cst_7 = arith.constant dense<0.000000e+00> : vector<256x128xf32>
    %7 = tpu.matmul %4, %6, %cst_7 {dimension_numbers = #tpu.dot_dimension_numbers<[1], [0], [0], [1], [0, 0, 1, 1], [], []>} : vector<256x40xbf16>, vector<40x128xbf16>, vector<256x128xf32> -> vector<256x128xf32>
    %8 = arith.addf %3, %7 : vector<256x128xf32>
    %c16 = arith.constant 16 : index
    %c0_8 = arith.constant 0 : index
    %9 = vector.load %arg1[%c16, %c0_8] : memref<1152x40xbf16, #tpu.memory_space<vmem>>, vector<256x40xbf16>
    %c2 = arith.constant 2 : index
    %c0_9 = arith.constant 0 : index
    %c0_10 = arith.constant 0 : index
    %10 = vector.load %arg2[%c2, %c0_9, %c0_10] : memref<5x40x128xbf16, #tpu.memory_space<vmem>>, vector<1x40x128xbf16>
    %11 = vector.shape_cast %10 : vector<1x40x128xbf16> to vector<40x128xbf16>
    %cst_11 = arith.constant dense<0.000000e+00> : vector<256x128xf32>
    %12 = tpu.matmul %9, %11, %cst_11 {dimension_numbers = #tpu.dot_dimension_numbers<[1], [0], [0], [1], [0, 0, 1, 1], [], []>} : vector<256x40xbf16>, vector<40x128xbf16>, vector<256x128xf32> -> vector<256x128xf32>
    %13 = arith.addf %8, %12 : vector<256x128xf32>
    %c304 = arith.constant 304 : index
    %c0_12 = arith.constant 0 : index
    %14 = vector.load %arg1[%c304, %c0_12] : memref<1152x40xbf16, #tpu.memory_space<vmem>>, vector<256x40xbf16>
    %c3 = arith.constant 3 : index
    %c0_13 = arith.constant 0 : index
    %c0_14 = arith.constant 0 : index
    %15 = vector.load %arg2[%c3, %c0_13, %c0_14] : memref<5x40x128xbf16, #tpu.memory_space<vmem>>, vector<1x40x128xbf16>
    %16 = vector.shape_cast %15 : vector<1x40x128xbf16> to vector<40x128xbf16>
    %cst_15 = arith.constant dense<0.000000e+00> : vector<256x128xf32>
    %17 = tpu.matmul %14, %16, %cst_15 {dimension_numbers = #tpu.dot_dimension_numbers<[1], [0], [0], [1], [0, 0, 1, 1], [], []>} : vector<256x40xbf16>, vector<40x128xbf16>, vector<256x128xf32> -> vector<256x128xf32>
    %18 = arith.addf %13, %17 : vector<256x128xf32>
    %c32 = arith.constant 32 : index
    %c0_16 = arith.constant 0 : index
    %19 = vector.load %arg1[%c32, %c0_16] : memref<1152x40xbf16, #tpu.memory_space<vmem>>, vector<256x40xbf16>
    %c4 = arith.constant 4 : index
    %c0_17 = arith.constant 0 : index
    %c0_18 = arith.constant 0 : index
    %20 = vector.load %arg2[%c4, %c0_17, %c0_18] : memref<5x40x128xbf16, #tpu.memory_space<vmem>>, vector<1x40x128xbf16>
    %21 = vector.shape_cast %20 : vector<1x40x128xbf16> to vector<40x128xbf16>
    %cst_19 = arith.constant dense<0.000000e+00> : vector<256x128xf32>
    %22 = tpu.matmul %19, %21, %cst_19 {dimension_numbers = #tpu.dot_dimension_numbers<[1], [0], [0], [1], [0, 0, 1, 1], [], []>} : vector<256x40xbf16>, vector<40x128xbf16>, vector<256x128xf32> -> vector<256x128xf32>
    %23 = arith.addf %18, %22 : vector<256x128xf32>
    %c0_20 = arith.constant 0 : index
    %c0_21 = arith.constant 0 : index
    %24 = vector.load %arg6[%c0_20, %c0_21] : memref<512x128xf32, #tpu.memory_space<vmem>>, vector<256x128xf32>
    tpu.vector_store %arg6[%c0_20, %c0_21], %23 {strides = array<i32>} : memref<512x128xf32, #tpu.memory_space<vmem>>, vector<256x128xf32>,
    %c576 = arith.constant 576 : index
    %c0_22 = arith.constant 0 : index
    %25 = vector.load %arg1[%c576, %c0_22] : memref<1152x40xbf16, #tpu.memory_space<vmem>>, vector<256x40xbf16>
    %c0_23 = arith.constant 0 : index
    %c0_24 = arith.constant 0 : index
    %c0_25 = arith.constant 0 : index
    %26 = vector.load %arg2[%c0_23, %c0_24, %c0_25] : memref<5x40x128xbf16, #tpu.memory_space<vmem>>, vector<1x40x128xbf16>
    %27 = vector.shape_cast %26 : vector<1x40x128xbf16> to vector<40x128xbf16>
    %cst_26 = arith.constant dense<0.000000e+00> : vector<256x128xf32>
    %28 = tpu.matmul %25, %27, %cst_26 {dimension_numbers = #tpu.dot_dimension_numbers<[1], [0], [0], [1], [0, 0, 1, 1], [], []>} : vector<256x40xbf16>, vector<40x128xbf16>, vector<256x128xf32> -> vector<256x128xf32>
    %c864 = arith.constant 864 : index
    %c0_27 = arith.constant 0 : index
    %29 = vector.load %arg1[%c864, %c0_27] : memref<1152x40xbf16, #tpu.memory_space<vmem>>, vector<256x40xbf16>
    %c1_28 = arith.constant 1 : index
    %c0_29 = arith.constant 0 : index
    %c0_30 = arith.constant 0 : index
    %30 = vector.load %arg2[%c1_28, %c0_29, %c0_30] : memref<5x40x128xbf16, #tpu.memory_space<vmem>>, vector<1x40x128xbf16>
    %31 = vector.shape_cast %30 : vector<1x40x128xbf16> to vector<40x128xbf16>
    %cst_31 = arith.constant dense<0.000000e+00> : vector<256x128xf32>
    %32 = tpu.matmul %29, %31, %cst_31 {dimension_numbers = #tpu.dot_dimension_numbers<[1], [0], [0], [1], [0, 0, 1, 1], [], []>} : vector<256x40xbf16>, vector<40x128xbf16>, vector<256x128xf32> -> vector<256x128xf32>
    %33 = arith.addf %28, %32 : vector<256x128xf32>
    %c592 = arith.constant 592 : index
    %c0_32 = arith.constant 0 : index
    %34 = vector.load %arg1[%c592, %c0_32] : memref<1152x40xbf16, #tpu.memory_space<vmem>>, vector<256x40xbf16>
    %c2_33 = arith.constant 2 : index
    %c0_34 = arith.constant 0 : index
    %c0_35 = arith.constant 0 : index
    %35 = vector.load %arg2[%c2_33, %c0_34, %c0_35] : memref<5x40x128xbf16, #tpu.memory_space<vmem>>, vector<1x40x128xbf16>
    %36 = vector.shape_cast %35 : vector<1x40x128xbf16> to vector<40x128xbf16>
    %cst_36 = arith.constant dense<0.000000e+00> : vector<256x128xf32>
    %37 = tpu.matmul %34, %36, %cst_36 {dimension_numbers = #tpu.dot_dimension_numbers<[1], [0], [0], [1], [0, 0, 1, 1], [], []>} : vector<256x40xbf16>, vector<40x128xbf16>, vector<256x128xf32> -> vector<256x128xf32>
    %38 = arith.addf %33, %37 : vector<256x128xf32>
    %c880 = arith.constant 880 : index
    %c0_37 = arith.constant 0 : index
    %39 = vector.load %arg1[%c880, %c0_37] : memref<1152x40xbf16, #tpu.memory_space<vmem>>, vector<256x40xbf16>
    %c3_38 = arith.constant 3 : index
    %c0_39 = arith.constant 0 : index
    %c0_40 = arith.constant 0 : index
    %40 = vector.load %arg2[%c3_38, %c0_39, %c0_40] : memref<5x40x128xbf16, #tpu.memory_space<vmem>>, vector<1x40x128xbf16>
    %41 = vector.shape_cast %40 : vector<1x40x128xbf16> to vector<40x128xbf16>
    %cst_41 = arith.constant dense<0.000000e+00> : vector<256x128xf32>
    %42 = tpu.matmul %39, %41, %cst_41 {dimension_numbers = #tpu.dot_dimension_numbers<[1], [0], [0], [1], [0, 0, 1, 1], [], []>} : vector<256x40xbf16>, vector<40x128xbf16>, vector<256x128xf32> -> vector<256x128xf32>
    %43 = arith.addf %38, %42 : vector<256x128xf32>
    %c608 = arith.constant 608 : index
    %c0_42 = arith.constant 0 : index
    %44 = vector.load %arg1[%c608, %c0_42] : memref<1152x40xbf16, #tpu.memory_space<vmem>>, vector<256x40xbf16>
    %c4_43 = arith.constant 4 : index
    %c0_44 = arith.constant 0 : index
    %c0_45 = arith.constant 0 : index
    %45 = vector.load %arg2[%c4_43, %c0_44, %c0_45] : memref<5x40x128xbf16, #tpu.memory_space<vmem>>, vector<1x40x128xbf16>
    %46 = vector.shape_cast %45 : vector<1x40x128xbf16> to vector<40x128xbf16>
    %cst_46 = arith.constant dense<0.000000e+00> : vector<256x128xf32>
    %47 = tpu.matmul %44, %46, %cst_46 {dimension_numbers = #tpu.dot_dimension_numbers<[1], [0], [0], [1], [0, 0, 1, 1], [], []>} : vector<256x40xbf16>, vector<40x128xbf16>, vector<256x128xf32> -> vector<256x128xf32>
    %48 = arith.addf %43, %47 : vector<256x128xf32>
    %c256 = arith.constant 256 : index
    %c0_47 = arith.constant 0 : index
    %49 = vector.load %arg6[%c256, %c0_47] : memref<512x128xf32, #tpu.memory_space<vmem>>, vector<256x128xf32>
    tpu.vector_store %arg6[%c256, %c0_47], %48 {strides = array<i32>} : memref<512x128xf32, #tpu.memory_space<vmem>>, vector<256x128xf32>,
    %c0_48 = arith.constant 0 : index
    %c0_49 = arith.constant 0 : index
    %50 = vector.load %arg6[%c0_48, %c0_49] : memref<512x128xf32, #tpu.memory_space<vmem>>, vector<512x128xf32>
    %cst_50 = arith.constant dense<0.000000e+00> : vector<128xf32>
    %51 = vector.multi_reduction <add>, %50, %cst_50 [0] : vector<512x128xf32> to vector<128xf32>
    %52 = vector.shape_cast %51 : vector<128xf32> to vector<1x128xf32>
    %cst_51 = arith.constant 5.120000e+02 : f32
    %53 = vector.broadcast %cst_51 : f32 to vector<1x128xf32>
    %54 = arith.divf %52, %53 : vector<1x128xf32>
    %55 = vector.broadcast %54 : vector<1x128xf32> to vector<512x128xf32>
    %56 = arith.subf %50, %55 : vector<512x128xf32>
    %57 = arith.mulf %56, %56 : vector<512x128xf32>
    %cst_52 = arith.constant dense<0.000000e+00> : vector<128xf32>
    %58 = vector.multi_reduction <add>, %57, %cst_52 [0] : vector<512x128xf32> to vector<128xf32>
    %59 = vector.shape_cast %58 : vector<128xf32> to vector<1x128xf32>
    %cst_53 = arith.constant 5.120000e+02 : f32
    %60 = vector.broadcast %cst_53 : f32 to vector<1x128xf32>
    %61 = arith.divf %59, %60 : vector<1x128xf32>
    %c0_54 = arith.constant 0 : index
    %c0_55 = arith.constant 0 : index
    %62 = vector.load %arg3[%c0_54, %c0_55] : memref<1x128xf32, #tpu.memory_space<vmem>>, vector<1x128xf32>
    %cst_56 = arith.constant 9.99999974E-6 : f32
    %63 = vector.broadcast %cst_56 : f32 to vector<1x128xf32>
    %64 = arith.addf %61, %63 : vector<1x128xf32>
    %65 = math.rsqrt %64 : vector<1x128xf32>
    %66 = arith.mulf %62, %65 : vector<1x128xf32>
    %67 = vector.broadcast %66 : vector<1x128xf32> to vector<512x128xf32>
    %68 = arith.mulf %56, %67 : vector<512x128xf32>
    %c0_57 = arith.constant 0 : index
    %c0_58 = arith.constant 0 : index
    %69 = vector.load %arg4[%c0_57, %c0_58] : memref<1x128xf32, #tpu.memory_space<vmem>>, vector<1x128xf32>
    %70 = vector.broadcast %69 : vector<1x128xf32> to vector<512x128xf32>
    %71 = arith.addf %68, %70 : vector<512x128xf32>
    %cst_59 = arith.constant 0.000000e+00 : f32
    %72 = vector.broadcast %cst_59 : f32 to vector<512x128xf32>
    %73 = arith.cmpf oge, %71, %72 : vector<512x128xf32>
    %cst_60 = arith.constant 2.000000e-01 : f32
    %74 = vector.broadcast %cst_60 : f32 to vector<512x128xf32>
    %75 = arith.mulf %74, %71 : vector<512x128xf32>
    %76 = arith.select %73, %71, %75 : vector<512x128xi1>, vector<512x128xf32>
    %77 = arith.truncf %76 : vector<512x128xf32> to vector<512x128xbf16>
    %c0_61 = arith.constant 0 : index
    %c0_62 = arith.constant 0 : index
    %78 = vector.load %arg5[%c0_61, %c0_62] : memref<512x128xbf16, #tpu.memory_space<vmem>>, vector<512x128xbf16>
    tpu.vector_store %arg5[%c0_61, %c0_62], %77 {strides = array<i32>} : memref<512x128xbf16, #tpu.memory_space<vmem>>, vector<512x128xbf16>,
    return
  }
  func.func @transform_0(%arg0: i32) -> (i32, i32) {
    %c0_i32 = arith.constant 0 : i32
    %c0_i32_0 = arith.constant 0 : i32
    return %arg0, %c0_i32 : i32, i32
  }
  func.func @transform_1(%arg0: i32) -> (i32, i32, i32) {
    %c0_i32 = arith.constant 0 : i32
    %c0_i32_0 = arith.constant 0 : i32
    %c0_i32_1 = arith.constant 0 : i32
    %c0_i32_2 = arith.constant 0 : i32
    return %c0_i32, %c0_i32_0, %c0_i32_1 : i32, i32, i32
  }
  func.func @transform_2(%arg0: i32) -> (i32, i32) {
    %c0_i32 = arith.constant 0 : i32
    %c0_i32_0 = arith.constant 0 : i32
    %c0_i32_1 = arith.constant 0 : i32
    return %c0_i32, %c0_i32_0 : i32, i32
  }
  func.func @transform_3(%arg0: i32) -> (i32, i32) {
    %c0_i32 = arith.constant 0 : i32
    %c0_i32_0 = arith.constant 0 : i32
    %c0_i32_1 = arith.constant 0 : i32
    return %c0_i32, %c0_i32_0 : i32, i32
  }
  func.func @transform_4(%arg0: i32) -> (i32, i32) {
    %c0_i32 = arith.constant 0 : i32
    %c0_i32_0 = arith.constant 0 : i32
    return %arg0, %c0_i32 : i32, i32
  }
}

module attributes {stable_mosaic.version = 11 : i64} {
  func.func @_conv_block_kernel(%arg0: i32, %arg1: memref<320x80xbf16, #tpu.memory_space<vmem>>, %arg2: memref<5x80x128xbf16, #tpu.memory_space<vmem>>, %arg3: memref<1x128xf32, #tpu.memory_space<vmem>>, %arg4: memref<1x128xf32, #tpu.memory_space<vmem>>, %arg5: memref<128x128xbf16, #tpu.memory_space<vmem>>, %arg6: memref<128x128xf32, #tpu.memory_space<vmem>>) attributes {dimension_semantics = [#tpu.dimension_semantics<arbitrary>], iteration_bounds = array<i64: 1>, scalar_prefetch = 0 : i64, scratch_operands = 1 : i64, tpu.core_type = #tpu.core_type<tc>, window_params = [{transform_indices = @transform_0, window_bounds = array<i64: 320, 80>}, {pipeline_mode = #tpu.pipeline_mode<synchronous>, transform_indices = @transform_1, window_bounds = array<i64: 5, 80, 128>}, {pipeline_mode = #tpu.pipeline_mode<synchronous>, transform_indices = @transform_2, window_bounds = array<i64: 1, 128>}, {pipeline_mode = #tpu.pipeline_mode<synchronous>, transform_indices = @transform_3, window_bounds = array<i64: 1, 128>}, {transform_indices = @transform_4, window_bounds = array<i64: 128, 128>}]} {
    %c0 = arith.constant 0 : index
    %c0_0 = arith.constant 0 : index
    %0 = vector.load %arg1[%c0, %c0_0] : memref<320x80xbf16, #tpu.memory_space<vmem>>, vector<64x80xbf16>
    %c0_1 = arith.constant 0 : index
    %c0_2 = arith.constant 0 : index
    %c0_3 = arith.constant 0 : index
    %1 = vector.load %arg2[%c0_1, %c0_2, %c0_3] : memref<5x80x128xbf16, #tpu.memory_space<vmem>>, vector<1x80x128xbf16>
    %2 = vector.shape_cast %1 : vector<1x80x128xbf16> to vector<80x128xbf16>
    %cst = arith.constant dense<0.000000e+00> : vector<64x128xf32>
    %3 = tpu.matmul %0, %2, %cst {dimension_numbers = #tpu.dot_dimension_numbers<[1], [0], [0], [1], [0, 0, 1, 1], [], []>} : vector<64x80xbf16>, vector<80x128xbf16>, vector<64x128xf32> -> vector<64x128xf32>
    %c80 = arith.constant 80 : index
    %c0_4 = arith.constant 0 : index
    %4 = vector.load %arg1[%c80, %c0_4] : memref<320x80xbf16, #tpu.memory_space<vmem>>, vector<64x80xbf16>
    %c1 = arith.constant 1 : index
    %c0_5 = arith.constant 0 : index
    %c0_6 = arith.constant 0 : index
    %5 = vector.load %arg2[%c1, %c0_5, %c0_6] : memref<5x80x128xbf16, #tpu.memory_space<vmem>>, vector<1x80x128xbf16>
    %6 = vector.shape_cast %5 : vector<1x80x128xbf16> to vector<80x128xbf16>
    %cst_7 = arith.constant dense<0.000000e+00> : vector<64x128xf32>
    %7 = tpu.matmul %4, %6, %cst_7 {dimension_numbers = #tpu.dot_dimension_numbers<[1], [0], [0], [1], [0, 0, 1, 1], [], []>} : vector<64x80xbf16>, vector<80x128xbf16>, vector<64x128xf32> -> vector<64x128xf32>
    %8 = arith.addf %3, %7 : vector<64x128xf32>
    %c8 = arith.constant 8 : index
    %c0_8 = arith.constant 0 : index
    %9 = vector.load %arg1[%c8, %c0_8] : memref<320x80xbf16, #tpu.memory_space<vmem>>, vector<64x80xbf16>
    %c2 = arith.constant 2 : index
    %c0_9 = arith.constant 0 : index
    %c0_10 = arith.constant 0 : index
    %10 = vector.load %arg2[%c2, %c0_9, %c0_10] : memref<5x80x128xbf16, #tpu.memory_space<vmem>>, vector<1x80x128xbf16>
    %11 = vector.shape_cast %10 : vector<1x80x128xbf16> to vector<80x128xbf16>
    %cst_11 = arith.constant dense<0.000000e+00> : vector<64x128xf32>
    %12 = tpu.matmul %9, %11, %cst_11 {dimension_numbers = #tpu.dot_dimension_numbers<[1], [0], [0], [1], [0, 0, 1, 1], [], []>} : vector<64x80xbf16>, vector<80x128xbf16>, vector<64x128xf32> -> vector<64x128xf32>
    %13 = arith.addf %8, %12 : vector<64x128xf32>
    %c88 = arith.constant 88 : index
    %c0_12 = arith.constant 0 : index
    %14 = vector.load %arg1[%c88, %c0_12] : memref<320x80xbf16, #tpu.memory_space<vmem>>, vector<64x80xbf16>
    %c3 = arith.constant 3 : index
    %c0_13 = arith.constant 0 : index
    %c0_14 = arith.constant 0 : index
    %15 = vector.load %arg2[%c3, %c0_13, %c0_14] : memref<5x80x128xbf16, #tpu.memory_space<vmem>>, vector<1x80x128xbf16>
    %16 = vector.shape_cast %15 : vector<1x80x128xbf16> to vector<80x128xbf16>
    %cst_15 = arith.constant dense<0.000000e+00> : vector<64x128xf32>
    %17 = tpu.matmul %14, %16, %cst_15 {dimension_numbers = #tpu.dot_dimension_numbers<[1], [0], [0], [1], [0, 0, 1, 1], [], []>} : vector<64x80xbf16>, vector<80x128xbf16>, vector<64x128xf32> -> vector<64x128xf32>
    %18 = arith.addf %13, %17 : vector<64x128xf32>
    %c16 = arith.constant 16 : index
    %c0_16 = arith.constant 0 : index
    %19 = vector.load %arg1[%c16, %c0_16] : memref<320x80xbf16, #tpu.memory_space<vmem>>, vector<64x80xbf16>
    %c4 = arith.constant 4 : index
    %c0_17 = arith.constant 0 : index
    %c0_18 = arith.constant 0 : index
    %20 = vector.load %arg2[%c4, %c0_17, %c0_18] : memref<5x80x128xbf16, #tpu.memory_space<vmem>>, vector<1x80x128xbf16>
    %21 = vector.shape_cast %20 : vector<1x80x128xbf16> to vector<80x128xbf16>
    %cst_19 = arith.constant dense<0.000000e+00> : vector<64x128xf32>
    %22 = tpu.matmul %19, %21, %cst_19 {dimension_numbers = #tpu.dot_dimension_numbers<[1], [0], [0], [1], [0, 0, 1, 1], [], []>} : vector<64x80xbf16>, vector<80x128xbf16>, vector<64x128xf32> -> vector<64x128xf32>
    %23 = arith.addf %18, %22 : vector<64x128xf32>
    %c0_20 = arith.constant 0 : index
    %c0_21 = arith.constant 0 : index
    %24 = vector.load %arg6[%c0_20, %c0_21] : memref<128x128xf32, #tpu.memory_space<vmem>>, vector<64x128xf32>
    tpu.vector_store %arg6[%c0_20, %c0_21], %23 {strides = array<i32>} : memref<128x128xf32, #tpu.memory_space<vmem>>, vector<64x128xf32>,
    %c160 = arith.constant 160 : index
    %c0_22 = arith.constant 0 : index
    %25 = vector.load %arg1[%c160, %c0_22] : memref<320x80xbf16, #tpu.memory_space<vmem>>, vector<64x80xbf16>
    %c0_23 = arith.constant 0 : index
    %c0_24 = arith.constant 0 : index
    %c0_25 = arith.constant 0 : index
    %26 = vector.load %arg2[%c0_23, %c0_24, %c0_25] : memref<5x80x128xbf16, #tpu.memory_space<vmem>>, vector<1x80x128xbf16>
    %27 = vector.shape_cast %26 : vector<1x80x128xbf16> to vector<80x128xbf16>
    %cst_26 = arith.constant dense<0.000000e+00> : vector<64x128xf32>
    %28 = tpu.matmul %25, %27, %cst_26 {dimension_numbers = #tpu.dot_dimension_numbers<[1], [0], [0], [1], [0, 0, 1, 1], [], []>} : vector<64x80xbf16>, vector<80x128xbf16>, vector<64x128xf32> -> vector<64x128xf32>
    %c240 = arith.constant 240 : index
    %c0_27 = arith.constant 0 : index
    %29 = vector.load %arg1[%c240, %c0_27] : memref<320x80xbf16, #tpu.memory_space<vmem>>, vector<64x80xbf16>
    %c1_28 = arith.constant 1 : index
    %c0_29 = arith.constant 0 : index
    %c0_30 = arith.constant 0 : index
    %30 = vector.load %arg2[%c1_28, %c0_29, %c0_30] : memref<5x80x128xbf16, #tpu.memory_space<vmem>>, vector<1x80x128xbf16>
    %31 = vector.shape_cast %30 : vector<1x80x128xbf16> to vector<80x128xbf16>
    %cst_31 = arith.constant dense<0.000000e+00> : vector<64x128xf32>
    %32 = tpu.matmul %29, %31, %cst_31 {dimension_numbers = #tpu.dot_dimension_numbers<[1], [0], [0], [1], [0, 0, 1, 1], [], []>} : vector<64x80xbf16>, vector<80x128xbf16>, vector<64x128xf32> -> vector<64x128xf32>
    %33 = arith.addf %28, %32 : vector<64x128xf32>
    %c168 = arith.constant 168 : index
    %c0_32 = arith.constant 0 : index
    %34 = vector.load %arg1[%c168, %c0_32] : memref<320x80xbf16, #tpu.memory_space<vmem>>, vector<64x80xbf16>
    %c2_33 = arith.constant 2 : index
    %c0_34 = arith.constant 0 : index
    %c0_35 = arith.constant 0 : index
    %35 = vector.load %arg2[%c2_33, %c0_34, %c0_35] : memref<5x80x128xbf16, #tpu.memory_space<vmem>>, vector<1x80x128xbf16>
    %36 = vector.shape_cast %35 : vector<1x80x128xbf16> to vector<80x128xbf16>
    %cst_36 = arith.constant dense<0.000000e+00> : vector<64x128xf32>
    %37 = tpu.matmul %34, %36, %cst_36 {dimension_numbers = #tpu.dot_dimension_numbers<[1], [0], [0], [1], [0, 0, 1, 1], [], []>} : vector<64x80xbf16>, vector<80x128xbf16>, vector<64x128xf32> -> vector<64x128xf32>
    %38 = arith.addf %33, %37 : vector<64x128xf32>
    %c248 = arith.constant 248 : index
    %c0_37 = arith.constant 0 : index
    %39 = vector.load %arg1[%c248, %c0_37] : memref<320x80xbf16, #tpu.memory_space<vmem>>, vector<64x80xbf16>
    %c3_38 = arith.constant 3 : index
    %c0_39 = arith.constant 0 : index
    %c0_40 = arith.constant 0 : index
    %40 = vector.load %arg2[%c3_38, %c0_39, %c0_40] : memref<5x80x128xbf16, #tpu.memory_space<vmem>>, vector<1x80x128xbf16>
    %41 = vector.shape_cast %40 : vector<1x80x128xbf16> to vector<80x128xbf16>
    %cst_41 = arith.constant dense<0.000000e+00> : vector<64x128xf32>
    %42 = tpu.matmul %39, %41, %cst_41 {dimension_numbers = #tpu.dot_dimension_numbers<[1], [0], [0], [1], [0, 0, 1, 1], [], []>} : vector<64x80xbf16>, vector<80x128xbf16>, vector<64x128xf32> -> vector<64x128xf32>
    %43 = arith.addf %38, %42 : vector<64x128xf32>
    %c176 = arith.constant 176 : index
    %c0_42 = arith.constant 0 : index
    %44 = vector.load %arg1[%c176, %c0_42] : memref<320x80xbf16, #tpu.memory_space<vmem>>, vector<64x80xbf16>
    %c4_43 = arith.constant 4 : index
    %c0_44 = arith.constant 0 : index
    %c0_45 = arith.constant 0 : index
    %45 = vector.load %arg2[%c4_43, %c0_44, %c0_45] : memref<5x80x128xbf16, #tpu.memory_space<vmem>>, vector<1x80x128xbf16>
    %46 = vector.shape_cast %45 : vector<1x80x128xbf16> to vector<80x128xbf16>
    %cst_46 = arith.constant dense<0.000000e+00> : vector<64x128xf32>
    %47 = tpu.matmul %44, %46, %cst_46 {dimension_numbers = #tpu.dot_dimension_numbers<[1], [0], [0], [1], [0, 0, 1, 1], [], []>} : vector<64x80xbf16>, vector<80x128xbf16>, vector<64x128xf32> -> vector<64x128xf32>
    %48 = arith.addf %43, %47 : vector<64x128xf32>
    %c64 = arith.constant 64 : index
    %c0_47 = arith.constant 0 : index
    %49 = vector.load %arg6[%c64, %c0_47] : memref<128x128xf32, #tpu.memory_space<vmem>>, vector<64x128xf32>
    tpu.vector_store %arg6[%c64, %c0_47], %48 {strides = array<i32>} : memref<128x128xf32, #tpu.memory_space<vmem>>, vector<64x128xf32>,
    %c0_48 = arith.constant 0 : index
    %c0_49 = arith.constant 0 : index
    %50 = vector.load %arg6[%c0_48, %c0_49] : memref<128x128xf32, #tpu.memory_space<vmem>>, vector<128x128xf32>
    %cst_50 = arith.constant dense<0.000000e+00> : vector<128xf32>
    %51 = vector.multi_reduction <add>, %50, %cst_50 [0] : vector<128x128xf32> to vector<128xf32>
    %52 = vector.shape_cast %51 : vector<128xf32> to vector<1x128xf32>
    %cst_51 = arith.constant 1.280000e+02 : f32
    %53 = vector.broadcast %cst_51 : f32 to vector<1x128xf32>
    %54 = arith.divf %52, %53 : vector<1x128xf32>
    %55 = vector.broadcast %54 : vector<1x128xf32> to vector<128x128xf32>
    %56 = arith.subf %50, %55 : vector<128x128xf32>
    %57 = arith.mulf %56, %56 : vector<128x128xf32>
    %cst_52 = arith.constant dense<0.000000e+00> : vector<128xf32>
    %58 = vector.multi_reduction <add>, %57, %cst_52 [0] : vector<128x128xf32> to vector<128xf32>
    %59 = vector.shape_cast %58 : vector<128xf32> to vector<1x128xf32>
    %cst_53 = arith.constant 1.280000e+02 : f32
    %60 = vector.broadcast %cst_53 : f32 to vector<1x128xf32>
    %61 = arith.divf %59, %60 : vector<1x128xf32>
    %c0_54 = arith.constant 0 : index
    %c0_55 = arith.constant 0 : index
    %62 = vector.load %arg3[%c0_54, %c0_55] : memref<1x128xf32, #tpu.memory_space<vmem>>, vector<1x128xf32>
    %cst_56 = arith.constant 9.99999974E-6 : f32
    %63 = vector.broadcast %cst_56 : f32 to vector<1x128xf32>
    %64 = arith.addf %61, %63 : vector<1x128xf32>
    %65 = math.rsqrt %64 : vector<1x128xf32>
    %66 = arith.mulf %62, %65 : vector<1x128xf32>
    %67 = vector.broadcast %66 : vector<1x128xf32> to vector<128x128xf32>
    %68 = arith.mulf %56, %67 : vector<128x128xf32>
    %c0_57 = arith.constant 0 : index
    %c0_58 = arith.constant 0 : index
    %69 = vector.load %arg4[%c0_57, %c0_58] : memref<1x128xf32, #tpu.memory_space<vmem>>, vector<1x128xf32>
    %70 = vector.broadcast %69 : vector<1x128xf32> to vector<128x128xf32>
    %71 = arith.addf %68, %70 : vector<128x128xf32>
    %cst_59 = arith.constant 0.000000e+00 : f32
    %72 = vector.broadcast %cst_59 : f32 to vector<128x128xf32>
    %73 = arith.cmpf oge, %71, %72 : vector<128x128xf32>
    %cst_60 = arith.constant 2.000000e-01 : f32
    %74 = vector.broadcast %cst_60 : f32 to vector<128x128xf32>
    %75 = arith.mulf %74, %71 : vector<128x128xf32>
    %76 = arith.select %73, %71, %75 : vector<128x128xi1>, vector<128x128xf32>
    %77 = arith.truncf %76 : vector<128x128xf32> to vector<128x128xbf16>
    %c0_61 = arith.constant 0 : index
    %c0_62 = arith.constant 0 : index
    %78 = vector.load %arg5[%c0_61, %c0_62] : memref<128x128xbf16, #tpu.memory_space<vmem>>, vector<128x128xbf16>
    tpu.vector_store %arg5[%c0_61, %c0_62], %77 {strides = array<i32>} : memref<128x128xbf16, #tpu.memory_space<vmem>>, vector<128x128xbf16>,
    return
  }
  func.func @transform_0(%arg0: i32) -> (i32, i32) {
    %c0_i32 = arith.constant 0 : i32
    %c0_i32_0 = arith.constant 0 : i32
    return %arg0, %c0_i32 : i32, i32
  }
  func.func @transform_1(%arg0: i32) -> (i32, i32, i32) {
    %c0_i32 = arith.constant 0 : i32
    %c0_i32_0 = arith.constant 0 : i32
    %c0_i32_1 = arith.constant 0 : i32
    %c0_i32_2 = arith.constant 0 : i32
    return %c0_i32, %c0_i32_0, %c0_i32_1 : i32, i32, i32
  }
  func.func @transform_2(%arg0: i32) -> (i32, i32) {
    %c0_i32 = arith.constant 0 : i32
    %c0_i32_0 = arith.constant 0 : i32
    %c0_i32_1 = arith.constant 0 : i32
    return %c0_i32, %c0_i32_0 : i32, i32
  }
  func.func @transform_3(%arg0: i32) -> (i32, i32) {
    %c0_i32 = arith.constant 0 : i32
    %c0_i32_0 = arith.constant 0 : i32
    %c0_i32_1 = arith.constant 0 : i32
    return %c0_i32, %c0_i32_0 : i32, i32
  }
  func.func @transform_4(%arg0: i32) -> (i32, i32) {
    %c0_i32 = arith.constant 0 : i32
    %c0_i32_0 = arith.constant 0 : i32
    return %arg0, %c0_i32 : i32, i32
  }
}

module attributes {stable_mosaic.version = 11 : i64} {
  func.func @_conv_block_kernel(%arg0: i32, %arg1: memref<96x160xbf16, #tpu.memory_space<vmem>>, %arg2: memref<5x160x128xbf16, #tpu.memory_space<vmem>>, %arg3: memref<1x128xf32, #tpu.memory_space<vmem>>, %arg4: memref<1x128xf32, #tpu.memory_space<vmem>>, %arg5: memref<32x128xbf16, #tpu.memory_space<vmem>>, %arg6: memref<32x128xf32, #tpu.memory_space<vmem>>) attributes {dimension_semantics = [#tpu.dimension_semantics<arbitrary>], iteration_bounds = array<i64: 1>, scalar_prefetch = 0 : i64, scratch_operands = 1 : i64, tpu.core_type = #tpu.core_type<tc>, window_params = [{transform_indices = @transform_0, window_bounds = array<i64: 96, 160>}, {pipeline_mode = #tpu.pipeline_mode<synchronous>, transform_indices = @transform_1, window_bounds = array<i64: 5, 160, 128>}, {pipeline_mode = #tpu.pipeline_mode<synchronous>, transform_indices = @transform_2, window_bounds = array<i64: 1, 128>}, {pipeline_mode = #tpu.pipeline_mode<synchronous>, transform_indices = @transform_3, window_bounds = array<i64: 1, 128>}, {transform_indices = @transform_4, window_bounds = array<i64: 32, 128>}]} {
    %c0 = arith.constant 0 : index
    %c0_0 = arith.constant 0 : index
    %0 = vector.load %arg1[%c0, %c0_0] : memref<96x160xbf16, #tpu.memory_space<vmem>>, vector<16x160xbf16>
    %c0_1 = arith.constant 0 : index
    %c0_2 = arith.constant 0 : index
    %c0_3 = arith.constant 0 : index
    %1 = vector.load %arg2[%c0_1, %c0_2, %c0_3] : memref<5x160x128xbf16, #tpu.memory_space<vmem>>, vector<1x160x128xbf16>
    %2 = vector.shape_cast %1 : vector<1x160x128xbf16> to vector<160x128xbf16>
    %cst = arith.constant dense<0.000000e+00> : vector<16x128xf32>
    %3 = tpu.matmul %0, %2, %cst {dimension_numbers = #tpu.dot_dimension_numbers<[1], [0], [0], [1], [0, 0, 1, 1], [], []>} : vector<16x160xbf16>, vector<160x128xbf16>, vector<16x128xf32> -> vector<16x128xf32>
    %c24 = arith.constant 24 : index
    %c0_4 = arith.constant 0 : index
    %4 = vector.load %arg1[%c24, %c0_4] : memref<96x160xbf16, #tpu.memory_space<vmem>>, vector<16x160xbf16>
    %c1 = arith.constant 1 : index
    %c0_5 = arith.constant 0 : index
    %c0_6 = arith.constant 0 : index
    %5 = vector.load %arg2[%c1, %c0_5, %c0_6] : memref<5x160x128xbf16, #tpu.memory_space<vmem>>, vector<1x160x128xbf16>
    %6 = vector.shape_cast %5 : vector<1x160x128xbf16> to vector<160x128xbf16>
    %cst_7 = arith.constant dense<0.000000e+00> : vector<16x128xf32>
    %7 = tpu.matmul %4, %6, %cst_7 {dimension_numbers = #tpu.dot_dimension_numbers<[1], [0], [0], [1], [0, 0, 1, 1], [], []>} : vector<16x160xbf16>, vector<160x128xbf16>, vector<16x128xf32> -> vector<16x128xf32>
    %8 = arith.addf %3, %7 : vector<16x128xf32>
    %c4 = arith.constant 4 : index
    %c0_8 = arith.constant 0 : index
    %9 = vector.load %arg1[%c4, %c0_8] : memref<96x160xbf16, #tpu.memory_space<vmem>>, vector<16x160xbf16>
    %c2 = arith.constant 2 : index
    %c0_9 = arith.constant 0 : index
    %c0_10 = arith.constant 0 : index
    %10 = vector.load %arg2[%c2, %c0_9, %c0_10] : memref<5x160x128xbf16, #tpu.memory_space<vmem>>, vector<1x160x128xbf16>
    %11 = vector.shape_cast %10 : vector<1x160x128xbf16> to vector<160x128xbf16>
    %cst_11 = arith.constant dense<0.000000e+00> : vector<16x128xf32>
    %12 = tpu.matmul %9, %11, %cst_11 {dimension_numbers = #tpu.dot_dimension_numbers<[1], [0], [0], [1], [0, 0, 1, 1], [], []>} : vector<16x160xbf16>, vector<160x128xbf16>, vector<16x128xf32> -> vector<16x128xf32>
    %13 = arith.addf %8, %12 : vector<16x128xf32>
    %c28 = arith.constant 28 : index
    %c0_12 = arith.constant 0 : index
    %14 = vector.load %arg1[%c28, %c0_12] : memref<96x160xbf16, #tpu.memory_space<vmem>>, vector<16x160xbf16>
    %c3 = arith.constant 3 : index
    %c0_13 = arith.constant 0 : index
    %c0_14 = arith.constant 0 : index
    %15 = vector.load %arg2[%c3, %c0_13, %c0_14] : memref<5x160x128xbf16, #tpu.memory_space<vmem>>, vector<1x160x128xbf16>
    %16 = vector.shape_cast %15 : vector<1x160x128xbf16> to vector<160x128xbf16>
    %cst_15 = arith.constant dense<0.000000e+00> : vector<16x128xf32>
    %17 = tpu.matmul %14, %16, %cst_15 {dimension_numbers = #tpu.dot_dimension_numbers<[1], [0], [0], [1], [0, 0, 1, 1], [], []>} : vector<16x160xbf16>, vector<160x128xbf16>, vector<16x128xf32> -> vector<16x128xf32>
    %18 = arith.addf %13, %17 : vector<16x128xf32>
    %c8 = arith.constant 8 : index
    %c0_16 = arith.constant 0 : index
    %19 = vector.load %arg1[%c8, %c0_16] : memref<96x160xbf16, #tpu.memory_space<vmem>>, vector<16x160xbf16>
    %c4_17 = arith.constant 4 : index
    %c0_18 = arith.constant 0 : index
    %c0_19 = arith.constant 0 : index
    %20 = vector.load %arg2[%c4_17, %c0_18, %c0_19] : memref<5x160x128xbf16, #tpu.memory_space<vmem>>, vector<1x160x128xbf16>
    %21 = vector.shape_cast %20 : vector<1x160x128xbf16> to vector<160x128xbf16>
    %cst_20 = arith.constant dense<0.000000e+00> : vector<16x128xf32>
    %22 = tpu.matmul %19, %21, %cst_20 {dimension_numbers = #tpu.dot_dimension_numbers<[1], [0], [0], [1], [0, 0, 1, 1], [], []>} : vector<16x160xbf16>, vector<160x128xbf16>, vector<16x128xf32> -> vector<16x128xf32>
    %23 = arith.addf %18, %22 : vector<16x128xf32>
    %c0_21 = arith.constant 0 : index
    %c0_22 = arith.constant 0 : index
    %24 = vector.load %arg6[%c0_21, %c0_22] : memref<32x128xf32, #tpu.memory_space<vmem>>, vector<16x128xf32>
    tpu.vector_store %arg6[%c0_21, %c0_22], %23 {strides = array<i32>} : memref<32x128xf32, #tpu.memory_space<vmem>>, vector<16x128xf32>,
    %c48 = arith.constant 48 : index
    %c0_23 = arith.constant 0 : index
    %25 = vector.load %arg1[%c48, %c0_23] : memref<96x160xbf16, #tpu.memory_space<vmem>>, vector<16x160xbf16>
    %c0_24 = arith.constant 0 : index
    %c0_25 = arith.constant 0 : index
    %c0_26 = arith.constant 0 : index
    %26 = vector.load %arg2[%c0_24, %c0_25, %c0_26] : memref<5x160x128xbf16, #tpu.memory_space<vmem>>, vector<1x160x128xbf16>
    %27 = vector.shape_cast %26 : vector<1x160x128xbf16> to vector<160x128xbf16>
    %cst_27 = arith.constant dense<0.000000e+00> : vector<16x128xf32>
    %28 = tpu.matmul %25, %27, %cst_27 {dimension_numbers = #tpu.dot_dimension_numbers<[1], [0], [0], [1], [0, 0, 1, 1], [], []>} : vector<16x160xbf16>, vector<160x128xbf16>, vector<16x128xf32> -> vector<16x128xf32>
    %c72 = arith.constant 72 : index
    %c0_28 = arith.constant 0 : index
    %29 = vector.load %arg1[%c72, %c0_28] : memref<96x160xbf16, #tpu.memory_space<vmem>>, vector<16x160xbf16>
    %c1_29 = arith.constant 1 : index
    %c0_30 = arith.constant 0 : index
    %c0_31 = arith.constant 0 : index
    %30 = vector.load %arg2[%c1_29, %c0_30, %c0_31] : memref<5x160x128xbf16, #tpu.memory_space<vmem>>, vector<1x160x128xbf16>
    %31 = vector.shape_cast %30 : vector<1x160x128xbf16> to vector<160x128xbf16>
    %cst_32 = arith.constant dense<0.000000e+00> : vector<16x128xf32>
    %32 = tpu.matmul %29, %31, %cst_32 {dimension_numbers = #tpu.dot_dimension_numbers<[1], [0], [0], [1], [0, 0, 1, 1], [], []>} : vector<16x160xbf16>, vector<160x128xbf16>, vector<16x128xf32> -> vector<16x128xf32>
    %33 = arith.addf %28, %32 : vector<16x128xf32>
    %c52 = arith.constant 52 : index
    %c0_33 = arith.constant 0 : index
    %34 = vector.load %arg1[%c52, %c0_33] : memref<96x160xbf16, #tpu.memory_space<vmem>>, vector<16x160xbf16>
    %c2_34 = arith.constant 2 : index
    %c0_35 = arith.constant 0 : index
    %c0_36 = arith.constant 0 : index
    %35 = vector.load %arg2[%c2_34, %c0_35, %c0_36] : memref<5x160x128xbf16, #tpu.memory_space<vmem>>, vector<1x160x128xbf16>
    %36 = vector.shape_cast %35 : vector<1x160x128xbf16> to vector<160x128xbf16>
    %cst_37 = arith.constant dense<0.000000e+00> : vector<16x128xf32>
    %37 = tpu.matmul %34, %36, %cst_37 {dimension_numbers = #tpu.dot_dimension_numbers<[1], [0], [0], [1], [0, 0, 1, 1], [], []>} : vector<16x160xbf16>, vector<160x128xbf16>, vector<16x128xf32> -> vector<16x128xf32>
    %38 = arith.addf %33, %37 : vector<16x128xf32>
    %c76 = arith.constant 76 : index
    %c0_38 = arith.constant 0 : index
    %39 = vector.load %arg1[%c76, %c0_38] : memref<96x160xbf16, #tpu.memory_space<vmem>>, vector<16x160xbf16>
    %c3_39 = arith.constant 3 : index
    %c0_40 = arith.constant 0 : index
    %c0_41 = arith.constant 0 : index
    %40 = vector.load %arg2[%c3_39, %c0_40, %c0_41] : memref<5x160x128xbf16, #tpu.memory_space<vmem>>, vector<1x160x128xbf16>
    %41 = vector.shape_cast %40 : vector<1x160x128xbf16> to vector<160x128xbf16>
    %cst_42 = arith.constant dense<0.000000e+00> : vector<16x128xf32>
    %42 = tpu.matmul %39, %41, %cst_42 {dimension_numbers = #tpu.dot_dimension_numbers<[1], [0], [0], [1], [0, 0, 1, 1], [], []>} : vector<16x160xbf16>, vector<160x128xbf16>, vector<16x128xf32> -> vector<16x128xf32>
    %43 = arith.addf %38, %42 : vector<16x128xf32>
    %c56 = arith.constant 56 : index
    %c0_43 = arith.constant 0 : index
    %44 = vector.load %arg1[%c56, %c0_43] : memref<96x160xbf16, #tpu.memory_space<vmem>>, vector<16x160xbf16>
    %c4_44 = arith.constant 4 : index
    %c0_45 = arith.constant 0 : index
    %c0_46 = arith.constant 0 : index
    %45 = vector.load %arg2[%c4_44, %c0_45, %c0_46] : memref<5x160x128xbf16, #tpu.memory_space<vmem>>, vector<1x160x128xbf16>
    %46 = vector.shape_cast %45 : vector<1x160x128xbf16> to vector<160x128xbf16>
    %cst_47 = arith.constant dense<0.000000e+00> : vector<16x128xf32>
    %47 = tpu.matmul %44, %46, %cst_47 {dimension_numbers = #tpu.dot_dimension_numbers<[1], [0], [0], [1], [0, 0, 1, 1], [], []>} : vector<16x160xbf16>, vector<160x128xbf16>, vector<16x128xf32> -> vector<16x128xf32>
    %48 = arith.addf %43, %47 : vector<16x128xf32>
    %c16 = arith.constant 16 : index
    %c0_48 = arith.constant 0 : index
    %49 = vector.load %arg6[%c16, %c0_48] : memref<32x128xf32, #tpu.memory_space<vmem>>, vector<16x128xf32>
    tpu.vector_store %arg6[%c16, %c0_48], %48 {strides = array<i32>} : memref<32x128xf32, #tpu.memory_space<vmem>>, vector<16x128xf32>,
    %c0_49 = arith.constant 0 : index
    %c0_50 = arith.constant 0 : index
    %50 = vector.load %arg6[%c0_49, %c0_50] : memref<32x128xf32, #tpu.memory_space<vmem>>, vector<32x128xf32>
    %cst_51 = arith.constant dense<0.000000e+00> : vector<128xf32>
    %51 = vector.multi_reduction <add>, %50, %cst_51 [0] : vector<32x128xf32> to vector<128xf32>
    %52 = vector.shape_cast %51 : vector<128xf32> to vector<1x128xf32>
    %cst_52 = arith.constant 3.200000e+01 : f32
    %53 = vector.broadcast %cst_52 : f32 to vector<1x128xf32>
    %54 = arith.divf %52, %53 : vector<1x128xf32>
    %55 = vector.broadcast %54 : vector<1x128xf32> to vector<32x128xf32>
    %56 = arith.subf %50, %55 : vector<32x128xf32>
    %57 = arith.mulf %56, %56 : vector<32x128xf32>
    %cst_53 = arith.constant dense<0.000000e+00> : vector<128xf32>
    %58 = vector.multi_reduction <add>, %57, %cst_53 [0] : vector<32x128xf32> to vector<128xf32>
    %59 = vector.shape_cast %58 : vector<128xf32> to vector<1x128xf32>
    %cst_54 = arith.constant 3.200000e+01 : f32
    %60 = vector.broadcast %cst_54 : f32 to vector<1x128xf32>
    %61 = arith.divf %59, %60 : vector<1x128xf32>
    %c0_55 = arith.constant 0 : index
    %c0_56 = arith.constant 0 : index
    %62 = vector.load %arg3[%c0_55, %c0_56] : memref<1x128xf32, #tpu.memory_space<vmem>>, vector<1x128xf32>
    %cst_57 = arith.constant 9.99999974E-6 : f32
    %63 = vector.broadcast %cst_57 : f32 to vector<1x128xf32>
    %64 = arith.addf %61, %63 : vector<1x128xf32>
    %65 = math.rsqrt %64 : vector<1x128xf32>
    %66 = arith.mulf %62, %65 : vector<1x128xf32>
    %67 = vector.broadcast %66 : vector<1x128xf32> to vector<32x128xf32>
    %68 = arith.mulf %56, %67 : vector<32x128xf32>
    %c0_58 = arith.constant 0 : index
    %c0_59 = arith.constant 0 : index
    %69 = vector.load %arg4[%c0_58, %c0_59] : memref<1x128xf32, #tpu.memory_space<vmem>>, vector<1x128xf32>
    %70 = vector.broadcast %69 : vector<1x128xf32> to vector<32x128xf32>
    %71 = arith.addf %68, %70 : vector<32x128xf32>
    %cst_60 = arith.constant 0.000000e+00 : f32
    %72 = vector.broadcast %cst_60 : f32 to vector<32x128xf32>
    %73 = arith.cmpf oge, %71, %72 : vector<32x128xf32>
    %cst_61 = arith.constant 2.000000e-01 : f32
    %74 = vector.broadcast %cst_61 : f32 to vector<32x128xf32>
    %75 = arith.mulf %74, %71 : vector<32x128xf32>
    %76 = arith.select %73, %71, %75 : vector<32x128xi1>, vector<32x128xf32>
    %77 = arith.truncf %76 : vector<32x128xf32> to vector<32x128xbf16>
    %c0_62 = arith.constant 0 : index
    %c0_63 = arith.constant 0 : index
    %78 = vector.load %arg5[%c0_62, %c0_63] : memref<32x128xbf16, #tpu.memory_space<vmem>>, vector<32x128xbf16>
    tpu.vector_store %arg5[%c0_62, %c0_63], %77 {strides = array<i32>} : memref<32x128xbf16, #tpu.memory_space<vmem>>, vector<32x128xbf16>,
    return
  }
  func.func @transform_0(%arg0: i32) -> (i32, i32) {
    %c0_i32 = arith.constant 0 : i32
    %c0_i32_0 = arith.constant 0 : i32
    return %arg0, %c0_i32 : i32, i32
  }
  func.func @transform_1(%arg0: i32) -> (i32, i32, i32) {
    %c0_i32 = arith.constant 0 : i32
    %c0_i32_0 = arith.constant 0 : i32
    %c0_i32_1 = arith.constant 0 : i32
    %c0_i32_2 = arith.constant 0 : i32
    return %c0_i32, %c0_i32_0, %c0_i32_1 : i32, i32, i32
  }
  func.func @transform_2(%arg0: i32) -> (i32, i32) {
    %c0_i32 = arith.constant 0 : i32
    %c0_i32_0 = arith.constant 0 : i32
    %c0_i32_1 = arith.constant 0 : i32
    return %c0_i32, %c0_i32_0 : i32, i32
  }
  func.func @transform_3(%arg0: i32) -> (i32, i32) {
    %c0_i32 = arith.constant 0 : i32
    %c0_i32_0 = arith.constant 0 : i32
    %c0_i32_1 = arith.constant 0 : i32
    return %c0_i32, %c0_i32_0 : i32, i32
  }
  func.func @transform_4(%arg0: i32) -> (i32, i32) {
    %c0_i32 = arith.constant 0 : i32
    %c0_i32_0 = arith.constant 0 : i32
    return %arg0, %c0_i32 : i32, i32
  }
}

module attributes {stable_mosaic.version = 11 : i64} {
  func.func @_head_kernel(%arg0: i32, %arg1: memref<2x2048xbf16, #tpu.memory_space<vmem>>, %arg2: memref<2048x128xbf16, #tpu.memory_space<vmem>>, %arg3: memref<1x128xf32, #tpu.memory_space<vmem>>, %arg4: memref<2x128xf32, #tpu.memory_space<vmem>>) attributes {dimension_semantics = [#tpu.dimension_semantics<arbitrary>], iteration_bounds = array<i64: 1>, scalar_prefetch = 0 : i64, scratch_operands = 0 : i64, tpu.core_type = #tpu.core_type<tc>, window_params = [{pipeline_mode = #tpu.pipeline_mode<synchronous>, transform_indices = @transform_0, window_bounds = array<i64: 2, 2048>}, {pipeline_mode = #tpu.pipeline_mode<synchronous>, transform_indices = @transform_1, window_bounds = array<i64: 2048, 128>}, {pipeline_mode = #tpu.pipeline_mode<synchronous>, transform_indices = @transform_2, window_bounds = array<i64: 1, 128>}, {pipeline_mode = #tpu.pipeline_mode<synchronous>, transform_indices = @transform_3, window_bounds = array<i64: 2, 128>}]} {
    %c0 = arith.constant 0 : index
    %c0_0 = arith.constant 0 : index
    %0 = vector.load %arg1[%c0, %c0_0] : memref<2x2048xbf16, #tpu.memory_space<vmem>>, vector<2x2048xbf16>
    %c0_1 = arith.constant 0 : index
    %c0_2 = arith.constant 0 : index
    %1 = vector.load %arg2[%c0_1, %c0_2] : memref<2048x128xbf16, #tpu.memory_space<vmem>>, vector<2048x128xbf16>
    %cst = arith.constant dense<0.000000e+00> : vector<2x128xf32>
    %2 = tpu.matmul %0, %1, %cst {dimension_numbers = #tpu.dot_dimension_numbers<[1], [0], [0], [1], [0, 0, 1, 1], [], []>} : vector<2x2048xbf16>, vector<2048x128xbf16>, vector<2x128xf32> -> vector<2x128xf32>
    %c0_3 = arith.constant 0 : index
    %c0_4 = arith.constant 0 : index
    %3 = vector.load %arg3[%c0_3, %c0_4] : memref<1x128xf32, #tpu.memory_space<vmem>>, vector<1x128xf32>
    %4 = vector.broadcast %3 : vector<1x128xf32> to vector<2x128xf32>
    %5 = arith.addf %2, %4 : vector<2x128xf32>
    %cst_5 = arith.constant 0.000000e+00 : f32
    %6 = vector.broadcast %cst_5 : f32 to vector<2x128xf32>
    %7 = arith.subf %6, %5 : vector<2x128xf32>
    %8 = math.exp %7 : vector<2x128xf32>
    %cst_6 = arith.constant 1.000000e+00 : f32
    %9 = vector.broadcast %cst_6 : f32 to vector<2x128xf32>
    %10 = arith.addf %9, %8 : vector<2x128xf32>
    %11 = tpu.reciprocal %10 {approx = true} : vector<2x128xf32> -> vector<2x128xf32>
    %c0_7 = arith.constant 0 : index
    %c0_8 = arith.constant 0 : index
    %12 = vector.load %arg4[%c0_7, %c0_8] : memref<2x128xf32, #tpu.memory_space<vmem>>, vector<2x128xf32>
    tpu.vector_store %arg4[%c0_7, %c0_8], %11 {strides = array<i32>} : memref<2x128xf32, #tpu.memory_space<vmem>>, vector<2x128xf32>,
    return
  }
  func.func @transform_0(%arg0: i32) -> (i32, i32) {
    %c0_i32 = arith.constant 0 : i32
    %c0_i32_0 = arith.constant 0 : i32
    %c0_i32_1 = arith.constant 0 : i32
    return %c0_i32, %c0_i32_0 : i32, i32
  }
  func.func @transform_1(%arg0: i32) -> (i32, i32) {
    %c0_i32 = arith.constant 0 : i32
    %c0_i32_0 = arith.constant 0 : i32
    %c0_i32_1 = arith.constant 0 : i32
    return %c0_i32, %c0_i32_0 : i32, i32
  }
  func.func @transform_2(%arg0: i32) -> (i32, i32) {
    %c0_i32 = arith.constant 0 : i32
    %c0_i32_0 = arith.constant 0 : i32
    %c0_i32_1 = arith.constant 0 : i32
    return %c0_i32, %c0_i32_0 : i32, i32
  }
  func.func @transform_3(%arg0: i32) -> (i32, i32) {
    %c0_i32 = arith.constant 0 : i32
    %c0_i32_0 = arith.constant 0 : i32
    %c0_i32_1 = arith.constant 0 : i32
    return %c0_i32, %c0_i32_0 : i32, i32
  }
}

</mosaic_0001>

<bundles_post_ra>
// kernel: discriminator_forward.5
= control target key start
LH: loop header
LB: loop body
LE: loop exit
PB: predicated region body
PF: predicated region fallthrough
CT: control target
= control target key end

     0   :  { %s8786_s12 = smov 0   ;;  %s10099_s0 = inlined_call_operand.vmem [shape: bf16[4352,40], index: 0, kind: input, shape index: {}]   ;;  %s10100_s1 = inlined_call_operand.vmem [shape: bf16[5,40,128], index: 1, kind: input, shape index: {}]   ;;  %s10101_s2 = inlined_call_operand.vmem [shape: f32[1,128], index: 2, kind: input, shape index: {}]   ;;  %s10102_s3 = inlined_call_operand.vmem [shape: bf16[2048,128], index: 3, kind: output, shape index: {}]  }
   0x1 LB: > { %s6353_s13 = sadd.s32 4294967295, %s8764_s12   ;;  %p6357_p0 = scmp.ge.s32.totalorder %s8764_s12, 1  ;;  %s8764_s12 = sphi %s8786_s12, %s13_s12  }
   0x2   : > { %p138_p1 = scmp.lt.s32.totalorder %s8764_s12, 3 }
   0x4   : > { %p139_p2 = pnand %p6357_p0, %p138_p1 }
   0x6   : > { %142 = sbr.rel (%p139_p2) target bundleno = 1446 (0x5a6), region = 32 }
   0xb   : > { %v6365_v0 = vld [vmem:[%s10100_s1 + $0x24] sm:$0xf]  ;;  %s162_s16 = smul.u32 272, %s6353_s13  ;;  %vm970_vm0 = vcmask 1043456   ;;  %v7026_v2 = vld [vmem:[%s10100_s1 + $0x38] sm:$0xf] }
   0xc   : > { %v771_v1 = vunpack.c.l.b16 %v6365_v0  ;;  %v7359_v3 = vld [vmem:[%s10100_s1 + $0x4c] sm:$0xf]  ;;  %v2625_v6 = vunpack.c.l.b16 %v7026_v2  ;;  %v307_v8 = vld [vmem:[%s10100_s1 + $0x10] sm:$0xf]  ;;  %v7692_v9 = vld [vmem:[%s10100_s1 + $0x60] sm:$0xf] }
   0xd   : > { %p163_p3 = scmp.lt.s32.totalorder %s162_s16, 543  ;;  %v3746_v7 = vunpack.c.l.b16 %v7359_v3  ;;  %v8154_v10 = vld [vmem:[%s10100_s1 + $0x1c] sm:$0xff]  ;;  %v1632_v11 = vunpack.c.l.b16 %v307_v8  ;;  %v4867_v12 = vunpack.c.l.b16 %v7692_v9  ;;  %v8153_v15 = vld [vmem:[%s10100_s1 + $0x14] sm:$0xff]  ;;  %vm777_vm1 = vcmask 326656   ;;  %v8286_v39 = vld [vmem:[%s10100_s1 + $0x44] sm:$0xff]  ;;  %s6359_s24 = sshll.u32 %s6353_s13, 7 }
   0xe   : > { %v774_v4 = vpack.c.b16 %v771_v1, %v771_v1  ;;  %v2628_v13 = vpack.c.b16 %v2625_v6, %v2625_v6  ;;  %v8220_v38 = vld [vmem:[%s10100_s1 + $0x30] sm:$0xff]  ;;  %v8088_v40 = vld [vmem:[%s10100_s1 + $0x8] sm:$0xff]  ;;  %v8352_v45 = vld [vmem:[%s10100_s1 + $0x58] sm:$0xff]  ;;  %p169_p4 = scmp.lt.s32.totalorder %s6359_s24, 255 }
   0xf   : > { %s10276_s16 = smov (!%p163_p3, %s162_s16), 543  ;;  %v3749_v14 = vpack.c.b16 %v3746_v7, %v3746_v7  ;;  %v1635_v16 = vpack.c.b16 %v1632_v11, %v1632_v11  ;;  %v4870_v17 = vpack.c.b16 %v4867_v12, %v4867_v12  ;;  %v8219_v8 = vld [vmem:[%s10100_s1 + $0x28] sm:$0xff]  ;;  %v8285_v12 = vld [vmem:[%s10100_s1 + $0x3c] sm:$0xff] }
  0x10   : > { %v972_v5 = vsel %vm970_vm0, %v774_v4, 0  ;;  %s6358_s27 = sshll.u32 %s10276_s16, 2  ;;  %v2824_v20 = vsel %vm970_vm0, %v2628_v13, 0  ;;  %s10278_s24 = smov (!%p169_p4, %s6359_s24), 255 }
  0x11   : > { %8736 = vmatpush.bf16.msra.mxu1 %v972_v5  ;;  %8737 = vmatpush.bf16.msra.mxu2 %v972_v5  ;;  %s8821_s5 = scalar_lea.vmem %s10099_s0, %s6358_s27  ;;  %v3945_v21 = vsel %vm970_vm0, %v3749_v14, 0  ;;  %v1831_v24 = vsel %vm970_vm0, %v1635_v16, 0  ;;  %v5066_v25 = vsel %vm970_vm0, %v4870_v17, 0  ;;  %v8087_v14 = vld [vmem:[%s10100_s1] sm:$0xff]  ;;  %s6360_s13 = sshll.u32 %s10278_s24, 2 }
  0x12   : > { %8738 = vmatpush.bf16.msra.mxu3 %v972_v5  ;;  %979 = vmatpush.bf16.msra.mxu0 %v972_v5  ;;  %v8105_v18 = vld [vmem:[%s8821_s5 + $0x2a0] sm:$0xff]  ;;  %v8106_v26 = vld [vmem:[%s8821_s5 + $0x2a8] sm:$0xff]  ;;  %v8107_v30 = vld [vmem:[%s8821_s5 + $0x2b0] sm:$0xff]  ;;  %s9330_s29 = scalar_lea.vmem %s10102_s3, %s6360_s13 }
  0x13   : > { %v8121_v19 = vld [vmem:[%s8821_s5 + $0x320] sm:$0xff]  ;;  %v8122_v27 = vld [vmem:[%s8821_s5 + $0x328] sm:$0xff]  ;;  %v8123_v31 = vld [vmem:[%s8821_s5 + $0x330] sm:$0xff] }
  0x14   : > { %v8137_v22 = vld [vmem:[%s8821_s5 + $0x3a0] sm:$0xff]  ;;  %v8138_v28 = vld [vmem:[%s8821_s5 + $0x3a8] sm:$0xff]  ;;  %v8139_v32 = vld [vmem:[%s8821_s5 + $0x3b0] sm:$0xff] }
  0x15   : > { %8739 = vmatpush.bf16.msra.mxu1 %v8154_v10  ;;  %8740 = vmatpush.bf16.msra.mxu2 %v8154_v10  ;;  %v8089_v23 = vld [vmem:[%s8821_s5 + $0x220] sm:$0xff]  ;;  %v8090_v29 = vld [vmem:[%s8821_s5 + $0x228] sm:$0xff]  ;;  %v8091_v33 = vld [vmem:[%s8821_s5 + $0x230] sm:$0xff] }
  0x16   : > { %8741 = vmatpush.bf16.msra.mxu3 %v8154_v10  ;;  %980 = vmatpush.bf16.msra.mxu0 %v8154_v10  ;;  %v8108_v34 = vld [vmem:[%s8821_s5 + $0x2b8] sm:$0xff]  ;;  %v8109_v41 = vld [vmem:[%s8821_s5 + $0x2c0] sm:$0xff]  ;;  %v8110_v46 = vld [vmem:[%s8821_s5 + $0x2c8] sm:$0xff] }
  0x17   : > { %v8124_v35 = vld [vmem:[%s8821_s5 + $0x338] sm:$0xff]  ;;  %v8125_v42 = vld [vmem:[%s8821_s5 + $0x340] sm:$0xff]  ;;  %v8126_v47 = vld [vmem:[%s8821_s5 + $0x348] sm:$0xff] }
  0x18   : > { %v8140_v36 = vld [vmem:[%s8821_s5 + $0x3b8] sm:$0xff]  ;;  %v8141_v43 = vld [vmem:[%s8821_s5 + $0x3c0] sm:$0xff]  ;;  %v8142_v48 = vld [vmem:[%s8821_s5 + $0x3c8] sm:$0xff] }
  0x19   : > { %8742 = vmatpush.bf16.msra.mxu1 %v8153_v15  ;;  %8743 = vmatpush.bf16.msra.mxu2 %v8153_v15  ;;  %v8092_v37 = vld [vmem:[%s8821_s5 + $0x238] sm:$0xff]  ;;  %v8093_v44 = vld [vmem:[%s8821_s5 + $0x240] sm:$0xff]  ;;  %v8094_v49 = vld [vmem:[%s8821_s5 + $0x248] sm:$0xff] }
  0x1a   : > { %8744 = vmatpush.bf16.msra.mxu3 %v8153_v15  ;;  %981 = vmatpush.bf16.msra.mxu0 %v8153_v15  ;;  %v8111_v50 = vld [vmem:[%s8821_s5 + $0x2d0] sm:$0xff]  ;;  %v8112_v54 = vld [vmem:[%s8821_s5 + $0x2d8] sm:$0xff]  ;;  %v8113_v58 = vld [vmem:[%s8821_s5 + $0x2e0] sm:$0xff] }
  0x1b   : > { %v8127_v51 = vld [vmem:[%s8821_s5 + $0x350] sm:$0xff]  ;;  %v8128_v55 = vld [vmem:[%s8821_s5 + $0x358] sm:$0xff]  ;;  %v8129_v59 = vld [vmem:[%s8821_s5 + $0x360] sm:$0xff] }
  0x1c   : > { %6646 = vmatmul.msk.bf16.vlgmr.msra.gmra.mxu1 %vm777_vm1, %v8105_v18  ;;  %6662 = vmatmul.msk.bf16.vlgmr.msra.gmra.mxu2 %vm777_vm1, %v8121_v19  ;;  %v8143_v52 = vld [vmem:[%s8821_s5 + $0x3d0] sm:$0xff]  ;;  %v8144_v56 = vld [vmem:[%s8821_s5 + $0x3d8] sm:$0xff]  ;;  %v8145_v61 = vld [vmem:[%s8821_s5 + $0x3e0] sm:$0xff] }
  0x1d   : > { %2831 = vmatpush.bf16.msrb.mxu2 %v2824_v20  ;;  %6678 = vmatmul.msk.bf16.vlgmr.msra.gmra.mxu3 %vm777_vm1, %v8137_v22  ;;  %v8095_v53 = vld [vmem:[%s8821_s5 + $0x250] sm:$0xff]  ;;  %v8096_v57 = vld [vmem:[%s8821_s5 + $0x258] sm:$0xff]  ;;  %v8097_v62 = vld [vmem:[%s8821_s5 + $0x260] sm:$0xff] }
  0x1e   : > { %3952 = vmatpush.bf16.msrb.mxu3 %v3945_v21  ;;  %6630 = vmatmul.msk.bf16.vlgmr.msra.gmra.mxu0 %vm777_vm1, %v8089_v23  ;;  %v8114_v6 = vld [vmem:[%s8821_s5 + $0x2e8] sm:$0xff]  ;;  %v8351_v18 = vld [vmem:[%s10100_s1 + $0x50] sm:$0xff] }
  0x1f   : > { %1838 = vmatpush.bf16.msrb.mxu1 %v1831_v24  ;;  %5073 = vmatpush.bf16.msrb.mxu0 %v5066_v25  ;;  %v8130_v7 = vld [vmem:[%s8821_s5 + $0x368] sm:$0xff]  ;;  %v8115_v22 = vld [vmem:[%s8821_s5 + $0x2f0] sm:$0xff] }
  0x20   : > { %v8146_v10 = vld [vmem:[%s8821_s5 + $0x3e8] sm:$0xff]  ;;  %v8131_v23 = vld [vmem:[%s8821_s5 + $0x370] sm:$0xff] }
  0x21   : > { %2832 = vmatpush.bf16.msrb.mxu2 %v8220_v38  ;;  %v8098_v11 = vld [vmem:[%s8821_s5 + $0x268] sm:$0xff]  ;;  %v8147_v25 = vld [vmem:[%s8821_s5 + $0x3f0] sm:$0xff]  ;;  %v8100_v38 = vld [vmem:[%s8821_s5 + $0x278] sm:$0xff] }
  0x22   : > { %3953 = vmatpush.bf16.msrb.mxu3 %v8286_v39 }
  0x23   : > { %1839 = vmatpush.bf16.msrb.mxu1 %v8088_v40  ;;  %5074 = vmatpush.bf16.msrb.mxu0 %v8352_v45 }
  0x25   : > { %2833 = vmatpush.bf16.msrb.mxu2 %v8219_v8 }
  0x26   : > { %3954 = vmatpush.bf16.msrb.mxu3 %v8285_v12 }
  0x27   : > { %1840 = vmatpush.bf16.msrb.mxu1 %v8087_v14  ;;  %5075 = vmatpush.bf16.msrb.mxu0 %v8351_v18 }
  0x2c   : > { %6647 = vmatmul.msk.bf16.gmra.mxu1 %vm777_vm1, %v8106_v26  ;;  %6663 = vmatmul.msk.bf16.gmra.mxu2 %vm777_vm1, %v8122_v27  ;;  %v8099_v26 = vld [vmem:[%s8821_s5 + $0x270] sm:$0xff] }
  0x2d   : > { %6679 = vmatmul.msk.bf16.gmra.mxu3 %vm777_vm1, %v8138_v28 }
  0x2e   : > { %6631 = vmatmul.msk.bf16.gmra.mxu0 %vm777_vm1, %v8090_v29 }
  0x3c   : > { %6648 = vmatmul.msk.bf16.gmra.mxu1 %vm777_vm1, %v8107_v30  ;;  %6664 = vmatmul.msk.bf16.gmra.mxu2 %vm777_vm1, %v8123_v31 }
  0x3d   : > { %6680 = vmatmul.msk.bf16.gmra.mxu3 %vm777_vm1, %v8139_v32 }
  0x3e   : > { %6632 = vmatmul.msk.bf16.gmra.mxu0 %vm777_vm1, %v8091_v33 }
  0x4c   : > { %6649 = vmatmul.msk.bf16.gmra.mxu1 %vm777_vm1, %v8108_v34  ;;  %6665 = vmatmul.msk.bf16.gmra.mxu2 %vm777_vm1, %v8124_v35  ;;  %v8116_v34 = vld [vmem:[%s8821_s5 + $0x2f8] sm:$0xff] }
  0x4d   : > { %6681 = vmatmul.msk.bf16.gmra.mxu3 %vm777_vm1, %v8140_v36  ;;  %v8132_v35 = vld [vmem:[%s8821_s5 + $0x378] sm:$0xff] }
  0x4e   : > { %6633 = vmatmul.msk.bf16.gmra.mxu0 %vm777_vm1, %v8092_v37  ;;  %v8148_v37 = vld [vmem:[%s8821_s5 + $0x3f8] sm:$0xff] }
  0x5c   : > { %6650 = vmatmul.msk.bf16.gmra.mxu1 %vm777_vm1, %v8109_v41  ;;  %6666 = vmatmul.msk.bf16.gmra.mxu2 %vm777_vm1, %v8125_v42 }
  0x5d   : > { %6682 = vmatmul.msk.bf16.gmra.mxu3 %vm777_vm1, %v8141_v43 }
  0x5e   : > { %6634 = vmatmul.msk.bf16.gmra.mxu0 %vm777_vm1, %v8093_v44 }
  0x6c   : > { %6651 = vmatmul.msk.bf16.gmra.mxu1 %vm777_vm1, %v8110_v46  ;;  %6667 = vmatmul.msk.bf16.gmra.mxu2 %vm777_vm1, %v8126_v47  ;;  %v8117_v46 = vld [vmem:[%s8821_s5 + $0x300] sm:$0xff] }
  0x6d   : > { %6683 = vmatmul.msk.bf16.gmra.mxu3 %vm777_vm1, %v8142_v48  ;;  %v8133_v47 = vld [vmem:[%s8821_s5 + $0x380] sm:$0xff] }
  0x6e   : > { %6635 = vmatmul.msk.bf16.gmra.mxu0 %vm777_vm1, %v8094_v49  ;;  %v8149_v49 = vld [vmem:[%s8821_s5 + $0x400] sm:$0xff] }
  0x7c   : > { %6652 = vmatmul.msk.bf16.gmra.mxu1 %vm777_vm1, %v8111_v50  ;;  %6668 = vmatmul.msk.bf16.gmra.mxu2 %vm777_vm1, %v8127_v51  ;;  %v8101_v50 = vld [vmem:[%s8821_s5 + $0x280] sm:$0xff] }
  0x7d   : > { %6684 = vmatmul.msk.bf16.gmra.mxu3 %vm777_vm1, %v8143_v52 }
  0x7e   : > { %6636 = vmatmul.msk.bf16.gmra.mxu0 %vm777_vm1, %v8095_v53 }
  0x8c   : > { %6653 = vmatmul.msk.bf16.gmra.mxu1 %vm777_vm1, %v8112_v54  ;;  %6669 = vmatmul.msk.bf16.gmra.mxu2 %vm777_vm1, %v8128_v55 }
  0x8d   : > { %6685 = vmatmul.msk.bf16.gmra.mxu3 %vm777_vm1, %v8144_v56 }
  0x8e   : > { %6637 = vmatmul.msk.bf16.gmra.mxu0 %vm777_vm1, %v8096_v57 }
  0x99   : > { %v8905_v60 = vpop.f32.mrf.mxu1 }
  0x9b   : > { %v8909_v63 = vpop.f32.mrf.mxu0 }
  0x9c   : > { %6654 = vmatmul.msk.bf16.gmra.mxu1 %vm777_vm1, %v8113_v58  ;;  %6670 = vmatmul.msk.bf16.gmra.mxu2 %vm777_vm1, %v8129_v59  ;;  %v8118_v58 = vld [vmem:[%s8821_s5 + $0x308] sm:$0xff] }
  0x9d   : > { %6686 = vmatmul.msk.bf16.gmra.mxu3 %vm777_vm1, %v8145_v61  ;;  %v8134_v59 = vld [vmem:[%s8821_s5 + $0x388] sm:$0xff] }
  0x9e   : > { %6638 = vmatmul.msk.bf16.gmra.mxu0 %vm777_vm1, %v8097_v62  ;;  %v8150_v62 = vld [vmem:[%s8821_s5 + $0x408] sm:$0xff] }
  0x9f   : > { %v8915_v0 = vpop.f32.mrf.mxu2 }
  0xa0   : > { %10103 = vst [vmem:[#allocation2_spill] sm:$0xff] %v8915_v0  ;;  %v8917_v1 = vpop.f32.mrf.mxu3 }
  0xa1   : > { %10104 = vst [vmem:[#allocation3_spill] sm:$0xff] %v8917_v1  ;;  %v8919_v2 = vpop.f32.mrf.mxu1 }
  0xa3   : > { %v8921_v3 = vpop.f32.mrf.mxu0 }
  0xa7   : > { %v8923_v4 = vpop.f32.mrf.mxu2 }
  0xa8   : > { %10105 = vst [vmem:[#allocation4_spill] sm:$0xff] %v8923_v4  ;;  %v8925_v5 = vpop.f32.mrf.mxu3 }
  0xa9   : > { %10106 = vst [vmem:[#allocation5_spill] sm:$0xff] %v8925_v5  ;;  %v8932_v9 = vpop.f32.mrf.mxu1 }
  0xab   : > { %v8939_v13 = vpop.f32.mrf.mxu0 }
  0xac   : > { %6655 = vmatmul.msk.bf16.gmra.mxu1 %vm777_vm1, %v8114_v6  ;;  %6671 = vmatmul.msk.bf16.gmra.mxu2 %vm777_vm1, %v8130_v7  ;;  %v8102_v6 = vld [vmem:[%s8821_s5 + $0x288] sm:$0xff] }
  0xad   : > { %6687 = vmatmul.msk.bf16.gmra.mxu3 %vm777_vm1, %v8146_v10 }
  0xae   : > { %6639 = vmatmul.msk.bf16.gmra.mxu0 %vm777_vm1, %v8098_v11 }
  0xaf   : > { %v8948_v15 = vpop.f32.mrf.mxu2 }
  0xb0   : > { %10107 = vst [vmem:[#allocation6_spill] sm:$0xff] %v8948_v15  ;;  %v8950_v16 = vpop.f32.mrf.mxu3 }
  0xb1   : > { %10108 = vst [vmem:[#allocation7_spill] sm:$0xff] %v8950_v16  ;;  %v8952_v17 = vpop.f32.mrf.mxu1 }
  0xb3   : > { %v8957_v19 = vpop.f32.mrf.mxu0 }
  0xb7   : > { %v8959_v20 = vpop.f32.mrf.mxu2 }
  0xb8   : > { %10109 = vst [vmem:[#allocation8_spill] sm:$0xff] %v8959_v20  ;;  %v8961_v21 = vpop.f32.mrf.mxu3  ;;  %v8028_v20 = vld [vmem:[%s8821_s5 + $0x28] sm:$0xff] }
  0xb9   : > { %10110 = vst [vmem:[#allocation9_spill] sm:$0xff] %v8961_v21  ;;  %v8965_v24 = vpop.f32.mrf.mxu1  ;;  %v8024_v21 = vld [vmem:[%s8821_s5 + $0x8] sm:$0xff] }
  0xbb   : > { %v8969_v27 = vpop.f32.mrf.mxu0 }
  0xbc   : > { %6656 = vmatmul.msk.bf16.gmra.mxu1 %vm777_vm1, %v8115_v22  ;;  %6672 = vmatmul.msk.bf16.gmra.mxu2 %vm777_vm1, %v8131_v23  ;;  %v8119_v22 = vld [vmem:[%s8821_s5 + $0x310] sm:$0xff] }
  0xbd   : > { %6688 = vmatmul.msk.bf16.gmra.mxu3 %vm777_vm1, %v8147_v25  ;;  %v8135_v23 = vld [vmem:[%s8821_s5 + $0x390] sm:$0xff] }
  0xbe   : > { %6640 = vmatmul.msk.bf16.gmra.mxu0 %vm777_vm1, %v8099_v26  ;;  %v8151_v26 = vld [vmem:[%s8821_s5 + $0x410] sm:$0xff] }
  0xbf   : > { %v8975_v28 = vpop.f32.mrf.mxu2 }
  0xc0   : > { %10111 = vst [vmem:[#allocation10_spill] sm:$0xff] %v8975_v28  ;;  %v8977_v29 = vpop.f32.mrf.mxu3 }
  0xc1   : > { %10112 = vst [vmem:[#allocation11_spill] sm:$0xff] %v8977_v29  ;;  %v8979_v30 = vpop.f32.mrf.mxu1 }
  0xc3   : > { %v8981_v31 = vpop.f32.mrf.mxu0 }
  0xc7   : > { %v8983_v32 = vpop.f32.mrf.mxu2 }
  0xc8   : > { %10113 = vst [vmem:[#allocation12_spill] sm:$0xff] %v8983_v32  ;;  %v8985_v33 = vpop.f32.mrf.mxu3 }
  0xc9   : > { %10114 = vst [vmem:[#allocation13_spill] sm:$0xff] %v8985_v33  ;;  %v8989_v36 = vpop.f32.mrf.mxu1 }
  0xcb   : > { %v8993_v39 = vpop.f32.mrf.mxu0 }
  0xcc   : > { %6657 = vmatmul.msk.bf16.gmra.mxu1 %vm777_vm1, %v8116_v34  ;;  %6673 = vmatmul.msk.bf16.gmra.mxu2 %vm777_vm1, %v8132_v35  ;;  %v8103_v34 = vld [vmem:[%s8821_s5 + $0x290] sm:$0xff] }
  0xcd   : > { %6689 = vmatmul.msk.bf16.gmra.mxu3 %vm777_vm1, %v8148_v37 }
  0xce   : > { %6641 = vmatmul.msk.bf16.gmra.mxu0 %vm777_vm1, %v8100_v38 }
  0xcf   : > { %v8999_v40 = vpop.f32.mrf.mxu2 }
  0xd0   : > { %10115 = vst [vmem:[#allocation14_spill] sm:$0xff] %v8999_v40  ;;  %v9001_v41 = vpop.f32.mrf.mxu3 }
  0xd1   : > { %10116 = vst [vmem:[#allocation15_spill] sm:$0xff] %v9001_v41  ;;  %v9003_v42 = vpop.f32.mrf.mxu1 }
  0xd3   : > { %v9005_v43 = vpop.f32.mrf.mxu0 }
  0xd7   : > { %v9007_v44 = vpop.f32.mrf.mxu2 }
  0xd8   : > { %10117 = vst [vmem:[#allocation16_spill] sm:$0xff] %v9007_v44  ;;  %v9009_v45 = vpop.f32.mrf.mxu3  ;;  %v8027_v44 = vld [vmem:[%s8821_s5 + $0x20] sm:$0xff] }
  0xd9   : > { %10118 = vst [vmem:[#allocation17_spill] sm:$0xff] %v9009_v45  ;;  %v9013_v48 = vpop.f32.mrf.mxu1 }
  0xdb   : > { %v9017_v51 = vpop.f32.mrf.mxu0 }
  0xdc   : > { %6658 = vmatmul.msk.bf16.gmra.mxu1 %vm777_vm1, %v8117_v46  ;;  %6674 = vmatmul.msk.bf16.gmra.mxu2 %vm777_vm1, %v8133_v47 }
  0xdd   : > { %6690 = vmatmul.msk.bf16.gmra.mxu3 %vm777_vm1, %v8149_v49 }
  0xde   : > { %6642 = vmatmul.msk.bf16.gmra.mxu0 %vm777_vm1, %v8101_v50 }
  0xdf   : > { %v9023_v52 = vpop.f32.mrf.mxu2 }
  0xe0   : > { %10119 = vst [vmem:[#allocation18_spill] sm:$0xff] %v9023_v52  ;;  %v9025_v53 = vpop.f32.mrf.mxu3 }
  0xe1   : > { %10120 = vst [vmem:[#allocation19_spill] sm:$0xff] %v9025_v53  ;;  %v9027_v54 = vpop.f32.mrf.mxu1 }
  0xe3   : > { %v9029_v55 = vpop.f32.mrf.mxu0 }
  0xe7   : > { %v9031_v56 = vpop.f32.mrf.mxu2 }
  0xe8   : > { %10121 = vst [vmem:[#allocation20_spill] sm:$0xff] %v9031_v56  ;;  %v9033_v57 = vpop.f32.mrf.mxu3 }
  0xe9   : > { %10122 = vst [vmem:[#allocation21_spill] sm:$0xff] %v9033_v57  ;;  %v9037_v61 = vpop.f32.mrf.mxu1  ;;  %v8023_v57 = vld [vmem:[%s8821_s5] sm:$0xff] }
  0xea   : > { %10123 = vst [vmem:[#allocation22_spill] sm:$0xff] %v9037_v61 }
  0xeb   : > { %v9041_v7 = vpop.f32.mrf.mxu0 }
  0xec   : > { %6659 = vmatmul.msk.bf16.gmra.mxu1 %vm777_vm1, %v8118_v58  ;;  %6675 = vmatmul.msk.bf16.gmra.mxu2 %vm777_vm1, %v8134_v59  ;;  %v8120_v58 = vld [vmem:[%s8821_s5 + $0x318] sm:$0xff] }
  0xed   : > { %6691 = vmatmul.msk.bf16.gmra.mxu3 %vm777_vm1, %v8150_v62  ;;  %v8136_v59 = vld [vmem:[%s8821_s5 + $0x398] sm:$0xff] }
  0xee   : > { %6643 = vmatmul.msk.bf16.gmra.mxu0 %vm777_vm1, %v8102_v6  ;;  %v8152_v6 = vld [vmem:[%s8821_s5 + $0x418] sm:$0xff] }
  0xef   : > { %v9047_v8 = vpop.f32.mrf.mxu2 }
  0xf0   : > { %10124 = vst [vmem:[#allocation23_spill] sm:$0xff] %v9047_v8  ;;  %v9049_v10 = vpop.f32.mrf.mxu3 }
  0xf1   : > { %10125 = vst [vmem:[#allocation24_spill] sm:$0xff] %v9049_v10  ;;  %v9051_v11 = vpop.f32.mrf.mxu1 }
  0xf2   : > { %10126 = vst [vmem:[#allocation25_spill] sm:$0xff] %v9051_v11 }
  0xf3   : > { %v9053_v12 = vpop.f32.mrf.mxu0 }
  0xf7   : > { %v9055_v14 = vpop.f32.mrf.mxu2 }
  0xf8   : > { %10127 = vst [vmem:[#allocation26_spill] sm:$0xff] %v9055_v14  ;;  %v9057_v18 = vpop.f32.mrf.mxu3  ;;  %v8026_v14 = vld [vmem:[%s8821_s5 + $0x18] sm:$0xff] }
  0xf9   : > { %10128 = vst [vmem:[#allocation27_spill] sm:$0xff] %v9057_v18  ;;  %v9061_v25 = vpop.f32.mrf.mxu1 }
  0xfa   : > { %10129 = vst [vmem:[#allocation28_spill] sm:$0xff] %v9061_v25 }
  0xfb   : > { %v9065_v35 = vpop.f32.mrf.mxu0 }
  0xfc   : > { %6660 = vmatmul.msk.bf16.gmra.mxu1 %vm777_vm1, %v8119_v22  ;;  %6676 = vmatmul.msk.bf16.gmra.mxu2 %vm777_vm1, %v8135_v23  ;;  %v8104_v22 = vld [vmem:[%s8821_s5 + $0x298] sm:$0xff] }
  0xfd   : > { %6692 = vmatmul.msk.bf16.gmra.mxu3 %vm777_vm1, %v8151_v26 }
  0xfe   : > { %6644 = vmatmul.msk.bf16.gmra.mxu0 %vm777_vm1, %v8103_v34 }
  0xff   : > { %v9071_v37 = vpop.f32.mrf.mxu2 }
 0x100   : > { %10130 = vst [vmem:[#allocation29_spill] sm:$0xff] %v9071_v37  ;;  %v9073_v38 = vpop.f32.mrf.mxu3 }
 0x101   : > { %10131 = vst [vmem:[#allocation30_spill] sm:$0xff] %v9073_v38  ;;  %v9075_v46 = vpop.f32.mrf.mxu1 }
 0x102   : > { %10132 = vst [vmem:[#allocation31_spill] sm:$0xff] %v9075_v46  ;;  %v8297_v46 = vld [vmem:[%s8821_s5 + $0x70] sm:$0xff] }
 0x103   : > { %v9077_v47 = vpop.f32.mrf.mxu0 }
 0x107   : > { %v9079_v49 = vpop.f32.mrf.mxu2 }
 0x108   : > { %10133 = vst [vmem:[#allocation32_spill] sm:$0xff] %v9079_v49  ;;  %v9081_v50 = vpop.f32.mrf.mxu3 }
 0x109   : > { %10134 = vst [vmem:[#allocation33_spill] sm:$0xff] %v9081_v50  ;;  %v9085_v62 = vpop.f32.mrf.mxu1 }
 0x10a   : > { %10135 = vst [vmem:[#allocation34_spill] sm:$0xff] %v9085_v62  ;;  %v8231_v62 = vld [vmem:[%s8821_s5 + $0x280] sm:$0xff] }
 0x10b   : > { %v9089_v23 = vpop.f32.mrf.mxu0 }
 0x10c   : > { %6661 = vmatmul.msk.bf16.gmra.mxu1 %vm777_vm1, %v8120_v58  ;;  %6677 = vmatmul.msk.bf16.gmra.mxu2 %vm777_vm1, %v8136_v59  ;;  %v8155_v58 = vld [vmem:[%s8821_s5 + $0x10] sm:$0xff] }
 0x10d   : > { %6693 = vmatmul.msk.bf16.gmra.mxu3 %vm777_vm1, %v8152_v6  ;;  %v8221_v6 = vld [vmem:[%s8821_s5 + $0x230] sm:$0xff] }
 0x10e   : > { %6645 = vmatmul.msk.bf16.gmra.mxu0 %vm777_vm1, %v8104_v22  ;;  %v8287_v22 = vld [vmem:[%s8821_s5 + $0x20] sm:$0xff] }
 0x10f   : > { %v9095_v26 = vpop.f32.mrf.mxu2 }
 0x110   : > { %10136 = vst [vmem:[#allocation35_spill] sm:$0xff] %v9095_v26  ;;  %v9097_v34 = vpop.f32.mrf.mxu3 }
 0x111   : > { %10137 = vst [vmem:[#allocation36_spill] sm:$0xff] %v9097_v34  ;;  %v9099_v50 = vpop.f32.mrf.mxu1 }
 0x112   : > { %10138 = vst [vmem:[#allocation37_spill] sm:$0xff] %v9099_v50  ;;  %v8033_v50 = vld [vmem:[%s8821_s5 + $0x50] sm:$0xff] }
 0x113   : > { %v9101_v38 = vpop.f32.mrf.mxu0 }
 0x117   : > { %v9103_v18 = vpop.f32.mrf.mxu2 }
 0x118   : > { %10139 = vst [vmem:[#allocation38_spill] sm:$0xff] %v9103_v18  ;;  %v9105_v10 = vpop.f32.mrf.mxu3  ;;  %v8025_v18 = vld [vmem:[%s8821_s5 + $0x10] sm:$0xff] }
 0x119   : > { %10140 = vst [vmem:[#allocation39_spill] sm:$0xff] %v9105_v10  ;;  %v9109_v59 = vpop.f32.mrf.mxu1 }
 0x11a   : > { %10141 = vst [vmem:[#allocation40_spill] sm:$0xff] %v9109_v59 }
 0x11b   : > { %v9113_v53 = vpop.f32.mrf.mxu0 }
 0x11c   : > { %6958 = vmatmul.msk.bf16.vlgmr.msrb.gmra.mxu1 %vm777_vm1, %v8023_v57  ;;  %7291 = vmatmul.msk.bf16.vlgmr.msrb.gmra.mxu2 %vm777_vm1, %v8155_v58  ;;  %v8156_v57 = vld [vmem:[%s8821_s5 + $0x18] sm:$0xff] }
 0x11d   : > { %7624 = vmatmul.msk.bf16.vlgmr.msrb.gmra.mxu3 %vm777_vm1, %v8221_v6  ;;  %v8222_v6 = vld [vmem:[%s8821_s5 + $0x238] sm:$0xff] }
 0x11e   : > { %7957 = vmatmul.msk.bf16.vlgmr.msrb.gmra.mxu0 %vm777_vm1, %v8287_v22  ;;  %v8288_v22 = vld [vmem:[%s8821_s5 + $0x28] sm:$0xff] }
 0x11f   : > { %v9119_v10 = vpop.f32.mrf.mxu2 }
 0x120   : > { %10142 = vst [vmem:[#allocation41_spill] sm:$0xff] %v9119_v10  ;;  %v9121_v34 = vpop.f32.mrf.mxu3 }
 0x121   : > { %10143 = vst [vmem:[#allocation42_spill] sm:$0xff] %v9121_v34  ;;  %v9123_v45 = vpop.f32.mrf.mxu1 }
 0x122   : > { %10144 = vst [vmem:[#allocation43_spill] sm:$0xff] %v9123_v45  ;;  %v8230_v45 = vld [vmem:[%s8821_s5 + $0x278] sm:$0xff] }
 0x123   : > { %v9125_v41 = vpop.f32.mrf.mxu0 }
 0x127   : > { %v9127_v33 = vpop.f32.mrf.mxu2 }
 0x128   : > { %10145 = vst [vmem:[#allocation44_spill] sm:$0xff] %v9127_v33  ;;  %v9129_v29 = vpop.f32.mrf.mxu3 }
 0x129   : > { %10146 = vst [vmem:[#allocation45_spill] sm:$0xff] %v9129_v29  ;;  %v9133_v58 = vpop.f32.mrf.mxu1 }
 0x12a   : > { %10147 = vst [vmem:[#allocation46_spill] sm:$0xff] %v9133_v58 }
 0x12b   : > { %v9137_v16 = vpop.f32.mrf.mxu0 }
 0x12c   : > { %6959 = vmatmul.msk.bf16.gmra.mxu1 %vm777_vm1, %v8024_v21  ;;  %7292 = vmatmul.msk.bf16.gmra.mxu2 %vm777_vm1, %v8156_v57  ;;  %v8157_v21 = vld [vmem:[%s8821_s5 + $0x20] sm:$0xff] }
 0x12d   : > { %7625 = vmatmul.msk.bf16.gmra.mxu3 %vm777_vm1, %v8222_v6  ;;  %v8223_v6 = vld [vmem:[%s8821_s5 + $0x240] sm:$0xff] }
 0x12e   : > { %7958 = vmatmul.msk.bf16.gmra.mxu0 %vm777_vm1, %v8288_v22  ;;  %v8289_v22 = vld [vmem:[%s8821_s5 + $0x30] sm:$0xff] }
 0x12f   : > { %v9143_v29 = vpop.f32.mrf.mxu2 }
 0x130   : > { %10148 = vst [vmem:[#allocation47_spill] sm:$0xff] %v9143_v29  ;;  %v9145_v34 = vpop.f32.mrf.mxu3 }
 0x131   : > { %10149 = vst [vmem:[#allocation48_spill] sm:$0xff] %v9145_v34  ;;  %v9147_v5 = vpop.f32.mrf.mxu1 }
 0x132   : > { %10150 = vst [vmem:[#allocation49_spill] sm:$0xff] %v9147_v5 }
 0x133   : > { %v9149_v1 = vpop.f32.mrf.mxu0 }
 0x137   : > { %v9151_v33 = vpop.f32.mrf.mxu2 }
 0x138   : > { %10151 = vst [vmem:[#allocation50_spill] sm:$0xff] %v9151_v33  ;;  %v9153_v10 = vpop.f32.mrf.mxu3 }
 0x139   : > { %10152 = vst [vmem:[#allocation51_spill] sm:$0xff] %v9153_v10  ;;  %v9157_v57 = vpop.f32.mrf.mxu1 }
 0x13a   : > { %10153 = vst [vmem:[#allocation52_spill] sm:$0xff] %v9157_v57 }
 0x13b   : > { %v9161_v29 = vpop.f32.mrf.mxu0 }
 0x13c   : > { %6960 = vmatmul.msk.bf16.gmra.mxu1 %vm777_vm1, %v8025_v18  ;;  %7293 = vmatmul.msk.bf16.gmra.mxu2 %vm777_vm1, %v8157_v21  ;;  %v8158_v18 = vld [vmem:[%s8821_s5 + $0x28] sm:$0xff] }
 0x13d   : > { %7626 = vmatmul.msk.bf16.gmra.mxu3 %vm777_vm1, %v8223_v6  ;;  %v8224_v6 = vld [vmem:[%s8821_s5 + $0x248] sm:$0xff] }
 0x13e   : > { %7959 = vmatmul.msk.bf16.gmra.mxu0 %vm777_vm1, %v8289_v22  ;;  %v8290_v22 = vld [vmem:[%s8821_s5 + $0x38] sm:$0xff] }
 0x13f   : > { %v9167_v10 = vpop.f32.mrf.mxu2 }
 0x140   : > { %10154 = vst [vmem:[#allocation53_spill] sm:$0xff] %v9167_v10  ;;  %v9169_v34 = vpop.f32.mrf.mxu3 }
 0x141   : > { %10155 = vst [vmem:[#allocation54_spill] sm:$0xff] %v9169_v34  ;;  %v9171_v33 = vpop.f32.mrf.mxu1 }
 0x142   : > { %10156 = vst [vmem:[#allocation55_spill] sm:$0xff] %v9171_v33  ;;  %v8229_v33 = vld [vmem:[%s8821_s5 + $0x270] sm:$0xff] }
 0x143   : > { %v9173_v26 = vpop.f32.mrf.mxu0 }
 0x147   : > { %v9175_v49 = vpop.f32.mrf.mxu2 }
 0x148   : > { %10157 = vst [vmem:[#allocation56_spill] sm:$0xff] %v9175_v49  ;;  %v9177_v37 = vpop.f32.mrf.mxu3 }
 0x149   : > { %10158 = vst [vmem:[#allocation57_spill] sm:$0xff] %v9177_v37  ;;  %v9181_v21 = vpop.f32.mrf.mxu1 }
 0x14a   : > { %10159 = vst [vmem:[#allocation58_spill] sm:$0xff] %v9181_v21  ;;  %v8031_v21 = vld [vmem:[%s8821_s5 + $0x40] sm:$0xff] }
 0x14b   : > { %v9185_v10 = vpop.f32.mrf.mxu0 }
 0x14c   : > { %6961 = vmatmul.msk.bf16.gmra.mxu1 %vm777_vm1, %v8026_v14  ;;  %7294 = vmatmul.msk.bf16.gmra.mxu2 %vm777_vm1, %v8158_v18  ;;  %v8159_v14 = vld [vmem:[%s8821_s5 + $0x30] sm:$0xff] }
 0x14d   : > { %7627 = vmatmul.msk.bf16.gmra.mxu3 %vm777_vm1, %v8224_v6  ;;  %v8225_v6 = vld [vmem:[%s8821_s5 + $0x250] sm:$0xff] }
 0x14e   : > { %7960 = vmatmul.msk.bf16.gmra.mxu0 %vm777_vm1, %v8290_v22  ;;  %v8291_v22 = vld [vmem:[%s8821_s5 + $0x40] sm:$0xff] }
 0x14f   : > { %v9191_v37 = vpop.f32.mrf.mxu2 }
 0x150   : > { %10160 = vst [vmem:[#allocation59_spill] sm:$0xff] %v9191_v37  ;;  %v9193_v34 = vpop.f32.mrf.mxu3 }
 0x151   : > { %10161 = vst [vmem:[#allocation60_spill] sm:$0xff] %v9193_v34  ;;  %v9195_v49 = vpop.f32.mrf.mxu1 }
 0x152   : > { %10162 = vst [vmem:[#allocation61_spill] sm:$0xff] %v9195_v49 }
 0x153   : > { %v9197_v8 = vpop.f32.mrf.mxu0 }
 0x157   : > { %v9199_v56 = vpop.f32.mrf.mxu2 }
 0x158   : > { %10163 = vst [vmem:[#allocation62_spill] sm:$0xff] %v9199_v56  ;;  %v9201_v52 = vpop.f32.mrf.mxu3 }
 0x159   : > { %10164 = vst [vmem:[#allocation63_spill] sm:$0xff] %v9201_v52  ;;  %v9205_v18 = vpop.f32.mrf.mxu1 }
 0x15a   : > { %10165 = vst [vmem:[#allocation64_spill] sm:$0xff] %v9205_v18  ;;  %v8030_v18 = vld [vmem:[%s8821_s5 + $0x38] sm:$0xff] }
 0x15b   : > { %v9209_v37 = vpop.f32.mrf.mxu0 }
 0x15c   : > { %6962 = vmatmul.msk.bf16.gmra.mxu1 %vm777_vm1, %v8027_v44  ;;  %7295 = vmatmul.msk.bf16.gmra.mxu2 %vm777_vm1, %v8159_v14  ;;  %v8160_v44 = vld [vmem:[%s8821_s5 + $0x38] sm:$0xff] }
 0x15d   : > { %7628 = vmatmul.msk.bf16.gmra.mxu3 %vm777_vm1, %v8225_v6  ;;  %v8226_v6 = vld [vmem:[%s8821_s5 + $0x258] sm:$0xff] }
 0x15e   : > { %7961 = vmatmul.msk.bf16.gmra.mxu0 %vm777_vm1, %v8291_v22  ;;  %v8292_v22 = vld [vmem:[%s8821_s5 + $0x48] sm:$0xff] }
 0x15f   : > { %v9215_v52 = vpop.f32.mrf.mxu2 }
 0x160   : > { %10166 = vst [vmem:[#allocation65_spill] sm:$0xff] %v9215_v52  ;;  %v9217_v34 = vpop.f32.mrf.mxu3 }
 0x161   : > { %10167 = vst [vmem:[#allocation66_spill] sm:$0xff] %v9217_v34  ;;  %v9219_v56 = vpop.f32.mrf.mxu1 }
 0x162   : > { %10168 = vst [vmem:[#allocation67_spill] sm:$0xff] %v9219_v56 }
 0x163   : > { %v9221_v40 = vpop.f32.mrf.mxu0 }
 0x167   : > { %v9223_v32 = vpop.f32.mrf.mxu2 }
 0x168   : > { %10169 = vst [vmem:[#allocation68_spill] sm:$0xff] %v9223_v32  ;;  %v9225_v28 = vpop.f32.mrf.mxu3 }
 0x169   : > { %10170 = vst [vmem:[#allocation69_spill] sm:$0xff] %v9225_v28  ;;  %v9229_v14 = vpop.f32.mrf.mxu1 }
 0x16a   : > { %10171 = vst [vmem:[#allocation70_spill] sm:$0xff] %v9229_v14  ;;  %v8029_v14 = vld [vmem:[%s8821_s5 + $0x30] sm:$0xff] }
 0x16b   : > { %v9233_v52 = vpop.f32.mrf.mxu0 }
 0x16c   : > { %6963 = vmatmul.msk.bf16.gmra.mxu1 %vm777_vm1, %v8028_v20  ;;  %7296 = vmatmul.msk.bf16.gmra.mxu2 %vm777_vm1, %v8160_v44  ;;  %v8161_v20 = vld [vmem:[%s8821_s5 + $0x40] sm:$0xff] }
 0x16d   : > { %7629 = vmatmul.msk.bf16.gmra.mxu3 %vm777_vm1, %v8226_v6  ;;  %v8227_v6 = vld [vmem:[%s8821_s5 + $0x260] sm:$0xff] }
 0x16e   : > { %7962 = vmatmul.msk.bf16.gmra.mxu0 %vm777_vm1, %v8292_v22  ;;  %v8293_v22 = vld [vmem:[%s8821_s5 + $0x50] sm:$0xff] }
 0x16f   : > { %v9239_v28 = vpop.f32.mrf.mxu2 }
 0x170   : > { %10172 = vst [vmem:[#allocation71_spill] sm:$0xff] %v9239_v28  ;;  %v9241_v34 = vpop.f32.mrf.mxu3 }
 0x171   : > { %10173 = vst [vmem:[#allocation72_spill] sm:$0xff] %v9241_v34  ;;  %v9243_v32 = vpop.f32.mrf.mxu1 }
 0x172   : > { %10174 = vst [vmem:[#allocation73_spill] sm:$0xff] %v9243_v32 }
 0x173   : > { %v9245_v15 = vpop.f32.mrf.mxu0 }
 0x177   : > { %v9247_v4 = vpop.f32.mrf.mxu2 }
 0x178   : > { %10175 = vst [vmem:[#allocation74_spill] sm:$0xff] %v9247_v4  ;;  %v9249_v0 = vpop.f32.mrf.mxu3 }
 0x179   : > { %10176 = vst [vmem:[#allocation75_spill] sm:$0xff] %v9249_v0  ;;  %v9253_v44 = vpop.f32.mrf.mxu1 }
 0x17a   : > { %10177 = vst [vmem:[#allocation76_spill] sm:$0xff] %v9253_v44 }
 0x17b   : > { %v9257_v28 = vpop.f32.mrf.mxu0 }
 0x17c   : > { %6964 = vmatmul.msk.bf16.gmra.mxu1 %vm777_vm1, %v8029_v14  ;;  %7297 = vmatmul.msk.bf16.gmra.mxu2 %vm777_vm1, %v8161_v20  ;;  %v8162_v14 = vld [vmem:[%s8821_s5 + $0x48] sm:$0xff] }
 0x17d   : > { %7630 = vmatmul.msk.bf16.gmra.mxu3 %vm777_vm1, %v8227_v6  ;;  %v8228_v6 = vld [vmem:[%s8821_s5 + $0x268] sm:$0xff] }
 0x17e   : > { %7963 = vmatmul.msk.bf16.gmra.mxu0 %vm777_vm1, %v8293_v22  ;;  %v8294_v22 = vld [vmem:[%s8821_s5 + $0x58] sm:$0xff] }
 0x17f   : > { %v9263_v0 = vpop.f32.mrf.mxu2 }
 0x180   : > { %10178 = vst [vmem:[#allocation77_spill] sm:$0xff] %v9263_v0  ;;  %v9265_v34 = vpop.f32.mrf.mxu3 }
 0x181   : > { %10179 = vst [vmem:[#allocation78_spill] sm:$0xff] %v9265_v34  ;;  %v9267_v4 = vpop.f32.mrf.mxu1 }
 0x182   : > { %10180 = vst [vmem:[#allocation79_spill] sm:$0xff] %v9267_v4 }
 0x183   : > { %v9269_v44 = vpop.f32.mrf.mxu0 }
 0x187   : > { %v9271_v32 = vpop.f32.mrf.mxu2 }
 0x188   : > { %10181 = vst [vmem:[#allocation80_spill] sm:$0xff] %v9271_v32  ;;  %v9273_v56 = vpop.f32.mrf.mxu3 }
 0x189   : > { %10182 = vst [vmem:[#allocation81_spill] sm:$0xff] %v9273_v56  ;;  %v9277_v20 = vpop.f32.mrf.mxu1 }
 0x18a   : > { %10183 = vst [vmem:[#allocation82_spill] sm:$0xff] %v9277_v20 }
 0x18b   : > { %v9281_v0 = vpop.f32.mrf.mxu0 }
 0x18c   : > { %6965 = vmatmul.msk.bf16.gmra.mxu1 %vm777_vm1, %v8030_v18  ;;  %7298 = vmatmul.msk.bf16.gmra.mxu2 %vm777_vm1, %v8162_v14  ;;  %v8163_v18 = vld [vmem:[%s8821_s5 + $0x50] sm:$0xff] }
 0x18d   : > { %7631 = vmatmul.msk.bf16.gmra.mxu3 %vm777_vm1, %v8228_v6  ;;  %v8295_v6 = vld [vmem:[%s8821_s5 + $0x60] sm:$0xff] }
 0x18e   : > { %7964 = vmatmul.msk.bf16.gmra.mxu0 %vm777_vm1, %v8294_v22 }
 0x18f   : > { %v9287_v56 = vpop.f32.mrf.mxu2 }
 0x190   : > { %10184 = vst [vmem:[#allocation83_spill] sm:$0xff] %v9287_v56  ;;  %v9289_v34 = vpop.f32.mrf.mxu3 }
 0x191   : > { %10185 = vst [vmem:[#allocation84_spill] sm:$0xff] %v9289_v34  ;;  %v9291_v32 = vpop.f32.mrf.mxu1 }
 0x192   : > { %10186 = vst [vmem:[#allocation85_spill] sm:$0xff] %v9291_v32 }
 0x193   : > { %v9293_v20 = vpop.f32.mrf.mxu0 }
 0x197   : > { %v9295_v4 = vpop.f32.mrf.mxu2 }
 0x198   : > { %10187 = vst [vmem:[#allocation86_spill] sm:$0xff] %v9295_v4  ;;  %v9297_v49 = vpop.f32.mrf.mxu3 }
 0x199   : > { %10188 = vst [vmem:[#allocation87_spill] sm:$0xff] %v9297_v49  ;;  %v1842_v14 = vpop.f32.mrf.mxu1 }
 0x19a   : > { %v1843_v22 = vadd.f32 %v1842_v14, %v8909_v63 }
 0x19b   : > { %v5077_v57 = vpop.f32.mrf.mxu0 }
 0x19c   : > { %6966 = vmatmul.msk.bf16.gmra.mxu1 %vm777_vm1, %v8031_v21  ;;  %7299 = vmatmul.msk.bf16.gmra.mxu2 %vm777_vm1, %v8163_v18 }
 0x19d   : > { %7632 = vmatmul.msk.bf16.gmra.mxu3 %vm777_vm1, %v8229_v33  ;;  %v9313_v33 = vld [vmem:[%s10101_s2] ss:$0 sm:$0xff] }
 0x19e   : > { %7965 = vmatmul.msk.bf16.gmra.mxu0 %vm777_vm1, %v8295_v6  ;;  %v8032_v6 = vld [vmem:[%s8821_s5 + $0x48] sm:$0xff] }
 0x19f   : > { %v2835_v49 = vpop.f32.mrf.mxu2 }
 0x1a0   : > { %v3155_v34 = vadd.f32 %v2835_v49, %v1843_v22  ;;  %v3956_v4 = vpop.f32.mrf.mxu3  ;;  %v8164_v22 = vld [vmem:[%s8821_s5 + $0x58] sm:$0xff] }
 0x1a1   : > { %v1844_v56 = vpop.f32.mrf.mxu1 }
 0x1a2   : > { %v4276_v32 = vadd.f32 %v3956_v4, %v3155_v34  ;;  %v1845_v18 = vadd.f32 %v1844_v56, %v8921_v3  ;;  %v8296_v4 = vld [vmem:[%s8821_s5 + $0x68] sm:$0xff] }
 0x1a3   : > { %v5079_v5 = vpop.f32.mrf.mxu0 }
 0x1a4   : > { %v5397_v21 = vadd.f32 %v5077_v57, %v4276_v32 }
 0x1a6   : > { %v5529_v34 = vadd.f32 %v9313_v33, %v5397_v21 }
 0x1a7   : > { %v2837_v63 = vpop.f32.mrf.mxu2 }
 0x1a8   : > { %v3156_v14 = vadd.f32 %v2837_v63, %v1845_v18  ;;  %v3958_v49 = vpop.f32.mrf.mxu3  ;;  %v5785_v3 = vmul.f32 0.2, %v5529_v34  ;;  %vm5657_vm2 = vcmp.ge.f32.partialorder %v5529_v34, 0.0 }
 0x1a9   : > { %v1847_v58 = vpop.f32.mrf.mxu1 }
 0x1aa   : > { %v4277_v59 = vadd.f32 %v3958_v49, %v3156_v14  ;;  %v1848_v18 = vadd.f32 %v1847_v58, %v8939_v13  ;;  %v5913_v49 = vsel %vm5657_vm2, %v5529_v34, %v5785_v3  ;;  %v8165_v34 = vld [vmem:[%s8821_s5 + $0x60] sm:$0xff] }
 0x1ab   : > { %v5082_v32 = vpop.f32.mrf.mxu0 }
 0x1ac   : > { %v5398_v57 = vadd.f32 %v5079_v5, %v4277_v59  ;;  %6967 = vmatmul.msk.bf16.gmra.mxu1 %vm777_vm1, %v8032_v6  ;;  %7300 = vmatmul.msk.bf16.gmra.mxu2 %vm777_vm1, %v8164_v22 }
 0x1ad   : > { %7633 = vmatmul.msk.bf16.gmra.mxu3 %vm777_vm1, %v8230_v45 }
 0x1ae   : > { %7966 = vmatmul.msk.bf16.gmra.mxu0 %vm777_vm1, %v8296_v4  ;;  %v5530_v56 = vadd.f32 %v9313_v33, %v5398_v57 }
 0x1af   : > { %v2840_v21 = vpop.f32.mrf.mxu2 }
 0x1b0   : > { %vm5658_vm3 = vcmp.ge.f32.partialorder %v5530_v56, 0.0  ;;  %v5786_v63 = vmul.f32 0.2, %v5530_v56  ;;  %v3157_v5 = vadd.f32 %v2840_v21, %v1848_v18  ;;  %v3961_v59 = vpop.f32.mrf.mxu3 }
 0x1b1   : > { %v1849_v14 = vpop.f32.mrf.mxu1 }
 0x1b2   : > { %v5914_v13 = vsel %vm5658_vm3, %v5530_v56, %v5786_v63  ;;  %v4278_v45 = vadd.f32 %v3961_v59, %v3157_v5  ;;  %v1850_v4 = vadd.f32 %v1849_v14, %v8957_v19 }
 0x1b3   : > { %v5084_v58 = vpop.f32.mrf.mxu0  ;;  %v8356_v6 = vpack.c.bf16 %v5914_v13, %v5913_v49 }
 0x1b4   : > { %v5399_v22 = vadd.f32 %v5082_v32, %v4278_v45 }
 0x1b5   : > { %8357 = vst [vmem:[%s9330_s29] sm:$0xff] %v8356_v6  }
 0x1b6   : > { %v5531_v25 = vadd.f32 %v9313_v33, %v5399_v22 }
 0x1b7   : > { %v2842_v57 = vpop.f32.mrf.mxu2 }
 0x1b8   : > { %v3158_v18 = vadd.f32 %v2842_v57, %v1850_v4  ;;  %v3963_v21 = vpop.f32.mrf.mxu3  ;;  %v5787_v19 = vmul.f32 0.2, %v5531_v25  ;;  %vm5659_vm4 = vcmp.ge.f32.partialorder %v5531_v25, 0.0  ;;  %v8034_v57 = vld [vmem:[%s8821_s5 + $0x58] sm:$0xff] }
 0x1b9   : > { %v1852_v3 = vpop.f32.mrf.mxu1 }
 0x1ba   : > { %v4279_v11 = vadd.f32 %v3963_v21, %v3158_v18  ;;  %v1853_v63 = vadd.f32 %v1852_v3, %v8969_v27  ;;  %v8166_v18 = vld [vmem:[%s8821_s5 + $0x68] sm:$0xff]  ;;  %v8298_v3 = vld [vmem:[%s8821_s5 + $0x78] sm:$0xff] }
 0x1bb   : > { %v5087_v61 = vpop.f32.mrf.mxu0 }
 0x1bc   : > { %v5400_v56 = vadd.f32 %v5084_v58, %v4279_v11  ;;  %6968 = vmatmul.msk.bf16.gmra.mxu1 %vm777_vm1, %v8033_v50  ;;  %7301 = vmatmul.msk.bf16.gmra.mxu2 %vm777_vm1, %v8165_v34  ;;  %v8232_v34 = vld [vmem:[%s8821_s5 + $0x288] sm:$0xff] }
 0x1bd   : > { %7634 = vmatmul.msk.bf16.gmra.mxu3 %vm777_vm1, %v8231_v62  ;;  %v5915_v62 = vsel %vm5659_vm4, %v5531_v25, %v5787_v19 }
 0x1be   : > { %7967 = vmatmul.msk.bf16.gmra.mxu0 %vm777_vm1, %v8297_v46  ;;  %v5532_v32 = vadd.f32 %v9313_v33, %v5400_v56 }
 0x1bf   : > { %v2845_v5 = vpop.f32.mrf.mxu2 }
 0x1c0   : > { %vm5660_vm5 = vcmp.ge.f32.partialorder %v5532_v32, 0.0  ;;  %v5788_v59 = vmul.f32 0.2, %v5532_v32  ;;  %v3159_v11 = vadd.f32 %v2845_v5, %v1853_v63  ;;  %v3966_v50 = vpop.f32.mrf.mxu3 }
 0x1c1   : > { %v1854_v14 = vpop.f32.mrf.mxu1 }
 0x1c2   : > { %v5916_v49 = vsel %vm5660_vm5, %v5532_v32, %v5788_v59  ;;  %v4280_v46 = vadd.f32 %v3966_v50, %v3159_v11  ;;  %v1855_v27 = vadd.f32 %v1854_v14, %v8981_v31 }
 0x1c3   : > { %v5089_v13 = vpop.f32.mrf.mxu0  ;;  %v8361_v45 = vpack.c.bf16 %v5916_v49, %v5915_v62 }
 0x1c4   : > { %v5401_v58 = vadd.f32 %v5087_v61, %v4280_v46 }
 0x1c5   : > { %8673 = vst [vmem:[%s9330_s29 + $0x8] sm:$0xff] %v8361_v45  }
 0x1c6   : > { %v5533_v56 = vadd.f32 %v9313_v33, %v5401_v58 }
 0x1c7   : > { %v2847_v6 = vpop.f32.mrf.mxu2 }
 0x1c8   : > { %v3160_v22 = vadd.f32 %v2847_v6, %v1855_v27  ;;  %v3968_v4 = vpop.f32.mrf.mxu3  ;;  %v5789_v31 = vmul.f32 0.2, %v5533_v56  ;;  %vm5661_vm6 = vcmp.ge.f32.partialorder %v5533_v56, 0.0 }
 0x1c9   : > { %v1857_v21 = vpop.f32.mrf.mxu1 }
 0x1ca   : > { %v4281_v63 = vadd.f32 %v3968_v4, %v3160_v22  ;;  %v1858_v32 = vadd.f32 %v1857_v21, %v8993_v39  ;;  %v5917_v62 = vsel %vm5661_vm6, %v5533_v56, %v5789_v31  ;;  %v8035_v4 = vld [vmem:[%s8821_s5 + $0x60] sm:$0xff]  ;;  %v8233_v21 = vld [vmem:[%s8821_s5 + $0x290] sm:$0xff] }
 0x1cb   : > { %v5092_v25 = vpop.f32.mrf.mxu0 }
 0x1cc   : > { %v5402_v19 = vadd.f32 %v5089_v13, %v4281_v63  ;;  %6969 = vmatmul.msk.bf16.gmra.mxu1 %vm777_vm1, %v8034_v57  ;;  %7302 = vmatmul.msk.bf16.gmra.mxu2 %vm777_vm1, %v8166_v18  ;;  %v8167_v57 = vld [vmem:[%s8821_s5 + $0x70] sm:$0xff] }
 0x1cd   : > { %7635 = vmatmul.msk.bf16.gmra.mxu3 %vm777_vm1, %v8232_v34  ;;  %v8299_v34 = vld [vmem:[%s8821_s5 + $0x80] sm:$0xff] }
 0x1ce   : > { %7968 = vmatmul.msk.bf16.gmra.mxu0 %vm777_vm1, %v8298_v3  ;;  %v5534_v61 = vadd.f32 %v9313_v33, %v5402_v19 }
 0x1cf   : > { %v2850_v5 = vpop.f32.mrf.mxu2 }
 0x1d0   : > { %vm5662_vm7 = vcmp.ge.f32.partialorder %v5534_v61, 0.0  ;;  %v5790_v59 = vmul.f32 0.2, %v5534_v61  ;;  %v3161_v11 = vadd.f32 %v2850_v5, %v1858_v32  ;;  %v3971_v50 = vpop.f32.mrf.mxu3 }
 0x1d1   : > { %v1859_v14 = vpop.f32.mrf.mxu1 }
 0x1d2   : > { %v5918_v49 = vsel %vm5662_vm7, %v5534_v61, %v5790_v59  ;;  %v4282_v46 = vadd.f32 %v3971_v50, %v3161_v11  ;;  %v1860_v39 = vadd.f32 %v1859_v14, %v9005_v43 }
 0x1d3   : > { %v5094_v13 = vpop.f32.mrf.mxu0  ;;  %v8366_v45 = vpack.c.bf16 %v5918_v49, %v5917_v62 }
 0x1d4   : > { %v5403_v58 = vadd.f32 %v5092_v25, %v4282_v46 }
 0x1d5   : > { %8674 = vst [vmem:[%s9330_s29 + $0x10] sm:$0xff] %v8366_v45  }
 0x1d6   : > { %v5535_v3 = vadd.f32 %v9313_v33, %v5403_v58 }
 0x1d7   : > { %v2852_v27 = vpop.f32.mrf.mxu2 }
 0x1d8   : > { %v3162_v6 = vadd.f32 %v2852_v27, %v1860_v39  ;;  %v3973_v22 = vpop.f32.mrf.mxu3  ;;  %v5791_v43 = vmul.f32 0.2, %v5535_v3  ;;  %vm5663_vm8 = vcmp.ge.f32.partialorder %v5535_v3, 0.0  ;;  %v8036_v27 = vld [vmem:[%s8821_s5 + $0x68] sm:$0xff] }
 0x1d9   : > { %v1862_v18 = vpop.f32.mrf.mxu1 }
 0x1da   : > { %v4283_v63 = vadd.f32 %v3973_v22, %v3162_v6  ;;  %v1863_v31 = vadd.f32 %v1862_v18, %v9017_v51  ;;  %v5919_v50 = vsel %vm5663_vm8, %v5535_v3, %v5791_v43  ;;  %v8168_v6 = vld [vmem:[%s8821_s5 + $0x78] sm:$0xff] }
 0x1db   : > { %v5097_v56 = vpop.f32.mrf.mxu0 }
 0x1dc   : > { %v5404_v19 = vadd.f32 %v5094_v13, %v4283_v63  ;;  %6970 = vmatmul.msk.bf16.gmra.mxu1 %vm777_vm1, %v8035_v4  ;;  %7303 = vmatmul.msk.bf16.gmra.mxu2 %vm777_vm1, %v8167_v57  ;;  %v8234_v4 = vld [vmem:[%s8821_s5 + $0x298] sm:$0xff]  ;;  %v8300_v57 = vld [vmem:[%s8821_s5 + $0x88] sm:$0xff] }
 0x1dd   : > { %7636 = vmatmul.msk.bf16.gmra.mxu3 %vm777_vm1, %v8233_v21 }
 0x1de   : > { %7969 = vmatmul.msk.bf16.gmra.mxu0 %vm777_vm1, %v8299_v34  ;;  %v5536_v25 = vadd.f32 %v9313_v33, %v5404_v19 }
 0x1df   : > { %v2855_v61 = vpop.f32.mrf.mxu2 }
 0x1e0   : > { %vm5664_vm9 = vcmp.ge.f32.partialorder %v5536_v25, 0.0  ;;  %v5792_v32 = vmul.f32 0.2, %v5536_v25  ;;  %v3163_v5 = vadd.f32 %v2855_v61, %v1863_v31  ;;  %v3976_v59 = vpop.f32.mrf.mxu3 }
 0x1e1   : > { %v1864_v11 = vpop.f32.mrf.mxu1 }
 0x1e2   : > { %v5920_v14 = vsel %vm5664_vm9, %v5536_v25, %v5792_v32  ;;  %v4284_v62 = vadd.f32 %v3976_v59, %v3163_v5  ;;  %v1865_v51 = vadd.f32 %v1864_v11, %v9029_v55 }
 0x1e3   : > { %v5099_v49 = vpop.f32.mrf.mxu0  ;;  %v8371_v46 = vpack.c.bf16 %v5920_v14, %v5919_v50 }
 0x1e4   : > { %v5405_v13 = vadd.f32 %v5097_v56, %v4284_v62 }
 0x1e5   : > { %8675 = vst [vmem:[%s9330_s29 + $0x18] sm:$0xff] %v8371_v46  }
 0x1e6   : > { %v5537_v18 = vadd.f32 %v9313_v33, %v5405_v13  ;;  %v8037_v13 = vld [vmem:[%s8821_s5 + $0x70] sm:$0xff] }
 0x1e7   : > { %v2857_v45 = vpop.f32.mrf.mxu2 }
 0x1e8   : > { %v3164_v58 = vadd.f32 %v2857_v45, %v1865_v51  ;;  %v3978_v39 = vpop.f32.mrf.mxu3  ;;  %v5793_v55 = vmul.f32 0.2, %v5537_v18  ;;  %vm5665_vm10 = vcmp.ge.f32.partialorder %v5537_v18, 0.0  ;;  %v8169_v51 = vld [vmem:[%s8821_s5 + $0x80] sm:$0xff] }
 0x1e9   : > { %v1867_v22 = vpop.f32.mrf.mxu1 }
 0x1ea   : > { %v4285_v21 = vadd.f32 %v3978_v39, %v3164_v58  ;;  %v1868_v56 = vadd.f32 %v1867_v22, %v9041_v7  ;;  %v5921_v32 = vsel %vm5665_vm10, %v5537_v18, %v5793_v55  ;;  %v8235_v58 = vld [vmem:[%s8821_s5 + $0x2a0] sm:$0xff]  ;;  %v8301_v39 = vld [vmem:[%s8821_s5 + $0x90] sm:$0xff] }
 0x1eb   : > { %v5102_v34 = vpop.f32.mrf.mxu0 }
 0x1ec   : > { %v5406_v3 = vadd.f32 %v5099_v49, %v4285_v21  ;;  %6971 = vmatmul.msk.bf16.gmra.mxu1 %vm777_vm1, %v8036_v27  ;;  %7304 = vmatmul.msk.bf16.gmra.mxu2 %vm777_vm1, %v8168_v6 }
 0x1ed   : > { %7637 = vmatmul.msk.bf16.gmra.mxu3 %vm777_vm1, %v8234_v4 }
 0x1ee   : > { %7970 = vmatmul.msk.bf16.gmra.mxu0 %vm777_vm1, %v8300_v57  ;;  %v5538_v63 = vadd.f32 %v9313_v33, %v5406_v3 }
 0x1ef   : > { %v2860_v19 = vpop.f32.mrf.mxu2 }
 0x1f0   : > { %vm5666_vm11 = vcmp.ge.f32.partialorder %v5538_v63, 0.0  ;;  %v5794_v43 = vmul.f32 0.2, %v5538_v63  ;;  %v3165_v25 = vadd.f32 %v2860_v19, %v1868_v56  ;;  %v3981_v31 = vpop.f32.mrf.mxu3 }
 0x1f1   : > { %v1869_v61 = vpop.f32.mrf.mxu1 }
 0x1f2   : > { %v5922_v5 = vsel %vm5666_vm11, %v5538_v63, %v5794_v43  ;;  %v4286_v59 = vadd.f32 %v3981_v31, %v3165_v25  ;;  %v1870_v7 = vadd.f32 %v1869_v61, %v9053_v12 }
 0x1f3   : > { %v5104_v11 = vpop.f32.mrf.mxu0  ;;  %v8376_v50 = vpack.c.bf16 %v5922_v5, %v5921_v32 }
 0x1f4   : > { %v5407_v14 = vadd.f32 %v5102_v34, %v4286_v59 }
 0x1f5   : > { %8676 = vst [vmem:[%s9330_s29 + $0x20] sm:$0xff] %v8376_v50   ;;  %v8170_v50 = vld [vmem:[%s8821_s5 + $0x88] sm:$0xff] }
 0x1f6   : > { %v5539_v27 = vadd.f32 %v9313_v33, %v5407_v14 }
 0x1f7   : > { %v2862_v62 = vpop.f32.mrf.mxu2 }
 0x1f8   : > { %v3166_v49 = vadd.f32 %v2862_v62, %v1870_v7  ;;  %v3983_v46 = vpop.f32.mrf.mxu3  ;;  %v5795_v12 = vmul.f32 0.2, %v5539_v27  ;;  %vm5667_vm12 = vcmp.ge.f32.partialorder %v5539_v27, 0.0  ;;  %v8236_v7 = vld [vmem:[%s8821_s5 + $0x2a8] sm:$0xff]  ;;  %v8302_v62 = vld [vmem:[%s8821_s5 + $0x98] sm:$0xff] }
 0x1f9   : > { %v1872_v45 = vpop.f32.mrf.mxu1 }
 0x1fa   : > { %v4287_v6 = vadd.f32 %v3983_v46, %v3166_v49  ;;  %v1873_v18 = vadd.f32 %v1872_v45, %v9065_v35  ;;  %v5923_v56 = vsel %vm5667_vm12, %v5539_v27, %v5795_v12 }
 0x1fb   : > { %v5107_v22 = vpop.f32.mrf.mxu0 }
 0x1fc   : > { %v5408_v4 = vadd.f32 %v5104_v11, %v4287_v6  ;;  %6972 = vmatmul.msk.bf16.gmra.mxu1 %vm777_vm1, %v8037_v13  ;;  %7305 = vmatmul.msk.bf16.gmra.mxu2 %vm777_vm1, %v8169_v51  ;;  %v8038_v11 = vld [vmem:[%s8821_s5 + $0x78] sm:$0xff] }
 0x1fd   : > { %7638 = vmatmul.msk.bf16.gmra.mxu3 %vm777_vm1, %v8235_v58 }
 0x1fe   : > { %7971 = vmatmul.msk.bf16.gmra.mxu0 %vm777_vm1, %v8301_v39  ;;  %v5540_v57 = vadd.f32 %v9313_v33, %v5408_v4 }
 0x1ff   : > { %v2865_v21 = vpop.f32.mrf.mxu2 }
 0x200   : > { %vm5668_vm13 = vcmp.ge.f32.partialorder %v5540_v57, 0.0  ;;  %v5796_v34 = vmul.f32 0.2, %v5540_v57  ;;  %v3167_v3 = vadd.f32 %v2865_v21, %v1873_v18  ;;  %v3986_v55 = vpop.f32.mrf.mxu3 }
 0x201   : > { %v1874_v63 = vpop.f32.mrf.mxu1 }
 0x202   : > { %v5924_v19 = vsel %vm5668_vm13, %v5540_v57, %v5796_v34  ;;  %v4288_v43 = vadd.f32 %v3986_v55, %v3167_v3  ;;  %v1875_v35 = vadd.f32 %v1874_v63, %v9077_v47 }
 0x203   : > { %v5109_v25 = vpop.f32.mrf.mxu0  ;;  %v8381_v31 = vpack.c.bf16 %v5924_v19, %v5923_v56  ;;  %v8039_v19 = vld [vmem:[%s8821_s5 + $0x80] sm:$0xff] }
 0x204   : > { %v5409_v61 = vadd.f32 %v5107_v22, %v4288_v43  ;;  %v8171_v43 = vld [vmem:[%s8821_s5 + $0x90] sm:$0xff] }
 0x205   : > { %8677 = vst [vmem:[%s9330_s29 + $0x28] sm:$0xff] %v8381_v31   ;;  %v8237_v31 = vld [vmem:[%s8821_s5 + $0x2b0] sm:$0xff] }
 0x206   : > { %v5541_v49 = vadd.f32 %v9313_v33, %v5409_v61  ;;  %v8303_v61 = vld [vmem:[%s8821_s5 + $0xa0] sm:$0xff] }
 0x207   : > { %v2867_v32 = vpop.f32.mrf.mxu2 }
 0x208   : > { %v3168_v5 = vadd.f32 %v2867_v32, %v1875_v35  ;;  %v3988_v59 = vpop.f32.mrf.mxu3  ;;  %v5797_v47 = vmul.f32 0.2, %v5541_v49  ;;  %vm5669_vm14 = vcmp.ge.f32.partialorder %v5541_v49, 0.0 }
 0x209   : > { %v1877_v14 = vpop.f32.mrf.mxu1 }
 0x20a   : > { %v4289_v46 = vadd.f32 %v3988_v59, %v3168_v5  ;;  %v1878_v58 = vadd.f32 %v1877_v14, %v9089_v23  ;;  %v5925_v12 = vsel %vm5669_vm14, %v5541_v49, %v5797_v47 }
 0x20b   : > { %v5112_v13 = vpop.f32.mrf.mxu0 }
 0x20c   : > { %v5410_v51 = vadd.f32 %v5109_v25, %v4289_v46  ;;  %6973 = vmatmul.msk.bf16.gmra.mxu1 %vm777_vm1, %v8038_v11  ;;  %7306 = vmatmul.msk.bf16.gmra.mxu2 %vm777_vm1, %v8170_v50 }
 0x20d   : > { %7639 = vmatmul.msk.bf16.gmra.mxu3 %vm777_vm1, %v8236_v7 }
 0x20e   : > { %7972 = vmatmul.msk.bf16.gmra.mxu0 %vm777_vm1, %v8302_v62  ;;  %v5542_v45 = vadd.f32 %v9313_v33, %v5410_v51 }
 0x20f   : > { %v2870_v39 = vpop.f32.mrf.mxu2 }
 0x210   : > { %vm5670_vm15 = vcmp.ge.f32.partialorder %v5542_v45, 0.0  ;;  %v5798_v27 = vmul.f32 0.2, %v5542_v45  ;;  %v3169_v6 = vadd.f32 %v2870_v39, %v1878_v58  ;;  %v3991_v22 = vpop.f32.mrf.mxu3 }
 0x211   : > { %v1879_v4 = vpop.f32.mrf.mxu1 }
 0x212   : > { %v5926_v57 = vsel %vm5670_vm15, %v5542_v45, %v5798_v27  ;;  %v4290_v18 = vadd.f32 %v3991_v22, %v3169_v6  ;;  %v1880_v23 = vadd.f32 %v1879_v4, %v9101_v38  ;;  %v8040_v4 = vld [vmem:[%s8821_s5 + $0x88] sm:$0xff] }
 0x213   : > { %v5114_v21 = vpop.f32.mrf.mxu0  ;;  %v8386_v34 = vpack.c.bf16 %v5926_v57, %v5925_v12  ;;  %v8172_v12 = vld [vmem:[%s8821_s5 + $0x98] sm:$0xff] }
 0x214   : > { %v5411_v3 = vadd.f32 %v5112_v13, %v4290_v18  ;;  %v8238_v18 = vld [vmem:[%s8821_s5 + $0x2b8] sm:$0xff] }
 0x215   : > { %8678 = vst [vmem:[%s9330_s29 + $0x30] sm:$0xff] %v8386_v34  }
 0x216   : > { %v5543_v35 = vadd.f32 %v9313_v33, %v5411_v3 }
 0x217   : > { %v2872_v55 = vpop.f32.mrf.mxu2 }
 0x218   : > { %v3170_v63 = vadd.f32 %v2872_v55, %v1880_v23  ;;  %v3993_v56 = vpop.f32.mrf.mxu3  ;;  %v5799_v38 = vmul.f32 0.2, %v5543_v35  ;;  %vm5671_vm0 = vcmp.ge.f32.partialorder %v5543_v35, 0.0 }
 0x219   : > { %v1882_v25 = vpop.f32.mrf.mxu1 }
 0x21a   : > { %v4291_v32 = vadd.f32 %v3993_v56, %v3170_v63  ;;  %v1883_v50 = vadd.f32 %v1882_v25, %v9113_v53  ;;  %v5927_v13 = vsel %vm5671_vm0, %v5543_v35, %v5799_v38 }
 0x21b   : > { %v5117_v5 = vpop.f32.mrf.mxu0 }
 0x21c   : > { %v5412_v59 = vadd.f32 %v5114_v21, %v4291_v32  ;;  %6974 = vmatmul.msk.bf16.gmra.mxu1 %vm777_vm1, %v8039_v19  ;;  %7307 = vmatmul.msk.bf16.gmra.mxu2 %vm777_vm1, %v8171_v43  ;;  %v8304_v21 = vld [vmem:[%s8821_s5 + $0xa8] sm:$0xff] }
 0x21d   : > { %7640 = vmatmul.msk.bf16.gmra.mxu3 %vm777_vm1, %v8237_v31 }
 0x21e   : > { %7973 = vmatmul.msk.bf16.gmra.mxu0 %vm777_vm1, %v8303_v61  ;;  %v5544_v11 = vadd.f32 %v9313_v33, %v5412_v59 }
 0x21f   : > { %v2875_v14 = vpop.f32.mrf.mxu2 }
 0x220   : > { %vm5672_vm2 = vcmp.ge.f32.partialorder %v5544_v11, 0.0  ;;  %v5800_v7 = vmul.f32 0.2, %v5544_v11  ;;  %v3171_v62 = vadd.f32 %v2875_v14, %v1883_v50  ;;  %v3996_v49 = vpop.f32.mrf.mxu3 }
 0x221   : > { %v1884_v46 = vpop.f32.mrf.mxu1 }
 0x222   : > { %v5928_v51 = vsel %vm5672_vm2, %v5544_v11, %v5800_v7  ;;  %v4292_v47 = vadd.f32 %v3996_v49, %v3171_v62  ;;  %v1885_v53 = vadd.f32 %v1884_v46, %v9125_v41  ;;  %v8041_v62 = vld [vmem:[%s8821_s5 + $0x90] sm:$0xff]  ;;  %v8173_v49 = vld [vmem:[%s8821_s5 + $0xa0] sm:$0xff] }
 0x223   : > { %v5119_v45 = vpop.f32.mrf.mxu0  ;;  %v8391_v58 = vpack.c.bf16 %v5928_v51, %v5927_v13  ;;  %v8239_v13 = vld [vmem:[%s8821_s5 + $0x2c0] sm:$0xff]  ;;  %v8305_v51 = vld [vmem:[%s8821_s5 + $0xb0] sm:$0xff] }
 0x224   : > { %v5413_v39 = vadd.f32 %v5117_v5, %v4292_v47 }
 0x225   : > { %8679 = vst [vmem:[%s9330_s29 + $0x38] sm:$0xff] %v8391_v58  }
 0x226   : > { %v5545_v34 = vadd.f32 %v9313_v33, %v5413_v39 }
 0x227   : > { %v2877_v27 = vpop.f32.mrf.mxu2 }
 0x228   : > { %v3172_v6 = vadd.f32 %v2877_v27, %v1885_v53  ;;  %v3998_v22 = vpop.f32.mrf.mxu3  ;;  %v5801_v41 = vmul.f32 0.2, %v5545_v34  ;;  %vm5673_vm3 = vcmp.ge.f32.partialorder %v5545_v34, 0.0 }
 0x229   : > { %v1887_v57 = vpop.f32.mrf.mxu1 }
 0x22a   : > { %v4293_v3 = vadd.f32 %v3998_v22, %v3172_v6  ;;  %v1888_v56 = vadd.f32 %v1887_v57, %v9137_v16  ;;  %v5929_v35 = vsel %vm5673_vm3, %v5545_v34, %v5801_v41 }
 0x22b   : > { %v5122_v23 = vpop.f32.mrf.mxu0 }
 0x22c   : > { %v5414_v55 = vadd.f32 %v5119_v45, %v4293_v3  ;;  %6975 = vmatmul.msk.bf16.gmra.mxu1 %vm777_vm1, %v8040_v4  ;;  %7308 = vmatmul.msk.bf16.gmra.mxu2 %vm777_vm1, %v8172_v12 }
 0x22d   : > { %7641 = vmatmul.msk.bf16.gmra.mxu3 %vm777_vm1, %v8238_v18 }
 0x22e   : > { %7974 = vmatmul.msk.bf16.gmra.mxu0 %vm777_vm1, %v8304_v21  ;;  %v5546_v63 = vadd.f32 %v9313_v33, %v5414_v55 }
 0x22f   : > { %v2880_v19 = vpop.f32.mrf.mxu2 }
 0x230   : > { %vm5674_vm4 = vcmp.ge.f32.partialorder %v5546_v63, 0.0  ;;  %v5802_v43 = vmul.f32 0.2, %v5546_v63  ;;  %v3173_v25 = vadd.f32 %v2880_v19, %v1888_v56  ;;  %v4001_v31 = vpop.f32.mrf.mxu3  ;;  %v8042_v19 = vld [vmem:[%s8821_s5 + $0x98] sm:$0xff] }
 0x231   : > { %v1889_v61 = vpop.f32.mrf.mxu1 }
 0x232   : > { %v5930_v32 = vsel %vm5674_vm4, %v5546_v63, %v5802_v43  ;;  %v4294_v5 = vadd.f32 %v4001_v31, %v3173_v25  ;;  %v1890_v16 = vadd.f32 %v1889_v61, %v9149_v1  ;;  %v8174_v43 = vld [vmem:[%s8821_s5 + $0xa8] sm:$0xff]  ;;  %v8306_v61 = vld [vmem:[%s8821_s5 + $0xb8] sm:$0xff] }
 0x233   : > { %v5124_v59 = vpop.f32.mrf.mxu0  ;;  %v8396_v38 = vpack.c.bf16 %v5930_v32, %v5929_v35  ;;  %v8240_v31 = vld [vmem:[%s8821_s5 + $0x2c8] sm:$0xff] }
 0x234   : > { %v5415_v11 = vadd.f32 %v5122_v23, %v4294_v5 }
 0x235   : > { %8680 = vst [vmem:[%s9330_s29 + $0x40] sm:$0xff] %v8396_v38  }
 0x236   : > { %v5547_v47 = vadd.f32 %v9313_v33, %v5415_v11 }
 0x237   : > { %v2882_v50 = vpop.f32.mrf.mxu2 }
 0x238   : > { %v3174_v14 = vadd.f32 %v2882_v50, %v1890_v16  ;;  %v4003_v7 = vpop.f32.mrf.mxu3  ;;  %v5803_v1 = vmul.f32 0.2, %v5547_v47  ;;  %vm5675_vm5 = vcmp.ge.f32.partialorder %v5547_v47, 0.0 }
 0x239   : > { %v1892_v46 = vpop.f32.mrf.mxu1 }
 0x23a   : > { %v4295_v45 = vadd.f32 %v4003_v7, %v3174_v14  ;;  %v1893_v27 = vadd.f32 %v1892_v46, %v9161_v29  ;;  %v5931_v18 = vsel %vm5675_vm5, %v5547_v47, %v5803_v1 }
 0x23b   : > { %v5127_v58 = vpop.f32.mrf.mxu0 }
 0x23c   : > { %v5416_v39 = vadd.f32 %v5124_v59, %v4295_v45  ;;  %6976 = vmatmul.msk.bf16.gmra.mxu1 %vm777_vm1, %v8041_v62  ;;  %7309 = vmatmul.msk.bf16.gmra.mxu2 %vm777_vm1, %v8173_v49 }
 0x23d   : > { %7642 = vmatmul.msk.bf16.gmra.mxu3 %vm777_vm1, %v8239_v13 }
 0x23e   : > { %7975 = vmatmul.msk.bf16.gmra.mxu0 %vm777_vm1, %v8305_v51  ;;  %v5548_v53 = vadd.f32 %v9313_v33, %v5416_v39 }
 0x23f   : > { %v2885_v6 = vpop.f32.mrf.mxu2 }
 0x240   : > { %vm5676_vm6 = vcmp.ge.f32.partialorder %v5548_v53, 0.0  ;;  %v5804_v22 = vmul.f32 0.2, %v5548_v53  ;;  %v3175_v4 = vadd.f32 %v2885_v6, %v1893_v27  ;;  %v4006_v12 = vpop.f32.mrf.mxu3  ;;  %v8175_v27 = vld [vmem:[%s8821_s5 + $0xb0] sm:$0xff] }
 0x241   : > { %v1894_v57 = vpop.f32.mrf.mxu1 }
 0x242   : > { %v5932_v21 = vsel %vm5676_vm6, %v5548_v53, %v5804_v22  ;;  %v4296_v34 = vadd.f32 %v4006_v12, %v3175_v4  ;;  %v1895_v29 = vadd.f32 %v1894_v57, %v9173_v26  ;;  %v8043_v53 = vld [vmem:[%s8821_s5 + $0xa0] sm:$0xff]  ;;  %v8241_v22 = vld [vmem:[%s8821_s5 + $0x2d0] sm:$0xff] }
 0x243   : > { %v5129_v3 = vpop.f32.mrf.mxu0  ;;  %v8401_v23 = vpack.c.bf16 %v5932_v21, %v5931_v18  ;;  %v8307_v4 = vld [vmem:[%s8821_s5 + $0xc0] sm:$0xff] }
 0x244   : > { %v5417_v55 = vadd.f32 %v5127_v58, %v4296_v34 }
 0x245   : > { %8681 = vst [vmem:[%s9330_s29 + $0x48] sm:$0xff] %v8401_v23  }
 0x246   : > { %v5549_v35 = vadd.f32 %v9313_v33, %v5417_v55 }
 0x247   : > { %v2887_v41 = vpop.f32.mrf.mxu2 }
 0x248   : > { %v3176_v63 = vadd.f32 %v2887_v41, %v1895_v29  ;;  %v4008_v56 = vpop.f32.mrf.mxu3  ;;  %v5805_v26 = vmul.f32 0.2, %v5549_v35  ;;  %vm5677_vm7 = vcmp.ge.f32.partialorder %v5549_v35, 0.0 }
 0x249   : > { %v1897_v25 = vpop.f32.mrf.mxu1 }
 0x24a   : > { %v4297_v32 = vadd.f32 %v4008_v56, %v3176_v63  ;;  %v1898_v11 = vadd.f32 %v1897_v25, %v9185_v10  ;;  %v5933_v49 = vsel %vm5677_vm7, %v5549_v35, %v5805_v26  ;;  %v8176_v26 = vld [vmem:[%s8821_s5 + $0xb8] sm:$0xff] }
 0x24b   : > { %v5132_v5 = vpop.f32.mrf.mxu0 }
 0x24c   : > { %v5418_v59 = vadd.f32 %v5129_v3, %v4297_v32  ;;  %6977 = vmatmul.msk.bf16.gmra.mxu1 %vm777_vm1, %v8042_v19  ;;  %7310 = vmatmul.msk.bf16.gmra.mxu2 %vm777_vm1, %v8174_v43 }
 0x24d   : > { %7643 = vmatmul.msk.bf16.gmra.mxu3 %vm777_vm1, %v8240_v31 }
 0x24e   : > { %7976 = vmatmul.msk.bf16.gmra.mxu0 %vm777_vm1, %v8306_v61  ;;  %v5550_v38 = vadd.f32 %v9313_v33, %v5418_v59  ;;  %v8044_v59 = vld [vmem:[%s8821_s5 + $0xa8] sm:$0xff] }
 0x24f   : > { %v2890_v16 = vpop.f32.mrf.mxu2 }
 0x250   : > { %vm5678_vm8 = vcmp.ge.f32.partialorder %v5550_v38, 0.0  ;;  %v5806_v50 = vmul.f32 0.2, %v5550_v38  ;;  %v3177_v14 = vadd.f32 %v2890_v16, %v1898_v11  ;;  %v4011_v7 = vpop.f32.mrf.mxu3  ;;  %v8242_v11 = vld [vmem:[%s8821_s5 + $0x2d8] sm:$0xff]  ;;  %v8308_v16 = vld [vmem:[%s8821_s5 + $0xc8] sm:$0xff] }
 0x251   : > { %v1899_v62 = vpop.f32.mrf.mxu1 }
 0x252   : > { %v5934_v46 = vsel %vm5678_vm8, %v5550_v38, %v5806_v50  ;;  %v4298_v13 = vadd.f32 %v4011_v7, %v3177_v14  ;;  %v1900_v10 = vadd.f32 %v1899_v62, %v9197_v8 }
 0x253   : > { %v5134_v51 = vpop.f32.mrf.mxu0  ;;  %v8406_v47 = vpack.c.bf16 %v5934_v46, %v5933_v49 }
 0x254   : > { %v5419_v45 = vadd.f32 %v5132_v5, %v4298_v13 }
 0x255   : > { %8682 = vst [vmem:[%s9330_s29 + $0x50] sm:$0xff] %v8406_v47  }
 0x256   : > { %v5551_v12 = vadd.f32 %v9313_v33, %v5419_v45 }
 0x257   : > { %v2892_v58 = vpop.f32.mrf.mxu2 }
 0x258   : > { %v3178_v39 = vadd.f32 %v2892_v58, %v1900_v10  ;;  %v4013_v1 = vpop.f32.mrf.mxu3  ;;  %v5807_v8 = vmul.f32 0.2, %v5551_v12  ;;  %vm5679_vm9 = vcmp.ge.f32.partialorder %v5551_v12, 0.0 }
 0x259   : > { %v1902_v6 = vpop.f32.mrf.mxu1 }
 0x25a   : > { %v4299_v57 = vadd.f32 %v4013_v1, %v3178_v39  ;;  %v1903_v3 = vadd.f32 %v1902_v6, %v9209_v37  ;;  %v5935_v56 = vsel %vm5679_vm9, %v5551_v12, %v5807_v8  ;;  %v8243_v8 = vld [vmem:[%s8821_s5 + $0x2e0] sm:$0xff] }
 0x25b   : > { %v5137_v18 = vpop.f32.mrf.mxu0 }
 0x25c   : > { %v5420_v21 = vadd.f32 %v5134_v51, %v4299_v57  ;;  %6978 = vmatmul.msk.bf16.gmra.mxu1 %vm777_vm1, %v8043_v53  ;;  %7311 = vmatmul.msk.bf16.gmra.mxu2 %vm777_vm1, %v8175_v27  ;;  %v8045_v57 = vld [vmem:[%s8821_s5 + $0xb0] sm:$0xff] }
 0x25d   : > { %7644 = vmatmul.msk.bf16.gmra.mxu3 %vm777_vm1, %v8241_v22 }
 0x25e   : > { %7977 = vmatmul.msk.bf16.gmra.mxu0 %vm777_vm1, %v8307_v4  ;;  %v5552_v34 = vadd.f32 %v9313_v33, %v5420_v21 }
 0x25f   : > { %v2895_v23 = vpop.f32.mrf.mxu2 }
 0x260   : > { %vm5680_vm10 = vcmp.ge.f32.partialorder %v5552_v34, 0.0  ;;  %v5808_v55 = vmul.f32 0.2, %v5552_v34  ;;  %v3179_v29 = vadd.f32 %v2895_v23, %v1903_v3  ;;  %v4016_v41 = vpop.f32.mrf.mxu3 }
 0x261   : > { %v1904_v63 = vpop.f32.mrf.mxu1 }
 0x262   : > { %v5936_v19 = vsel %vm5680_vm10, %v5552_v34, %v5808_v55  ;;  %v4300_v43 = vadd.f32 %v4016_v41, %v3179_v29  ;;  %v1905_v37 = vadd.f32 %v1904_v63, %v9221_v40  ;;  %v8309_v34 = vld [vmem:[%s8821_s5 + $0xd0] sm:$0xff] }
 0x263   : > { %v5139_v25 = vpop.f32.mrf.mxu0  ;;  %v8411_v31 = vpack.c.bf16 %v5936_v19, %v5935_v56 }
 0x264   : > { %v5421_v61 = vadd.f32 %v5137_v18, %v4300_v43  ;;  %v8177_v18 = vld [vmem:[%s8821_s5 + $0xc0] sm:$0xff] }
 0x265   : > { %8683 = vst [vmem:[%s9330_s29 + $0x58] sm:$0xff] %v8411_v31  }
 0x266   : > { %v5553_v50 = vadd.f32 %v9313_v33, %v5421_v61 }
 0x267   : > { %v2897_v35 = vpop.f32.mrf.mxu2 }
 0x268   : > { %v3180_v32 = vadd.f32 %v2897_v35, %v1905_v37  ;;  %v4018_v5 = vpop.f32.mrf.mxu3  ;;  %v5809_v40 = vmul.f32 0.2, %v5553_v50  ;;  %vm5681_vm11 = vcmp.ge.f32.partialorder %v5553_v50, 0.0 }
 0x269   : > { %v1907_v38 = vpop.f32.mrf.mxu1 }
 0x26a   : > { %v4301_v14 = vadd.f32 %v4018_v5, %v3180_v32  ;;  %v1908_v46 = vadd.f32 %v1907_v38, %v9233_v52  ;;  %v5937_v58 = vsel %vm5681_vm11, %v5553_v50, %v5809_v40  ;;  %v8178_v50 = vld [vmem:[%s8821_s5 + $0xc8] sm:$0xff] }
 0x26b   : > { %v5142_v7 = vpop.f32.mrf.mxu0 }
 0x26c   : > { %v5422_v62 = vadd.f32 %v5139_v25, %v4301_v14  ;;  %6979 = vmatmul.msk.bf16.gmra.mxu1 %vm777_vm1, %v8044_v59  ;;  %7312 = vmatmul.msk.bf16.gmra.mxu2 %vm777_vm1, %v8176_v26 }
 0x26d   : > { %7645 = vmatmul.msk.bf16.gmra.mxu3 %vm777_vm1, %v8242_v11 }
 0x26e   : > { %7978 = vmatmul.msk.bf16.gmra.mxu0 %vm777_vm1, %v8308_v16  ;;  %v5554_v49 = vadd.f32 %v9313_v33, %v5422_v62  ;;  %v8046_v16 = vld [vmem:[%s8821_s5 + $0xb8] sm:$0xff] }
 0x26f   : > { %v2900_v13 = vpop.f32.mrf.mxu2  ;;  %v8310_v62 = vld [vmem:[%s8821_s5 + $0xd8] sm:$0xff] }
 0x270   : > { %vm5682_vm12 = vcmp.ge.f32.partialorder %v5554_v49, 0.0  ;;  %v5810_v51 = vmul.f32 0.2, %v5554_v49  ;;  %v3181_v47 = vadd.f32 %v2900_v13, %v1908_v46  ;;  %v4021_v45 = vpop.f32.mrf.mxu3 }
 0x271   : > { %v1909_v10 = vpop.f32.mrf.mxu1 }
 0x272   : > { %v5938_v39 = vsel %vm5682_vm12, %v5554_v49, %v5810_v51  ;;  %v4302_v1 = vadd.f32 %v4021_v45, %v3181_v47  ;;  %v1910_v52 = vadd.f32 %v1909_v10, %v9245_v15 }
 0x273   : > { %v5144_v53 = vpop.f32.mrf.mxu0  ;;  %v8416_v27 = vpack.c.bf16 %v5938_v39, %v5937_v58 }
 0x274   : > { %v5423_v6 = vadd.f32 %v5142_v7, %v4302_v1  ;;  %v8244_v7 = vld [vmem:[%s8821_s5 + $0x2e8] sm:$0xff] }
 0x275   : > { %8684 = vst [vmem:[%s9330_s29 + $0x60] sm:$0xff] %v8416_v27  }
 0x276   : > { %v5555_v3 = vadd.f32 %v9313_v33, %v5423_v6 }
 0x277   : > { %v2902_v22 = vpop.f32.mrf.mxu2 }
 0x278   : > { %v3182_v4 = vadd.f32 %v2902_v22, %v1910_v52  ;;  %v4023_v12 = vpop.f32.mrf.mxu3  ;;  %v5811_v15 = vmul.f32 0.2, %v5555_v3  ;;  %vm5683_vm13 = vcmp.ge.f32.partialorder %v5555_v3, 0.0 }
 0x279   : > { %v1912_v21 = vpop.f32.mrf.mxu1 }
 0x27a   : > { %v4303_v23 = vadd.f32 %v4023_v12, %v3182_v4  ;;  %v1913_v63 = vadd.f32 %v1912_v21, %v9257_v28  ;;  %v5939_v61 = vsel %vm5683_vm13, %v5555_v3, %v5811_v15  ;;  %v8179_v21 = vld [vmem:[%s8821_s5 + $0xd0] sm:$0xff]  ;;  %v8311_v3 = vld [vmem:[%s8821_s5 + $0xe0] sm:$0xff] }
 0x27b   : > { %v5147_v55 = vpop.f32.mrf.mxu0 }
 0x27c   : > { %v5424_v29 = vadd.f32 %v5144_v53, %v4303_v23  ;;  %6980 = vmatmul.msk.bf16.gmra.mxu1 %vm777_vm1, %v8045_v57  ;;  %7313 = vmatmul.msk.bf16.gmra.mxu2 %vm777_vm1, %v8177_v18  ;;  %v8047_v18 = vld [vmem:[%s8821_s5 + $0xc0] sm:$0xff] }
 0x27d   : > { %7646 = vmatmul.msk.bf16.gmra.mxu3 %vm777_vm1, %v8243_v8  ;;  %v9523_v23 = vld [vmem:[%s10101_s2] ss:$0 sm:$0xff] }
 0x27e   : > { %7979 = vmatmul.msk.bf16.gmra.mxu0 %vm777_vm1, %v8309_v34  ;;  %v5556_v41 = vadd.f32 %v9313_v33, %v5424_v29  ;;  %v8245_v34 = vld [vmem:[%s8821_s5 + $0x2f0] sm:$0xff] }
 0x27f   : > { %v2905_v56 = vpop.f32.mrf.mxu2 }
 0x280   : > { %vm5684_vm14 = vcmp.ge.f32.partialorder %v5556_v41, 0.0  ;;  %v5812_v19 = vmul.f32 0.2, %v5556_v41  ;;  %v3183_v43 = vadd.f32 %v2905_v56, %v1913_v63  ;;  %v4026_v25 = vpop.f32.mrf.mxu3 }
 0x281   : > { %v1914_v31 = vpop.f32.mrf.mxu1 }
 0x282   : > { %v5940_v37 = vsel %vm5684_vm14, %v5556_v41, %v5812_v19  ;;  %v4304_v35 = vadd.f32 %v4026_v25, %v3183_v43  ;;  %v1915_v28 = vadd.f32 %v1914_v31, %v9269_v44 }
 0x283   : > { %v5149_v32 = vpop.f32.mrf.mxu0  ;;  %v8421_v5 = vpack.c.bf16 %v5940_v37, %v5939_v61 }
 0x284   : > { %v5425_v59 = vadd.f32 %v5147_v55, %v4304_v35 }
 0x285   : > { %8685 = vst [vmem:[%s9330_s29 + $0x68] sm:$0xff] %v8421_v5  }
 0x286   : > { %v5557_v40 = vadd.f32 %v9313_v33, %v5425_v59 }
 0x287   : > { %v2907_v26 = vpop.f32.mrf.mxu2 }
 0x288   : > { %v3184_v38 = vadd.f32 %v2907_v26, %v1915_v28  ;;  %v4028_v11 = vpop.f32.mrf.mxu3  ;;  %v5813_v44 = vmul.f32 0.2, %v5557_v40  ;;  %vm5685_vm15 = vcmp.ge.f32.partialorder %v5557_v40, 0.0 }
 0x289   : > { %v1917_v14 = vpop.f32.mrf.mxu1 }
 0x28a   : > { %v4305_v49 = vadd.f32 %v4028_v11, %v3184_v38  ;;  %v1918_v47 = vadd.f32 %v1917_v14, %v9281_v0  ;;  %v5941_v53 = vsel %vm5685_vm15, %v5557_v40, %v5813_v44 }
 0x28b   : > { %v5152_v46 = vpop.f32.mrf.mxu0 }
 0x28c   : > { %v5426_v13 = vadd.f32 %v5149_v32, %v4305_v49  ;;  %6981 = vmatmul.msk.bf16.gmra.mxu1 %vm777_vm1, %v8046_v16  ;;  %7314 = vmatmul.msk.bf16.gmra.mxu2 %vm777_vm1, %v8178_v50  ;;  %v8048_v16 = vld [vmem:[%s8821_s5 + $0xc8] sm:$0xff]  ;;  %v8180_v50 = vld [vmem:[%s8821_s5 + $0xd8] sm:$0xff] }
 0x28d   : > { %7647 = vmatmul.msk.bf16.gmra.mxu3 %vm777_vm1, %v8244_v7  ;;  %v8246_v7 = vld [vmem:[%s8821_s5 + $0x2f8] sm:$0xff] }
 0x28e   : > { %7980 = vmatmul.msk.bf16.gmra.mxu0 %vm777_vm1, %v8310_v62  ;;  %v5558_v51 = vadd.f32 %v9313_v33, %v5426_v13  ;;  %v8312_v62 = vld [vmem:[%s8821_s5 + $0xe8] sm:$0xff] }
 0x28f   : > { %v2910_v45 = vpop.f32.mrf.mxu2 }
 0x290   : > { %vm5686_vm0 = vcmp.ge.f32.partialorder %v5558_v51, 0.0  ;;  %v5814_v10 = vmul.f32 0.2, %v5558_v51  ;;  %v3185_v58 = vadd.f32 %v2910_v45, %v1918_v47  ;;  %v4031_v39 = vpop.f32.mrf.mxu3 }
 0x291   : > { %v1919_v1 = vpop.f32.mrf.mxu1 }
 0x292   : > { %v5942_v27 = vsel %vm5686_vm0, %v5558_v51, %v5814_v10  ;;  %v4306_v6 = vadd.f32 %v4031_v39, %v3185_v58  ;;  %v1920_v0 = vadd.f32 %v1919_v1, %v9293_v20 }
 0x293   : > { %v5154_v52 = vpop.f32.mrf.mxu0  ;;  %v8426_v22 = vpack.c.bf16 %v5942_v27, %v5941_v53 }
 0x294   : > { %v5427_v33 = vadd.f32 %v5152_v46, %v4306_v6 }
 0x295   : > { %8686 = vst [vmem:[%s9330_s29 + $0x70] sm:$0xff] %v8426_v22  }
 0x296   : > { %v5559_v55 = vadd.f32 %v9523_v23, %v5427_v33 }
 0x297   : > { %v2912_v4 = vpop.f32.mrf.mxu2 }
 0x298   : > { %v3186_v12 = vadd.f32 %v2912_v4, %v1920_v0  ;;  %v4033_v57 = vpop.f32.mrf.mxu3  ;;  %v5815_v20 = vmul.f32 0.2, %v5559_v55  ;;  %vm5687_vm2 = vcmp.ge.f32.partialorder %v5559_v55, 0.0 }
 0x299   : > { %v1922_v8 = vpop.f32.mrf.mxu1 }
 0x29a   : > { %v4307_v29 = vadd.f32 %v4033_v57, %v3186_v12  ;;  %v1923_v56 = vadd.f32 %v1922_v8, %v8905_v60  ;;  %v5943_v37 = vsel %vm5687_vm2, %v5559_v55, %v5815_v20  ;;  %v8049_v12 = vld [vmem:[%s8821_s5 + $0xd0] sm:$0xff]  ;;  %v8181_v57 = vld [vmem:[%s8821_s5 + $0xe0] sm:$0xff] }
 0x29b   : > { %v5157_v15 = vpop.f32.mrf.mxu0  ;;  %v8313_v8 = vld [vmem:[%s8821_s5 + $0xf0] sm:$0xff] }
 0x29c   : > { %v5428_v41 = vadd.f32 %v5154_v52, %v4307_v29  ;;  %6982 = vmatmul.msk.bf16.gmra.mxu1 %vm777_vm1, %v8047_v18  ;;  %7315 = vmatmul.msk.bf16.gmra.mxu2 %vm777_vm1, %v8179_v21  ;;  %v8247_v21 = vld [vmem:[%s8821_s5 + $0x300] sm:$0xff] }
 0x29d   : > { %7648 = vmatmul.msk.bf16.gmra.mxu3 %vm777_vm1, %v8245_v34 }
 0x29e   : > { %7981 = vmatmul.msk.bf16.gmra.mxu0 %vm777_vm1, %v8311_v3  ;;  %v5560_v63 = vadd.f32 %v9523_v23, %v5428_v41 }
 0x29f   : > { %v2915_v19 = vpop.f32.mrf.mxu2 }
 0x2a0   : > { %vm5688_vm3 = vcmp.ge.f32.partialorder %v5560_v63, 0.0  ;;  %v5816_v43 = vmul.f32 0.2, %v5560_v63  ;;  %v3187_v25 = vadd.f32 %v2915_v19, %v1923_v56  ;;  %v4036_v31 = vpop.f32.mrf.mxu3 }
 0x2a1   : > { %v1924_v61 = vpop.f32.mrf.mxu1 }
 0x2a2   : > { %v5944_v35 = vsel %vm5688_vm3, %v5560_v63, %v5816_v43  ;;  %v4308_v32 = vadd.f32 %v4036_v31, %v3187_v25  ;;  %v1925_v60 = vadd.f32 %v1924_v61, %v8919_v2 }
 0x2a3   : > { %v5159_v5 = vpop.f32.mrf.mxu0  ;;  %v8431_v59 = vpack.c.bf16 %v5944_v35, %v5943_v37 }
 0x2a4   : > { %v5429_v28 = vadd.f32 %v5157_v15, %v4308_v32 }
 0x2a5   : > { %8687 = vst [vmem:[%s9330_s29 + $0x78] sm:$0xff] %v8431_v59  }
 0x2a6   : > { %v5561_v40 = vadd.f32 %v9523_v23, %v5429_v28 }
 0x2a7   : > { %v2917_v26 = vpop.f32.mrf.mxu2 }
 0x2a8   : > { %v3188_v38 = vadd.f32 %v2917_v26, %v1925_v60  ;;  %v4038_v11 = vpop.f32.mrf.mxu3  ;;  %v5817_v2 = vmul.f32 0.2, %v5561_v40  ;;  %vm5689_vm4 = vcmp.ge.f32.partialorder %v5561_v40, 0.0  ;;  %v8050_v60 = vld [vmem:[%s8821_s5 + $0xd8] sm:$0xff]  ;;  %v8182_v26 = vld [vmem:[%s8821_s5 + $0xe8] sm:$0xff] }
 0x2a9   : > { %v1927_v14 = vpop.f32.mrf.mxu1 }
 0x2aa   : > { %v4309_v49 = vadd.f32 %v4038_v11, %v3188_v38  ;;  %v1928_v51 = vadd.f32 %v1927_v14, %v8932_v9  ;;  %v5945_v1 = vsel %vm5689_vm4, %v5561_v40, %v5817_v2  ;;  %v8248_v11 = vld [vmem:[%s8821_s5 + $0x308] sm:$0xff] }
 0x2ab   : > { %v5162_v46 = vpop.f32.mrf.mxu0 }
 0x2ac   : > { %v5430_v13 = vadd.f32 %v5159_v5, %v4309_v49  ;;  %6983 = vmatmul.msk.bf16.gmra.mxu1 %vm777_vm1, %v8048_v16  ;;  %7316 = vmatmul.msk.bf16.gmra.mxu2 %vm777_vm1, %v8180_v50  ;;  %v8314_v16 = vld [vmem:[%s8821_s5 + $0xf8] sm:$0xff] }
 0x2ad   : > { %7649 = vmatmul.msk.bf16.gmra.mxu3 %vm777_vm1, %v8246_v7 }
 0x2ae   : > { %7982 = vmatmul.msk.bf16.gmra.mxu0 %vm777_vm1, %v8312_v62  ;;  %v5562_v44 = vadd.f32 %v9523_v23, %v5430_v13 }
 0x2af   : > { %v2920_v47 = vpop.f32.mrf.mxu2 }
 0x2b0   : > { %vm5690_vm5 = vcmp.ge.f32.partialorder %v5562_v44, 0.0  ;;  %v5818_v45 = vmul.f32 0.2, %v5562_v44  ;;  %v3189_v10 = vadd.f32 %v2920_v47, %v1928_v51  ;;  %v4041_v58 = vpop.f32.mrf.mxu3 }
 0x2b1   : > { %v1929_v39 = vpop.f32.mrf.mxu1 }
 0x2b2   : > { %v5946_v53 = vsel %vm5690_vm5, %v5562_v44, %v5818_v45  ;;  %v4310_v27 = vadd.f32 %v4041_v58, %v3189_v10  ;;  %v1930_v9 = vadd.f32 %v1929_v39, %v8952_v17 }
 0x2b3   : > { %v5164_v6 = vpop.f32.mrf.mxu0  ;;  %v8436_v52 = vpack.c.bf16 %v5946_v53, %v5945_v1 }
 0x2b4   : > { %v5431_v22 = vadd.f32 %v5162_v46, %v4310_v27 }
 0x2b5   : > { %8688 = vst [vmem:[%s9330_s29 + $0x80] sm:$0xff] %v8436_v52   ;;  %v8051_v52 = vld [vmem:[%s8821_s5 + $0xe0] sm:$0xff] }
 0x2b6   : > { %v5563_v34 = vadd.f32 %v9523_v23, %v5431_v22  ;;  %v8183_v22 = vld [vmem:[%s8821_s5 + $0xf0] sm:$0xff] }
 0x2b7   : > { %v2922_v33 = vpop.f32.mrf.mxu2 }
 0x2b8   : > { %v3190_v0 = vadd.f32 %v2922_v33, %v1930_v9  ;;  %v4043_v4 = vpop.f32.mrf.mxu3  ;;  %v5819_v17 = vmul.f32 0.2, %v5563_v34  ;;  %vm5691_vm6 = vcmp.ge.f32.partialorder %v5563_v34, 0.0  ;;  %v8249_v33 = vld [vmem:[%s8821_s5 + $0x310] sm:$0xff] }
 0x2b9   : > { %v1932_v18 = vpop.f32.mrf.mxu1 }
 0x2ba   : > { %v4311_v3 = vadd.f32 %v4043_v4, %v3190_v0  ;;  %v1933_v41 = vadd.f32 %v1932_v18, %v8965_v24  ;;  %v5947_v25 = vsel %vm5691_vm6, %v5563_v34, %v5819_v17  ;;  %v8315_v0 = vld [vmem:[%s8821_s5 + $0x100] sm:$0xff] }
 0x2bb   : > { %v5167_v55 = vpop.f32.mrf.mxu0 }
 0x2bc   : > { %v5432_v29 = vadd.f32 %v5164_v6, %v4311_v3  ;;  %6984 = vmatmul.msk.bf16.gmra.mxu1 %vm777_vm1, %v8049_v12  ;;  %7317 = vmatmul.msk.bf16.gmra.mxu2 %vm777_vm1, %v8181_v57 }
 0x2bd   : > { %7650 = vmatmul.msk.bf16.gmra.mxu3 %vm777_vm1, %v8247_v21 }
 0x2be   : > { %7983 = vmatmul.msk.bf16.gmra.mxu0 %vm777_vm1, %v8313_v8  ;;  %v5564_v15 = vadd.f32 %v9523_v23, %v5432_v29 }
 0x2bf   : > { %v2925_v20 = vpop.f32.mrf.mxu2 }
 0x2c0   : > { %vm5692_vm7 = vcmp.ge.f32.partialorder %v5564_v15, 0.0  ;;  %v5820_v63 = vmul.f32 0.2, %v5564_v15  ;;  %v3191_v56 = vadd.f32 %v2925_v20, %v1933_v41  ;;  %v4046_v19 = vpop.f32.mrf.mxu3 }
 0x2c1   : > { %v1934_v43 = vpop.f32.mrf.mxu1 }
 0x2c2   : > { %v5948_v31 = vsel %vm5692_vm7, %v5564_v15, %v5820_v63  ;;  %v4312_v61 = vadd.f32 %v4046_v19, %v3191_v56  ;;  %v1935_v24 = vadd.f32 %v1934_v43, %v8979_v30 }
 0x2c3   : > { %v5169_v37 = vpop.f32.mrf.mxu0  ;;  %v8441_v35 = vpack.c.bf16 %v5948_v31, %v5947_v25 }
 0x2c4   : > { %v5433_v32 = vadd.f32 %v5167_v55, %v4312_v61  ;;  %v8052_v61 = vld [vmem:[%s8821_s5 + $0xe8] sm:$0xff] }
 0x2c5   : > { %8689 = vst [vmem:[%s9330_s29 + $0x88] sm:$0xff] %v8441_v35  }
 0x2c6   : > { %v5565_v50 = vadd.f32 %v9523_v23, %v5433_v32  ;;  %v8250_v32 = vld [vmem:[%s8821_s5 + $0x318] sm:$0xff] }
 0x2c7   : > { %v2927_v5 = vpop.f32.mrf.mxu2 }
 0x2c8   : > { %v3192_v59 = vadd.f32 %v2927_v5, %v1935_v24  ;;  %v4048_v28 = vpop.f32.mrf.mxu3  ;;  %v5821_v30 = vmul.f32 0.2, %v5565_v50  ;;  %vm5693_vm8 = vcmp.ge.f32.partialorder %v5565_v50, 0.0  ;;  %v8316_v24 = vld [vmem:[%s8821_s5 + $0x108] sm:$0xff] }
 0x2c9   : > { %v1937_v38 = vpop.f32.mrf.mxu1 }
 0x2ca   : > { %v4313_v14 = vadd.f32 %v4048_v28, %v3192_v59  ;;  %v1938_v49 = vadd.f32 %v1937_v38, %v8989_v36  ;;  %v5949_v47 = vsel %vm5693_vm8, %v5565_v50, %v5821_v30  ;;  %v10189_v38 = vld [vmem:[#allocation22_spill] sm:$0xff] }
 0x2cb   : > { %v5172_v7 = vpop.f32.mrf.mxu0 }
 0x2cc   : > { %v5434_v62 = vadd.f32 %v5169_v37, %v4313_v14  ;;  %6985 = vmatmul.msk.bf16.gmra.mxu1 %vm777_vm1, %v8050_v60  ;;  %7318 = vmatmul.msk.bf16.gmra.mxu2 %vm777_vm1, %v8182_v26  ;;  %v8184_v37 = vld [vmem:[%s8821_s5 + $0xf8] sm:$0xff] }
 0x2cd   : > { %7651 = vmatmul.msk.bf16.gmra.mxu3 %vm777_vm1, %v8248_v11 }
 0x2ce   : > { %7984 = vmatmul.msk.bf16.gmra.mxu0 %vm777_vm1, %v8314_v16  ;;  %v5566_v40 = vadd.f32 %v9523_v23, %v5434_v62 }
 0x2cf   : > { %v2930_v46 = vpop.f32.mrf.mxu2 }
 0x2d0   : > { %vm5694_vm9 = vcmp.ge.f32.partialorder %v5566_v40, 0.0  ;;  %v5822_v13 = vmul.f32 0.2, %v5566_v40  ;;  %v3193_v2 = vadd.f32 %v2930_v46, %v1938_v49  ;;  %v4051_v44 = vpop.f32.mrf.mxu3 }
 0x2d1   : > { %v1939_v51 = vpop.f32.mrf.mxu1 }
 0x2d2   : > { %v5950_v45 = vsel %vm5694_vm9, %v5566_v40, %v5822_v13  ;;  %v4314_v10 = vadd.f32 %v4051_v44, %v3193_v2  ;;  %v1940_v36 = vadd.f32 %v1939_v51, %v9003_v42  ;;  %v10190_v44 = vld [vmem:[#allocation25_spill] sm:$0xff] }
 0x2d3   : > { %v5174_v58 = vpop.f32.mrf.mxu0  ;;  %v8446_v39 = vpack.c.bf16 %v5950_v45, %v5949_v47 }
 0x2d4   : > { %v5435_v1 = vadd.f32 %v5172_v7, %v4314_v10 }
 0x2d5   : > { %8690 = vst [vmem:[%s9330_s29 + $0x90] sm:$0xff] %v8446_v39   ;;  %v8185_v39 = vld [vmem:[%s8821_s5 + $0x100] sm:$0xff] }
 0x2d6   : > { %v5567_v4 = vadd.f32 %v9523_v23, %v5435_v1 }
 0x2d7   : > { %v2932_v53 = vpop.f32.mrf.mxu2 }
 0x2d8   : > { %v3194_v27 = vadd.f32 %v2932_v53, %v1940_v36  ;;  %v4053_v6 = vpop.f32.mrf.mxu3  ;;  %v5823_v42 = vmul.f32 0.2, %v5567_v4  ;;  %vm5695_vm10 = vcmp.ge.f32.partialorder %v5567_v4, 0.0  ;;  %v8251_v36 = vld [vmem:[%s8821_s5 + $0x320] sm:$0xff]  ;;  %v8317_v53 = vld [vmem:[%s8821_s5 + $0x110] sm:$0xff] }
 0x2d9   : > { %v1942_v9 = vpop.f32.mrf.mxu1 }
 0x2da   : > { %v4315_v12 = vadd.f32 %v4053_v6, %v3194_v27  ;;  %v1943_v8 = vadd.f32 %v1942_v9, %v9013_v48  ;;  %v5951_v15 = vsel %vm5695_vm10, %v5567_v4, %v5823_v42 }
 0x2db   : > { %v5177_v57 = vpop.f32.mrf.mxu0 }
 0x2dc   : > { %v5436_v18 = vadd.f32 %v5174_v58, %v4315_v12  ;;  %6986 = vmatmul.msk.bf16.gmra.mxu1 %vm777_vm1, %v8051_v52  ;;  %7319 = vmatmul.msk.bf16.gmra.mxu2 %vm777_vm1, %v8183_v22  ;;  %v8053_v58 = vld [vmem:[%s8821_s5 + $0xf0] sm:$0xff] }
 0x2dd   : > { %7652 = vmatmul.msk.bf16.gmra.mxu3 %vm777_vm1, %v8249_v33 }
 0x2de   : > { %7985 = vmatmul.msk.bf16.gmra.mxu0 %vm777_vm1, %v8315_v0  ;;  %v5568_v21 = vadd.f32 %v9523_v23, %v5436_v18  ;;  %v10191_v0 = vld [vmem:[#allocation28_spill] sm:$0xff] }
 0x2df   : > { %v2935_v34 = vpop.f32.mrf.mxu2 }
 0x2e0   : > { %vm5696_vm11 = vcmp.ge.f32.partialorder %v5568_v21, 0.0  ;;  %v5824_v3 = vmul.f32 0.2, %v5568_v21  ;;  %v3195_v55 = vadd.f32 %v2935_v34, %v1943_v8  ;;  %v4056_v29 = vpop.f32.mrf.mxu3 }
 0x2e1   : > { %v1944_v17 = vpop.f32.mrf.mxu1 }
 0x2e2   : > { %v5952_v41 = vsel %vm5696_vm11, %v5568_v21, %v5824_v3  ;;  %v4316_v20 = vadd.f32 %v4056_v29, %v3195_v55  ;;  %v1945_v48 = vadd.f32 %v1944_v17, %v9027_v54 }
 0x2e3   : > { %v5179_v63 = vpop.f32.mrf.mxu0  ;;  %v8451_v56 = vpack.c.bf16 %v5952_v41, %v5951_v15  ;;  %v10192_v15 = vld [vmem:[#allocation31_spill] sm:$0xff] }
 0x2e4   : > { %v5437_v19 = vadd.f32 %v5177_v57, %v4316_v20 }
 0x2e5   : > { %8691 = vst [vmem:[%s9330_s29 + $0x98] sm:$0xff] %v8451_v56  }
 0x2e6   : > { %v5569_v5 = vadd.f32 %v9523_v23, %v5437_v19  ;;  %v8054_v19 = vld [vmem:[%s8821_s5 + $0xf8] sm:$0xff] }
 0x2e7   : > { %v2937_v43 = vpop.f32.mrf.mxu2 }
 0x2e8   : > { %v3196_v25 = vadd.f32 %v2937_v43, %v1945_v48  ;;  %v4058_v31 = vpop.f32.mrf.mxu3  ;;  %v5825_v54 = vmul.f32 0.2, %v5569_v5  ;;  %vm5697_vm12 = vcmp.ge.f32.partialorder %v5569_v5, 0.0  ;;  %v8186_v48 = vld [vmem:[%s8821_s5 + $0x108] sm:$0xff] }
 0x2e9   : > { %v1947_v35 = vpop.f32.mrf.mxu1 }
 0x2ea   : > { %v4317_v59 = vadd.f32 %v4058_v31, %v3196_v25  ;;  %v1948_v11 = vadd.f32 %v1947_v35, %v10189_v38  ;;  %v5953_v30 = vsel %vm5697_vm12, %v5569_v5, %v5825_v54  ;;  %v8252_v25 = vld [vmem:[%s8821_s5 + $0x328] sm:$0xff]  ;;  %v8318_v31 = vld [vmem:[%s8821_s5 + $0x118] sm:$0xff] }
 0x2eb   : > { %v5182_v28 = vpop.f32.mrf.mxu0 }
 0x2ec   : > { %v5438_v60 = vadd.f32 %v5179_v63, %v4317_v59  ;;  %6987 = vmatmul.msk.bf16.gmra.mxu1 %vm777_vm1, %v8052_v61  ;;  %7320 = vmatmul.msk.bf16.gmra.mxu2 %vm777_vm1, %v8184_v37  ;;  %v10193_v59 = vld [vmem:[#allocation34_spill] sm:$0xff] }
 0x2ed   : > { %7653 = vmatmul.msk.bf16.gmra.mxu3 %vm777_vm1, %v8250_v32 }
 0x2ee   : > { %7986 = vmatmul.msk.bf16.gmra.mxu0 %vm777_vm1, %v8316_v24  ;;  %v5570_v26 = vadd.f32 %v9523_v23, %v5438_v60 }
 0x2ef   : > { %v2940_v16 = vpop.f32.mrf.mxu2 }
 0x2f0   : > { %vm5698_vm13 = vcmp.ge.f32.partialorder %v5570_v26, 0.0  ;;  %v5826_v50 = vmul.f32 0.2, %v5570_v26  ;;  %v3197_v14 = vadd.f32 %v2940_v16, %v1948_v11  ;;  %v4061_v7 = vpop.f32.mrf.mxu3 }
 0x2f1   : > { %v1949_v62 = vpop.f32.mrf.mxu1 }
 0x2f2   : > { %v5954_v40 = vsel %vm5698_vm13, %v5570_v26, %v5826_v50  ;;  %v4318_v49 = vadd.f32 %v4061_v7, %v3197_v14  ;;  %v1950_v51 = vadd.f32 %v1949_v62, %v10190_v44  ;;  %v8055_v44 = vld [vmem:[%s8821_s5 + $0x100] sm:$0xff] }
 0x2f3   : > { %v5184_v46 = vpop.f32.mrf.mxu0  ;;  %v8456_v13 = vpack.c.bf16 %v5954_v40, %v5953_v30  ;;  %v10194_v40 = vld [vmem:[#allocation37_spill] sm:$0xff] }
 0x2f4   : > { %v5439_v2 = vadd.f32 %v5182_v28, %v4318_v49 }
 0x2f5   : > { %8692 = vst [vmem:[%s9330_s29 + $0xa0] sm:$0xff] %v8456_v13  }
 0x2f6   : > { %v5571_v27 = vadd.f32 %v9523_v23, %v5439_v2 }
 0x2f7   : > { %v2942_v47 = vpop.f32.mrf.mxu2 }
 0x2f8   : > { %v3198_v45 = vadd.f32 %v2942_v47, %v1950_v51  ;;  %v4063_v10 = vpop.f32.mrf.mxu3  ;;  %v5827_v9 = vmul.f32 0.2, %v5571_v27  ;;  %vm5699_vm14 = vcmp.ge.f32.partialorder %v5571_v27, 0.0  ;;  %v8187_v51 = vld [vmem:[%s8821_s5 + $0x110] sm:$0xff] }
 0x2f9   : > { %v1952_v1 = vpop.f32.mrf.mxu1 }
 0x2fa   : > { %v4319_v6 = vadd.f32 %v4063_v10, %v3198_v45  ;;  %v1953_v4 = vadd.f32 %v1952_v1, %v10191_v0  ;;  %v5955_v8 = vsel %vm5699_vm14, %v5571_v27, %v5827_v9  ;;  %v8253_v45 = vld [vmem:[%s8821_s5 + $0x330] sm:$0xff]  ;;  %v8319_v10 = vld [vmem:[%s8821_s5 + $0x120] sm:$0xff] }
 0x2fb   : > { %v5187_v52 = vpop.f32.mrf.mxu0 }
 0x2fc   : > { %v5440_v22 = vadd.f32 %v5184_v46, %v4319_v6  ;;  %6988 = vmatmul.msk.bf16.gmra.mxu1 %vm777_vm1, %v8053_v58  ;;  %7321 = vmatmul.msk.bf16.gmra.mxu2 %vm777_vm1, %v8185_v39  ;;  %v10195_v6 = vld [vmem:[#allocation40_spill] sm:$0xff] }
 0x2fd   : > { %7654 = vmatmul.msk.bf16.gmra.mxu3 %vm777_vm1, %v8251_v36 }
 0x2fe   : > { %7987 = vmatmul.msk.bf16.gmra.mxu0 %vm777_vm1, %v8317_v53  ;;  %v5572_v33 = vadd.f32 %v9523_v23, %v5440_v22 }
 0x2ff   : > { %v2945_v12 = vpop.f32.mrf.mxu2 }
 0x300   : > { %vm5700_vm15 = vcmp.ge.f32.partialorder %v5572_v33, 0.0  ;;  %v5828_v57 = vmul.f32 0.2, %v5572_v33  ;;  %v3199_v18 = vadd.f32 %v2945_v12, %v1953_v4  ;;  %v4066_v42 = vpop.f32.mrf.mxu3 }
 0x301   : > { %v1954_v21 = vpop.f32.mrf.mxu1 }
 0x302   : > { %v5956_v34 = vsel %vm5700_vm15, %v5572_v33, %v5828_v57  ;;  %v4320_v3 = vadd.f32 %v4066_v42, %v3199_v18  ;;  %v1955_v41 = vadd.f32 %v1954_v21, %v10192_v15  ;;  %v8056_v15 = vld [vmem:[%s8821_s5 + $0x108] sm:$0xff] }
 0x303   : > { %v5189_v55 = vpop.f32.mrf.mxu0  ;;  %v8461_v29 = vpack.c.bf16 %v5956_v34, %v5955_v8  ;;  %v10196_v34 = vld [vmem:[#allocation43_spill] sm:$0xff] }
 0x304   : > { %v5441_v17 = vadd.f32 %v5187_v52, %v4320_v3 }
 0x305   : > { %8693 = vst [vmem:[%s9330_s29 + $0xa8] sm:$0xff] %v8461_v29  }
 0x306   : > { %v5573_v61 = vadd.f32 %v9523_v23, %v5441_v17 }
 0x307   : > { %v2947_v20 = vpop.f32.mrf.mxu2 }
 0x308   : > { %v3200_v63 = vadd.f32 %v2947_v20, %v1955_v41  ;;  %v4068_v56 = vpop.f32.mrf.mxu3  ;;  %v5829_v24 = vmul.f32 0.2, %v5573_v61  ;;  %vm5701_vm0 = vcmp.ge.f32.partialorder %v5573_v61, 0.0  ;;  %v8188_v41 = vld [vmem:[%s8821_s5 + $0x118] sm:$0xff] }
 0x309   : > { %v1957_v43 = vpop.f32.mrf.mxu1 }
 0x30a   : > { %v4321_v37 = vadd.f32 %v4068_v56, %v3200_v63  ;;  %v1958_v28 = vadd.f32 %v1957_v43, %v10193_v59  ;;  %v5957_v16 = vsel %vm5701_vm0, %v5573_v61, %v5829_v24  ;;  %v8254_v63 = vld [vmem:[%s8821_s5 + $0x338] sm:$0xff]  ;;  %v8320_v56 = vld [vmem:[%s8821_s5 + $0x128] sm:$0xff] }
 0x30b   : > { %v5192_v35 = vpop.f32.mrf.mxu0 }
 0x30c   : > { %v5442_v32 = vadd.f32 %v5189_v55, %v4321_v37  ;;  %6989 = vmatmul.msk.bf16.gmra.mxu1 %vm777_vm1, %v8054_v19  ;;  %7322 = vmatmul.msk.bf16.gmra.mxu2 %vm777_vm1, %v8186_v48  ;;  %v10197_v37 = vld [vmem:[#allocation46_spill] sm:$0xff] }
 0x30d   : > { %7655 = vmatmul.msk.bf16.gmra.mxu3 %vm777_vm1, %v8252_v25 }
 0x30e   : > { %7988 = vmatmul.msk.bf16.gmra.mxu0 %vm777_vm1, %v8318_v31  ;;  %v5574_v5 = vadd.f32 %v9523_v23, %v5442_v32 }
 0x30f   : > { %v2950_v60 = vpop.f32.mrf.mxu2 }
 0x310   : > { %vm5702_vm2 = vcmp.ge.f32.partialorder %v5574_v5, 0.0  ;;  %v5830_v54 = vmul.f32 0.2, %v5574_v5  ;;  %v3201_v26 = vadd.f32 %v2950_v60, %v1958_v28  ;;  %v4071_v38 = vpop.f32.mrf.mxu3 }
 0x311   : > { %v1959_v11 = vpop.f32.mrf.mxu1 }
 0x312   : > { %v5958_v50 = vsel %vm5702_vm2, %v5574_v5, %v5830_v54  ;;  %v4322_v14 = vadd.f32 %v4071_v38, %v3201_v26  ;;  %v1960_v49 = vadd.f32 %v1959_v11, %v10194_v40  ;;  %v8057_v40 = vld [vmem:[%s8821_s5 + $0x110] sm:$0xff] }
 0x313   : > { %v5194_v7 = vpop.f32.mrf.mxu0  ;;  %v8466_v62 = vpack.c.bf16 %v5958_v50, %v5957_v16  ;;  %v10198_v50 = vld [vmem:[#allocation49_spill] sm:$0xff] }
 0x314   : > { %v5443_v30 = vadd.f32 %v5192_v35, %v4322_v14 }
 0x315   : > { %8694 = vst [vmem:[%s9330_s29 + $0xb0] sm:$0xff] %v8466_v62  }
 0x316   : > { %v5575_v58 = vadd.f32 %v9523_v23, %v5443_v30 }
 0x317   : > { %v2952_v46 = vpop.f32.mrf.mxu2 }
 0x318   : > { %v3202_v13 = vadd.f32 %v2952_v46, %v1960_v49  ;;  %v4073_v2 = vpop.f32.mrf.mxu3  ;;  %v5831_v53 = vmul.f32 0.2, %v5575_v58  ;;  %vm5703_vm3 = vcmp.ge.f32.partialorder %v5575_v58, 0.0  ;;  %v8189_v49 = vld [vmem:[%s8821_s5 + $0x120] sm:$0xff] }
 0x319   : > { %v1962_v47 = vpop.f32.mrf.mxu1 }
 0x31a   : > { %v4323_v39 = vadd.f32 %v4073_v2, %v3202_v13  ;;  %v1963_v52 = vadd.f32 %v1962_v47, %v10195_v6  ;;  %v5959_v12 = vsel %vm5703_vm3, %v5575_v58, %v5831_v53  ;;  %v8255_v13 = vld [vmem:[%s8821_s5 + $0x340] sm:$0xff]  ;;  %v8321_v2 = vld [vmem:[%s8821_s5 + $0x130] sm:$0xff] }
 0x31b   : > { %v5197_v1 = vpop.f32.mrf.mxu0 }
 0x31c   : > { %v5444_v36 = vadd.f32 %v5194_v7, %v4323_v39  ;;  %6990 = vmatmul.msk.bf16.gmra.mxu1 %vm777_vm1, %v8055_v44  ;;  %7323 = vmatmul.msk.bf16.gmra.mxu2 %vm777_vm1, %v8187_v51  ;;  %v10199_v39 = vld [vmem:[#allocation52_spill] sm:$0xff] }
 0x31d   : > { %7656 = vmatmul.msk.bf16.gmra.mxu3 %vm777_vm1, %v8253_v45 }
 0x31e   : > { %7989 = vmatmul.msk.bf16.gmra.mxu0 %vm777_vm1, %v8319_v10  ;;  %v5576_v27 = vadd.f32 %v9523_v23, %v5444_v36 }
 0x31f   : > { %v2955_v22 = vpop.f32.mrf.mxu2 }
 0x320   : > { %vm5704_vm4 = vcmp.ge.f32.partialorder %v5576_v27, 0.0  ;;  %v5832_v9 = vmul.f32 0.2, %v5576_v27  ;;  %v3203_v33 = vadd.f32 %v2955_v22, %v1963_v52  ;;  %v4076_v0 = vpop.f32.mrf.mxu3 }
 0x321   : > { %v1964_v4 = vpop.f32.mrf.mxu1 }
 0x322   : > { %v5960_v57 = vsel %vm5704_vm4, %v5576_v27, %v5832_v9  ;;  %v4324_v18 = vadd.f32 %v4076_v0, %v3203_v33  ;;  %v1965_v3 = vadd.f32 %v1964_v4, %v10196_v34  ;;  %v8058_v34 = vld [vmem:[%s8821_s5 + $0x118] sm:$0xff] }
 0x323   : > { %v5199_v42 = vpop.f32.mrf.mxu0  ;;  %v8471_v21 = vpack.c.bf16 %v5960_v57, %v5959_v12  ;;  %v10200_v57 = vld [vmem:[#allocation55_spill] sm:$0xff] }
 0x324   : > { %v5445_v8 = vadd.f32 %v5197_v1, %v4324_v18 }
 0x325   : > { %8695 = vst [vmem:[%s9330_s29 + $0xb8] sm:$0xff] %v8471_v21  }
 0x326   : > { %v5577_v19 = vadd.f32 %v9523_v23, %v5445_v8 }
 0x327   : > { %v2957_v55 = vpop.f32.mrf.mxu2 }
 0x328   : > { %v3204_v29 = vadd.f32 %v2957_v55, %v1965_v3  ;;  %v4078_v17 = vpop.f32.mrf.mxu3  ;;  %v5833_v31 = vmul.f32 0.2, %v5577_v19  ;;  %vm5705_vm5 = vcmp.ge.f32.partialorder %v5577_v19, 0.0  ;;  %v8190_v3 = vld [vmem:[%s8821_s5 + $0x128] sm:$0xff] }
 0x329   : > { %v1967_v20 = vpop.f32.mrf.mxu1 }
 0x32a   : > { %v4325_v48 = vadd.f32 %v4078_v17, %v3204_v29  ;;  %v1968_v35 = vadd.f32 %v1967_v20, %v10197_v37  ;;  %v5961_v60 = vsel %vm5705_vm5, %v5577_v19, %v5833_v31  ;;  %v8256_v29 = vld [vmem:[%s8821_s5 + $0x348] sm:$0xff]  ;;  %v8322_v17 = vld [vmem:[%s8821_s5 + $0x138] sm:$0xff] }
 0x32b   : > { %v5202_v43 = vpop.f32.mrf.mxu0 }
 0x32c   : > { %v5446_v25 = vadd.f32 %v5199_v42, %v4325_v48  ;;  %6991 = vmatmul.msk.bf16.gmra.mxu1 %vm777_vm1, %v8056_v15  ;;  %7324 = vmatmul.msk.bf16.gmra.mxu2 %vm777_vm1, %v8188_v41  ;;  %v10201_v48 = vld [vmem:[#allocation58_spill] sm:$0xff] }
 0x32d   : > { %7657 = vmatmul.msk.bf16.gmra.mxu3 %vm777_vm1, %v8254_v63 }
 0x32e   : > { %7990 = vmatmul.msk.bf16.gmra.mxu0 %vm777_vm1, %v8320_v56  ;;  %v5578_v61 = vadd.f32 %v9523_v23, %v5446_v25 }
 0x32f   : > { %v2960_v32 = vpop.f32.mrf.mxu2 }
 0x330   : > { %vm5706_vm6 = vcmp.ge.f32.partialorder %v5578_v61, 0.0  ;;  %v5834_v24 = vmul.f32 0.2, %v5578_v61  ;;  %v3205_v5 = vadd.f32 %v2960_v32, %v1968_v35  ;;  %v4081_v59 = vpop.f32.mrf.mxu3 }
 0x331   : > { %v1969_v28 = vpop.f32.mrf.mxu1 }
 0x332   : > { %v5962_v54 = vsel %vm5706_vm6, %v5578_v61, %v5834_v24  ;;  %v4326_v26 = vadd.f32 %v4081_v59, %v3205_v5  ;;  %v1970_v14 = vadd.f32 %v1969_v28, %v10198_v50  ;;  %v8059_v50 = vld [vmem:[%s8821_s5 + $0x120] sm:$0xff] }
 0x333   : > { %v5204_v38 = vpop.f32.mrf.mxu0  ;;  %v8476_v11 = vpack.c.bf16 %v5962_v54, %v5961_v60  ;;  %v10202_v54 = vld [vmem:[#allocation61_spill] sm:$0xff] }
 0x334   : > { %v5447_v16 = vadd.f32 %v5202_v43, %v4326_v26 }
 0x335   : > { %8696 = vst [vmem:[%s9330_s29 + $0xc0] sm:$0xff] %v8476_v11  }
 0x336   : > { %v5579_v44 = vadd.f32 %v9523_v23, %v5447_v16 }
 0x337   : > { %v2962_v7 = vpop.f32.mrf.mxu2 }
 0x338   : > { %v3206_v62 = vadd.f32 %v2962_v7, %v1970_v14  ;;  %v4083_v30 = vpop.f32.mrf.mxu3  ;;  %v5835_v10 = vmul.f32 0.2, %v5579_v44  ;;  %vm5707_vm7 = vcmp.ge.f32.partialorder %v5579_v44, 0.0  ;;  %v8191_v14 = vld [vmem:[%s8821_s5 + $0x130] sm:$0xff] }
 0x339   : > { %v1972_v46 = vpop.f32.mrf.mxu1 }
 0x33a   : > { %v4327_v51 = vadd.f32 %v4083_v30, %v3206_v62  ;;  %v1973_v1 = vadd.f32 %v1972_v46, %v10199_v39  ;;  %v5963_v22 = vsel %vm5707_vm7, %v5579_v44, %v5835_v10  ;;  %v8257_v62 = vld [vmem:[%s8821_s5 + $0x350] sm:$0xff]  ;;  %v8323_v30 = vld [vmem:[%s8821_s5 + $0x140] sm:$0xff] }
 0x33b   : > { %v5207_v47 = vpop.f32.mrf.mxu0 }
 0x33c   : > { %v5448_v45 = vadd.f32 %v5204_v38, %v4327_v51  ;;  %6992 = vmatmul.msk.bf16.gmra.mxu1 %vm777_vm1, %v8057_v40  ;;  %7325 = vmatmul.msk.bf16.gmra.mxu2 %vm777_vm1, %v8189_v49  ;;  %v10203_v51 = vld [vmem:[#allocation64_spill] sm:$0xff] }
 0x33d   : > { %7658 = vmatmul.msk.bf16.gmra.mxu3 %vm777_vm1, %v8255_v13 }
 0x33e   : > { %7991 = vmatmul.msk.bf16.gmra.mxu0 %vm777_vm1, %v8321_v2  ;;  %v5580_v58 = vadd.f32 %v9523_v23, %v5448_v45 }
 0x33f   : > { %v2965_v36 = vpop.f32.mrf.mxu2 }
 0x340   : > { %vm5708_vm8 = vcmp.ge.f32.partialorder %v5580_v58, 0.0  ;;  %v5836_v53 = vmul.f32 0.2, %v5580_v58  ;;  %v3207_v27 = vadd.f32 %v2965_v36, %v1973_v1  ;;  %v4086_v6 = vpop.f32.mrf.mxu3 }
 0x341   : > { %v1974_v52 = vpop.f32.mrf.mxu1 }
 0x342   : > { %v5964_v9 = vsel %vm5708_vm8, %v5580_v58, %v5836_v53  ;;  %v4328_v33 = vadd.f32 %v4086_v6, %v3207_v27  ;;  %v1975_v18 = vadd.f32 %v1974_v52, %v10200_v57  ;;  %v8060_v57 = vld [vmem:[%s8821_s5 + $0x128] sm:$0xff] }
 0x343   : > { %v5209_v0 = vpop.f32.mrf.mxu0  ;;  %v8481_v4 = vpack.c.bf16 %v5964_v9, %v5963_v22  ;;  %v10204_v9 = vld [vmem:[#allocation67_spill] sm:$0xff] }
 0x344   : > { %v5449_v12 = vadd.f32 %v5207_v47, %v4328_v33 }
 0x345   : > { %8697 = vst [vmem:[%s9330_s29 + $0xc8] sm:$0xff] %v8481_v4  }
 0x346   : > { %v5581_v15 = vadd.f32 %v9523_v23, %v5449_v12 }
 0x347   : > { %v2967_v42 = vpop.f32.mrf.mxu2 }
 0x348   : > { %v3208_v21 = vadd.f32 %v2967_v42, %v1975_v18  ;;  %v4088_v8 = vpop.f32.mrf.mxu3  ;;  %v5837_v56 = vmul.f32 0.2, %v5581_v15  ;;  %vm5709_vm9 = vcmp.ge.f32.partialorder %v5581_v15, 0.0  ;;  %v8192_v18 = vld [vmem:[%s8821_s5 + $0x138] sm:$0xff] }
 0x349   : > { %v1977_v55 = vpop.f32.mrf.mxu1 }
 0x34a   : > { %v4329_v41 = vadd.f32 %v4088_v8, %v3208_v21  ;;  %v1978_v43 = vadd.f32 %v1977_v55, %v10201_v48  ;;  %v5965_v32 = vsel %vm5709_vm9, %v5581_v15, %v5837_v56  ;;  %v8258_v21 = vld [vmem:[%s8821_s5 + $0x358] sm:$0xff]  ;;  %v8324_v8 = vld [vmem:[%s8821_s5 + $0x148] sm:$0xff] }
 0x34b   : > { %v5212_v20 = vpop.f32.mrf.mxu0 }
 0x34c   : > { %v5450_v63 = vadd.f32 %v5209_v0, %v4329_v41  ;;  %6993 = vmatmul.msk.bf16.gmra.mxu1 %vm777_vm1, %v8058_v34  ;;  %7326 = vmatmul.msk.bf16.gmra.mxu2 %vm777_vm1, %v8190_v3  ;;  %v10205_v41 = vld [vmem:[#allocation70_spill] sm:$0xff] }
 0x34d   : > { %7659 = vmatmul.msk.bf16.gmra.mxu3 %vm777_vm1, %v8256_v29 }
 0x34e   : > { %7992 = vmatmul.msk.bf16.gmra.mxu0 %vm777_vm1, %v8322_v17  ;;  %v5582_v19 = vadd.f32 %v9523_v23, %v5450_v63 }
 0x34f   : > { %v2970_v25 = vpop.f32.mrf.mxu2 }
 0x350   : > { %vm5710_vm10 = vcmp.ge.f32.partialorder %v5582_v19, 0.0  ;;  %v5838_v31 = vmul.f32 0.2, %v5582_v19  ;;  %v3209_v61 = vadd.f32 %v2970_v25, %v1978_v43  ;;  %v4091_v37 = vpop.f32.mrf.mxu3 }
 0x351   : > { %v1979_v35 = vpop.f32.mrf.mxu1 }
 0x352   : > { %v5966_v24 = vsel %vm5710_vm10, %v5582_v19, %v5838_v31  ;;  %v4330_v5 = vadd.f32 %v4091_v37, %v3209_v61  ;;  %v1980_v26 = vadd.f32 %v1979_v35, %v10202_v54  ;;  %v8061_v54 = vld [vmem:[%s8821_s5 + $0x130] sm:$0xff] }
 0x353   : > { %v5214_v59 = vpop.f32.mrf.mxu0  ;;  %v8486_v28 = vpack.c.bf16 %v5966_v24, %v5965_v32  ;;  %v10206_v24 = vld [vmem:[#allocation73_spill] sm:$0xff] }
 0x354   : > { %v5451_v60 = vadd.f32 %v5212_v20, %v4330_v5 }
 0x355   : > { %8698 = vst [vmem:[%s9330_s29 + $0xd0] sm:$0xff] %v8486_v28  }
 0x356   : > { %v5583_v40 = vadd.f32 %v9523_v23, %v5451_v60 }
 0x357   : > { %v2972_v38 = vpop.f32.mrf.mxu2 }
 0x358   : > { %v3210_v11 = vadd.f32 %v2972_v38, %v1980_v26  ;;  %v4093_v16 = vpop.f32.mrf.mxu3  ;;  %v5839_v2 = vmul.f32 0.2, %v5583_v40  ;;  %vm5711_vm11 = vcmp.ge.f32.partialorder %v5583_v40, 0.0  ;;  %v8193_v26 = vld [vmem:[%s8821_s5 + $0x140] sm:$0xff] }
 0x359   : > { %v1982_v7 = vpop.f32.mrf.mxu1 }
 0x35a   : > { %v4331_v49 = vadd.f32 %v4093_v16, %v3210_v11  ;;  %v1983_v47 = vadd.f32 %v1982_v7, %v10203_v51  ;;  %v5967_v36 = vsel %vm5711_vm11, %v5583_v40, %v5839_v2  ;;  %v8259_v11 = vld [vmem:[%s8821_s5 + $0x360] sm:$0xff]  ;;  %v8325_v16 = vld [vmem:[%s8821_s5 + $0x150] sm:$0xff] }
 0x35b   : > { %v5217_v46 = vpop.f32.mrf.mxu0 }
 0x35c   : > { %v5452_v13 = vadd.f32 %v5214_v59, %v4331_v49  ;;  %6994 = vmatmul.msk.bf16.gmra.mxu1 %vm777_vm1, %v8059_v50  ;;  %7327 = vmatmul.msk.bf16.gmra.mxu2 %vm777_vm1, %v8191_v14  ;;  %v10207_v49 = vld [vmem:[#allocation76_spill] sm:$0xff] }
 0x35d   : > { %7660 = vmatmul.msk.bf16.gmra.mxu3 %vm777_vm1, %v8257_v62 }
 0x35e   : > { %7993 = vmatmul.msk.bf16.gmra.mxu0 %vm777_vm1, %v8323_v30  ;;  %v5584_v44 = vadd.f32 %v9523_v23, %v5452_v13 }
 0x35f   : > { %v2975_v45 = vpop.f32.mrf.mxu2 }
 0x360   : > { %vm5712_vm12 = vcmp.ge.f32.partialorder %v5584_v44, 0.0  ;;  %v5840_v10 = vmul.f32 0.2, %v5584_v44  ;;  %v3211_v58 = vadd.f32 %v2975_v45, %v1983_v47  ;;  %v4096_v39 = vpop.f32.mrf.mxu3 }
 0x361   : > { %v1984_v1 = vpop.f32.mrf.mxu1 }
 0x362   : > { %v5968_v53 = vsel %vm5712_vm12, %v5584_v44, %v5840_v10  ;;  %v4332_v27 = vadd.f32 %v4096_v39, %v3211_v58  ;;  %v1985_v33 = vadd.f32 %v1984_v1, %v10204_v9  ;;  %v8062_v9 = vld [vmem:[%s8821_s5 + $0x138] sm:$0xff] }
 0x363   : > { %v5219_v6 = vpop.f32.mrf.mxu0  ;;  %v8491_v52 = vpack.c.bf16 %v5968_v53, %v5967_v36  ;;  %v10208_v53 = vld [vmem:[#allocation79_spill] sm:$0xff] }
 0x364   : > { %v5453_v22 = vadd.f32 %v5217_v46, %v4332_v27 }
 0x365   : > { %8699 = vst [vmem:[%s9330_s29 + $0xd8] sm:$0xff] %v8491_v52  }
 0x366   : > { %v5585_v34 = vadd.f32 %v9523_v23, %v5453_v22 }
 0x367   : > { %v2977_v0 = vpop.f32.mrf.mxu2 }
 0x368   : > { %v3212_v4 = vadd.f32 %v2977_v0, %v1985_v33  ;;  %v4098_v12 = vpop.f32.mrf.mxu3  ;;  %v5841_v17 = vmul.f32 0.2, %v5585_v34  ;;  %vm5713_vm13 = vcmp.ge.f32.partialorder %v5585_v34, 0.0  ;;  %v8194_v33 = vld [vmem:[%s8821_s5 + $0x148] sm:$0xff] }
 0x369   : > { %v1987_v42 = vpop.f32.mrf.mxu1 }
 0x36a   : > { %v4333_v3 = vadd.f32 %v4098_v12, %v3212_v4  ;;  %v1988_v20 = vadd.f32 %v1987_v42, %v10205_v41  ;;  %v5969_v25 = vsel %vm5713_vm13, %v5585_v34, %v5841_v17  ;;  %v8260_v4 = vld [vmem:[%s8821_s5 + $0x368] sm:$0xff]  ;;  %v8326_v12 = vld [vmem:[%s8821_s5 + $0x158] sm:$0xff]  ;;  %v9728_v34 = vld [vmem:[%s10101_s2] ss:$0 sm:$0xff] }
 0x36b   : > { %v5222_v55 = vpop.f32.mrf.mxu0 }
 0x36c   : > { %v5454_v29 = vadd.f32 %v5219_v6, %v4333_v3  ;;  %6995 = vmatmul.msk.bf16.gmra.mxu1 %vm777_vm1, %v8060_v57  ;;  %7328 = vmatmul.msk.bf16.gmra.mxu2 %vm777_vm1, %v8192_v18  ;;  %v10209_v3 = vld [vmem:[#allocation82_spill] sm:$0xff] }
 0x36d   : > { %7661 = vmatmul.msk.bf16.gmra.mxu3 %vm777_vm1, %v8258_v21 }
 0x36e   : > { %7994 = vmatmul.msk.bf16.gmra.mxu0 %vm777_vm1, %v8324_v8  ;;  %v5586_v15 = vadd.f32 %v9523_v23, %v5454_v29 }
 0x36f   : > { %v2980_v63 = vpop.f32.mrf.mxu2 }
 0x370   : > { %vm5714_vm14 = vcmp.ge.f32.partialorder %v5586_v15, 0.0  ;;  %v5842_v56 = vmul.f32 0.2, %v5586_v15  ;;  %v3213_v19 = vadd.f32 %v2980_v63, %v1988_v20  ;;  %v4101_v48 = vpop.f32.mrf.mxu3 }
 0x371   : > { %v1989_v43 = vpop.f32.mrf.mxu1 }
 0x372   : > { %v5970_v31 = vsel %vm5714_vm14, %v5586_v15, %v5842_v56  ;;  %v4334_v61 = vadd.f32 %v4101_v48, %v3213_v19  ;;  %v1990_v5 = vadd.f32 %v1989_v43, %v10206_v24  ;;  %v8063_v24 = vld [vmem:[%s8821_s5 + $0x140] sm:$0xff] }
 0x373   : > { %v5224_v37 = vpop.f32.mrf.mxu0  ;;  %v8496_v35 = vpack.c.bf16 %v5970_v31, %v5969_v25  ;;  %v10210_v31 = vld [vmem:[#allocation85_spill] sm:$0xff] }
 0x374   : > { %v5455_v32 = vadd.f32 %v5222_v55, %v4334_v61 }
 0x375   : > { %8700 = vst [vmem:[%s9330_s29 + $0xe0] sm:$0xff] %v8496_v35  }
 0x376   : > { %v5587_v50 = vadd.f32 %v9523_v23, %v5455_v32 }
 0x377   : > { %v2982_v59 = vpop.f32.mrf.mxu2 }
 0x378   : > { %v3214_v28 = vadd.f32 %v2982_v59, %v1990_v5  ;;  %v4103_v60 = vpop.f32.mrf.mxu3  ;;  %v5843_v30 = vmul.f32 0.2, %v5587_v50  ;;  %vm5715_vm15 = vcmp.ge.f32.partialorder %v5587_v50, 0.0  ;;  %v8195_v5 = vld [vmem:[%s8821_s5 + $0x150] sm:$0xff] }
 0x379   : > { %v1992_v38 = vpop.f32.mrf.mxu1 }
 0x37a   : > { %v4335_v14 = vadd.f32 %v4103_v60, %v3214_v28  ;;  %v1993_v46 = vadd.f32 %v1992_v38, %v10207_v49  ;;  %v5971_v45 = vsel %vm5715_vm15, %v5587_v50, %v5843_v30  ;;  %v8261_v28 = vld [vmem:[%s8821_s5 + $0x370] sm:$0xff]  ;;  %v8327_v60 = vld [vmem:[%s8821_s5 + $0x160] sm:$0xff] }
 0x37b   : > { %v5227_v7 = vpop.f32.mrf.mxu0 }
 0x37c   : > { %v5456_v62 = vadd.f32 %v5224_v37, %v4335_v14  ;;  %6996 = vmatmul.msk.bf16.gmra.mxu1 %vm777_vm1, %v8061_v54  ;;  %7329 = vmatmul.msk.bf16.gmra.mxu2 %vm777_vm1, %v8193_v26  ;;  %v10211_v14 = vld [vmem:[#allocation2_spill] sm:$0xff] }
 0x37d   : > { %7662 = vmatmul.msk.bf16.gmra.mxu3 %vm777_vm1, %v8259_v11 }
 0x37e   : > { %7995 = vmatmul.msk.bf16.gmra.mxu0 %vm777_vm1, %v8325_v16  ;;  %v5588_v40 = vadd.f32 %v9523_v23, %v5456_v62 }
 0x37f   : > { %v2985_v13 = vpop.f32.mrf.mxu2 }
 0x380   : > { %vm5716_vm0 = vcmp.ge.f32.partialorder %v5588_v40, 0.0  ;;  %v5844_v2 = vmul.f32 0.2, %v5588_v40  ;;  %v3215_v44 = vadd.f32 %v2985_v13, %v1993_v46  ;;  %v4106_v51 = vpop.f32.mrf.mxu3 }
 0x381   : > { %v1994_v47 = vpop.f32.mrf.mxu1 }
 0x382   : > { %v5972_v10 = vsel %vm5716_vm0, %v5588_v40, %v5844_v2  ;;  %v4336_v58 = vadd.f32 %v4106_v51, %v3215_v44  ;;  %v1995_v27 = vadd.f32 %v1994_v47, %v10208_v53  ;;  %v8064_v53 = vld [vmem:[%s8821_s5 + $0x148] sm:$0xff] }
 0x383   : > { %v5229_v39 = vpop.f32.mrf.mxu0  ;;  %v8501_v1 = vpack.c.bf16 %v5972_v10, %v5971_v45  ;;  %v10212_v10 = vld [vmem:[#allocation4_spill] sm:$0xff] }
 0x384   : > { %v5457_v36 = vadd.f32 %v5227_v7, %v4336_v58 }
 0x385   : > { %8701 = vst [vmem:[%s9330_s29 + $0xe8] sm:$0xff] %v8501_v1  }
 0x386   : > { %v5589_v57 = vadd.f32 %v9523_v23, %v5457_v36 }
 0x387   : > { %v2987_v6 = vpop.f32.mrf.mxu2 }
 0x388   : > { %v3216_v52 = vadd.f32 %v2987_v6, %v1995_v27  ;;  %v4108_v22 = vpop.f32.mrf.mxu3  ;;  %v5845_v8 = vmul.f32 0.2, %v5589_v57  ;;  %vm5717_vm2 = vcmp.ge.f32.partialorder %v5589_v57, 0.0  ;;  %v8196_v27 = vld [vmem:[%s8821_s5 + $0x158] sm:$0xff] }
 0x389   : > { %v1997_v0 = vpop.f32.mrf.mxu1 }
 0x38a   : > { %v4337_v18 = vadd.f32 %v4108_v22, %v3216_v52  ;;  %v1998_v55 = vadd.f32 %v1997_v0, %v10209_v3  ;;  %v5973_v63 = vsel %vm5717_vm2, %v5589_v57, %v5845_v8  ;;  %v8262_v52 = vld [vmem:[%s8821_s5 + $0x378] sm:$0xff]  ;;  %v8328_v22 = vld [vmem:[%s8821_s5 + $0x168] sm:$0xff] }
 0x38b   : > { %v5232_v42 = vpop.f32.mrf.mxu0 }
 0x38c   : > { %v5458_v21 = vadd.f32 %v5229_v39, %v4337_v18  ;;  %6997 = vmatmul.msk.bf16.gmra.mxu1 %vm777_vm1, %v8062_v9  ;;  %7330 = vmatmul.msk.bf16.gmra.mxu2 %vm777_vm1, %v8194_v33  ;;  %v10213_v18 = vld [vmem:[#allocation6_spill] sm:$0xff] }
 0x38d   : > { %7663 = vmatmul.msk.bf16.gmra.mxu3 %vm777_vm1, %v8260_v4 }
 0x38e   : > { %7996 = vmatmul.msk.bf16.gmra.mxu0 %vm777_vm1, %v8326_v12  ;;  %v5590_v23 = vadd.f32 %v9728_v34, %v5458_v21 }
 0x38f   : > { %v2990_v29 = vpop.f32.mrf.mxu2 }
 0x390   : > { %vm5718_vm3 = vcmp.ge.f32.partialorder %v5590_v23, 0.0  ;;  %v5846_v17 = vmul.f32 0.2, %v5590_v23  ;;  %v3217_v15 = vadd.f32 %v2990_v29, %v1998_v55  ;;  %v4111_v41 = vpop.f32.mrf.mxu3 }
 0x391   : > { %v1999_v20 = vpop.f32.mrf.mxu1 }
 0x392   : > { %v5974_v56 = vsel %vm5718_vm3, %v5590_v23, %v5846_v17  ;;  %v4338_v19 = vadd.f32 %v4111_v41, %v3217_v15  ;;  %v2000_v61 = vadd.f32 %v1999_v20, %v10210_v31  ;;  %v8065_v31 = vld [vmem:[%s8821_s5 + $0x150] sm:$0xff] }
 0x393   : > { %v5234_v48 = vpop.f32.mrf.mxu0  ;;  %v8506_v43 = vpack.c.bf16 %v5974_v56, %v5973_v63  ;;  %v10214_v56 = vld [vmem:[#allocation8_spill] sm:$0xff] }
 0x394   : > { %v5459_v25 = vadd.f32 %v5232_v42, %v4338_v19 }
 0x395   : > { %8702 = vst [vmem:[%s9330_s29 + $0xf0] sm:$0xff] %v8506_v43  }
 0x396   : > { %v5591_v54 = vadd.f32 %v9728_v34, %v5459_v25 }
 0x397   : > { %v2992_v37 = vpop.f32.mrf.mxu2 }
 0x398   : > { %v3218_v35 = vadd.f32 %v2992_v37, %v2000_v61  ;;  %v4113_v32 = vpop.f32.mrf.mxu3  ;;  %v5847_v16 = vmul.f32 0.2, %v5591_v54  ;;  %vm5719_vm4 = vcmp.ge.f32.partialorder %v5591_v54, 0.0  ;;  %v8197_v61 = vld [vmem:[%s8821_s5 + $0x160] sm:$0xff] }
 0x399   : > { %v2002_v59 = vpop.f32.mrf.mxu1 }
 0x39a   : > { %v4339_v26 = vadd.f32 %v4113_v32, %v3218_v35  ;;  %v2003_v7 = vadd.f32 %v2002_v59, %v10211_v14  ;;  %v5975_v13 = vsel %vm5719_vm4, %v5591_v54, %v5847_v16  ;;  %v8263_v35 = vld [vmem:[%s8821_s5 + $0x380] sm:$0xff]  ;;  %v8329_v32 = vld [vmem:[%s8821_s5 + $0x170] sm:$0xff] }
 0x39b   : > { %v5237_v38 = vpop.f32.mrf.mxu0 }
 0x39c   : > { %v5460_v11 = vadd.f32 %v5234_v48, %v4339_v26  ;;  %6998 = vmatmul.msk.bf16.gmra.mxu1 %vm777_vm1, %v8063_v24  ;;  %7331 = vmatmul.msk.bf16.gmra.mxu2 %vm777_vm1, %v8195_v5  ;;  %v10215_v26 = vld [vmem:[#allocation10_spill] sm:$0xff] }
 0x39d   : > { %7664 = vmatmul.msk.bf16.gmra.mxu3 %vm777_vm1, %v8261_v28 }
 0x39e   : > { %7997 = vmatmul.msk.bf16.gmra.mxu0 %vm777_vm1, %v8327_v60  ;;  %v5592_v50 = vadd.f32 %v9728_v34, %v5460_v11 }
 0x39f   : > { %v2995_v62 = vpop.f32.mrf.mxu2 }
 0x3a0   : > { %vm5720_vm5 = vcmp.ge.f32.partialorder %v5592_v50, 0.0  ;;  %v5848_v30 = vmul.f32 0.2, %v5592_v50  ;;  %v3219_v40 = vadd.f32 %v2995_v62, %v2003_v7  ;;  %v4116_v49 = vpop.f32.mrf.mxu3 }
 0x3a1   : > { %v2004_v46 = vpop.f32.mrf.mxu1 }
 0x3a2   : > { %v5976_v2 = vsel %vm5720_vm5, %v5592_v50, %v5848_v30  ;;  %v4340_v44 = vadd.f32 %v4116_v49, %v3219_v40  ;;  %v2005_v58 = vadd.f32 %v2004_v46, %v10212_v10  ;;  %v8066_v10 = vld [vmem:[%s8821_s5 + $0x158] sm:$0xff] }
 0x3a3   : > { %v5239_v51 = vpop.f32.mrf.mxu0  ;;  %v8511_v47 = vpack.c.bf16 %v5976_v2, %v5975_v13  ;;  %v10216_v2 = vld [vmem:[#allocation12_spill] sm:$0xff] }
 0x3a4   : > { %v5461_v45 = vadd.f32 %v5237_v38, %v4340_v44 }
 0x3a5   : > { %8703 = vst [vmem:[%s9330_s29 + $0xf8] sm:$0xff] %v8511_v47  }
 0x3a6   : > { %v5593_v9 = vadd.f32 %v9728_v34, %v5461_v45 }
 0x3a7   : > { %v2997_v39 = vpop.f32.mrf.mxu2 }
 0x3a8   : > { %v3220_v1 = vadd.f32 %v2997_v39, %v2005_v58  ;;  %v4118_v36 = vpop.f32.mrf.mxu3  ;;  %v5849_v12 = vmul.f32 0.2, %v5593_v9  ;;  %vm5721_vm6 = vcmp.ge.f32.partialorder %v5593_v9, 0.0  ;;  %v8198_v58 = vld [vmem:[%s8821_s5 + $0x168] sm:$0xff] }
 0x3a9   : > { %v2007_v6 = vpop.f32.mrf.mxu1 }
 0x3aa   : > { %v4341_v33 = vadd.f32 %v4118_v36, %v3220_v1  ;;  %v2008_v42 = vadd.f32 %v2007_v6, %v10213_v18  ;;  %v5977_v29 = vsel %vm5721_vm6, %v5593_v9, %v5849_v12  ;;  %v8264_v1 = vld [vmem:[%s8821_s5 + $0x388] sm:$0xff]  ;;  %v8330_v36 = vld [vmem:[%s8821_s5 + $0x178] sm:$0xff] }
 0x3ab   : > { %v5242_v0 = vpop.f32.mrf.mxu0 }
 0x3ac   : > { %v5462_v4 = vadd.f32 %v5239_v51, %v4341_v33  ;;  %6999 = vmatmul.msk.bf16.gmra.mxu1 %vm777_vm1, %v8064_v53  ;;  %7332 = vmatmul.msk.bf16.gmra.mxu2 %vm777_vm1, %v8196_v27  ;;  %v10217_v33 = vld [vmem:[#allocation14_spill] sm:$0xff] }
 0x3ad   : > { %7665 = vmatmul.msk.bf16.gmra.mxu3 %vm777_vm1, %v8262_v52 }
 0x3ae   : > { %7998 = vmatmul.msk.bf16.gmra.mxu0 %vm777_vm1, %v8328_v22  ;;  %v5594_v57 = vadd.f32 %v9728_v34, %v5462_v4 }
 0x3af   : > { %v3000_v21 = vpop.f32.mrf.mxu2 }
 0x3b0   : > { %vm5722_vm7 = vcmp.ge.f32.partialorder %v5594_v57, 0.0  ;;  %v5850_v8 = vmul.f32 0.2, %v5594_v57  ;;  %v3221_v23 = vadd.f32 %v3000_v21, %v2008_v42  ;;  %v4121_v3 = vpop.f32.mrf.mxu3 }
 0x3b1   : > { %v2009_v55 = vpop.f32.mrf.mxu1 }
 0x3b2   : > { %v5978_v17 = vsel %vm5722_vm7, %v5594_v57, %v5850_v8  ;;  %v4342_v15 = vadd.f32 %v4121_v3, %v3221_v23  ;;  %v2010_v19 = vadd.f32 %v2009_v55, %v10214_v56  ;;  %v8067_v56 = vld [vmem:[%s8821_s5 + $0x160] sm:$0xff] }
 0x3b3   : > { %v5244_v41 = vpop.f32.mrf.mxu0  ;;  %v8516_v20 = vpack.c.bf16 %v5978_v17, %v5977_v29  ;;  %v10218_v17 = vld [vmem:[#allocation16_spill] sm:$0xff] }
 0x3b4   : > { %v5463_v63 = vadd.f32 %v5242_v0, %v4342_v15 }
 0x3b5   : > { %8704 = vst [vmem:[%s9330_s29 + $0x100] sm:$0xff] %v8516_v20  }
 0x3b6   : > { %v5595_v24 = vadd.f32 %v9728_v34, %v5463_v63 }
 0x3b7   : > { %v3002_v48 = vpop.f32.mrf.mxu2 }
 0x3b8   : > { %v3222_v43 = vadd.f32 %v3002_v48, %v2010_v19  ;;  %v4123_v25 = vpop.f32.mrf.mxu3  ;;  %v5851_v60 = vmul.f32 0.2, %v5595_v24  ;;  %vm5723_vm8 = vcmp.ge.f32.partialorder %v5595_v24, 0.0  ;;  %v8199_v19 = vld [vmem:[%s8821_s5 + $0x170] sm:$0xff] }
 0x3b9   : > { %v2012_v37 = vpop.f32.mrf.mxu1 }
 0x3ba   : > { %v4343_v5 = vadd.f32 %v4123_v25, %v3222_v43  ;;  %v2013_v38 = vadd.f32 %v2012_v37, %v10215_v26  ;;  %v5979_v62 = vsel %vm5723_vm8, %v5595_v24, %v5851_v60  ;;  %v8265_v43 = vld [vmem:[%s8821_s5 + $0x390] sm:$0xff]  ;;  %v8331_v25 = vld [vmem:[%s8821_s5 + $0x180] sm:$0xff] }
 0x3bb   : > { %v5247_v59 = vpop.f32.mrf.mxu0 }
 0x3bc   : > { %v5464_v28 = vadd.f32 %v5244_v41, %v4343_v5  ;;  %7000 = vmatmul.msk.bf16.gmra.mxu1 %vm777_vm1, %v8065_v31  ;;  %7333 = vmatmul.msk.bf16.gmra.mxu2 %vm777_vm1, %v8197_v61  ;;  %v10219_v5 = vld [vmem:[#allocation18_spill] sm:$0xff] }
 0x3bd   : > { %7666 = vmatmul.msk.bf16.gmra.mxu3 %vm777_vm1, %v8263_v35 }
 0x3be   : > { %7999 = vmatmul.msk.bf16.gmra.mxu0 %vm777_vm1, %v8329_v32  ;;  %v5596_v54 = vadd.f32 %v9728_v34, %v5464_v28 }
 0x3bf   : > { %v3005_v11 = vpop.f32.mrf.mxu2 }
 0x3c0   : > { %vm5724_vm9 = vcmp.ge.f32.partialorder %v5596_v54, 0.0  ;;  %v5852_v16 = vmul.f32 0.2, %v5596_v54  ;;  %v3223_v50 = vadd.f32 %v3005_v11, %v2013_v38  ;;  %v4126_v14 = vpop.f32.mrf.mxu3 }
 0x3c1   : > { %v2014_v7 = vpop.f32.mrf.mxu1 }
 0x3c2   : > { %v5980_v30 = vsel %vm5724_vm9, %v5596_v54, %v5852_v16  ;;  %v4344_v40 = vadd.f32 %v4126_v14, %v3223_v50  ;;  %v2015_v44 = vadd.f32 %v2014_v7, %v10216_v2  ;;  %v8068_v2 = vld [vmem:[%s8821_s5 + $0x168] sm:$0xff] }
 0x3c3   : > { %v5249_v49 = vpop.f32.mrf.mxu0  ;;  %v8521_v46 = vpack.c.bf16 %v5980_v30, %v5979_v62  ;;  %v10220_v30 = vld [vmem:[#allocation20_spill] sm:$0xff] }
 0x3c4   : > { %v5465_v13 = vadd.f32 %v5247_v59, %v4344_v40 }
 0x3c5   : > { %8705 = vst [vmem:[%s9330_s29 + $0x108] sm:$0xff] %v8521_v46  }
 0x3c6   : > { %v5597_v53 = vadd.f32 %v9728_v34, %v5465_v13 }
 0x3c7   : > { %v3007_v51 = vpop.f32.mrf.mxu2 }
 0x3c8   : > { %v3224_v47 = vadd.f32 %v3007_v51, %v2015_v44  ;;  %v4128_v45 = vpop.f32.mrf.mxu3  ;;  %v5853_v22 = vmul.f32 0.2, %v5597_v53  ;;  %vm5725_vm10 = vcmp.ge.f32.partialorder %v5597_v53, 0.0  ;;  %v8200_v44 = vld [vmem:[%s8821_s5 + $0x178] sm:$0xff] }
 0x3c9   : > { %v2017_v39 = vpop.f32.mrf.mxu1 }
 0x3ca   : > { %v4345_v27 = vadd.f32 %v4128_v45, %v3224_v47  ;;  %v2018_v0 = vadd.f32 %v2017_v39, %v10217_v33  ;;  %v5981_v21 = vsel %vm5725_vm10, %v5597_v53, %v5853_v22  ;;  %v8266_v47 = vld [vmem:[%s8821_s5 + $0x398] sm:$0xff]  ;;  %v8332_v45 = vld [vmem:[%s8821_s5 + $0x188] sm:$0xff] }
 0x3cb   : > { %v5252_v6 = vpop.f32.mrf.mxu0 }
 0x3cc   : > { %v5466_v52 = vadd.f32 %v5249_v49, %v4345_v27  ;;  %7001 = vmatmul.msk.bf16.gmra.mxu1 %vm777_vm1, %v8066_v10  ;;  %7334 = vmatmul.msk.bf16.gmra.mxu2 %vm777_vm1, %v8198_v58  ;;  %v10221_v27 = vld [vmem:[#allocation23_spill] sm:$0xff] }
 0x3cd   : > { %7667 = vmatmul.msk.bf16.gmra.mxu3 %vm777_vm1, %v8264_v1 }
 0x3ce   : > { %8000 = vmatmul.msk.bf16.gmra.mxu0 %vm777_vm1, %v8330_v36  ;;  %v5598_v9 = vadd.f32 %v9728_v34, %v5466_v52 }
 0x3cf   : > { %v3010_v4 = vpop.f32.mrf.mxu2 }
 0x3d0   : > { %vm5726_vm11 = vcmp.ge.f32.partialorder %v5598_v9, 0.0  ;;  %v5854_v12 = vmul.f32 0.2, %v5598_v9  ;;  %v3225_v57 = vadd.f32 %v3010_v4, %v2018_v0  ;;  %v4131_v18 = vpop.f32.mrf.mxu3 }
 0x3d1   : > { %v2019_v42 = vpop.f32.mrf.mxu1 }
 0x3d2   : > { %v5982_v8 = vsel %vm5726_vm11, %v5598_v9, %v5854_v12  ;;  %v4346_v23 = vadd.f32 %v4131_v18, %v3225_v57  ;;  %v2020_v15 = vadd.f32 %v2019_v42, %v10218_v17  ;;  %v8069_v17 = vld [vmem:[%s8821_s5 + $0x170] sm:$0xff] }
 0x3d3   : > { %v5254_v3 = vpop.f32.mrf.mxu0  ;;  %v8526_v55 = vpack.c.bf16 %v5982_v8, %v5981_v21  ;;  %v10222_v8 = vld [vmem:[#allocation26_spill] sm:$0xff] }
 0x3d4   : > { %v5467_v29 = vadd.f32 %v5252_v6, %v4346_v23 }
 0x3d5   : > { %8706 = vst [vmem:[%s9330_s29 + $0x110] sm:$0xff] %v8526_v55  }
 0x3d6   : > { %v5599_v31 = vadd.f32 %v9728_v34, %v5467_v29 }
 0x3d7   : > { %v3012_v41 = vpop.f32.mrf.mxu2 }
 0x3d8   : > { %v3226_v20 = vadd.f32 %v3012_v41, %v2020_v15  ;;  %v4133_v63 = vpop.f32.mrf.mxu3  ;;  %v5855_v32 = vmul.f32 0.2, %v5599_v31  ;;  %vm5727_vm12 = vcmp.ge.f32.partialorder %v5599_v31, 0.0  ;;  %v8201_v15 = vld [vmem:[%s8821_s5 + $0x180] sm:$0xff] }
 0x3d9   : > { %v2022_v48 = vpop.f32.mrf.mxu1 }
 0x3da   : > { %v4347_v61 = vadd.f32 %v4133_v63, %v3226_v20  ;;  %v2023_v59 = vadd.f32 %v2022_v48, %v10219_v5  ;;  %v5983_v11 = vsel %vm5727_vm12, %v5599_v31, %v5855_v32  ;;  %v8267_v20 = vld [vmem:[%s8821_s5 + $0x3a0] sm:$0xff]  ;;  %v8333_v63 = vld [vmem:[%s8821_s5 + $0x190] sm:$0xff] }
 0x3db   : > { %v5257_v37 = vpop.f32.mrf.mxu0 }
 0x3dc   : > { %v5468_v35 = vadd.f32 %v5254_v3, %v4347_v61  ;;  %7002 = vmatmul.msk.bf16.gmra.mxu1 %vm777_vm1, %v8067_v56  ;;  %7335 = vmatmul.msk.bf16.gmra.mxu2 %vm777_vm1, %v8199_v19  ;;  %v10223_v61 = vld [vmem:[#allocation29_spill] sm:$0xff] }
 0x3dd   : > { %7668 = vmatmul.msk.bf16.gmra.mxu3 %vm777_vm1, %v8265_v43 }
 0x3de   : > { %8001 = vmatmul.msk.bf16.gmra.mxu0 %vm777_vm1, %v8331_v25  ;;  %v5600_v24 = vadd.f32 %v9728_v34, %v5468_v35 }
 0x3df   : > { %v3015_v28 = vpop.f32.mrf.mxu2 }
 0x3e0   : > { %vm5728_vm13 = vcmp.ge.f32.partialorder %v5600_v24, 0.0  ;;  %v5856_v60 = vmul.f32 0.2, %v5600_v24  ;;  %v3227_v54 = vadd.f32 %v3015_v28, %v2023_v59  ;;  %v4136_v26 = vpop.f32.mrf.mxu3 }
 0x3e1   : > { %v2024_v38 = vpop.f32.mrf.mxu1 }
 0x3e2   : > { %v5984_v16 = vsel %vm5728_vm13, %v5600_v24, %v5856_v60  ;;  %v4348_v50 = vadd.f32 %v4136_v26, %v3227_v54  ;;  %v2025_v40 = vadd.f32 %v2024_v38, %v10220_v30  ;;  %v8070_v30 = vld [vmem:[%s8821_s5 + $0x178] sm:$0xff] }
 0x3e3   : > { %v5259_v14 = vpop.f32.mrf.mxu0  ;;  %v8531_v7 = vpack.c.bf16 %v5984_v16, %v5983_v11  ;;  %v10224_v16 = vld [vmem:[#allocation32_spill] sm:$0xff] }
 0x3e4   : > { %v5469_v62 = vadd.f32 %v5257_v37, %v4348_v50 }
 0x3e5   : > { %8707 = vst [vmem:[%s9330_s29 + $0x118] sm:$0xff] %v8531_v7  }
 0x3e6   : > { %v5601_v10 = vadd.f32 %v9728_v34, %v5469_v62 }
 0x3e7   : > { %v3017_v49 = vpop.f32.mrf.mxu2 }
 0x3e8   : > { %v3228_v46 = vadd.f32 %v3017_v49, %v2025_v40  ;;  %v4138_v13 = vpop.f32.mrf.mxu3  ;;  %v5857_v36 = vmul.f32 0.2, %v5601_v10  ;;  %vm5729_vm14 = vcmp.ge.f32.partialorder %v5601_v10, 0.0  ;;  %v8202_v40 = vld [vmem:[%s8821_s5 + $0x188] sm:$0xff] }
 0x3e9   : > { %v2027_v51 = vpop.f32.mrf.mxu1 }
 0x3ea   : > { %v4349_v58 = vadd.f32 %v4138_v13, %v3228_v46  ;;  %v2028_v6 = vadd.f32 %v2027_v51, %v10221_v27  ;;  %v5985_v4 = vsel %vm5729_vm14, %v5601_v10, %v5857_v36  ;;  %v8268_v46 = vld [vmem:[%s8821_s5 + $0x3a8] sm:$0xff]  ;;  %v8334_v13 = vld [vmem:[%s8821_s5 + $0x198] sm:$0xff] }
 0x3eb   : > { %v5262_v39 = vpop.f32.mrf.mxu0 }
 0x3ec   : > { %v5470_v1 = vadd.f32 %v5259_v14, %v4349_v58  ;;  %7003 = vmatmul.msk.bf16.gmra.mxu1 %vm777_vm1, %v8068_v2  ;;  %7336 = vmatmul.msk.bf16.gmra.mxu2 %vm777_vm1, %v8200_v44  ;;  %v10225_v58 = vld [vmem:[#allocation35_spill] sm:$0xff] }
 0x3ed   : > { %7669 = vmatmul.msk.bf16.gmra.mxu3 %vm777_vm1, %v8266_v47 }
 0x3ee   : > { %8002 = vmatmul.msk.bf16.gmra.mxu0 %vm777_vm1, %v8332_v45  ;;  %v5602_v53 = vadd.f32 %v9728_v34, %v5470_v1 }
 0x3ef   : > { %v3020_v52 = vpop.f32.mrf.mxu2 }
 0x3f0   : > { %vm5730_vm15 = vcmp.ge.f32.partialorder %v5602_v53, 0.0  ;;  %v5858_v22 = vmul.f32 0.2, %v5602_v53  ;;  %v3229_v9 = vadd.f32 %v3020_v52, %v2028_v6  ;;  %v4141_v33 = vpop.f32.mrf.mxu3 }
 0x3f1   : > { %v2029_v0 = vpop.f32.mrf.mxu1 }
 0x3f2   : > { %v5986_v12 = vsel %vm5730_vm15, %v5602_v53, %v5858_v22  ;;  %v4350_v57 = vadd.f32 %v4141_v33, %v3229_v9  ;;  %v2030_v23 = vadd.f32 %v2029_v0, %v10222_v8  ;;  %v8071_v8 = vld [vmem:[%s8821_s5 + $0x180] sm:$0xff] }
 0x3f3   : > { %v5264_v18 = vpop.f32.mrf.mxu0  ;;  %v8536_v42 = vpack.c.bf16 %v5986_v12, %v5985_v4  ;;  %v10226_v12 = vld [vmem:[#allocation38_spill] sm:$0xff] }
 0x3f4   : > { %v5471_v21 = vadd.f32 %v5262_v39, %v4350_v57 }
 0x3f5   : > { %8708 = vst [vmem:[%s9330_s29 + $0x120] sm:$0xff] %v8536_v42  }
 0x3f6   : > { %v5603_v56 = vadd.f32 %v9728_v34, %v5471_v21 }
 0x3f7   : > { %v3022_v3 = vpop.f32.mrf.mxu2 }
 0x3f8   : > { %v3230_v55 = vadd.f32 %v3022_v3, %v2030_v23  ;;  %v4143_v29 = vpop.f32.mrf.mxu3  ;;  %v5859_v25 = vmul.f32 0.2, %v5603_v56  ;;  %vm5731_vm0 = vcmp.ge.f32.partialorder %v5603_v56, 0.0  ;;  %v8203_v23 = vld [vmem:[%s8821_s5 + $0x190] sm:$0xff] }
 0x3f9   : > { %v2032_v41 = vpop.f32.mrf.mxu1 }
 0x3fa   : > { %v4351_v19 = vadd.f32 %v4143_v29, %v3230_v55  ;;  %v2033_v37 = vadd.f32 %v2032_v41, %v10223_v61  ;;  %v5987_v28 = vsel %vm5731_vm0, %v5603_v56, %v5859_v25  ;;  %v8269_v55 = vld [vmem:[%s8821_s5 + $0x3b0] sm:$0xff]  ;;  %v8335_v29 = vld [vmem:[%s8821_s5 + $0x1a0] sm:$0xff] }
 0x3fb   : > { %v5267_v48 = vpop.f32.mrf.mxu0 }
 0x3fc   : > { %v5472_v43 = vadd.f32 %v5264_v18, %v4351_v19  ;;  %7004 = vmatmul.msk.bf16.gmra.mxu1 %vm777_vm1, %v8069_v17  ;;  %7337 = vmatmul.msk.bf16.gmra.mxu2 %vm777_vm1, %v8201_v15  ;;  %v10227_v19 = vld [vmem:[#allocation41_spill] sm:$0xff] }
 0x3fd   : > { %7670 = vmatmul.msk.bf16.gmra.mxu3 %vm777_vm1, %v8267_v20 }
 0x3fe   : > { %8003 = vmatmul.msk.bf16.gmra.mxu0 %vm777_vm1, %v8333_v63  ;;  %v5604_v31 = vadd.f32 %v9728_v34, %v5472_v43 }
 0x3ff   : > { %v3025_v35 = vpop.f32.mrf.mxu2 }
 0x400   : > { %vm5732_vm2 = vcmp.ge.f32.partialorder %v5604_v31, 0.0  ;;  %v5860_v32 = vmul.f32 0.2, %v5604_v31  ;;  %v3231_v24 = vadd.f32 %v3025_v35, %v2033_v37  ;;  %v4146_v5 = vpop.f32.mrf.mxu3 }
 0x401   : > { %v2034_v59 = vpop.f32.mrf.mxu1 }
 0x402   : > { %v5988_v60 = vsel %vm5732_vm2, %v5604_v31, %v5860_v32  ;;  %v4352_v54 = vadd.f32 %v4146_v5, %v3231_v24  ;;  %v2035_v50 = vadd.f32 %v2034_v59, %v10224_v16  ;;  %v8072_v16 = vld [vmem:[%s8821_s5 + $0x188] sm:$0xff] }
 0x403   : > { %v5269_v26 = vpop.f32.mrf.mxu0  ;;  %v8541_v38 = vpack.c.bf16 %v5988_v60, %v5987_v28  ;;  %v10228_v60 = vld [vmem:[#allocation44_spill] sm:$0xff] }
 0x404   : > { %v5473_v11 = vadd.f32 %v5267_v48, %v4352_v54 }
 0x405   : > { %8709 = vst [vmem:[%s9330_s29 + $0x128] sm:$0xff] %v8541_v38  }
 0x406   : > { %v5605_v2 = vadd.f32 %v9728_v34, %v5473_v11 }
 0x407   : > { %v3027_v14 = vpop.f32.mrf.mxu2 }
 0x408   : > { %v3232_v7 = vadd.f32 %v3027_v14, %v2035_v50  ;;  %v4148_v62 = vpop.f32.mrf.mxu3  ;;  %v5861_v45 = vmul.f32 0.2, %v5605_v2  ;;  %vm5733_vm3 = vcmp.ge.f32.partialorder %v5605_v2, 0.0  ;;  %v8204_v50 = vld [vmem:[%s8821_s5 + $0x198] sm:$0xff] }
 0x409   : > { %v2037_v49 = vpop.f32.mrf.mxu1 }
 0x40a   : > { %v4353_v44 = vadd.f32 %v4148_v62, %v3232_v7  ;;  %v2038_v39 = vadd.f32 %v2037_v49, %v10225_v58  ;;  %v5989_v52 = vsel %vm5733_vm3, %v5605_v2, %v5861_v45  ;;  %v8270_v7 = vld [vmem:[%s8821_s5 + $0x3b8] sm:$0xff]  ;;  %v8336_v62 = vld [vmem:[%s8821_s5 + $0x1a8] sm:$0xff] }
 0x40b   : > { %v5272_v51 = vpop.f32.mrf.mxu0 }
 0x40c   : > { %v5474_v47 = vadd.f32 %v5269_v26, %v4353_v44  ;;  %7005 = vmatmul.msk.bf16.gmra.mxu1 %vm777_vm1, %v8070_v30  ;;  %7338 = vmatmul.msk.bf16.gmra.mxu2 %vm777_vm1, %v8202_v40  ;;  %v10229_v44 = vld [vmem:[#allocation47_spill] sm:$0xff] }
 0x40d   : > { %7671 = vmatmul.msk.bf16.gmra.mxu3 %vm777_vm1, %v8268_v46 }
 0x40e   : > { %8004 = vmatmul.msk.bf16.gmra.mxu0 %vm777_vm1, %v8334_v13  ;;  %v5606_v10 = vadd.f32 %v9728_v34, %v5474_v47 }
 0x40f   : > { %v3030_v1 = vpop.f32.mrf.mxu2 }
 0x410   : > { %vm5734_vm4 = vcmp.ge.f32.partialorder %v5606_v10, 0.0  ;;  %v5862_v36 = vmul.f32 0.2, %v5606_v10  ;;  %v3233_v53 = vadd.f32 %v3030_v1, %v2038_v39  ;;  %v4151_v27 = vpop.f32.mrf.mxu3 }
 0x411   : > { %v2039_v6 = vpop.f32.mrf.mxu1 }
 0x412   : > { %v5990_v22 = vsel %vm5734_vm4, %v5606_v10, %v5862_v36  ;;  %v4354_v9 = vadd.f32 %v4151_v27, %v3233_v53  ;;  %v2040_v57 = vadd.f32 %v2039_v6, %v10226_v12  ;;  %v8073_v12 = vld [vmem:[%s8821_s5 + $0x190] sm:$0xff] }
 0x413   : > { %v5274_v33 = vpop.f32.mrf.mxu0  ;;  %v8546_v0 = vpack.c.bf16 %v5990_v22, %v5989_v52  ;;  %v10230_v22 = vld [vmem:[#allocation50_spill] sm:$0xff] }
 0x414   : > { %v5475_v4 = vadd.f32 %v5272_v51, %v4354_v9 }
 0x415   : > { %8710 = vst [vmem:[%s9330_s29 + $0x130] sm:$0xff] %v8546_v0  }
 0x416   : > { %v5607_v17 = vadd.f32 %v9728_v34, %v5475_v4 }
 0x417   : > { %v3032_v18 = vpop.f32.mrf.mxu2 }
 0x418   : > { %v3234_v42 = vadd.f32 %v3032_v18, %v2040_v57  ;;  %v4153_v21 = vpop.f32.mrf.mxu3  ;;  %v5863_v63 = vmul.f32 0.2, %v5607_v17  ;;  %vm5735_vm5 = vcmp.ge.f32.partialorder %v5607_v17, 0.0  ;;  %v8205_v57 = vld [vmem:[%s8821_s5 + $0x1a0] sm:$0xff] }
 0x419   : > { %v2042_v3 = vpop.f32.mrf.mxu1 }
 0x41a   : > { %v4355_v15 = vadd.f32 %v4153_v21, %v3234_v42  ;;  %v2043_v48 = vadd.f32 %v2042_v3, %v10227_v19  ;;  %v5991_v35 = vsel %vm5735_vm5, %v5607_v17, %v5863_v63  ;;  %v8271_v42 = vld [vmem:[%s8821_s5 + $0x3c0] sm:$0xff]  ;;  %v8337_v21 = vld [vmem:[%s8821_s5 + $0x1b0] sm:$0xff] }
 0x41b   : > { %v5277_v41 = vpop.f32.mrf.mxu0 }
 0x41c   : > { %v5476_v20 = vadd.f32 %v5274_v33, %v4355_v15  ;;  %7006 = vmatmul.msk.bf16.gmra.mxu1 %vm777_vm1, %v8071_v8  ;;  %7339 = vmatmul.msk.bf16.gmra.mxu2 %vm777_vm1, %v8203_v23  ;;  %v10231_v15 = vld [vmem:[#allocation53_spill] sm:$0xff] }
 0x41d   : > { %7672 = vmatmul.msk.bf16.gmra.mxu3 %vm777_vm1, %v8269_v55 }
 0x41e   : > { %8005 = vmatmul.msk.bf16.gmra.mxu0 %vm777_vm1, %v8335_v29  ;;  %v5608_v56 = vadd.f32 %v9728_v34, %v5476_v20 }
 0x41f   : > { %v3035_v43 = vpop.f32.mrf.mxu2 }
 0x420   : > { %vm5736_vm6 = vcmp.ge.f32.partialorder %v5608_v56, 0.0  ;;  %v5864_v25 = vmul.f32 0.2, %v5608_v56  ;;  %v3235_v31 = vadd.f32 %v3035_v43, %v2043_v48  ;;  %v4156_v61 = vpop.f32.mrf.mxu3 }
 0x421   : > { %v2044_v37 = vpop.f32.mrf.mxu1 }
 0x422   : > { %v5992_v32 = vsel %vm5736_vm6, %v5608_v56, %v5864_v25  ;;  %v4356_v24 = vadd.f32 %v4156_v61, %v3235_v31  ;;  %v2045_v54 = vadd.f32 %v2044_v37, %v10228_v60  ;;  %v8074_v60 = vld [vmem:[%s8821_s5 + $0x198] sm:$0xff] }
 0x423   : > { %v5279_v5 = vpop.f32.mrf.mxu0  ;;  %v8551_v59 = vpack.c.bf16 %v5992_v32, %v5991_v35  ;;  %v10232_v32 = vld [vmem:[#allocation56_spill] sm:$0xff] }
 0x424   : > { %v5477_v28 = vadd.f32 %v5277_v41, %v4356_v24 }
 0x425   : > { %8711 = vst [vmem:[%s9330_s29 + $0x138] sm:$0xff] %v8551_v59  }
 0x426   : > { %v5609_v30 = vadd.f32 %v9728_v34, %v5477_v28 }
 0x427   : > { %v3037_v26 = vpop.f32.mrf.mxu2 }
 0x428   : > { %v3236_v38 = vadd.f32 %v3037_v26, %v2045_v54  ;;  %v4158_v11 = vpop.f32.mrf.mxu3  ;;  %v5865_v13 = vmul.f32 0.2, %v5609_v30  ;;  %vm5737_vm7 = vcmp.ge.f32.partialorder %v5609_v30, 0.0  ;;  %v8206_v54 = vld [vmem:[%s8821_s5 + $0x1a8] sm:$0xff] }
 0x429   : > { %v2047_v14 = vpop.f32.mrf.mxu1 }
 0x42a   : > { %v4357_v40 = vadd.f32 %v4158_v11, %v3236_v38  ;;  %v2048_v51 = vadd.f32 %v2047_v14, %v10229_v44  ;;  %v5993_v1 = vsel %vm5737_vm7, %v5609_v30, %v5865_v13  ;;  %v8272_v38 = vld [vmem:[%s8821_s5 + $0x3c8] sm:$0xff]  ;;  %v8338_v11 = vld [vmem:[%s8821_s5 + $0x1b8] sm:$0xff] }
 0x42b   : > { %v5282_v49 = vpop.f32.mrf.mxu0 }
 0x42c   : > { %v5478_v46 = vadd.f32 %v5279_v5, %v4357_v40  ;;  %7007 = vmatmul.msk.bf16.gmra.mxu1 %vm777_vm1, %v8072_v16  ;;  %7340 = vmatmul.msk.bf16.gmra.mxu2 %vm777_vm1, %v8204_v50  ;;  %v10233_v40 = vld [vmem:[#allocation59_spill] sm:$0xff] }
 0x42d   : > { %7673 = vmatmul.msk.bf16.gmra.mxu3 %vm777_vm1, %v8270_v7 }
 0x42e   : > { %8006 = vmatmul.msk.bf16.gmra.mxu0 %vm777_vm1, %v8336_v62  ;;  %v5610_v2 = vadd.f32 %v9728_v34, %v5478_v46 }
 0x42f   : > { %v3040_v47 = vpop.f32.mrf.mxu2 }
 0x430   : > { %vm5738_vm8 = vcmp.ge.f32.partialorder %v5610_v2, 0.0  ;;  %v5866_v45 = vmul.f32 0.2, %v5610_v2  ;;  %v3237_v10 = vadd.f32 %v3040_v47, %v2048_v51  ;;  %v4161_v58 = vpop.f32.mrf.mxu3 }
 0x431   : > { %v2049_v39 = vpop.f32.mrf.mxu1 }
 0x432   : > { %v5994_v36 = vsel %vm5738_vm8, %v5610_v2, %v5866_v45  ;;  %v4358_v53 = vadd.f32 %v4161_v58, %v3237_v10  ;;  %v2050_v9 = vadd.f32 %v2049_v39, %v10230_v22  ;;  %v8075_v22 = vld [vmem:[%s8821_s5 + $0x1a0] sm:$0xff] }
 0x433   : > { %v5284_v27 = vpop.f32.mrf.mxu0  ;;  %v8556_v6 = vpack.c.bf16 %v5994_v36, %v5993_v1  ;;  %v10234_v36 = vld [vmem:[#allocation62_spill] sm:$0xff] }
 0x434   : > { %v5479_v52 = vadd.f32 %v5282_v49, %v4358_v53 }
 0x435   : > { %8712 = vst [vmem:[%s9330_s29 + $0x140] sm:$0xff] %v8556_v6  }
 0x436   : > { %v5611_v8 = vadd.f32 %v9728_v34, %v5479_v52 }
 0x437   : > { %v3042_v33 = vpop.f32.mrf.mxu2 }
 0x438   : > { %v3238_v0 = vadd.f32 %v3042_v33, %v2050_v9  ;;  %v4163_v4 = vpop.f32.mrf.mxu3  ;;  %v5867_v29 = vmul.f32 0.2, %v5611_v8  ;;  %vm5739_vm9 = vcmp.ge.f32.partialorder %v5611_v8, 0.0  ;;  %v8207_v9 = vld [vmem:[%s8821_s5 + $0x1b0] sm:$0xff] }
 0x439   : > { %v2052_v18 = vpop.f32.mrf.mxu1 }
 0x43a   : > { %v4359_v23 = vadd.f32 %v4163_v4, %v3238_v0  ;;  %v2053_v41 = vadd.f32 %v2052_v18, %v10231_v15  ;;  %v5995_v43 = vsel %vm5739_vm9, %v5611_v8, %v5867_v29  ;;  %v8273_v0 = vld [vmem:[%s8821_s5 + $0x3d0] sm:$0xff]  ;;  %v8339_v4 = vld [vmem:[%s8821_s5 + $0x1c0] sm:$0xff] }
 0x43b   : > { %v5287_v3 = vpop.f32.mrf.mxu0 }
 0x43c   : > { %v5480_v55 = vadd.f32 %v5284_v27, %v4359_v23  ;;  %7008 = vmatmul.msk.bf16.gmra.mxu1 %vm777_vm1, %v8073_v12  ;;  %7341 = vmatmul.msk.bf16.gmra.mxu2 %vm777_vm1, %v8205_v57  ;;  %v10235_v23 = vld [vmem:[#allocation65_spill] sm:$0xff] }
 0x43d   : > { %7674 = vmatmul.msk.bf16.gmra.mxu3 %vm777_vm1, %v8271_v42 }
 0x43e   : > { %8007 = vmatmul.msk.bf16.gmra.mxu0 %vm777_vm1, %v8337_v21  ;;  %v5612_v17 = vadd.f32 %v9728_v34, %v5480_v55 }
 0x43f   : > { %v3045_v20 = vpop.f32.mrf.mxu2 }
 0x440   : > { %vm5740_vm10 = vcmp.ge.f32.partialorder %v5612_v17, 0.0  ;;  %v5868_v63 = vmul.f32 0.2, %v5612_v17  ;;  %v3239_v56 = vadd.f32 %v3045_v20, %v2053_v41  ;;  %v4166_v19 = vpop.f32.mrf.mxu3 }
 0x441   : > { %v2054_v48 = vpop.f32.mrf.mxu1 }
 0x442   : > { %v5996_v25 = vsel %vm5740_vm10, %v5612_v17, %v5868_v63  ;;  %v4360_v31 = vadd.f32 %v4166_v19, %v3239_v56  ;;  %v2055_v24 = vadd.f32 %v2054_v48, %v10232_v32  ;;  %v8076_v32 = vld [vmem:[%s8821_s5 + $0x1a8] sm:$0xff] }
 0x443   : > { %v5289_v61 = vpop.f32.mrf.mxu0  ;;  %v8561_v37 = vpack.c.bf16 %v5996_v25, %v5995_v43  ;;  %v10236_v25 = vld [vmem:[#allocation68_spill] sm:$0xff] }
 0x444   : > { %v5481_v35 = vadd.f32 %v5287_v3, %v4360_v31 }
 0x445   : > { %8713 = vst [vmem:[%s9330_s29 + $0x148] sm:$0xff] %v8561_v37  }
 0x446   : > { %v5613_v16 = vadd.f32 %v9728_v34, %v5481_v35 }
 0x447   : > { %v3047_v5 = vpop.f32.mrf.mxu2 }
 0x448   : > { %v3240_v59 = vadd.f32 %v3047_v5, %v2055_v24  ;;  %v4168_v28 = vpop.f32.mrf.mxu3  ;;  %v5869_v62 = vmul.f32 0.2, %v5613_v16  ;;  %vm5741_vm11 = vcmp.ge.f32.partialorder %v5613_v16, 0.0  ;;  %v8208_v24 = vld [vmem:[%s8821_s5 + $0x1b8] sm:$0xff] }
 0x449   : > { %v2057_v26 = vpop.f32.mrf.mxu1 }
 0x44a   : > { %v4361_v50 = vadd.f32 %v4168_v28, %v3240_v59  ;;  %v2058_v49 = vadd.f32 %v2057_v26, %v10233_v40  ;;  %v5997_v47 = vsel %vm5741_vm11, %v5613_v16, %v5869_v62  ;;  %v8274_v59 = vld [vmem:[%s8821_s5 + $0x3d8] sm:$0xff]  ;;  %v8340_v28 = vld [vmem:[%s8821_s5 + $0x1c8] sm:$0xff] }
 0x44b   : > { %v5292_v14 = vpop.f32.mrf.mxu0 }
 0x44c   : > { %v5482_v7 = vadd.f32 %v5289_v61, %v4361_v50  ;;  %7009 = vmatmul.msk.bf16.gmra.mxu1 %vm777_vm1, %v8074_v60  ;;  %7342 = vmatmul.msk.bf16.gmra.mxu2 %vm777_vm1, %v8206_v54  ;;  %v10237_v50 = vld [vmem:[#allocation71_spill] sm:$0xff] }
 0x44d   : > { %7675 = vmatmul.msk.bf16.gmra.mxu3 %vm777_vm1, %v8272_v38 }
 0x44e   : > { %8008 = vmatmul.msk.bf16.gmra.mxu0 %vm777_vm1, %v8338_v11  ;;  %v5614_v30 = vadd.f32 %v9728_v34, %v5482_v7 }
 0x44f   : > { %v3050_v46 = vpop.f32.mrf.mxu2 }
 0x450   : > { %vm5742_vm12 = vcmp.ge.f32.partialorder %v5614_v30, 0.0  ;;  %v5870_v13 = vmul.f32 0.2, %v5614_v30  ;;  %v3241_v2 = vadd.f32 %v3050_v46, %v2058_v49  ;;  %v4171_v44 = vpop.f32.mrf.mxu3 }
 0x451   : > { %v2059_v51 = vpop.f32.mrf.mxu1 }
 0x452   : > { %v5998_v45 = vsel %vm5742_vm12, %v5614_v30, %v5870_v13  ;;  %v4362_v10 = vadd.f32 %v4171_v44, %v3241_v2  ;;  %v2060_v53 = vadd.f32 %v2059_v51, %v10234_v36  ;;  %v8077_v36 = vld [vmem:[%s8821_s5 + $0x1b0] sm:$0xff] }
 0x453   : > { %v5294_v58 = vpop.f32.mrf.mxu0  ;;  %v8566_v39 = vpack.c.bf16 %v5998_v45, %v5997_v47  ;;  %v10238_v45 = vld [vmem:[#allocation74_spill] sm:$0xff] }
 0x454   : > { %v5483_v1 = vadd.f32 %v5292_v14, %v4362_v10 }
 0x455   : > { %8714 = vst [vmem:[%s9330_s29 + $0x150] sm:$0xff] %v8566_v39  }
 0x456   : > { %v5615_v12 = vadd.f32 %v9728_v34, %v5483_v1 }
 0x457   : > { %v3052_v27 = vpop.f32.mrf.mxu2 }
 0x458   : > { %v3242_v6 = vadd.f32 %v3052_v27, %v2060_v53  ;;  %v4173_v52 = vpop.f32.mrf.mxu3  ;;  %v5871_v21 = vmul.f32 0.2, %v5615_v12  ;;  %vm5743_vm13 = vcmp.ge.f32.partialorder %v5615_v12, 0.0  ;;  %v8209_v53 = vld [vmem:[%s8821_s5 + $0x1c0] sm:$0xff] }
 0x459   : > { %v2062_v33 = vpop.f32.mrf.mxu1 }
 0x45a   : > { %v4363_v57 = vadd.f32 %v4173_v52, %v3242_v6  ;;  %v2063_v3 = vadd.f32 %v2062_v33, %v10235_v23  ;;  %v5999_v20 = vsel %vm5743_vm13, %v5615_v12, %v5871_v21  ;;  %v8275_v6 = vld [vmem:[%s8821_s5 + $0x3e0] sm:$0xff]  ;;  %v8341_v52 = vld [vmem:[%s8821_s5 + $0x1d0] sm:$0xff] }
 0x45b   : > { %v5297_v18 = vpop.f32.mrf.mxu0 }
 0x45c   : > { %v5484_v42 = vadd.f32 %v5294_v58, %v4363_v57  ;;  %7010 = vmatmul.msk.bf16.gmra.mxu1 %vm777_vm1, %v8075_v22  ;;  %7343 = vmatmul.msk.bf16.gmra.mxu2 %vm777_vm1, %v8207_v9  ;;  %v10239_v57 = vld [vmem:[#allocation77_spill] sm:$0xff] }
 0x45d   : > { %7676 = vmatmul.msk.bf16.gmra.mxu3 %vm777_vm1, %v8273_v0 }
 0x45e   : > { %8009 = vmatmul.msk.bf16.gmra.mxu0 %vm777_vm1, %v8339_v4  ;;  %v5616_v8 = vadd.f32 %v9728_v34, %v5484_v42 }
 0x45f   : > { %v3055_v55 = vpop.f32.mrf.mxu2 }
 0x460   : > { %vm5744_vm14 = vcmp.ge.f32.partialorder %v5616_v8, 0.0  ;;  %v5872_v29 = vmul.f32 0.2, %v5616_v8  ;;  %v3243_v17 = vadd.f32 %v3055_v55, %v2063_v3  ;;  %v4176_v15 = vpop.f32.mrf.mxu3 }
 0x461   : > { %v2064_v41 = vpop.f32.mrf.mxu1 }
 0x462   : > { %v6000_v63 = vsel %vm5744_vm14, %v5616_v8, %v5872_v29  ;;  %v4364_v56 = vadd.f32 %v4176_v15, %v3243_v17  ;;  %v2065_v31 = vadd.f32 %v2064_v41, %v10236_v25  ;;  %v8210_v25 = vld [vmem:[%s8821_s5 + $0x1c8] sm:$0xff] }
 0x463   : > { %v5299_v19 = vpop.f32.mrf.mxu0  ;;  %v8571_v48 = vpack.c.bf16 %v6000_v63, %v5999_v20  ;;  %v10240_v20 = vld [vmem:[#allocation80_spill] sm:$0xff] }
 0x464   : > { %v5485_v43 = vadd.f32 %v5297_v18, %v4364_v56 }
 0x465   : > { %8715 = vst [vmem:[%s9330_s29 + $0x158] sm:$0xff] %v8571_v48  }
 0x466   : > { %v5617_v60 = vadd.f32 %v9728_v34, %v5485_v43  ;;  %v8078_v43 = vld [vmem:[%s8821_s5 + $0x1b8] sm:$0xff] }
 0x467   : > { %v3057_v61 = vpop.f32.mrf.mxu2 }
 0x468   : > { %v3244_v37 = vadd.f32 %v3057_v61, %v2065_v31  ;;  %v4178_v35 = vpop.f32.mrf.mxu3  ;;  %v5873_v11 = vmul.f32 0.2, %v5617_v60  ;;  %vm5745_vm15 = vcmp.ge.f32.partialorder %v5617_v60, 0.0  ;;  %v8276_v61 = vld [vmem:[%s8821_s5 + $0x3e8] sm:$0xff] }
 0x469   : > { %v2067_v5 = vpop.f32.mrf.mxu1 }
 0x46a   : > { %v4365_v54 = vadd.f32 %v4178_v35, %v3244_v37  ;;  %v2068_v14 = vadd.f32 %v2067_v5, %v10237_v50  ;;  %v6001_v46 = vsel %vm5745_vm15, %v5617_v60, %v5873_v11  ;;  %v8342_v37 = vld [vmem:[%s8821_s5 + $0x1d8] sm:$0xff]  ;;  %v9936_v35 = vld [vmem:[%s10101_s2] ss:$0 sm:$0xff] }
 0x46b   : > { %v5302_v26 = vpop.f32.mrf.mxu0 }
 0x46c   : > { %v5486_v38 = vadd.f32 %v5299_v19, %v4365_v54  ;;  %7011 = vmatmul.msk.bf16.gmra.mxu1 %vm777_vm1, %v8076_v32  ;;  %7344 = vmatmul.msk.bf16.gmra.mxu2 %vm777_vm1, %v8208_v24  ;;  %v10241_v54 = vld [vmem:[#allocation83_spill] sm:$0xff] }
 0x46d   : > { %7677 = vmatmul.msk.bf16.gmra.mxu3 %vm777_vm1, %v8274_v59 }
 0x46e   : > { %8010 = vmatmul.msk.bf16.gmra.mxu0 %vm777_vm1, %v8340_v28  ;;  %v5618_v16 = vadd.f32 %v9728_v34, %v5486_v38 }
 0x46f   : > { %v3060_v7 = vpop.f32.mrf.mxu2 }
 0x470   : > { %vm5746_vm0 = vcmp.ge.f32.partialorder %v5618_v16, 0.0  ;;  %v5874_v62 = vmul.f32 0.2, %v5618_v16  ;;  %v3245_v30 = vadd.f32 %v3060_v7, %v2068_v14  ;;  %v4181_v40 = vpop.f32.mrf.mxu3 }
 0x471   : > { %v2069_v49 = vpop.f32.mrf.mxu1 }
 0x472   : > { %v6002_v13 = vsel %vm5746_vm0, %v5618_v16, %v5874_v62  ;;  %v4366_v2 = vadd.f32 %v4181_v40, %v3245_v30  ;;  %v2070_v10 = vadd.f32 %v2069_v49, %v10238_v45  ;;  %v8079_v45 = vld [vmem:[%s8821_s5 + $0x1c0] sm:$0xff] }
 0x473   : > { %v5304_v44 = vpop.f32.mrf.mxu0  ;;  %v8576_v51 = vpack.c.bf16 %v6002_v13, %v6001_v46  ;;  %v10242_v13 = vld [vmem:[#allocation86_spill] sm:$0xff] }
 0x474   : > { %v5487_v47 = vadd.f32 %v5302_v26, %v4366_v2 }
 0x475   : > { %8716 = vst [vmem:[%s9330_s29 + $0x160] sm:$0xff] %v8576_v51  }
 0x476   : > { %v5619_v22 = vadd.f32 %v9728_v34, %v5487_v47 }
 0x477   : > { %v3062_v58 = vpop.f32.mrf.mxu2 }
 0x478   : > { %v3246_v39 = vadd.f32 %v3062_v58, %v2070_v10  ;;  %v4183_v1 = vpop.f32.mrf.mxu3  ;;  %v5875_v4 = vmul.f32 0.2, %v5619_v22  ;;  %vm5747_vm2 = vcmp.ge.f32.partialorder %v5619_v22, 0.0  ;;  %v8211_v10 = vld [vmem:[%s8821_s5 + $0x1d0] sm:$0xff] }
 0x479   : > { %v2072_v27 = vpop.f32.mrf.mxu1 }
 0x47a   : > { %v4367_v9 = vadd.f32 %v4183_v1, %v3246_v39  ;;  %v2073_v18 = vadd.f32 %v2072_v27, %v10239_v57  ;;  %v6003_v55 = vsel %vm5747_vm2, %v5619_v22, %v5875_v4  ;;  %v8277_v39 = vld [vmem:[%s8821_s5 + $0x3f0] sm:$0xff]  ;;  %v8343_v1 = vld [vmem:[%s8821_s5 + $0x1e0] sm:$0xff] }
 0x47b   : > { %v5307_v33 = vpop.f32.mrf.mxu0 }
 0x47c   : > { %v5488_v0 = vadd.f32 %v5304_v44, %v4367_v9  ;;  %7012 = vmatmul.msk.bf16.gmra.mxu1 %vm777_vm1, %v8077_v36  ;;  %7345 = vmatmul.msk.bf16.gmra.mxu2 %vm777_vm1, %v8209_v53  ;;  %v10243_v9 = vld [vmem:[#allocation3_spill] sm:$0xff] }
 0x47d   : > { %7678 = vmatmul.msk.bf16.gmra.mxu3 %vm777_vm1, %v8275_v6 }
 0x47e   : > { %8011 = vmatmul.msk.bf16.gmra.mxu0 %vm777_vm1, %v8341_v52  ;;  %v5620_v12 = vadd.f32 %v9728_v34, %v5488_v0 }
 0x47f   : > { %v3065_v42 = vpop.f32.mrf.mxu2 }
 0x480   : > { %vm5748_vm3 = vcmp.ge.f32.partialorder %v5620_v12, 0.0  ;;  %v5876_v21 = vmul.f32 0.2, %v5620_v12  ;;  %v3247_v8 = vadd.f32 %v3065_v42, %v2073_v18  ;;  %v4186_v23 = vpop.f32.mrf.mxu3 }
 0x481   : > { %v2074_v3 = vpop.f32.mrf.mxu1 }
 0x482   : > { %v6004_v29 = vsel %vm5748_vm3, %v5620_v12, %v5876_v21  ;;  %v4368_v17 = vadd.f32 %v4186_v23, %v3247_v8  ;;  %v2075_v63 = vadd.f32 %v2074_v3, %v10240_v20  ;;  %v8080_v20 = vld [vmem:[%s8821_s5 + $0x1c8] sm:$0xff] }
 0x483   : > { %v5309_v15 = vpop.f32.mrf.mxu0  ;;  %v8581_v41 = vpack.c.bf16 %v6004_v29, %v6003_v55  ;;  %v10244_v29 = vld [vmem:[#allocation5_spill] sm:$0xff] }
 0x484   : > { %v5489_v34 = vadd.f32 %v5307_v33, %v4368_v17 }
 0x485   : > { %8717 = vst [vmem:[%s9330_s29 + $0x168] sm:$0xff] %v8581_v41  }
 0x486   : > { %v5621_v32 = vadd.f32 %v9936_v35, %v5489_v34 }
 0x487   : > { %v3067_v56 = vpop.f32.mrf.mxu2 }
 0x488   : > { %v3248_v19 = vadd.f32 %v3067_v56, %v2075_v63  ;;  %v4188_v48 = vpop.f32.mrf.mxu3  ;;  %v5877_v28 = vmul.f32 0.2, %v5621_v32  ;;  %vm5749_vm4 = vcmp.ge.f32.partialorder %v5621_v32, 0.0  ;;  %v8212_v63 = vld [vmem:[%s8821_s5 + $0x1d8] sm:$0xff] }
 0x489   : > { %v2077_v31 = vpop.f32.mrf.mxu1 }
 0x48a   : > { %v4369_v24 = vadd.f32 %v4188_v48, %v3248_v19  ;;  %v2078_v26 = vadd.f32 %v2077_v31, %v10241_v54  ;;  %v6005_v7 = vsel %vm5749_vm4, %v5621_v32, %v5877_v28  ;;  %v8278_v19 = vld [vmem:[%s8821_s5 + $0x3f8] sm:$0xff]  ;;  %v8344_v48 = vld [vmem:[%s8821_s5 + $0x1e8] sm:$0xff] }
 0x48b   : > { %v5312_v5 = vpop.f32.mrf.mxu0 }
 0x48c   : > { %v5490_v59 = vadd.f32 %v5309_v15, %v4369_v24  ;;  %7013 = vmatmul.msk.bf16.gmra.mxu1 %vm777_vm1, %v8078_v43  ;;  %7346 = vmatmul.msk.bf16.gmra.mxu2 %vm777_vm1, %v8210_v25  ;;  %v10245_v24 = vld [vmem:[#allocation7_spill] sm:$0xff] }
 0x48d   : > { %7679 = vmatmul.msk.bf16.gmra.mxu3 %vm777_vm1, %v8276_v61 }
 0x48e   : > { %8012 = vmatmul.msk.bf16.gmra.mxu0 %vm777_vm1, %v8342_v37  ;;  %v5622_v60 = vadd.f32 %v9936_v35, %v5490_v59 }
 0x48f   : > { %v3070_v38 = vpop.f32.mrf.mxu2 }
 0x490   : > { %vm5750_vm5 = vcmp.ge.f32.partialorder %v5622_v60, 0.0  ;;  %v5878_v11 = vmul.f32 0.2, %v5622_v60  ;;  %v3249_v16 = vadd.f32 %v3070_v38, %v2078_v26  ;;  %v4191_v50 = vpop.f32.mrf.mxu3 }
 0x491   : > { %v2079_v14 = vpop.f32.mrf.mxu1 }
 0x492   : > { %v6006_v62 = vsel %vm5750_vm5, %v5622_v60, %v5878_v11  ;;  %v4370_v30 = vadd.f32 %v4191_v50, %v3249_v16  ;;  %v2080_v2 = vadd.f32 %v2079_v14, %v10242_v13  ;;  %v8081_v13 = vld [vmem:[%s8821_s5 + $0x1d0] sm:$0xff] }
 0x493   : > { %v5314_v40 = vpop.f32.mrf.mxu0  ;;  %v8586_v49 = vpack.c.bf16 %v6006_v62, %v6005_v7  ;;  %v10246_v62 = vld [vmem:[#allocation9_spill] sm:$0xff] }
 0x494   : > { %v5491_v46 = vadd.f32 %v5312_v5, %v4370_v30 }
 0x495   : > { %8718 = vst [vmem:[%s9330_s29 + $0x170] sm:$0xff] %v8586_v49  }
 0x496   : > { %v5623_v36 = vadd.f32 %v9936_v35, %v5491_v46 }
 0x497   : > { %v3072_v44 = vpop.f32.mrf.mxu2 }
 0x498   : > { %v3250_v51 = vadd.f32 %v3072_v44, %v2080_v2  ;;  %v4193_v47 = vpop.f32.mrf.mxu3  ;;  %v5879_v52 = vmul.f32 0.2, %v5623_v36  ;;  %vm5751_vm6 = vcmp.ge.f32.partialorder %v5623_v36, 0.0  ;;  %v8213_v2 = vld [vmem:[%s8821_s5 + $0x1e0] sm:$0xff] }
 0x499   : > { %v2082_v58 = vpop.f32.mrf.mxu1 }
 0x49a   : > { %v4371_v53 = vadd.f32 %v4193_v47, %v3250_v51  ;;  %v2083_v33 = vadd.f32 %v2082_v58, %v10243_v9  ;;  %v6007_v42 = vsel %vm5751_vm6, %v5623_v36, %v5879_v52  ;;  %v8279_v51 = vld [vmem:[%s8821_s5 + $0x400] sm:$0xff]  ;;  %v8345_v47 = vld [vmem:[%s8821_s5 + $0x1f0] sm:$0xff] }
 0x49b   : > { %v5317_v27 = vpop.f32.mrf.mxu0 }
 0x49c   : > { %v5492_v6 = vadd.f32 %v5314_v40, %v4371_v53  ;;  %7014 = vmatmul.msk.bf16.gmra.mxu1 %vm777_vm1, %v8079_v45  ;;  %7347 = vmatmul.msk.bf16.gmra.mxu2 %vm777_vm1, %v8211_v10  ;;  %v10247_v53 = vld [vmem:[#allocation11_spill] sm:$0xff] }
 0x49d   : > { %7680 = vmatmul.msk.bf16.gmra.mxu3 %vm777_vm1, %v8277_v39 }
 0x49e   : > { %8013 = vmatmul.msk.bf16.gmra.mxu0 %vm777_vm1, %v8343_v1  ;;  %v5624_v22 = vadd.f32 %v9936_v35, %v5492_v6 }
 0x49f   : > { %v3075_v0 = vpop.f32.mrf.mxu2 }
 0x4a0   : > { %vm5752_vm7 = vcmp.ge.f32.partialorder %v5624_v22, 0.0  ;;  %v5880_v4 = vmul.f32 0.2, %v5624_v22  ;;  %v3251_v12 = vadd.f32 %v3075_v0, %v2083_v33  ;;  %v4196_v57 = vpop.f32.mrf.mxu3 }
 0x4a1   : > { %v2084_v18 = vpop.f32.mrf.mxu1 }
 0x4a2   : > { %v6008_v21 = vsel %vm5752_vm7, %v5624_v22, %v5880_v4  ;;  %v4372_v8 = vadd.f32 %v4196_v57, %v3251_v12  ;;  %v2085_v17 = vadd.f32 %v2084_v18, %v10244_v29  ;;  %v8082_v29 = vld [vmem:[%s8821_s5 + $0x1d8] sm:$0xff] }
 0x4a3   : > { %v5319_v23 = vpop.f32.mrf.mxu0  ;;  %v8591_v3 = vpack.c.bf16 %v6008_v21, %v6007_v42  ;;  %v10248_v21 = vld [vmem:[#allocation13_spill] sm:$0xff] }
 0x4a4   : > { %v5493_v55 = vadd.f32 %v5317_v27, %v4372_v8 }
 0x4a5   : > { %8719 = vst [vmem:[%s9330_s29 + $0x178] sm:$0xff] %v8591_v3  }
 0x4a6   : > { %v5625_v43 = vadd.f32 %v9936_v35, %v5493_v55 }
 0x4a7   : > { %v3077_v15 = vpop.f32.mrf.mxu2 }
 0x4a8   : > { %v3252_v41 = vadd.f32 %v3077_v15, %v2085_v17  ;;  %v4198_v34 = vpop.f32.mrf.mxu3  ;;  %v5881_v37 = vmul.f32 0.2, %v5625_v43  ;;  %vm5753_vm8 = vcmp.ge.f32.partialorder %v5625_v43, 0.0  ;;  %v8214_v17 = vld [vmem:[%s8821_s5 + $0x1e8] sm:$0xff] }
 0x4a9   : > { %v2087_v56 = vpop.f32.mrf.mxu1 }
 0x4aa   : > { %v4373_v25 = vadd.f32 %v4198_v34, %v3252_v41  ;;  %v2088_v5 = vadd.f32 %v2087_v56, %v10245_v24  ;;  %v6009_v38 = vsel %vm5753_vm8, %v5625_v43, %v5881_v37  ;;  %v8280_v41 = vld [vmem:[%s8821_s5 + $0x408] sm:$0xff]  ;;  %v8346_v34 = vld [vmem:[%s8821_s5 + $0x1f8] sm:$0xff] }
 0x4ab   : > { %v5322_v31 = vpop.f32.mrf.mxu0 }
 0x4ac   : > { %v5494_v61 = vadd.f32 %v5319_v23, %v4373_v25  ;;  %7015 = vmatmul.msk.bf16.gmra.mxu1 %vm777_vm1, %v8080_v20  ;;  %7348 = vmatmul.msk.bf16.gmra.mxu2 %vm777_vm1, %v8212_v63  ;;  %v10249_v25 = vld [vmem:[#allocation15_spill] sm:$0xff] }
 0x4ad   : > { %7681 = vmatmul.msk.bf16.gmra.mxu3 %vm777_vm1, %v8278_v19 }
 0x4ae   : > { %8014 = vmatmul.msk.bf16.gmra.mxu0 %vm777_vm1, %v8344_v48  ;;  %v5626_v32 = vadd.f32 %v9936_v35, %v5494_v61 }
 0x4af   : > { %v3080_v59 = vpop.f32.mrf.mxu2 }
 0x4b0   : > { %vm5754_vm9 = vcmp.ge.f32.partialorder %v5626_v32, 0.0  ;;  %v5882_v28 = vmul.f32 0.2, %v5626_v32  ;;  %v3253_v60 = vadd.f32 %v3080_v59, %v2088_v5  ;;  %v4201_v54 = vpop.f32.mrf.mxu3 }
 0x4b1   : > { %v2089_v26 = vpop.f32.mrf.mxu1 }
 0x4b2   : > { %v6010_v11 = vsel %vm5754_vm9, %v5626_v32, %v5882_v28  ;;  %v4374_v16 = vadd.f32 %v4201_v54, %v3253_v60  ;;  %v2090_v30 = vadd.f32 %v2089_v26, %v10246_v62  ;;  %v8083_v62 = vld [vmem:[%s8821_s5 + $0x1e0] sm:$0xff] }
 0x4b3   : > { %v5324_v50 = vpop.f32.mrf.mxu0  ;;  %v8596_v14 = vpack.c.bf16 %v6010_v11, %v6009_v38  ;;  %v10250_v11 = vld [vmem:[#allocation17_spill] sm:$0xff] }
 0x4b4   : > { %v5495_v7 = vadd.f32 %v5322_v31, %v4374_v16 }
 0x4b5   : > { %8720 = vst [vmem:[%s9330_s29 + $0x180] sm:$0xff] %v8596_v14  }
 0x4b6   : > { %v5627_v45 = vadd.f32 %v9936_v35, %v5495_v7 }
 0x4b7   : > { %v3082_v40 = vpop.f32.mrf.mxu2 }
 0x4b8   : > { %v3254_v49 = vadd.f32 %v3082_v40, %v2090_v30  ;;  %v4203_v46 = vpop.f32.mrf.mxu3  ;;  %v5883_v1 = vmul.f32 0.2, %v5627_v45  ;;  %vm5755_vm10 = vcmp.ge.f32.partialorder %v5627_v45, 0.0  ;;  %v8215_v30 = vld [vmem:[%s8821_s5 + $0x1f0] sm:$0xff] }
 0x4b9   : > { %v2092_v44 = vpop.f32.mrf.mxu1 }
 0x4ba   : > { %v4375_v10 = vadd.f32 %v4203_v46, %v3254_v49  ;;  %v2093_v27 = vadd.f32 %v2092_v44, %v10247_v53  ;;  %v6011_v0 = vsel %vm5755_vm10, %v5627_v45, %v5883_v1  ;;  %v8281_v49 = vld [vmem:[%s8821_s5 + $0x410] sm:$0xff]  ;;  %v8347_v46 = vld [vmem:[%s8821_s5 + $0x200] sm:$0xff] }
 0x4bb   : > { %v5327_v58 = vpop.f32.mrf.mxu0 }
 0x4bc   : > { %v5496_v39 = vadd.f32 %v5324_v50, %v4375_v10  ;;  %7016 = vmatmul.msk.bf16.gmra.mxu1 %vm777_vm1, %v8081_v13  ;;  %7349 = vmatmul.msk.bf16.gmra.mxu2 %vm777_vm1, %v8213_v2  ;;  %v10251_v10 = vld [vmem:[#allocation19_spill] sm:$0xff] }
 0x4bd   : > { %7682 = vmatmul.msk.bf16.gmra.mxu3 %vm777_vm1, %v8279_v51 }
 0x4be   : > { %8015 = vmatmul.msk.bf16.gmra.mxu0 %vm777_vm1, %v8345_v47  ;;  %v5628_v36 = vadd.f32 %v9936_v35, %v5496_v39 }
 0x4bf   : > { %v3085_v6 = vpop.f32.mrf.mxu2 }
 0x4c0   : > { %vm5756_vm11 = vcmp.ge.f32.partialorder %v5628_v36, 0.0  ;;  %v5884_v52 = vmul.f32 0.2, %v5628_v36  ;;  %v3255_v22 = vadd.f32 %v3085_v6, %v2093_v27  ;;  %v4206_v9 = vpop.f32.mrf.mxu3 }
 0x4c1   : > { %v2094_v33 = vpop.f32.mrf.mxu1 }
 0x4c2   : > { %v6012_v4 = vsel %vm5756_vm11, %v5628_v36, %v5884_v52  ;;  %v4376_v12 = vadd.f32 %v4206_v9, %v3255_v22  ;;  %v2095_v8 = vadd.f32 %v2094_v33, %v10248_v21  ;;  %v8084_v21 = vld [vmem:[%s8821_s5 + $0x1e8] sm:$0xff] }
 0x4c3   : > { %v5329_v57 = vpop.f32.mrf.mxu0  ;;  %v8601_v18 = vpack.c.bf16 %v6012_v4, %v6011_v0  ;;  %v10252_v4 = vld [vmem:[#allocation21_spill] sm:$0xff] }
 0x4c4   : > { %v5497_v42 = vadd.f32 %v5327_v58, %v4376_v12 }
 0x4c5   : > { %8721 = vst [vmem:[%s9330_s29 + $0x188] sm:$0xff] %v8601_v18  }
 0x4c6   : > { %v5629_v20 = vadd.f32 %v9936_v35, %v5497_v42 }
 0x4c7   : > { %v3087_v23 = vpop.f32.mrf.mxu2 }
 0x4c8   : > { %v3256_v3 = vadd.f32 %v3087_v23, %v2095_v8  ;;  %v4208_v55 = vpop.f32.mrf.mxu3  ;;  %v5885_v48 = vmul.f32 0.2, %v5629_v20  ;;  %vm5757_vm12 = vcmp.ge.f32.partialorder %v5629_v20, 0.0  ;;  %v8216_v8 = vld [vmem:[%s8821_s5 + $0x1f8] sm:$0xff] }
 0x4c9   : > { %v2097_v15 = vpop.f32.mrf.mxu1 }
 0x4ca   : > { %v4377_v63 = vadd.f32 %v4208_v55, %v3256_v3  ;;  %v2098_v31 = vadd.f32 %v2097_v15, %v10249_v25  ;;  %v6013_v59 = vsel %vm5757_vm12, %v5629_v20, %v5885_v48  ;;  %v8282_v3 = vld [vmem:[%s8821_s5 + $0x418] sm:$0xff]  ;;  %v8348_v55 = vld [vmem:[%s8821_s5 + $0x208] sm:$0xff] }
 0x4cb   : > { %v5332_v56 = vpop.f32.mrf.mxu0 }
 0x4cc   : > { %v5498_v19 = vadd.f32 %v5329_v57, %v4377_v63  ;;  %7017 = vmatmul.msk.bf16.gmra.mxu1 %vm777_vm1, %v8082_v29  ;;  %7350 = vmatmul.msk.bf16.gmra.mxu2 %vm777_vm1, %v8214_v17  ;;  %v10253_v63 = vld [vmem:[#allocation24_spill] sm:$0xff] }
 0x4cd   : > { %7683 = vmatmul.msk.bf16.gmra.mxu3 %vm777_vm1, %v8280_v41 }
 0x4ce   : > { %8016 = vmatmul.msk.bf16.gmra.mxu0 %vm777_vm1, %v8346_v34  ;;  %v5630_v43 = vadd.f32 %v9936_v35, %v5498_v19 }
 0x4cf   : > { %v3090_v61 = vpop.f32.mrf.mxu2 }
 0x4d0   : > { %vm5758_vm13 = vcmp.ge.f32.partialorder %v5630_v43, 0.0  ;;  %v5886_v37 = vmul.f32 0.2, %v5630_v43  ;;  %v3257_v32 = vadd.f32 %v3090_v61, %v2098_v31  ;;  %v4211_v24 = vpop.f32.mrf.mxu3 }
 0x4d1   : > { %v2099_v5 = vpop.f32.mrf.mxu1 }
 0x4d2   : > { %v6014_v28 = vsel %vm5758_vm13, %v5630_v43, %v5886_v37  ;;  %v4378_v60 = vadd.f32 %v4211_v24, %v3257_v32  ;;  %v2100_v16 = vadd.f32 %v2099_v5, %v10250_v11  ;;  %v8085_v11 = vld [vmem:[%s8821_s5 + $0x1f0] sm:$0xff] }
 0x4d3   : > { %v5334_v54 = vpop.f32.mrf.mxu0  ;;  %v8606_v26 = vpack.c.bf16 %v6014_v28, %v6013_v59  ;;  %v10254_v28 = vld [vmem:[#allocation27_spill] sm:$0xff] }
 0x4d4   : > { %v5499_v38 = vadd.f32 %v5332_v56, %v4378_v60 }
 0x4d5   : > { %8722 = vst [vmem:[%s9330_s29 + $0x190] sm:$0xff] %v8606_v26  }
 0x4d6   : > { %v5631_v13 = vadd.f32 %v9936_v35, %v5499_v38 }
 0x4d7   : > { %v3092_v50 = vpop.f32.mrf.mxu2 }
 0x4d8   : > { %v3258_v14 = vadd.f32 %v3092_v50, %v2100_v16  ;;  %v4213_v7 = vpop.f32.mrf.mxu3  ;;  %v5887_v47 = vmul.f32 0.2, %v5631_v13  ;;  %vm5759_vm14 = vcmp.ge.f32.partialorder %v5631_v13, 0.0  ;;  %v8217_v16 = vld [vmem:[%s8821_s5 + $0x200] sm:$0xff] }
 0x4d9   : > { %v2102_v40 = vpop.f32.mrf.mxu1 }
 0x4da   : > { %v4379_v2 = vadd.f32 %v4213_v7, %v3258_v14  ;;  %v2103_v58 = vadd.f32 %v2102_v40, %v10251_v10  ;;  %v6015_v6 = vsel %vm5759_vm14, %v5631_v13, %v5887_v47  ;;  %v8283_v14 = vld [vmem:[%s8821_s5 + $0x420] sm:$0xff]  ;;  %v8349_v7 = vld [vmem:[%s8821_s5 + $0x210] sm:$0xff] }
 0x4db   : > { %v5337_v44 = vpop.f32.mrf.mxu0 }
 0x4dc   : > { %v5500_v51 = vadd.f32 %v5334_v54, %v4379_v2  ;;  %7018 = vmatmul.msk.bf16.gmra.mxu1 %vm777_vm1, %v8083_v62  ;;  %7351 = vmatmul.msk.bf16.gmra.mxu2 %vm777_vm1, %v8215_v30  ;;  %v10255_v2 = vld [vmem:[#allocation30_spill] sm:$0xff] }
 0x4dd   : > { %7684 = vmatmul.msk.bf16.gmra.mxu3 %vm777_vm1, %v8281_v49 }
 0x4de   : > { %8017 = vmatmul.msk.bf16.gmra.mxu0 %vm777_vm1, %v8347_v46  ;;  %v5632_v45 = vadd.f32 %v9936_v35, %v5500_v51 }
 0x4df   : > { %v3095_v39 = vpop.f32.mrf.mxu2 }
 0x4e0   : > { %vm5760_vm15 = vcmp.ge.f32.partialorder %v5632_v45, 0.0  ;;  %v5888_v1 = vmul.f32 0.2, %v5632_v45  ;;  %v3259_v36 = vadd.f32 %v3095_v39, %v2103_v58  ;;  %v4216_v53 = vpop.f32.mrf.mxu3 }
 0x4e1   : > { %v2104_v27 = vpop.f32.mrf.mxu1 }
 0x4e2   : > { %v6016_v52 = vsel %vm5760_vm15, %v5632_v45, %v5888_v1  ;;  %v4380_v22 = vadd.f32 %v4216_v53, %v3259_v36  ;;  %v2105_v12 = vadd.f32 %v2104_v27, %v10252_v4  ;;  %v8086_v4 = vld [vmem:[%s8821_s5 + $0x1f8] sm:$0xff] }
 0x4e3   : > { %v5339_v9 = vpop.f32.mrf.mxu0  ;;  %v8611_v33 = vpack.c.bf16 %v6016_v52, %v6015_v6  ;;  %v10256_v52 = vld [vmem:[#allocation33_spill] sm:$0xff] }
 0x4e4   : > { %v5501_v0 = vadd.f32 %v5337_v44, %v4380_v22 }
 0x4e5   : > { %8723 = vst [vmem:[%s9330_s29 + $0x198] sm:$0xff] %v8611_v33  }
 0x4e6   : > { %v5633_v29 = vadd.f32 %v9936_v35, %v5501_v0 }
 0x4e7   : > { %v3097_v57 = vpop.f32.mrf.mxu2 }
 0x4e8   : > { %v3260_v18 = vadd.f32 %v3097_v57, %v2105_v12  ;;  %v4218_v42 = vpop.f32.mrf.mxu3  ;;  %v5889_v34 = vmul.f32 0.2, %v5633_v29  ;;  %vm5761_vm0 = vcmp.ge.f32.partialorder %v5633_v29, 0.0  ;;  %v8218_v12 = vld [vmem:[%s8821_s5 + $0x208] sm:$0xff] }
 0x4e9   : > { %v2107_v23 = vpop.f32.mrf.mxu1 }
 0x4ea   : > { %v4381_v17 = vadd.f32 %v4218_v42, %v3260_v18  ;;  %v2108_v56 = vadd.f32 %v2107_v23, %v10253_v63  ;;  %v6017_v61 = vsel %vm5761_vm0, %v5633_v29, %v5889_v34  ;;  %v8284_v18 = vld [vmem:[%s8821_s5 + $0x428] sm:$0xff]  ;;  %v8350_v42 = vld [vmem:[%s8821_s5 + $0x218] sm:$0xff] }
 0x4eb   : > { %v5342_v15 = vpop.f32.mrf.mxu0 }
 0x4ec   : > { %v5502_v41 = vadd.f32 %v5339_v9, %v4381_v17  ;;  %7019 = vmatmul.msk.bf16.gmra.mxu1 %vm777_vm1, %v8084_v21  ;;  %7352 = vmatmul.msk.bf16.gmra.mxu2 %vm777_vm1, %v8216_v8  ;;  %v10257_v17 = vld [vmem:[#allocation36_spill] sm:$0xff] }
 0x4ed   : > { %7685 = vmatmul.msk.bf16.gmra.mxu3 %vm777_vm1, %v8282_v3 }
 0x4ee   : > { %8018 = vmatmul.msk.bf16.gmra.mxu0 %vm777_vm1, %v8348_v55  ;;  %v5634_v20 = vadd.f32 %v9936_v35, %v5502_v41 }
 0x4ef   : > { %v3100_v19 = vpop.f32.mrf.mxu2 }
 0x4f0   : > { %vm5762_vm2 = vcmp.ge.f32.partialorder %v5634_v20, 0.0  ;;  %v5890_v48 = vmul.f32 0.2, %v5634_v20  ;;  %v3261_v43 = vadd.f32 %v3100_v19, %v2108_v56  ;;  %v4221_v25 = vpop.f32.mrf.mxu3 }
 0x4f1   : > { %v2109_v31 = vpop.f32.mrf.mxu1 }
 0x4f2   : > { %v6018_v37 = vsel %vm5762_vm2, %v5634_v20, %v5890_v48  ;;  %v4382_v32 = vadd.f32 %v4221_v25, %v3261_v43  ;;  %v2110_v60 = vadd.f32 %v2109_v31, %v10254_v28 }
 0x4f3   : > { %v5344_v24 = vpop.f32.mrf.mxu0  ;;  %v8616_v5 = vpack.c.bf16 %v6018_v37, %v6017_v61  ;;  %v10258_v37 = vld [vmem:[#allocation39_spill] sm:$0xff] }
 0x4f4   : > { %v5503_v59 = vadd.f32 %v5342_v15, %v4382_v32 }
 0x4f5   : > { %8724 = vst [vmem:[%s9330_s29 + $0x1a0] sm:$0xff] %v8616_v5  }
 0x4f6   : > { %v5635_v62 = vadd.f32 %v9936_v35, %v5503_v59 }
 0x4f7   : > { %v3102_v54 = vpop.f32.mrf.mxu2 }
 0x4f8   : > { %v3262_v26 = vadd.f32 %v3102_v54, %v2110_v60  ;;  %v4223_v38 = vpop.f32.mrf.mxu3  ;;  %v5891_v46 = vmul.f32 0.2, %v5635_v62  ;;  %vm5763_vm3 = vcmp.ge.f32.partialorder %v5635_v62, 0.0 }
 0x4f9   : > { %v2112_v50 = vpop.f32.mrf.mxu1 }
 0x4fa   : > { %v4383_v30 = vadd.f32 %v4223_v38, %v3262_v26  ;;  %v2113_v44 = vadd.f32 %v2112_v50, %v10255_v2  ;;  %v6019_v39 = vsel %vm5763_vm3, %v5635_v62, %v5891_v46  ;;  %v10259_v50 = vld [vmem:[#allocation42_spill] sm:$0xff] }
 0x4fb   : > { %v5347_v40 = vpop.f32.mrf.mxu0 }
 0x4fc   : > { %v5504_v49 = vadd.f32 %v5344_v24, %v4383_v30  ;;  %7020 = vmatmul.msk.bf16.gmra.mxu1 %vm777_vm1, %v8085_v11  ;;  %7353 = vmatmul.msk.bf16.gmra.mxu2 %vm777_vm1, %v8217_v16 }
 0x4fd   : > { %7686 = vmatmul.msk.bf16.gmra.mxu3 %vm777_vm1, %v8283_v14 }
 0x4fe   : > { %8019 = vmatmul.msk.bf16.gmra.mxu0 %vm777_vm1, %v8349_v7  ;;  %v5636_v13 = vadd.f32 %v9936_v35, %v5504_v49 }
 0x4ff   : > { %v3105_v51 = vpop.f32.mrf.mxu2 }
 0x500   : > { %vm5764_vm4 = vcmp.ge.f32.partialorder %v5636_v13, 0.0  ;;  %v5892_v47 = vmul.f32 0.2, %v5636_v13  ;;  %v3263_v45 = vadd.f32 %v3105_v51, %v2113_v44  ;;  %v4226_v10 = vpop.f32.mrf.mxu3 }
 0x501   : > { %v2114_v58 = vpop.f32.mrf.mxu1 }
 0x502   : > { %v6020_v1 = vsel %vm5764_vm4, %v5636_v13, %v5892_v47  ;;  %v4384_v36 = vadd.f32 %v4226_v10, %v3263_v45  ;;  %v2115_v22 = vadd.f32 %v2114_v58, %v10256_v52  ;;  %v10260_v45 = vld [vmem:[#allocation45_spill] sm:$0xff] }
 0x503   : > { %v5349_v53 = vpop.f32.mrf.mxu0  ;;  %v8621_v27 = vpack.c.bf16 %v6020_v1, %v6019_v39 }
 0x504   : > { %v5505_v6 = vadd.f32 %v5347_v40, %v4384_v36 }
 0x505   : > { %8725 = vst [vmem:[%s9330_s29 + $0x1a8] sm:$0xff] %v8621_v27  }
 0x506   : > { %v5637_v21 = vadd.f32 %v9936_v35, %v5505_v6 }
 0x507   : > { %v3107_v9 = vpop.f32.mrf.mxu2 }
 0x508   : > { %v3264_v33 = vadd.f32 %v3107_v9, %v2115_v22  ;;  %v4228_v0 = vpop.f32.mrf.mxu3  ;;  %v5893_v55 = vmul.f32 0.2, %v5637_v21  ;;  %vm5765_vm5 = vcmp.ge.f32.partialorder %v5637_v21, 0.0 }
 0x509   : > { %v2117_v57 = vpop.f32.mrf.mxu1 }
 0x50a   : > { %v4385_v8 = vadd.f32 %v4228_v0, %v3264_v33  ;;  %v2118_v15 = vadd.f32 %v2117_v57, %v10257_v17  ;;  %v6021_v19 = vsel %vm5765_vm5, %v5637_v21, %v5893_v55  ;;  %v10261_v33 = vld [vmem:[#allocation48_spill] sm:$0xff]  ;;  %v10262_v17 = vld [vmem:[#allocation51_spill] sm:$0xff] }
 0x50b   : > { %v5352_v23 = vpop.f32.mrf.mxu0 }
 0x50c   : > { %v5506_v3 = vadd.f32 %v5349_v53, %v4385_v8  ;;  %7021 = vmatmul.msk.bf16.gmra.mxu1 %vm777_vm1, %v8086_v4  ;;  %7354 = vmatmul.msk.bf16.gmra.mxu2 %vm777_vm1, %v8218_v12 }
 0x50d   : > { %7687 = vmatmul.msk.bf16.gmra.mxu3 %vm777_vm1, %v8284_v18 }
 0x50e   : > { %8020 = vmatmul.msk.bf16.gmra.mxu0 %vm777_vm1, %v8350_v42  ;;  %v5638_v29 = vadd.f32 %v9936_v35, %v5506_v3 }
 0x50f   : > { %v3110_v41 = vpop.f32.mrf.mxu2 }
 0x510   : > { %vm5766_vm6 = vcmp.ge.f32.partialorder %v5638_v29, 0.0  ;;  %v5894_v34 = vmul.f32 0.2, %v5638_v29  ;;  %v3265_v20 = vadd.f32 %v3110_v41, %v2118_v15  ;;  %v4231_v63 = vpop.f32.mrf.mxu3 }
 0x511   : > { %v2119_v56 = vpop.f32.mrf.mxu1 }
 0x512   : > { %v6022_v48 = vsel %vm5766_vm6, %v5638_v29, %v5894_v34  ;;  %v4386_v43 = vadd.f32 %v4231_v63, %v3265_v20  ;;  %v2120_v32 = vadd.f32 %v2119_v56, %v10258_v37 }
 0x513   : > { %v5354_v25 = vpop.f32.mrf.mxu0  ;;  %v8626_v31 = vpack.c.bf16 %v6022_v48, %v6021_v19 }
 0x514   : > { %v5507_v61 = vadd.f32 %v5352_v23, %v4386_v43 }
 0x515   : > { %8726 = vst [vmem:[%s9330_s29 + $0x1b0] sm:$0xff] %v8626_v31  }
 0x516   : > { %v5639_v60 = vadd.f32 %v9936_v35, %v5507_v61  ;;  %v10263_v61 = vld [vmem:[#allocation54_spill] sm:$0xff] }
 0x517   : > { %v3112_v24 = vpop.f32.mrf.mxu2 }
 0x518   : > { %v3266_v5 = vadd.f32 %v3112_v24, %v2120_v32  ;;  %v4233_v59 = vpop.f32.mrf.mxu3  ;;  %v5895_v11 = vmul.f32 0.2, %v5639_v60  ;;  %vm5767_vm1 = vcmp.ge.f32.partialorder %v5639_v60, 0.0 }
 0x519   : > { %v2122_v28 = vpop.f32.mrf.mxu1 }
 0x51a   : > { %v4387_v54 = vadd.f32 %v4233_v59, %v3266_v5  ;;  %v2123_v14 = vadd.f32 %v2122_v28, %v10259_v50  ;;  %v6023_v46 = vsel %vm5767_vm1, %v5639_v60, %v5895_v11  ;;  %v10264_v50 = vld [vmem:[#allocation57_spill] sm:$0xff] }
 0x51b   : > { %v5357_v26 = vpop.f32.mrf.mxu0 }
 0x51c   : > { %v5508_v38 = vadd.f32 %v5354_v25, %v4387_v54 }
 0x51e   : > { %v5640_v16 = vadd.f32 %v9936_v35, %v5508_v38 }
 0x51f   : > { %v3115_v7 = vpop.f32.mrf.mxu2 }
 0x520   : > { %vm5768_vm7 = vcmp.ge.f32.partialorder %v5640_v16, 0.0  ;;  %v5896_v62 = vmul.f32 0.2, %v5640_v16  ;;  %v3267_v30 = vadd.f32 %v3115_v7, %v2123_v14  ;;  %v4236_v40 = vpop.f32.mrf.mxu3 }
 0x521   : > { %v2124_v49 = vpop.f32.mrf.mxu1 }
 0x522   : > { %v6024_v13 = vsel %vm5768_vm7, %v5640_v16, %v5896_v62  ;;  %v4388_v2 = vadd.f32 %v4236_v40, %v3267_v30  ;;  %v2125_v10 = vadd.f32 %v2124_v49, %v10260_v45 }
 0x523   : > { %v5359_v44 = vpop.f32.mrf.mxu0  ;;  %v8631_v51 = vpack.c.bf16 %v6024_v13, %v6023_v46 }
 0x524   : > { %v5509_v47 = vadd.f32 %v5357_v26, %v4388_v2 }
 0x525   : > { %8727 = vst [vmem:[%s9330_s29 + $0x1b8] sm:$0xff] %v8631_v51  }
 0x526   : > { %v5641_v53 = vadd.f32 %v9936_v35, %v5509_v47  ;;  %v10265_v47 = vld [vmem:[#allocation60_spill] sm:$0xff] }
 0x527   : > { %v3117_v58 = vpop.f32.mrf.mxu2 }
 0x528   : > { %v3268_v39 = vadd.f32 %v3117_v58, %v2125_v10  ;;  %v4238_v1 = vpop.f32.mrf.mxu3  ;;  %v5897_v22 = vmul.f32 0.2, %v5641_v53  ;;  %vm5769_vm8 = vcmp.ge.f32.partialorder %v5641_v53, 0.0 }
 0x529   : > { %v2127_v36 = vpop.f32.mrf.mxu1 }
 0x52a   : > { %v4389_v27 = vadd.f32 %v4238_v1, %v3268_v39  ;;  %v2128_v0 = vadd.f32 %v2127_v36, %v10261_v33  ;;  %v6025_v21 = vsel %vm5769_vm8, %v5641_v53, %v5897_v22  ;;  %v10266_v33 = vld [vmem:[#allocation63_spill] sm:$0xff] }
 0x52b   : > { %v5362_v6 = vpop.f32.mrf.mxu0 }
 0x52c   : > { %v5510_v52 = vadd.f32 %v5359_v44, %v4389_v27 }
 0x52e   : > { %v5642_v9 = vadd.f32 %v9936_v35, %v5510_v52 }
 0x52f   : > { %v3120_v4 = vpop.f32.mrf.mxu2 }
 0x530   : > { %vm5770_vm9 = vcmp.ge.f32.partialorder %v5642_v9, 0.0  ;;  %v5898_v12 = vmul.f32 0.2, %v5642_v9  ;;  %v3269_v57 = vadd.f32 %v3120_v4, %v2128_v0  ;;  %v4241_v18 = vpop.f32.mrf.mxu3 }
 0x531   : > { %v2129_v42 = vpop.f32.mrf.mxu1 }
 0x532   : > { %v6026_v8 = vsel %vm5770_vm9, %v5642_v9, %v5898_v12  ;;  %v4390_v23 = vadd.f32 %v4241_v18, %v3269_v57  ;;  %v2130_v15 = vadd.f32 %v2129_v42, %v10262_v17 }
 0x533   : > { %v5364_v3 = vpop.f32.mrf.mxu0  ;;  %v8636_v55 = vpack.c.bf16 %v6026_v8, %v6025_v21 }
 0x534   : > { %v5511_v29 = vadd.f32 %v5362_v6, %v4390_v23 }
 0x535   : > { %8728 = vst [vmem:[%s9330_s29 + $0x1c0] sm:$0xff] %v8636_v55  }
 0x536   : > { %v5643_v56 = vadd.f32 %v9936_v35, %v5511_v29  ;;  %v10267_v29 = vld [vmem:[#allocation66_spill] sm:$0xff] }
 0x537   : > { %v3122_v41 = vpop.f32.mrf.mxu2 }
 0x538   : > { %v3270_v34 = vadd.f32 %v3122_v41, %v2130_v15  ;;  %v4243_v20 = vpop.f32.mrf.mxu3  ;;  %v5899_v25 = vmul.f32 0.2, %v5643_v56  ;;  %vm5771_vm10 = vcmp.ge.f32.partialorder %v5643_v56, 0.0 }
 0x539   : > { %v2132_v63 = vpop.f32.mrf.mxu1 }
 0x53a   : > { %v4391_v19 = vadd.f32 %v4243_v20, %v3270_v34  ;;  %v2133_v37 = vadd.f32 %v2132_v63, %v10263_v61  ;;  %v6027_v60 = vsel %vm5771_vm10, %v5643_v56, %v5899_v25  ;;  %v10268_v61 = vld [vmem:[#allocation69_spill] sm:$0xff] }
 0x53b   : > { %v5367_v48 = vpop.f32.mrf.mxu0 }
 0x53c   : > { %v5512_v43 = vadd.f32 %v5364_v3, %v4391_v19 }
 0x53e   : > { %v5644_v31 = vadd.f32 %v9936_v35, %v5512_v43 }
 0x53f   : > { %v3125_v32 = vpop.f32.mrf.mxu2 }
 0x540   : > { %vm5772_vm11 = vcmp.ge.f32.partialorder %v5644_v31, 0.0  ;;  %v5900_v24 = vmul.f32 0.2, %v5644_v31  ;;  %v3271_v5 = vadd.f32 %v3125_v32, %v2133_v37  ;;  %v4246_v59 = vpop.f32.mrf.mxu3 }
 0x541   : > { %v2134_v28 = vpop.f32.mrf.mxu1 }
 0x542   : > { %v6028_v54 = vsel %vm5772_vm11, %v5644_v31, %v5900_v24  ;;  %v4392_v26 = vadd.f32 %v4246_v59, %v3271_v5  ;;  %v2135_v14 = vadd.f32 %v2134_v28, %v10264_v50 }
 0x543   : > { %v5369_v38 = vpop.f32.mrf.mxu0  ;;  %v8641_v11 = vpack.c.bf16 %v6028_v54, %v6027_v60 }
 0x544   : > { %v5513_v16 = vadd.f32 %v5367_v48, %v4392_v26 }
 0x545   : > { %8729 = vst [vmem:[%s9330_s29 + $0x1c8] sm:$0xff] %v8641_v11  }
 0x546   : > { %v5645_v49 = vadd.f32 %v9936_v35, %v5513_v16  ;;  %v10269_v16 = vld [vmem:[#allocation72_spill] sm:$0xff] }
 0x547   : > { %v3127_v7 = vpop.f32.mrf.mxu2 }
 0x548   : > { %v3272_v62 = vadd.f32 %v3127_v7, %v2135_v14  ;;  %v4248_v30 = vpop.f32.mrf.mxu3  ;;  %v5901_v44 = vmul.f32 0.2, %v5645_v49  ;;  %vm5773_vm12 = vcmp.ge.f32.partialorder %v5645_v49, 0.0 }
 0x549   : > { %v2137_v40 = vpop.f32.mrf.mxu1 }
 0x54a   : > { %v4393_v46 = vadd.f32 %v4248_v30, %v3272_v62  ;;  %v2138_v45 = vadd.f32 %v2137_v40, %v10265_v47  ;;  %v6029_v53 = vsel %vm5773_vm12, %v5645_v49, %v5901_v44  ;;  %v10270_v47 = vld [vmem:[#allocation75_spill] sm:$0xff] }
 0x54b   : > { %v5372_v13 = vpop.f32.mrf.mxu0 }
 0x54c   : > { %v5514_v2 = vadd.f32 %v5369_v38, %v4393_v46 }
 0x54e   : > { %v5646_v51 = vadd.f32 %v9936_v35, %v5514_v2 }
 0x54f   : > { %v3130_v10 = vpop.f32.mrf.mxu2 }
 0x550   : > { %vm5774_vm13 = vcmp.ge.f32.partialorder %v5646_v51, 0.0  ;;  %v5902_v58 = vmul.f32 0.2, %v5646_v51  ;;  %v3273_v39 = vadd.f32 %v3130_v10, %v2138_v45  ;;  %v4251_v1 = vpop.f32.mrf.mxu3 }
 0x551   : > { %v2139_v36 = vpop.f32.mrf.mxu1 }
 0x552   : > { %v6030_v27 = vsel %vm5774_vm13, %v5646_v51, %v5902_v58  ;;  %v4394_v6 = vadd.f32 %v4251_v1, %v3273_v39  ;;  %v2140_v0 = vadd.f32 %v2139_v36, %v10266_v33 }
 0x553   : > { %v5374_v52 = vpop.f32.mrf.mxu0  ;;  %v8646_v22 = vpack.c.bf16 %v6030_v27, %v6029_v53 }
 0x554   : > { %v5515_v9 = vadd.f32 %v5372_v13, %v4394_v6 }
 0x555   : > { %8730 = vst [vmem:[%s9330_s29 + $0x1d0] sm:$0xff] %v8646_v22  }
 0x556   : > { %v5647_v42 = vadd.f32 %v9936_v35, %v5515_v9  ;;  %v10271_v9 = vld [vmem:[#allocation78_spill] sm:$0xff] }
 0x557   : > { %v3132_v4 = vpop.f32.mrf.mxu2 }
 0x558   : > { %v3274_v12 = vadd.f32 %v3132_v4, %v2140_v0  ;;  %v4253_v57 = vpop.f32.mrf.mxu3  ;;  %v5903_v3 = vmul.f32 0.2, %v5647_v42  ;;  %vm5775_vm14 = vcmp.ge.f32.partialorder %v5647_v42, 0.0 }
 0x559   : > { %v2142_v18 = vpop.f32.mrf.mxu1 }
 0x55a   : > { %v4395_v21 = vadd.f32 %v4253_v57, %v3274_v12  ;;  %v2143_v17 = vadd.f32 %v2142_v18, %v10267_v29  ;;  %v6031_v56 = vsel %vm5775_vm14, %v5647_v42, %v5903_v3 }
 0x55b   : > { %v5377_v8 = vpop.f32.mrf.mxu0 }
 0x55c   : > { %v5516_v23 = vadd.f32 %v5374_v52, %v4395_v21 }
 0x55e   : > { %v5648_v55 = vadd.f32 %v9936_v35, %v5516_v23 }
 0x55f   : > { %v3135_v15 = vpop.f32.mrf.mxu2 }
 0x560   : > { %vm5776_vm15 = vcmp.ge.f32.partialorder %v5648_v55, 0.0  ;;  %v5904_v41 = vmul.f32 0.2, %v5648_v55  ;;  %v3275_v34 = vadd.f32 %v3135_v15, %v2143_v17  ;;  %v4256_v20 = vpop.f32.mrf.mxu3 }
 0x561   : > { %v2144_v63 = vpop.f32.mrf.mxu1 }
 0x562   : > { %v6032_v19 = vsel %vm5776_vm15, %v5648_v55, %v5904_v41  ;;  %v4396_v48 = vadd.f32 %v4256_v20, %v3275_v34  ;;  %v2145_v37 = vadd.f32 %v2144_v63, %v10268_v61  ;;  %v10272_v55 = vld [vmem:[#allocation81_spill] sm:$0xff] }
 0x563   : > { %v5379_v43 = vpop.f32.mrf.mxu0  ;;  %v8651_v25 = vpack.c.bf16 %v6032_v19, %v6031_v56 }
 0x564   : > { %v5517_v31 = vadd.f32 %v5377_v8, %v4396_v48 }
 0x565   : > { %8731 = vst [vmem:[%s9330_s29 + $0x1d8] sm:$0xff] %v8651_v25   ;;  %v10273_v25 = vld [vmem:[#allocation84_spill] sm:$0xff] }
 0x566   : > { %v5649_v28 = vadd.f32 %v9936_v35, %v5517_v31 }
 0x567   : > { %v3137_v32 = vpop.f32.mrf.mxu2 }
 0x568   : > { %v3276_v24 = vadd.f32 %v3137_v32, %v2145_v37  ;;  %v4258_v5 = vpop.f32.mrf.mxu3  ;;  %v5905_v38 = vmul.f32 0.2, %v5649_v28  ;;  %vm5777_vm0 = vcmp.ge.f32.partialorder %v5649_v28, 0.0 }
 0x569   : > { %v2147_v59 = vpop.f32.mrf.mxu1 }
 0x56a   : > { %v4397_v60 = vadd.f32 %v4258_v5, %v3276_v24  ;;  %v2148_v50 = vadd.f32 %v2147_v59, %v10269_v16  ;;  %v6033_v49 = vsel %vm5777_vm0, %v5649_v28, %v5905_v38 }
 0x56b   : > { %v5382_v54 = vpop.f32.mrf.mxu0 }
 0x56c   : > { %v5518_v26 = vadd.f32 %v5379_v43, %v4397_v60 }
 0x56e   : > { %v5650_v11 = vadd.f32 %v9936_v35, %v5518_v26 }
 0x56f   : > { %v3140_v14 = vpop.f32.mrf.mxu2 }
 0x570   : > { %vm5778_vm2 = vcmp.ge.f32.partialorder %v5650_v11, 0.0  ;;  %v5906_v7 = vmul.f32 0.2, %v5650_v11  ;;  %v3277_v62 = vadd.f32 %v3140_v14, %v2148_v50  ;;  %v4261_v30 = vpop.f32.mrf.mxu3 }
 0x571   : > { %v2149_v40 = vpop.f32.mrf.mxu1 }
 0x572   : > { %v6034_v46 = vsel %vm5778_vm2, %v5650_v11, %v5906_v7  ;;  %v4398_v13 = vadd.f32 %v4261_v30, %v3277_v62  ;;  %v2150_v45 = vadd.f32 %v2149_v40, %v10270_v47  ;;  %v10274_v11 = vld [vmem:[#allocation87_spill] sm:$0xff] }
 0x573   : > { %v8656_v2 = vpack.c.bf16 %v6034_v46, %v6033_v49  ;;  %v5384_v44 = vpop.f32.mrf.mxu0 }
 0x574   : > { %v5519_v51 = vadd.f32 %v5382_v54, %v4398_v13  ;;  %v8757_v13 = vld [vmem:[%s10101_s2] ss:$0 sm:$0xff] }
 0x575   : > { %8732 = vst [vmem:[%s9330_s29 + $0x1e0] sm:$0xff] %v8656_v2  }
 0x576   : > { %v5651_v36 = vadd.f32 %v9936_v35, %v5519_v51 }
 0x577   : > { %v3142_v10 = vpop.f32.mrf.mxu2 }
 0x578   : > { %v3278_v58 = vadd.f32 %v3142_v10, %v2150_v45  ;;  %v4263_v39 = vpop.f32.mrf.mxu3  ;;  %v5907_v52 = vmul.f32 0.2, %v5651_v36  ;;  %vm5779_vm3 = vcmp.ge.f32.partialorder %v5651_v36, 0.0 }
 0x579   : > { %v2152_v1 = vpop.f32.mrf.mxu1 }
 0x57a   : > { %v4399_v53 = vadd.f32 %v4263_v39, %v3278_v58  ;;  %v2153_v33 = vadd.f32 %v2152_v1, %v10271_v9  ;;  %v6035_v42 = vsel %vm5779_vm3, %v5651_v36, %v5907_v52 }
 0x57b   : > { %v5387_v6 = vpop.f32.mrf.mxu0 }
 0x57c   : > { %v5520_v27 = vadd.f32 %v5384_v44, %v4399_v53 }
 0x57e   : > { %v5652_v22 = vadd.f32 %v9936_v35, %v5520_v27 }
 0x57f   : > { %v3145_v0 = vpop.f32.mrf.mxu2 }
 0x580   : > { %vm5780_vm4 = vcmp.ge.f32.partialorder %v5652_v22, 0.0  ;;  %v5908_v4 = vmul.f32 0.2, %v5652_v22  ;;  %v3279_v12 = vadd.f32 %v3145_v0, %v2153_v33  ;;  %v4266_v57 = vpop.f32.mrf.mxu3 }
 0x581   : > { %v2154_v18 = vpop.f32.mrf.mxu1 }
 0x582   : > { %v6036_v21 = vsel %vm5780_vm4, %v5652_v22, %v5908_v4  ;;  %v4400_v8 = vadd.f32 %v4266_v57, %v3279_v12  ;;  %v2155_v29 = vadd.f32 %v2154_v18, %v10272_v55 }
 0x583   : > { %v8661_v23 = vpack.c.bf16 %v6036_v21, %v6035_v42  ;;  %v5389_v17 = vpop.f32.mrf.mxu0 }
 0x584   : > { %v5521_v3 = vadd.f32 %v5387_v6, %v4400_v8 }
 0x585   : > { %8733 = vst [vmem:[%s9330_s29 + $0x1e8] sm:$0xff] %v8661_v23  }
 0x586   : > { %v5653_v63 = vadd.f32 %v9936_v35, %v5521_v3 }
 0x587   : > { %v3147_v15 = vpop.f32.mrf.mxu2 }
 0x588   : > { %v3280_v41 = vadd.f32 %v3147_v15, %v2155_v29  ;;  %v4268_v34 = vpop.f32.mrf.mxu3  ;;  %v5909_v48 = vmul.f32 0.2, %v5653_v63  ;;  %vm5781_vm5 = vcmp.ge.f32.partialorder %v5653_v63, 0.0 }
 0x589   : > { %v2157_v20 = vpop.f32.mrf.mxu1 }
 0x58a   : > { %v4401_v56 = vadd.f32 %v4268_v34, %v3280_v41  ;;  %v2158_v31 = vadd.f32 %v2157_v20, %v10273_v25  ;;  %v6037_v59 = vsel %vm5781_vm5, %v5653_v63, %v5909_v48 }
 0x58b   : > { %v5392_v5 = vpop.f32.mrf.mxu0 }
 0x58c   : > { %v5522_v19 = vadd.f32 %v5389_v17, %v4401_v56 }
 0x58e   : > { %v5654_v43 = vadd.f32 %v9936_v35, %v5522_v19 }
 0x58f   : > { %v3150_v61 = vpop.f32.mrf.mxu2 }
 0x590   : > { %vm5782_vm6 = vcmp.ge.f32.partialorder %v5654_v43, 0.0  ;;  %v5910_v37 = vmul.f32 0.2, %v5654_v43  ;;  %v3281_v32 = vadd.f32 %v3150_v61, %v2158_v31  ;;  %v4271_v24 = vpop.f32.mrf.mxu3 }
 0x591   : > { %v2159_v26 = vpop.f32.mrf.mxu1 }
 0x592   : > { %v6038_v28 = vsel %vm5782_vm6, %v5654_v43, %v5910_v37  ;;  %v4402_v60 = vadd.f32 %v4271_v24, %v3281_v32  ;;  %v2160_v16 = vadd.f32 %v2159_v26, %v10274_v11 }
 0x593   : > { %v8666_v54 = vpack.c.bf16 %v6038_v28, %v6037_v59  ;;  %v5394_v40 = vpop.f32.mrf.mxu0 }
 0x594   : > { %v5523_v38 = vadd.f32 %v5392_v5, %v4402_v60 }
 0x595   : > { %8734 = vst [vmem:[%s9330_s29 + $0x1f0] sm:$0xff] %v8666_v54  }
 0x596   : > { %v5655_v62 = vadd.f32 %v9936_v35, %v5523_v38 }
 0x597   : > { %v3152_v50 = vpop.f32.mrf.mxu2 }
 0x598   : > { %v3282_v14 = vadd.f32 %v3152_v50, %v2160_v16  ;;  %v4273_v7 = vpop.f32.mrf.mxu3  ;;  %v5911_v46 = vmul.f32 0.2, %v5655_v62  ;;  %vm5783_vm1 = vcmp.ge.f32.partialorder %v5655_v62, 0.0 }
 0x59a   : > { %v4403_v30 = vadd.f32 %v4273_v7, %v3282_v14  ;;  %v6039_v51 = vsel %vm5783_vm1, %v5655_v62, %v5911_v46 }
 0x59c   : > { %v5524_v49 = vadd.f32 %v5394_v40, %v4403_v30 }
 0x59e   : > { %v5656_v2 = vadd.f32 %v8757_v13, %v5524_v49 }
 0x5a0   : > { %vm5784_vm7 = vcmp.ge.f32.partialorder %v5656_v2, 0.0  ;;  %v5912_v44 = vmul.f32 0.2, %v5656_v2 }
 0x5a2   : > { %v6040_v47 = vsel %vm5784_vm7, %v5656_v2, %v5912_v44 }
 0x5a3   : > { %v8671_v45 = vpack.c.bf16 %v6040_v47, %v6039_v51 }
 0x5a5   : > { %8735 = vst [vmem:[%s9330_s29 + $0x1f8] sm:$0xff] %v8671_v45  }
 0x5a6 PF: > { %s13_s12 = sadd.s32 1, %s8764_s12  }
 0x5a7   : > { %p10_p5 = scmp.ge.s32.totalorder %s13_s12, 4  }
 0x5a9   :  { %12 = sbr.rel (!%p10_p5) target bundleno = 1 (0x1), region = 66 }

// kernel: discriminator_forward.6
= control target key start
LH: loop header
LB: loop body
LE: loop exit
PB: predicated region body
PF: predicated region fallthrough
CT: control target
= control target key end

     0   :  { %vm237_vm0 = vcmask 1043456   ;;  %vm188_vm1 = vcmask 326656   ;;  %s7747_s1 = inlined_call_operand.vmem [shape: bf16[5,40,128], index: 1, kind: input, shape index: {}]   ;;  %s7748_s0 = inlined_call_operand.vmem [shape: bf16[1152,40], index: 0, kind: input, shape index: {}]   ;;  %s7749_s3 = inlined_call_operand.vmem [shape: f32[1,128], index: 3, kind: input, shape index: {}]   ;;  %s7750_s2 = inlined_call_operand.vmem [shape: f32[1,128], index: 2, kind: input, shape index: {}]   ;;  %s7751_s4 = inlined_call_operand.vmem [shape: bf16[512,128], index: 4, kind: output, shape index: {}]  }
   0x1   :  { %v3815_v0 = vld [vmem:[%s7747_s1 + $0x24] sm:$0xf]  ;;  %v54_v1 = vld [vmem:[%s7747_s1 + $0x10] sm:$0xf]  ;;  %v3996_v4 = vld [vmem:[%s7747_s1 + $0x38] sm:$0xf] }
   0x2   :  { %v182_v2 = vunpack.c.l.b16 %v3815_v0  ;;  %v419_v3 = vunpack.c.l.b16 %v54_v1  ;;  %v4089_v7 = vld [vmem:[%s7747_s1 + $0x4c] sm:$0xf]  ;;  %v692_v10 = vunpack.c.l.b16 %v3996_v4  ;;  %v4182_v12 = vld [vmem:[%s7747_s1 + $0x60] sm:$0xf]  ;;  %v4275_v13 = vld [vmem:[%s7747_s1 + $0x24] sm:$0xf] }
   0x3   :  { %v997_v11 = vunpack.c.l.b16 %v4089_v7  ;;  %v4766_v14 = vld [vmem:[%s7747_s1 + $0x1c] sm:$0xff]  ;;  %v4748_v15 = vld [vmem:[%s7747_s1 + $0x8] sm:$0xff]  ;;  %v1302_v16 = vunpack.c.l.b16 %v4182_v12  ;;  %v1675_v17 = vunpack.c.l.b16 %v4275_v13  ;;  %v4765_v20 = vld [vmem:[%s7747_s1 + $0x14] sm:$0xff] }
   0x4   :  { %v185_v5 = vpack.c.b16 %v182_v2, %v182_v2  ;;  %v422_v6 = vpack.c.b16 %v419_v3, %v419_v3  ;;  %v695_v18 = vpack.c.b16 %v692_v10, %v692_v10  ;;  %v4747_v21 = vld [vmem:[%s7747_s1] sm:$0xff]  ;;  %v4757_v24 = vld [vmem:[%s7748_s0 + $0xd0] sm:$0xff]  ;;  %v4758_v34 = vld [vmem:[%s7748_s0 + $0xd8] sm:$0xff] }
   0x5   :  { %v1000_v19 = vpack.c.b16 %v997_v11, %v997_v11  ;;  %v1305_v22 = vpack.c.b16 %v1302_v16, %v1302_v16  ;;  %v1678_v23 = vpack.c.b16 %v1675_v17, %v1675_v17  ;;  %v4739_v25 = vld [vmem:[%s7748_s0 + $0x40] sm:$0xff]  ;;  %v4749_v28 = vld [vmem:[%s7748_s0 + $0x90] sm:$0xff]  ;;  %v4740_v35 = vld [vmem:[%s7748_s0 + $0x48] sm:$0xff] }
   0x6   :  { %v239_v8 = vsel %vm237_vm0, %v185_v5, 0  ;;  %v474_v9 = vsel %vm237_vm0, %v422_v6, 0  ;;  %v747_v26 = vsel %vm237_vm0, %v695_v18, 0  ;;  %v4731_v29 = vld [vmem:[%s7748_s0] sm:$0xff]  ;;  %v4784_v32 = vld [vmem:[%s7747_s1 + $0x30] sm:$0xff]  ;;  %v4750_v36 = vld [vmem:[%s7748_s0 + $0x98] sm:$0xff] }
   0x7   :  { %5102 = vmatpush.bf16.msra.mxu2 %v239_v8  ;;  %5105 = vmatpush.bf16.msra.mxu3 %v474_v9  ;;  %v1052_v27 = vsel %vm237_vm0, %v1000_v19, 0  ;;  %v1357_v30 = vsel %vm237_vm0, %v1305_v22, 0  ;;  %v1730_v31 = vsel %vm237_vm0, %v1678_v23, 0  ;;  %v4802_v33 = vld [vmem:[%s7747_s1 + $0x44] sm:$0xff]  ;;  %v4820_v38 = vld [vmem:[%s7747_s1 + $0x58] sm:$0xff]  ;;  %v4741_v41 = vld [vmem:[%s7748_s0 + $0x50] sm:$0xff] }
   0x8   :  { %246 = vmatpush.bf16.msra.mxu0 %v239_v8  ;;  %481 = vmatpush.bf16.msra.mxu1 %v474_v9  ;;  %v4732_v37 = vld [vmem:[%s7748_s0 + $0x8] sm:$0xff]  ;;  %v4856_v39 = vld [vmem:[%s7747_s1 + $0x1c] sm:$0xff]  ;;  %v4733_v43 = vld [vmem:[%s7748_s0 + $0x10] sm:$0xff] }
   0x9   :  { %v4759_v40 = vld [vmem:[%s7748_s0 + $0xe0] sm:$0xff]  ;;  %v4760_v44 = vld [vmem:[%s7748_s0 + $0xe8] sm:$0xff]  ;;  %v4742_v45 = vld [vmem:[%s7748_s0 + $0x58] sm:$0xff] }
   0xa   :  { %v4751_v42 = vld [vmem:[%s7748_s0 + $0xa0] sm:$0xff]  ;;  %v4752_v46 = vld [vmem:[%s7748_s0 + $0xa8] sm:$0xff]  ;;  %v4734_v47 = vld [vmem:[%s7748_s0 + $0x18] sm:$0xff] }
   0xb   :  { %5103 = vmatpush.bf16.msra.mxu2 %v4766_v14  ;;  %5106 = vmatpush.bf16.msra.mxu3 %v4748_v15  ;;  %v4783_v48 = vld [vmem:[%s7747_s1 + $0x28] sm:$0xff]  ;;  %v4801_v49 = vld [vmem:[%s7747_s1 + $0x3c] sm:$0xff]  ;;  %v4761_v50 = vld [vmem:[%s7748_s0 + $0xf0] sm:$0xff] }
   0xc   :  { %247 = vmatpush.bf16.msra.mxu0 %v4766_v14  ;;  %482 = vmatpush.bf16.msra.mxu1 %v4748_v15  ;;  %v4743_v51 = vld [vmem:[%s7748_s0 + $0x60] sm:$0xff]  ;;  %v4753_v52 = vld [vmem:[%s7748_s0 + $0xb0] sm:$0xff]  ;;  %v4762_v56 = vld [vmem:[%s7748_s0 + $0xf8] sm:$0xff] }
   0xd   :  { %v4735_v53 = vld [vmem:[%s7748_s0 + $0x20] sm:$0xff]  ;;  %v4819_v54 = vld [vmem:[%s7747_s1 + $0x50] sm:$0xff]  ;;  %v4744_v57 = vld [vmem:[%s7748_s0 + $0x68] sm:$0xff] }
   0xe   :  { %v4855_v55 = vld [vmem:[%s7747_s1 + $0x14] sm:$0xff]  ;;  %v4736_v59 = vld [vmem:[%s7748_s0 + $0x28] sm:$0xff]  ;;  %v4763_v60 = vld [vmem:[%s7748_s0 + $0x100] sm:$0xff] }
   0xf   :  { %5104 = vmatpush.bf16.msra.mxu2 %v4765_v20  ;;  %5107 = vmatpush.bf16.msra.mxu3 %v4747_v21  ;;  %v4754_v58 = vld [vmem:[%s7748_s0 + $0xb8] sm:$0xff]  ;;  %v4745_v61 = vld [vmem:[%s7748_s0 + $0x70] sm:$0xff]  ;;  %v4755_v62 = vld [vmem:[%s7748_s0 + $0xc0] sm:$0xff] }
  0x10   :  { %248 = vmatpush.bf16.msra.mxu0 %v4765_v20  ;;  %483 = vmatpush.bf16.msra.mxu1 %v4747_v21  ;;  %v4737_v63 = vld [vmem:[%s7748_s0 + $0x30] sm:$0xff]  ;;  %v4456_v2 = vld [vmem:[%s7747_s1 + $0x38] sm:$0xf]  ;;  %v4549_v8 = vld [vmem:[%s7747_s1 + $0x4c] sm:$0xf] }
  0x11   :  { %v1548_v0 = vld [vmem:[%s7747_s1 + $0x10] sm:$0xf]  ;;  %v2182_v3 = vunpack.c.l.b16 %v4456_v2  ;;  %v2486_v9 = vunpack.c.l.b16 %v4549_v8  ;;  %v4764_v11 = vld [vmem:[%s7748_s0 + $0x108] sm:$0xff]  ;;  %v4746_v12 = vld [vmem:[%s7748_s0 + $0x78] sm:$0xff] }
  0x12   :  { %3896 = vmatmul.msk.bf16.vlgmr.msra.gmra.mxu2 %vm188_vm1, %v4757_v24  ;;  %3984 = vmatmul.msk.bf16.vlgmr.msra.gmra.mxu3 %vm188_vm1, %v4739_v25  ;;  %v1910_v1 = vunpack.c.l.b16 %v1548_v0  ;;  %v4642_v14 = vld [vmem:[%s7747_s1 + $0x60] sm:$0xf]  ;;  %v4756_v15 = vld [vmem:[%s7748_s0 + $0xc8] sm:$0xff]  ;;  %v4738_v16 = vld [vmem:[%s7748_s0 + $0x38] sm:$0xff] }
  0x13   :  { %754 = vmatpush.bf16.msrb.mxu2 %v747_v26  ;;  %1059 = vmatpush.bf16.msrb.mxu3 %v1052_v27  ;;  %v2185_v5 = vpack.c.b16 %v2182_v3, %v2182_v3  ;;  %v2489_v10 = vpack.c.b16 %v2486_v9, %v2486_v9  ;;  %v2790_v17 = vunpack.c.l.b16 %v4642_v14  ;;  %v4767_v20 = vld [vmem:[%s7748_s0 + $0x8] sm:$0xff]  ;;  %v4785_v21 = vld [vmem:[%s7748_s0 + $0x98] sm:$0xff]  ;;  %v4803_v22 = vld [vmem:[%s7748_s0 + $0x10] sm:$0xff] }
  0x14   :  { %3888 = vmatmul.msk.bf16.vlgmr.msra.gmra.mxu0 %vm188_vm1, %v4749_v28  ;;  %3976 = vmatmul.msk.bf16.vlgmr.msra.gmra.mxu1 %vm188_vm1, %v4731_v29  ;;  %v1913_v4 = vpack.c.b16 %v1910_v1, %v1910_v1  ;;  %v4839_v23 = vld [vmem:[%s7748_s0 + $0x1b0] sm:$0xff]  ;;  %v4838_v14 = vld [vmem:[%s7747_s1 + $0x8] sm:$0xff] }
  0x15   :  { %1364 = vmatpush.bf16.msrb.mxu0 %v1357_v30  ;;  %1737 = vmatpush.bf16.msrb.mxu1 %v1730_v31  ;;  %v2237_v7 = vsel %vm237_vm0, %v2185_v5, 0  ;;  %v2541_v13 = vsel %vm237_vm0, %v2489_v10, 0  ;;  %v2793_v18 = vpack.c.b16 %v2790_v17, %v2790_v17  ;;  %v4788_v5 = vld [vmem:[%s7748_s0 + $0xb0] sm:$0xff] }
  0x16   :  { %v1965_v6 = vsel %vm237_vm0, %v1913_v4, 0  ;;  %v4770_v4 = vld [vmem:[%s7748_s0 + $0x20] sm:$0xff] }
  0x17   :  { %755 = vmatpush.bf16.msrb.mxu2 %v4784_v32  ;;  %1060 = vmatpush.bf16.msrb.mxu3 %v4802_v33  ;;  %v2845_v19 = vsel %vm237_vm0, %v2793_v18, 0  ;;  %v4874_v18 = vld [vmem:[%s7747_s1 + $0x30] sm:$0xff] }
  0x19   :  { %1365 = vmatpush.bf16.msrb.mxu0 %v4820_v38  ;;  %1738 = vmatpush.bf16.msrb.mxu1 %v4856_v39  ;;  %v4804_v38 = vld [vmem:[%s7748_s0 + $0x18] sm:$0xff] }
  0x1a   :  { %v4840_v39 = vld [vmem:[%s7748_s0 + $0x1b8] sm:$0xff] }
  0x1b   :  { %756 = vmatpush.bf16.msrb.mxu2 %v4783_v48  ;;  %1061 = vmatpush.bf16.msrb.mxu3 %v4801_v49 }
  0x1d   :  { %1366 = vmatpush.bf16.msrb.mxu0 %v4819_v54  ;;  %1739 = vmatpush.bf16.msrb.mxu1 %v4855_v55  ;;  %v4805_v54 = vld [vmem:[%s7748_s0 + $0x20] sm:$0xff] }
  0x1e   :  { %v4841_v55 = vld [vmem:[%s7748_s0 + $0x1c0] sm:$0xff] }
  0x1f   :  { %1972 = vmatpush.bf16.msra.mxu2 %v1965_v6  ;;  %2244 = vmatpush.bf16.msra.mxu3 %v2237_v7  ;;  %v4806_v6 = vld [vmem:[%s7748_s0 + $0x28] sm:$0xff] }
  0x20   :  { %v4842_v7 = vld [vmem:[%s7748_s0 + $0x1c8] sm:$0xff] }
  0x21   :  { %2548 = vmatpush.bf16.msra.mxu0 %v2541_v13  ;;  %2852 = vmatpush.bf16.msra.mxu1 %v2845_v19 }
  0x22   :  { %3897 = vmatmul.msk.bf16.gmra.mxu2 %vm188_vm1, %v4758_v34  ;;  %3985 = vmatmul.msk.bf16.gmra.mxu3 %vm188_vm1, %v4740_v35 }
  0x23   :  { %1973 = vmatpush.bf16.msra.mxu2 %v4838_v14  ;;  %2245 = vmatpush.bf16.msra.mxu3 %v4874_v18 }
  0x24   :  { %3889 = vmatmul.msk.bf16.gmra.mxu0 %vm188_vm1, %v4750_v36  ;;  %3977 = vmatmul.msk.bf16.gmra.mxu1 %vm188_vm1, %v4732_v37  ;;  %v4768_v36 = vld [vmem:[%s7748_s0 + $0x10] sm:$0xff]  ;;  %v4786_v37 = vld [vmem:[%s7748_s0 + $0xa0] sm:$0xff] }
  0x32   :  { %3898 = vmatmul.msk.bf16.gmra.mxu2 %vm188_vm1, %v4759_v40  ;;  %3986 = vmatmul.msk.bf16.gmra.mxu3 %vm188_vm1, %v4741_v41 }
  0x34   :  { %3890 = vmatmul.msk.bf16.gmra.mxu0 %vm188_vm1, %v4751_v42  ;;  %3978 = vmatmul.msk.bf16.gmra.mxu1 %vm188_vm1, %v4733_v43 }
  0x42   :  { %3899 = vmatmul.msk.bf16.gmra.mxu2 %vm188_vm1, %v4760_v44  ;;  %3987 = vmatmul.msk.bf16.gmra.mxu3 %vm188_vm1, %v4742_v45 }
  0x44   :  { %3891 = vmatmul.msk.bf16.gmra.mxu0 %vm188_vm1, %v4752_v46  ;;  %3979 = vmatmul.msk.bf16.gmra.mxu1 %vm188_vm1, %v4734_v47 }
  0x52   :  { %3900 = vmatmul.msk.bf16.gmra.mxu2 %vm188_vm1, %v4761_v50  ;;  %3988 = vmatmul.msk.bf16.gmra.mxu3 %vm188_vm1, %v4743_v51 }
  0x54   :  { %3892 = vmatmul.msk.bf16.gmra.mxu0 %vm188_vm1, %v4753_v52  ;;  %3980 = vmatmul.msk.bf16.gmra.mxu1 %vm188_vm1, %v4735_v53  ;;  %v4769_v52 = vld [vmem:[%s7748_s0 + $0x18] sm:$0xff]  ;;  %v4787_v53 = vld [vmem:[%s7748_s0 + $0xa8] sm:$0xff] }
  0x62   :  { %3901 = vmatmul.msk.bf16.gmra.mxu2 %vm188_vm1, %v4762_v56  ;;  %3989 = vmatmul.msk.bf16.gmra.mxu3 %vm188_vm1, %v4744_v57 }
  0x64   :  { %3893 = vmatmul.msk.bf16.gmra.mxu0 %vm188_vm1, %v4754_v58  ;;  %3981 = vmatmul.msk.bf16.gmra.mxu1 %vm188_vm1, %v4736_v59 }
  0x72   :  { %3902 = vmatmul.msk.bf16.gmra.mxu2 %vm188_vm1, %v4763_v60  ;;  %3990 = vmatmul.msk.bf16.gmra.mxu3 %vm188_vm1, %v4745_v61 }
  0x74   :  { %3894 = vmatmul.msk.bf16.gmra.mxu0 %vm188_vm1, %v4755_v62  ;;  %3982 = vmatmul.msk.bf16.gmra.mxu1 %vm188_vm1, %v4737_v63 }
  0x82   :  { %3903 = vmatmul.msk.bf16.gmra.mxu2 %vm188_vm1, %v4764_v11  ;;  %3991 = vmatmul.msk.bf16.gmra.mxu3 %vm188_vm1, %v4746_v12 }
  0x84   :  { %3895 = vmatmul.msk.bf16.gmra.mxu0 %vm188_vm1, %v4756_v15  ;;  %3983 = vmatmul.msk.bf16.gmra.mxu1 %vm188_vm1, %v4738_v16 }
  0x91   :  { %v250_v24 = vpop.f32.mrf.mxu0  ;;  %v485_v25 = vpop.f32.mrf.mxu1 }
  0x92   :  { %v5356_v26 = vadd.f32 %v485_v25, %v250_v24  ;;  %4069 = vmatmul.msk.bf16.vlgmr.msrb.gmra.mxu2 %vm188_vm1, %v4767_v20  ;;  %4162 = vmatmul.msk.bf16.vlgmr.msrb.gmra.mxu3 %vm188_vm1, %v4785_v21  ;;  %v4807_v24 = vld [vmem:[%s7748_s0 + $0x30] sm:$0xff] }
  0x93   :  { %v4843_v25 = vld [vmem:[%s7748_s0 + $0x1d0] sm:$0xff] }
  0x94   :  { %4255 = vmatmul.msk.bf16.vlgmr.msrb.gmra.mxu0 %vm188_vm1, %v4803_v22  ;;  %4348 = vmatmul.msk.bf16.vlgmr.msrb.gmra.mxu1 %vm188_vm1, %v4839_v23  ;;  %v4771_v22 = vld [vmem:[%s7748_s0 + $0x28] sm:$0xff]  ;;  %v4789_v23 = vld [vmem:[%s7748_s0 + $0xb8] sm:$0xff] }
  0x95   :  { %v290_v27 = vpop.f32.mrf.mxu2  ;;  %v525_v28 = vpop.f32.mrf.mxu3 }
  0x96   :  { %v5362_v29 = vadd.f32 %v525_v28, %v290_v27 }
  0x99   :  { %v252_v30 = vpop.f32.mrf.mxu0  ;;  %v487_v31 = vpop.f32.mrf.mxu1 }
  0x9a   :  { %v5364_v32 = vadd.f32 %v487_v31, %v252_v30  ;;  %v4892_v31 = vld [vmem:[%s7747_s1 + $0x44] sm:$0xff] }
  0x9b   :  { %2549 = vmatpush.bf16.msra.mxu0 %v4892_v31 }
  0x9d   :  { %v292_v33 = vpop.f32.mrf.mxu2  ;;  %v527_v34 = vpop.f32.mrf.mxu3 }
  0x9e   :  { %v5366_v35 = vadd.f32 %v527_v34, %v292_v33  ;;  %v4910_v33 = vld [vmem:[%s7747_s1 + $0x58] sm:$0xff] }
  0x9f   :  { %2853 = vmatpush.bf16.msra.mxu1 %v4910_v33 }
  0xa1   :  { %v255_v40 = vpop.f32.mrf.mxu0  ;;  %v490_v41 = vpop.f32.mrf.mxu1 }
  0xa2   :  { %v5380_v42 = vadd.f32 %v490_v41, %v255_v40  ;;  %4070 = vmatmul.msk.bf16.gmra.mxu2 %vm188_vm1, %v4768_v36  ;;  %4163 = vmatmul.msk.bf16.gmra.mxu3 %vm188_vm1, %v4786_v37 }
  0xa4   :  { %4256 = vmatmul.msk.bf16.gmra.mxu0 %vm188_vm1, %v4804_v38  ;;  %4349 = vmatmul.msk.bf16.gmra.mxu1 %vm188_vm1, %v4840_v39 }
  0xa5   :  { %v295_v43 = vpop.f32.mrf.mxu2  ;;  %v530_v44 = vpop.f32.mrf.mxu3 }
  0xa6   :  { %v5386_v45 = vadd.f32 %v530_v44, %v295_v43 }
  0xa9   :  { %v257_v46 = vpop.f32.mrf.mxu0  ;;  %v492_v47 = vpop.f32.mrf.mxu1 }
  0xaa   :  { %v5388_v48 = vadd.f32 %v492_v47, %v257_v46  ;;  %v4772_v46 = vld [vmem:[%s7748_s0 + $0x30] sm:$0xff]  ;;  %v4790_v47 = vld [vmem:[%s7748_s0 + $0xc0] sm:$0xff] }
  0xad   :  { %v297_v49 = vpop.f32.mrf.mxu2  ;;  %v532_v50 = vpop.f32.mrf.mxu3 }
  0xae   :  { %v5390_v51 = vadd.f32 %v532_v50, %v297_v49  ;;  %v4808_v49 = vld [vmem:[%s7748_s0 + $0x38] sm:$0xff] }
  0xaf   :  { %v4844_v50 = vld [vmem:[%s7748_s0 + $0x1d8] sm:$0xff] }
  0xb1   :  { %v260_v56 = vpop.f32.mrf.mxu0  ;;  %v495_v57 = vpop.f32.mrf.mxu1 }
  0xb2   :  { %v5404_v58 = vadd.f32 %v495_v57, %v260_v56  ;;  %4071 = vmatmul.msk.bf16.gmra.mxu2 %vm188_vm1, %v4769_v52  ;;  %4164 = vmatmul.msk.bf16.gmra.mxu3 %vm188_vm1, %v4787_v53 }
  0xb4   :  { %4257 = vmatmul.msk.bf16.gmra.mxu0 %vm188_vm1, %v4805_v54  ;;  %4350 = vmatmul.msk.bf16.gmra.mxu1 %vm188_vm1, %v4841_v55 }
  0xb5   :  { %v300_v59 = vpop.f32.mrf.mxu2  ;;  %v535_v60 = vpop.f32.mrf.mxu3 }
  0xb6   :  { %v5410_v61 = vadd.f32 %v535_v60, %v300_v59 }
  0xb9   :  { %v262_v62 = vpop.f32.mrf.mxu0  ;;  %v497_v63 = vpop.f32.mrf.mxu1 }
  0xba   :  { %v5412_v0 = vadd.f32 %v497_v63, %v262_v62 }
  0xbd   :  { %v302_v1 = vpop.f32.mrf.mxu2  ;;  %v537_v2 = vpop.f32.mrf.mxu3 }
  0xbe   :  { %v5414_v3 = vadd.f32 %v537_v2, %v302_v1 }
  0xc1   :  { %v265_v8 = vpop.f32.mrf.mxu0  ;;  %v500_v9 = vpop.f32.mrf.mxu1 }
  0xc2   :  { %v5428_v10 = vadd.f32 %v500_v9, %v265_v8  ;;  %4072 = vmatmul.msk.bf16.gmra.mxu2 %vm188_vm1, %v4770_v4  ;;  %4165 = vmatmul.msk.bf16.gmra.mxu3 %vm188_vm1, %v4788_v5  ;;  %v4773_v4 = vld [vmem:[%s7748_s0 + $0x38] sm:$0xff]  ;;  %v4791_v5 = vld [vmem:[%s7748_s0 + $0xc8] sm:$0xff] }
  0xc4   :  { %4258 = vmatmul.msk.bf16.gmra.mxu0 %vm188_vm1, %v4806_v6  ;;  %4351 = vmatmul.msk.bf16.gmra.mxu1 %vm188_vm1, %v4842_v7  ;;  %v4809_v6 = vld [vmem:[%s7748_s0 + $0x40] sm:$0xff] }
  0xc5   :  { %v305_v11 = vpop.f32.mrf.mxu2  ;;  %v540_v12 = vpop.f32.mrf.mxu3  ;;  %v4845_v7 = vld [vmem:[%s7748_s0 + $0x1e0] sm:$0xff] }
  0xc6   :  { %v5434_v13 = vadd.f32 %v540_v12, %v305_v11 }
  0xc9   :  { %v267_v15 = vpop.f32.mrf.mxu0  ;;  %v502_v16 = vpop.f32.mrf.mxu1 }
  0xca   :  { %v5439_v17 = vadd.f32 %v502_v16, %v267_v15 }
  0xcd   :  { %v307_v19 = vpop.f32.mrf.mxu2  ;;  %v542_v20 = vpop.f32.mrf.mxu3 }
  0xce   :  { %v5444_v21 = vadd.f32 %v542_v20, %v307_v19 }
  0xd1   :  { %v270_v27 = vpop.f32.mrf.mxu0  ;;  %v505_v28 = vpop.f32.mrf.mxu1 }
  0xd2   :  { %v5458_v30 = vadd.f32 %v505_v28, %v270_v27  ;;  %4073 = vmatmul.msk.bf16.gmra.mxu2 %vm188_vm1, %v4771_v22  ;;  %4166 = vmatmul.msk.bf16.gmra.mxu3 %vm188_vm1, %v4789_v23  ;;  %v4810_v27 = vld [vmem:[%s7748_s0 + $0x48] sm:$0xff] }
  0xd3   :  { %v4846_v28 = vld [vmem:[%s7748_s0 + $0x1e8] sm:$0xff] }
  0xd4   :  { %4259 = vmatmul.msk.bf16.gmra.mxu0 %vm188_vm1, %v4807_v24  ;;  %4352 = vmatmul.msk.bf16.gmra.mxu1 %vm188_vm1, %v4843_v25  ;;  %v4774_v24 = vld [vmem:[%s7748_s0 + $0x40] sm:$0xff]  ;;  %v4792_v25 = vld [vmem:[%s7748_s0 + $0xd0] sm:$0xff] }
  0xd5   :  { %v310_v34 = vpop.f32.mrf.mxu2  ;;  %v545_v36 = vpop.f32.mrf.mxu3 }
  0xd6   :  { %v5470_v37 = vadd.f32 %v545_v36, %v310_v34 }
  0xd9   :  { %v272_v38 = vpop.f32.mrf.mxu0  ;;  %v507_v39 = vpop.f32.mrf.mxu1 }
  0xda   :  { %v5472_v40 = vadd.f32 %v507_v39, %v272_v38 }
  0xdd   :  { %v312_v41 = vpop.f32.mrf.mxu2  ;;  %v547_v43 = vpop.f32.mrf.mxu3 }
  0xde   :  { %v5474_v44 = vadd.f32 %v547_v43, %v312_v41 }
  0xe1   :  { %v275_v52 = vpop.f32.mrf.mxu0  ;;  %v510_v53 = vpop.f32.mrf.mxu1 }
  0xe2   :  { %v5488_v54 = vadd.f32 %v510_v53, %v275_v52  ;;  %4074 = vmatmul.msk.bf16.gmra.mxu2 %vm188_vm1, %v4772_v46  ;;  %4167 = vmatmul.msk.bf16.gmra.mxu3 %vm188_vm1, %v4790_v47  ;;  %v4775_v52 = vld [vmem:[%s7748_s0 + $0x48] sm:$0xff]  ;;  %v4793_v53 = vld [vmem:[%s7748_s0 + $0xd8] sm:$0xff] }
  0xe4   :  { %4260 = vmatmul.msk.bf16.gmra.mxu0 %vm188_vm1, %v4808_v49  ;;  %4353 = vmatmul.msk.bf16.gmra.mxu1 %vm188_vm1, %v4844_v50 }
  0xe5   :  { %v315_v55 = vpop.f32.mrf.mxu2  ;;  %v550_v56 = vpop.f32.mrf.mxu3 }
  0xe6   :  { %v5494_v57 = vadd.f32 %v550_v56, %v315_v55  ;;  %v4811_v55 = vld [vmem:[%s7748_s0 + $0x50] sm:$0xff] }
  0xe7   :  { %v4847_v56 = vld [vmem:[%s7748_s0 + $0x1f0] sm:$0xff] }
  0xe9   :  { %v277_v59 = vpop.f32.mrf.mxu0  ;;  %v512_v60 = vpop.f32.mrf.mxu1 }
  0xea   :  { %v5496_v62 = vadd.f32 %v512_v60, %v277_v59 }
  0xed   :  { %v317_v63 = vpop.f32.mrf.mxu2  ;;  %v552_v1 = vpop.f32.mrf.mxu3 }
  0xee   :  { %v5498_v2 = vadd.f32 %v552_v1, %v317_v63 }
  0xf1   :  { %v280_v8 = vpop.f32.mrf.mxu0  ;;  %v515_v9 = vpop.f32.mrf.mxu1 }
  0xf2   :  { %v5512_v11 = vadd.f32 %v515_v9, %v280_v8  ;;  %4075 = vmatmul.msk.bf16.gmra.mxu2 %vm188_vm1, %v4773_v4  ;;  %4168 = vmatmul.msk.bf16.gmra.mxu3 %vm188_vm1, %v4791_v5 }
  0xf4   :  { %4261 = vmatmul.msk.bf16.gmra.mxu0 %vm188_vm1, %v4809_v6  ;;  %4354 = vmatmul.msk.bf16.gmra.mxu1 %vm188_vm1, %v4845_v7 }
  0xf5   :  { %v320_v12 = vpop.f32.mrf.mxu2  ;;  %v555_v14 = vpop.f32.mrf.mxu3 }
  0xf6   :  { %v5518_v15 = vadd.f32 %v555_v14, %v320_v12 }
  0xf9   :  { %v282_v16 = vpop.f32.mrf.mxu0  ;;  %v517_v18 = vpop.f32.mrf.mxu1 }
  0xfa   :  { %v5520_v19 = vadd.f32 %v517_v18, %v282_v16  ;;  %v4776_v16 = vld [vmem:[%s7748_s0 + $0x50] sm:$0xff]  ;;  %v4794_v18 = vld [vmem:[%s7748_s0 + $0xe0] sm:$0xff] }
  0xfd   :  { %v322_v20 = vpop.f32.mrf.mxu2  ;;  %v557_v22 = vpop.f32.mrf.mxu3 }
  0xfe   :  { %v5522_v23 = vadd.f32 %v557_v22, %v322_v20  ;;  %v4848_v20 = vld [vmem:[%s7748_s0 + $0x1f8] sm:$0xff] }
 0x101   :  { %v285_v31 = vpop.f32.mrf.mxu0  ;;  %v520_v33 = vpop.f32.mrf.mxu1 }
 0x102   :  { %v5536_v34 = vadd.f32 %v520_v33, %v285_v31  ;;  %4076 = vmatmul.msk.bf16.gmra.mxu2 %vm188_vm1, %v4774_v24  ;;  %4169 = vmatmul.msk.bf16.gmra.mxu3 %vm188_vm1, %v4792_v25 }
 0x104   :  { %4262 = vmatmul.msk.bf16.gmra.mxu0 %vm188_vm1, %v4810_v27  ;;  %4355 = vmatmul.msk.bf16.gmra.mxu1 %vm188_vm1, %v4846_v28  ;;  %v4837_v27 = vld [vmem:[%s7747_s1] sm:$0xff]  ;;  %v4873_v28 = vld [vmem:[%s7747_s1 + $0x28] sm:$0xff] }
 0x105   :  { %v325_v36 = vpop.f32.mrf.mxu2  ;;  %v560_v38 = vpop.f32.mrf.mxu3  ;;  %1974 = vmatpush.bf16.msra.mxu2 %v4837_v27  ;;  %2246 = vmatpush.bf16.msra.mxu3 %v4873_v28  ;;  %v4778_v28 = vld [vmem:[%s7748_s0 + $0x60] sm:$0xff] }
 0x106   :  { %v5542_v39 = vadd.f32 %v560_v38, %v325_v36 }
 0x109   :  { %v287_v41 = vpop.f32.mrf.mxu0  ;;  %v522_v43 = vpop.f32.mrf.mxu1 }
 0x10a   :  { %v5544_v46 = vadd.f32 %v522_v43, %v287_v41 }
 0x10d   :  { %v327_v47 = vpop.f32.mrf.mxu2  ;;  %v562_v49 = vpop.f32.mrf.mxu3 }
 0x10e   :  { %v5546_v50 = vadd.f32 %v562_v49, %v327_v47  ;;  %v4891_v49 = vld [vmem:[%s7747_s1 + $0x3c] sm:$0xff] }
 0x10f   :  { %2550 = vmatpush.bf16.msra.mxu0 %v4891_v49 }
 0x111   :  { %v1368_v59 = vpop.f32.mrf.mxu0  ;;  %v5560_v60 = vpop.f32.mrf.mxu1 }
 0x112   :  { %4077 = vmatmul.msk.bf16.gmra.mxu2 %vm188_vm1, %v4775_v52  ;;  %4170 = vmatmul.msk.bf16.gmra.mxu3 %vm188_vm1, %v4793_v53  ;;  %v4909_v52 = vld [vmem:[%s7747_s1 + $0x50] sm:$0xff] }
 0x113   :  { %2854 = vmatpush.bf16.msra.mxu1 %v4909_v52 }
 0x114   :  { %4263 = vmatmul.msk.bf16.gmra.mxu0 %vm188_vm1, %v4811_v55  ;;  %4356 = vmatmul.msk.bf16.gmra.mxu1 %vm188_vm1, %v4847_v56  ;;  %v4777_v56 = vld [vmem:[%s7748_s0 + $0x58] sm:$0xff] }
 0x115   :  { %v758_v63 = vpop.f32.mrf.mxu2  ;;  %v1063_v1 = vpop.f32.mrf.mxu3 }
 0x116   :  { %v838_v4 = vadd.f32 %v758_v63, %v5356_v26  ;;  %v4812_v26 = vld [vmem:[%s7748_s0 + $0x58] sm:$0xff]  ;;  %v4813_v63 = vld [vmem:[%s7748_s0 + $0x60] sm:$0xff] }
 0x118   :  { %v1143_v5 = vadd.f32 %v1063_v1, %v838_v4  ;;  %v4849_v1 = vld [vmem:[%s7748_s0 + $0x200] sm:$0xff] }
 0x119   :  { %v1370_v6 = vpop.f32.mrf.mxu0  ;;  %v5567_v7 = vpop.f32.mrf.mxu1 }
 0x11a   :  { %v5569_v8 = vadd.f32 %v1368_v59, %v1143_v5  ;;  %v4795_v59 = vld [vmem:[%s7748_s0 + $0xe8] sm:$0xff] }
 0x11d   :  { %v760_v9 = vpop.f32.mrf.mxu2  ;;  %v1065_v12 = vpop.f32.mrf.mxu3 }
 0x11e   :  { %v839_v14 = vadd.f32 %v760_v9, %v5364_v32 }
 0x120   :  { %v1144_v22 = vadd.f32 %v1065_v12, %v839_v14 }
 0x121   :  { %v1373_v24 = vpop.f32.mrf.mxu0  ;;  %v5584_v25 = vpop.f32.mrf.mxu1 }
 0x122   :  { %v5586_v32 = vadd.f32 %v1370_v6, %v1144_v22  ;;  %4078 = vmatmul.msk.bf16.gmra.mxu2 %vm188_vm1, %v4776_v16  ;;  %4171 = vmatmul.msk.bf16.gmra.mxu3 %vm188_vm1, %v4794_v18 }
 0x124   :  { %4264 = vmatmul.msk.bf16.gmra.mxu0 %vm188_vm1, %v4812_v26  ;;  %4357 = vmatmul.msk.bf16.gmra.mxu1 %vm188_vm1, %v4848_v20 }
 0x125   :  { %v763_v31 = vpop.f32.mrf.mxu2  ;;  %v1068_v33 = vpop.f32.mrf.mxu3 }
 0x126   :  { %v840_v36 = vadd.f32 %v763_v31, %v5380_v42  ;;  %v4796_v31 = vld [vmem:[%s7748_s0 + $0xf0] sm:$0xff] }
 0x128   :  { %v1145_v38 = vadd.f32 %v1068_v33, %v840_v36  ;;  %v4850_v33 = vld [vmem:[%s7748_s0 + $0x208] sm:$0xff] }
 0x129   :  { %v1375_v41 = vpop.f32.mrf.mxu0  ;;  %v5599_v43 = vpop.f32.mrf.mxu1 }
 0x12a   :  { %v5601_v47 = vadd.f32 %v1373_v24, %v1145_v38 }
 0x12d   :  { %v765_v53 = vpop.f32.mrf.mxu2  ;;  %v1070_v55 = vpop.f32.mrf.mxu3 }
 0x12e   :  { %v841_v42 = vadd.f32 %v765_v53, %v5388_v48 }
 0x130   :  { %v1146_v4 = vadd.f32 %v1070_v55, %v841_v42 }
 0x131   :  { %v1378_v48 = vpop.f32.mrf.mxu0  ;;  %v5622_v5 = vpop.f32.mrf.mxu1 }
 0x132   :  { %v5624_v6 = vadd.f32 %v1375_v41, %v1146_v4  ;;  %4079 = vmatmul.msk.bf16.gmra.mxu2 %vm188_vm1, %v4777_v56  ;;  %4172 = vmatmul.msk.bf16.gmra.mxu3 %vm188_vm1, %v4795_v59 }
 0x134   :  { %4265 = vmatmul.msk.bf16.gmra.mxu0 %vm188_vm1, %v4813_v63  ;;  %4358 = vmatmul.msk.bf16.gmra.mxu1 %vm188_vm1, %v4849_v1 }
 0x135   :  { %v768_v9 = vpop.f32.mrf.mxu2  ;;  %v1073_v12 = vpop.f32.mrf.mxu3 }
 0x136   :  { %v842_v14 = vadd.f32 %v768_v9, %v5404_v58  ;;  %v4814_v58 = vld [vmem:[%s7748_s0 + $0x68] sm:$0xff]  ;;  %v4797_v9 = vld [vmem:[%s7748_s0 + $0xf8] sm:$0xff] }
 0x138   :  { %v1147_v16 = vadd.f32 %v1073_v12, %v842_v14  ;;  %v4851_v12 = vld [vmem:[%s7748_s0 + $0x210] sm:$0xff] }
 0x139   :  { %v1380_v18 = vpop.f32.mrf.mxu0  ;;  %v5631_v26 = vpop.f32.mrf.mxu1 }
 0x13a   :  { %v5633_v20 = vadd.f32 %v1378_v48, %v1147_v16  ;;  %v4779_v48 = vld [vmem:[%s7748_s0 + $0x68] sm:$0xff] }
 0x13d   :  { %v770_v22 = vpop.f32.mrf.mxu2  ;;  %v1075_v24 = vpop.f32.mrf.mxu3 }
 0x13e   :  { %v843_v27 = vadd.f32 %v770_v22, %v5412_v0 }
 0x140   :  { %v1148_v36 = vadd.f32 %v1075_v24, %v843_v27 }
 0x141   :  { %v1383_v38 = vpop.f32.mrf.mxu0  ;;  %v5648_v41 = vpop.f32.mrf.mxu1 }
 0x142   :  { %v5650_v0 = vadd.f32 %v1380_v18, %v1148_v36  ;;  %4080 = vmatmul.msk.bf16.gmra.mxu2 %vm188_vm1, %v4778_v28  ;;  %4173 = vmatmul.msk.bf16.gmra.mxu3 %vm188_vm1, %v4796_v31 }
 0x144   :  { %4266 = vmatmul.msk.bf16.gmra.mxu0 %vm188_vm1, %v4814_v58  ;;  %4359 = vmatmul.msk.bf16.gmra.mxu1 %vm188_vm1, %v4850_v33 }
 0x145   :  { %v773_v49 = vpop.f32.mrf.mxu2  ;;  %v1078_v52 = vpop.f32.mrf.mxu3 }
 0x146   :  { %v844_v53 = vadd.f32 %v773_v49, %v5428_v10  ;;  %v4815_v10 = vld [vmem:[%s7748_s0 + $0x70] sm:$0xff] }
 0x148   :  { %v1149_v55 = vadd.f32 %v1078_v52, %v844_v53  ;;  %v4780_v52 = vld [vmem:[%s7748_s0 + $0x70] sm:$0xff]  ;;  %v4798_v53 = vld [vmem:[%s7748_s0 + $0x100] sm:$0xff] }
 0x149   :  { %v1385_v42 = vpop.f32.mrf.mxu0  ;;  %v5657_v56 = vpop.f32.mrf.mxu1 }
 0x14a   :  { %v5659_v59 = vadd.f32 %v1383_v38, %v1149_v55  ;;  %v4852_v55 = vld [vmem:[%s7748_s0 + $0x218] sm:$0xff] }
 0x14d   :  { %v775_v63 = vpop.f32.mrf.mxu2  ;;  %v1080_v1 = vpop.f32.mrf.mxu3 }
 0x14e   :  { %v845_v4 = vadd.f32 %v775_v63, %v5439_v17 }
 0x150   :  { %v1150_v14 = vadd.f32 %v1080_v1, %v845_v4 }
 0x151   :  { %v1388_v16 = vpop.f32.mrf.mxu0  ;;  %v5674_v18 = vpop.f32.mrf.mxu1 }
 0x152   :  { %v5676_v17 = vadd.f32 %v1385_v42, %v1150_v14  ;;  %4081 = vmatmul.msk.bf16.gmra.mxu2 %vm188_vm1, %v4779_v48  ;;  %4174 = vmatmul.msk.bf16.gmra.mxu3 %vm188_vm1, %v4797_v9 }
 0x154   :  { %4267 = vmatmul.msk.bf16.gmra.mxu0 %vm188_vm1, %v4815_v10  ;;  %4360 = vmatmul.msk.bf16.gmra.mxu1 %vm188_vm1, %v4851_v12 }
 0x155   :  { %v778_v22 = vpop.f32.mrf.mxu2  ;;  %v1083_v24 = vpop.f32.mrf.mxu3 }
 0x156   :  { %v846_v27 = vadd.f32 %v778_v22, %v5458_v30  ;;  %v4816_v30 = vld [vmem:[%s7748_s0 + $0x78] sm:$0xff] }
 0x158   :  { %v1151_v28 = vadd.f32 %v1083_v24, %v846_v27 }
 0x159   :  { %v1390_v31 = vpop.f32.mrf.mxu0  ;;  %v5683_v58 = vpop.f32.mrf.mxu1 }
 0x15a   :  { %v5685_v33 = vadd.f32 %v1388_v16, %v1151_v28  ;;  %v4781_v28 = vld [vmem:[%s7748_s0 + $0x78] sm:$0xff] }
 0x15d   :  { %v780_v36 = vpop.f32.mrf.mxu2  ;;  %v1085_v38 = vpop.f32.mrf.mxu3 }
 0x15e   :  { %v847_v49 = vadd.f32 %v780_v36, %v5472_v40  ;;  %v4853_v36 = vld [vmem:[%s7748_s0 + $0x220] sm:$0xff] }
 0x160   :  { %v1152_v42 = vadd.f32 %v1085_v38, %v847_v49 }
 0x161   :  { %v1393_v63 = vpop.f32.mrf.mxu0  ;;  %v5700_v1 = vpop.f32.mrf.mxu1 }
 0x162   :  { %v5702_v40 = vadd.f32 %v1390_v31, %v1152_v42  ;;  %4082 = vmatmul.msk.bf16.gmra.mxu2 %vm188_vm1, %v4780_v52  ;;  %4175 = vmatmul.msk.bf16.gmra.mxu3 %vm188_vm1, %v4798_v53  ;;  %v4799_v31 = vld [vmem:[%s7748_s0 + $0x108] sm:$0xff] }
 0x164   :  { %4268 = vmatmul.msk.bf16.gmra.mxu0 %vm188_vm1, %v4816_v30  ;;  %4361 = vmatmul.msk.bf16.gmra.mxu1 %vm188_vm1, %v4852_v55 }
 0x165   :  { %v783_v4 = vpop.f32.mrf.mxu2  ;;  %v1088_v48 = vpop.f32.mrf.mxu3 }
 0x166   :  { %v848_v9 = vadd.f32 %v783_v4, %v5488_v54  ;;  %v4817_v54 = vld [vmem:[%s7748_s0 + $0x80] sm:$0xff] }
 0x168   :  { %v1153_v10 = vadd.f32 %v1088_v48, %v848_v9 }
 0x169   :  { %v1395_v12 = vpop.f32.mrf.mxu0  ;;  %v5709_v14 = vpop.f32.mrf.mxu1 }
 0x16a   :  { %v5711_v16 = vadd.f32 %v1393_v63, %v1153_v10 }
 0x16c   :  { %7828 = vst [vmem:[#allocation3_spill] sm:$0xff] %v5711_v16 }
 0x16d   :  { %v785_v22 = vpop.f32.mrf.mxu2  ;;  %v1090_v24 = vpop.f32.mrf.mxu3 }
 0x16e   :  { %v849_v27 = vadd.f32 %v785_v22, %v5496_v62  ;;  %v4782_v22 = vld [vmem:[%s7748_s0 + $0x80] sm:$0xff] }
 0x170   :  { %v1154_v38 = vadd.f32 %v1090_v24, %v849_v27  ;;  %v4800_v24 = vld [vmem:[%s7748_s0 + $0x110] sm:$0xff]  ;;  %v4854_v27 = vld [vmem:[%s7748_s0 + $0x228] sm:$0xff] }
 0x171   :  { %v1398_v49 = vpop.f32.mrf.mxu0  ;;  %v5726_v52 = vpop.f32.mrf.mxu1 }
 0x172   :  { %v5728_v62 = vadd.f32 %v1395_v12, %v1154_v38  ;;  %4083 = vmatmul.msk.bf16.gmra.mxu2 %vm188_vm1, %v4781_v28  ;;  %4176 = vmatmul.msk.bf16.gmra.mxu3 %vm188_vm1, %v4799_v31 }
 0x174   :  { %7829 = vst [vmem:[#allocation4_spill] sm:$0xff] %v5728_v62  ;;  %4269 = vmatmul.msk.bf16.gmra.mxu0 %vm188_vm1, %v4817_v54  ;;  %4362 = vmatmul.msk.bf16.gmra.mxu1 %vm188_vm1, %v4853_v36 }
 0x175   :  { %v788_v53 = vpop.f32.mrf.mxu2  ;;  %v1093_v30 = vpop.f32.mrf.mxu3 }
 0x176   :  { %v850_v55 = vadd.f32 %v788_v53, %v5512_v11  ;;  %v4818_v11 = vld [vmem:[%s7748_s0 + $0x88] sm:$0xff] }
 0x178   :  { %v1155_v42 = vadd.f32 %v1093_v30, %v850_v55 }
 0x179   :  { %v1400_v63 = vpop.f32.mrf.mxu0  ;;  %v5735_v4 = vpop.f32.mrf.mxu1 }
 0x17a   :  { %v5737_v48 = vadd.f32 %v1398_v49, %v1155_v42 }
 0x17c   :  { %7830 = vst [vmem:[#allocation5_spill] sm:$0xff] %v5737_v48 }
 0x17d   :  { %v790_v9 = vpop.f32.mrf.mxu2  ;;  %v1095_v10 = vpop.f32.mrf.mxu3 }
 0x17e   :  { %v851_v12 = vadd.f32 %v790_v9, %v5520_v19 }
 0x180   :  { %v1156_v28 = vadd.f32 %v1095_v10, %v851_v12  ;;  %v4821_v12 = vld [vmem:[%s7748_s0 + $0x120] sm:$0xff] }
 0x181   :  { %v1403_v31 = vpop.f32.mrf.mxu0  ;;  %v5752_v54 = vpop.f32.mrf.mxu1 }
 0x182   :  { %v5754_v19 = vadd.f32 %v1400_v63, %v1156_v28  ;;  %4084 = vmatmul.msk.bf16.gmra.mxu2 %vm188_vm1, %v4782_v22  ;;  %4177 = vmatmul.msk.bf16.gmra.mxu3 %vm188_vm1, %v4800_v24  ;;  %v4857_v22 = vld [vmem:[%s7748_s0 + $0x128] sm:$0xff]  ;;  %v4893_v24 = vld [vmem:[%s7748_s0 + $0x130] sm:$0xff] }
 0x184   :  { %7831 = vst [vmem:[#allocation6_spill] sm:$0xff] %v5754_v19  ;;  %4270 = vmatmul.msk.bf16.gmra.mxu0 %vm188_vm1, %v4818_v11  ;;  %4363 = vmatmul.msk.bf16.gmra.mxu1 %vm188_vm1, %v4854_v27 }
 0x185   :  { %v793_v36 = vpop.f32.mrf.mxu2  ;;  %v1098_v38 = vpop.f32.mrf.mxu3 }
 0x186   :  { %v852_v49 = vadd.f32 %v793_v36, %v5536_v34  ;;  %v4875_v34 = vld [vmem:[%s7748_s0 + $0x1b8] sm:$0xff] }
 0x188   :  { %v1157_v53 = vadd.f32 %v1098_v38, %v852_v49 }
 0x189   :  { %v1405_v30 = vpop.f32.mrf.mxu0  ;;  %v5761_v55 = vpop.f32.mrf.mxu1 }
 0x18a   :  { %v5763_v42 = vadd.f32 %v1403_v31, %v1157_v53 }
 0x18c   :  { %7832 = vst [vmem:[#allocation7_spill] sm:$0xff] %v5763_v42 }
 0x18d   :  { %v795_v63 = vpop.f32.mrf.mxu2  ;;  %v1100_v9 = vpop.f32.mrf.mxu3 }
 0x18e   :  { %v853_v10 = vadd.f32 %v795_v63, %v5544_v46 }
 0x190   :  { %v1158_v11 = vadd.f32 %v1100_v9, %v853_v10 }
 0x191   :  { %v1408_v27 = vpop.f32.mrf.mxu0  ;;  %v5778_v28 = vpop.f32.mrf.mxu1 }
 0x192   :  { %v5780_v46 = vadd.f32 %v1405_v30, %v1158_v11  ;;  %4436 = vmatmul.msk.bf16.vlgmr.msra.gmra.mxu2 %vm188_vm1, %v4821_v12  ;;  %4529 = vmatmul.msk.bf16.vlgmr.msra.gmra.mxu3 %vm188_vm1, %v4857_v22  ;;  %v4822_v22 = vld [vmem:[%s7748_s0 + $0x128] sm:$0xff] }
 0x194   :  { %7833 = vst [vmem:[#allocation8_spill] sm:$0xff] %v5780_v46  ;;  %4622 = vmatmul.msk.bf16.vlgmr.msra.gmra.mxu0 %vm188_vm1, %v4875_v34  ;;  %4715 = vmatmul.msk.bf16.vlgmr.msra.gmra.mxu1 %vm188_vm1, %v4893_v24  ;;  %v4858_v34 = vld [vmem:[%s7748_s0 + $0x130] sm:$0xff]  ;;  %v4894_v24 = vld [vmem:[%s7748_s0 + $0x138] sm:$0xff] }
 0x195   :  { %v798_v31 = vpop.f32.mrf.mxu2  ;;  %v1103_v36 = vpop.f32.mrf.mxu3 }
 0x196   :  { %v854_v38 = vadd.f32 %v798_v31, %v5362_v29  ;;  %v4876_v29 = vld [vmem:[%s7748_s0 + $0x1c0] sm:$0xff] }
 0x198   :  { %v1159_v49 = vadd.f32 %v1103_v36, %v854_v38 }
 0x199   :  { %v1410_v53 = vpop.f32.mrf.mxu0  ;;  %v5787_v63 = vpop.f32.mrf.mxu1 }
 0x19a   :  { %v5789_v9 = vadd.f32 %v1408_v27, %v1159_v49 }
 0x19c   :  { %7834 = vst [vmem:[#allocation9_spill] sm:$0xff] %v5789_v9 }
 0x19d   :  { %v800_v30 = vpop.f32.mrf.mxu2  ;;  %v1105_v10 = vpop.f32.mrf.mxu3 }
 0x19e   :  { %v855_v12 = vadd.f32 %v800_v30, %v5366_v35 }
 0x1a0   :  { %v1160_v11 = vadd.f32 %v1105_v10, %v855_v12 }
 0x1a1   :  { %v1413_v27 = vpop.f32.mrf.mxu0  ;;  %v5804_v31 = vpop.f32.mrf.mxu1 }
 0x1a2   :  { %v5806_v35 = vadd.f32 %v1410_v53, %v1160_v11  ;;  %4437 = vmatmul.msk.bf16.gmra.mxu2 %vm188_vm1, %v4822_v22  ;;  %4530 = vmatmul.msk.bf16.gmra.mxu3 %vm188_vm1, %v4858_v34  ;;  %v4823_v34 = vld [vmem:[%s7748_s0 + $0x130] sm:$0xff] }
 0x1a4   :  { %7835 = vst [vmem:[#allocation10_spill] sm:$0xff] %v5806_v35  ;;  %4623 = vmatmul.msk.bf16.gmra.mxu0 %vm188_vm1, %v4876_v29  ;;  %4716 = vmatmul.msk.bf16.gmra.mxu1 %vm188_vm1, %v4894_v24  ;;  %v4859_v29 = vld [vmem:[%s7748_s0 + $0x138] sm:$0xff]  ;;  %v4895_v24 = vld [vmem:[%s7748_s0 + $0x140] sm:$0xff] }
 0x1a5   :  { %v803_v36 = vpop.f32.mrf.mxu2  ;;  %v1108_v38 = vpop.f32.mrf.mxu3 }
 0x1a6   :  { %v856_v49 = vadd.f32 %v803_v36, %v5386_v45  ;;  %v4877_v45 = vld [vmem:[%s7748_s0 + $0x1c8] sm:$0xff] }
 0x1a8   :  { %v1161_v30 = vadd.f32 %v1108_v38, %v856_v49 }
 0x1a9   :  { %v1415_v9 = vpop.f32.mrf.mxu0  ;;  %v5813_v10 = vpop.f32.mrf.mxu1 }
 0x1aa   :  { %v5815_v12 = vadd.f32 %v1413_v27, %v1161_v30 }
 0x1ac   :  { %7836 = vst [vmem:[#allocation11_spill] sm:$0xff] %v5815_v12 }
 0x1ad   :  { %v805_v53 = vpop.f32.mrf.mxu2  ;;  %v1110_v11 = vpop.f32.mrf.mxu3 }
 0x1ae   :  { %v857_v22 = vadd.f32 %v805_v53, %v5390_v51 }
 0x1b0   :  { %v1162_v27 = vadd.f32 %v1110_v11, %v857_v22 }
 0x1b1   :  { %v1418_v36 = vpop.f32.mrf.mxu0  ;;  %v5830_v38 = vpop.f32.mrf.mxu1 }
 0x1b2   :  { %v5832_v51 = vadd.f32 %v1415_v9, %v1162_v27  ;;  %4438 = vmatmul.msk.bf16.gmra.mxu2 %vm188_vm1, %v4823_v34  ;;  %4531 = vmatmul.msk.bf16.gmra.mxu3 %vm188_vm1, %v4859_v29  ;;  %v4824_v29 = vld [vmem:[%s7748_s0 + $0x138] sm:$0xff] }
 0x1b4   :  { %7837 = vst [vmem:[#allocation12_spill] sm:$0xff] %v5832_v51  ;;  %4624 = vmatmul.msk.bf16.gmra.mxu0 %vm188_vm1, %v4877_v45  ;;  %4717 = vmatmul.msk.bf16.gmra.mxu1 %vm188_vm1, %v4895_v24  ;;  %v4860_v45 = vld [vmem:[%s7748_s0 + $0x140] sm:$0xff] }
 0x1b5   :  { %v808_v49 = vpop.f32.mrf.mxu2  ;;  %v1113_v30 = vpop.f32.mrf.mxu3 }
 0x1b6   :  { %v858_v53 = vadd.f32 %v808_v49, %v5410_v61  ;;  %v4878_v61 = vld [vmem:[%s7748_s0 + $0x1d0] sm:$0xff] }
 0x1b8   :  { %v1163_v12 = vadd.f32 %v1113_v30, %v858_v53 }
 0x1b9   :  { %v1420_v35 = vpop.f32.mrf.mxu0  ;;  %v5839_v11 = vpop.f32.mrf.mxu1 }
 0x1ba   :  { %7838 = vst [vmem:[#allocation13_spill] sm:$0xff] %v5839_v11  ;;  %v5841_v22 = vadd.f32 %v1418_v36, %v1163_v12  ;;  %v4896_v12 = vld [vmem:[%s7748_s0 + $0x148] sm:$0xff] }
 0x1bc   :  { %7839 = vst [vmem:[#allocation14_spill] sm:$0xff] %v5841_v22 }
 0x1bd   :  { %v810_v9 = vpop.f32.mrf.mxu2  ;;  %v1115_v27 = vpop.f32.mrf.mxu3 }
 0x1be   :  { %v859_v34 = vadd.f32 %v810_v9, %v5414_v3 }
 0x1c0   :  { %v1164_v24 = vadd.f32 %v1115_v27, %v859_v34 }
 0x1c1   :  { %v1423_v36 = vpop.f32.mrf.mxu0  ;;  %v5856_v49 = vpop.f32.mrf.mxu1 }
 0x1c2   :  { %7840 = vst [vmem:[#allocation15_spill] sm:$0xff] %v5856_v49  ;;  %v5858_v3 = vadd.f32 %v1420_v35, %v1164_v24  ;;  %4439 = vmatmul.msk.bf16.gmra.mxu2 %vm188_vm1, %v4824_v29  ;;  %4532 = vmatmul.msk.bf16.gmra.mxu3 %vm188_vm1, %v4860_v45  ;;  %v4825_v45 = vld [vmem:[%s7748_s0 + $0x140] sm:$0xff] }
 0x1c4   :  { %7841 = vst [vmem:[#allocation16_spill] sm:$0xff] %v5858_v3  ;;  %4625 = vmatmul.msk.bf16.gmra.mxu0 %vm188_vm1, %v4878_v61  ;;  %4718 = vmatmul.msk.bf16.gmra.mxu1 %vm188_vm1, %v4896_v12  ;;  %v4861_v61 = vld [vmem:[%s7748_s0 + $0x148] sm:$0xff] }
 0x1c5   :  { %v813_v30 = vpop.f32.mrf.mxu2  ;;  %v1118_v53 = vpop.f32.mrf.mxu3 }
 0x1c6   :  { %v860_v9 = vadd.f32 %v813_v30, %v5434_v13  ;;  %v4879_v13 = vld [vmem:[%s7748_s0 + $0x1d8] sm:$0xff] }
 0x1c8   :  { %v1165_v11 = vadd.f32 %v1118_v53, %v860_v9 }
 0x1c9   :  { %v1425_v22 = vpop.f32.mrf.mxu0  ;;  %v5865_v27 = vpop.f32.mrf.mxu1 }
 0x1ca   :  { %7842 = vst [vmem:[#allocation17_spill] sm:$0xff] %v5865_v27  ;;  %v5867_v34 = vadd.f32 %v1423_v36, %v1165_v11  ;;  %v4897_v11 = vld [vmem:[%s7748_s0 + $0x150] sm:$0xff] }
 0x1cc   :  { %7843 = vst [vmem:[#allocation18_spill] sm:$0xff] %v5867_v34 }
 0x1cd   :  { %v815_v35 = vpop.f32.mrf.mxu2  ;;  %v1120_v24 = vpop.f32.mrf.mxu3 }
 0x1ce   :  { %v861_v29 = vadd.f32 %v815_v35, %v5444_v21 }
 0x1d0   :  { %v1166_v12 = vadd.f32 %v1120_v24, %v861_v29 }
 0x1d1   :  { %v1428_v36 = vpop.f32.mrf.mxu0  ;;  %v5882_v30 = vpop.f32.mrf.mxu1 }
 0x1d2   :  { %7844 = vst [vmem:[#allocation19_spill] sm:$0xff] %v5882_v30  ;;  %v5884_v21 = vadd.f32 %v1425_v22, %v1166_v12  ;;  %4440 = vmatmul.msk.bf16.gmra.mxu2 %vm188_vm1, %v4825_v45  ;;  %4533 = vmatmul.msk.bf16.gmra.mxu3 %vm188_vm1, %v4861_v61  ;;  %v4826_v61 = vld [vmem:[%s7748_s0 + $0x148] sm:$0xff] }
 0x1d4   :  { %7845 = vst [vmem:[#allocation20_spill] sm:$0xff] %v5884_v21  ;;  %4626 = vmatmul.msk.bf16.gmra.mxu0 %vm188_vm1, %v4879_v13  ;;  %4719 = vmatmul.msk.bf16.gmra.mxu1 %vm188_vm1, %v4897_v11  ;;  %v4862_v13 = vld [vmem:[%s7748_s0 + $0x150] sm:$0xff] }
 0x1d5   :  { %v818_v53 = vpop.f32.mrf.mxu2  ;;  %v1123_v9 = vpop.f32.mrf.mxu3 }
 0x1d6   :  { %v862_v35 = vadd.f32 %v818_v53, %v5470_v37  ;;  %v4880_v37 = vld [vmem:[%s7748_s0 + $0x1e0] sm:$0xff] }
 0x1d8   :  { %v1167_v27 = vadd.f32 %v1123_v9, %v862_v35 }
 0x1d9   :  { %v1430_v49 = vpop.f32.mrf.mxu0  ;;  %v5891_v24 = vpop.f32.mrf.mxu1 }
 0x1da   :  { %7846 = vst [vmem:[#allocation21_spill] sm:$0xff] %v5891_v24  ;;  %v5893_v29 = vadd.f32 %v1428_v36, %v1167_v27  ;;  %v4898_v27 = vld [vmem:[%s7748_s0 + $0x158] sm:$0xff] }
 0x1dc   :  { %7847 = vst [vmem:[#allocation22_spill] sm:$0xff] %v5893_v29 }
 0x1dd   :  { %v820_v22 = vpop.f32.mrf.mxu2  ;;  %v1125_v12 = vpop.f32.mrf.mxu3 }
 0x1de   :  { %v863_v45 = vadd.f32 %v820_v22, %v5474_v44 }
 0x1e0   :  { %v1168_v11 = vadd.f32 %v1125_v12, %v863_v45 }
 0x1e1   :  { %v1433_v36 = vpop.f32.mrf.mxu0  ;;  %v5908_v53 = vpop.f32.mrf.mxu1 }
 0x1e2   :  { %7848 = vst [vmem:[#allocation23_spill] sm:$0xff] %v5908_v53  ;;  %v5910_v44 = vadd.f32 %v1430_v49, %v1168_v11  ;;  %4441 = vmatmul.msk.bf16.gmra.mxu2 %vm188_vm1, %v4826_v61  ;;  %4534 = vmatmul.msk.bf16.gmra.mxu3 %vm188_vm1, %v4862_v13  ;;  %v4827_v13 = vld [vmem:[%s7748_s0 + $0x150] sm:$0xff] }
 0x1e4   :  { %7849 = vst [vmem:[#allocation24_spill] sm:$0xff] %v5910_v44  ;;  %4627 = vmatmul.msk.bf16.gmra.mxu0 %vm188_vm1, %v4880_v37  ;;  %4720 = vmatmul.msk.bf16.gmra.mxu1 %vm188_vm1, %v4898_v27  ;;  %v4863_v37 = vld [vmem:[%s7748_s0 + $0x158] sm:$0xff] }
 0x1e5   :  { %v823_v9 = vpop.f32.mrf.mxu2  ;;  %v1128_v35 = vpop.f32.mrf.mxu3 }
 0x1e6   :  { %v864_v22 = vadd.f32 %v823_v9, %v5494_v57  ;;  %v4881_v57 = vld [vmem:[%s7748_s0 + $0x1e8] sm:$0xff] }
 0x1e8   :  { %v1169_v24 = vadd.f32 %v1128_v35, %v864_v22 }
 0x1e9   :  { %v1435_v30 = vpop.f32.mrf.mxu0  ;;  %v5917_v12 = vpop.f32.mrf.mxu1 }
 0x1ea   :  { %7850 = vst [vmem:[#allocation25_spill] sm:$0xff] %v5917_v12  ;;  %v5919_v45 = vadd.f32 %v1433_v36, %v1169_v24  ;;  %v4899_v24 = vld [vmem:[%s7748_s0 + $0x160] sm:$0xff] }
 0x1ec   :  { %7851 = vst [vmem:[#allocation26_spill] sm:$0xff] %v5919_v45 }
 0x1ed   :  { %v825_v49 = vpop.f32.mrf.mxu2  ;;  %v1130_v11 = vpop.f32.mrf.mxu3 }
 0x1ee   :  { %v865_v61 = vadd.f32 %v825_v49, %v5498_v2 }
 0x1f0   :  { %v1170_v27 = vadd.f32 %v1130_v11, %v865_v61 }
 0x1f1   :  { %v1438_v36 = vpop.f32.mrf.mxu0  ;;  %v5934_v9 = vpop.f32.mrf.mxu1 }
 0x1f2   :  { %7852 = vst [vmem:[#allocation27_spill] sm:$0xff] %v5934_v9  ;;  %v5936_v2 = vadd.f32 %v1435_v30, %v1170_v27  ;;  %4442 = vmatmul.msk.bf16.gmra.mxu2 %vm188_vm1, %v4827_v13  ;;  %4535 = vmatmul.msk.bf16.gmra.mxu3 %vm188_vm1, %v4863_v37  ;;  %v4828_v37 = vld [vmem:[%s7748_s0 + $0x158] sm:$0xff] }
 0x1f4   :  { %7853 = vst [vmem:[#allocation28_spill] sm:$0xff] %v5936_v2  ;;  %4628 = vmatmul.msk.bf16.gmra.mxu0 %vm188_vm1, %v4881_v57  ;;  %4721 = vmatmul.msk.bf16.gmra.mxu1 %vm188_vm1, %v4899_v24  ;;  %v4864_v57 = vld [vmem:[%s7748_s0 + $0x160] sm:$0xff] }
 0x1f5   :  { %v828_v35 = vpop.f32.mrf.mxu2  ;;  %v1133_v22 = vpop.f32.mrf.mxu3 }
 0x1f6   :  { %v866_v49 = vadd.f32 %v828_v35, %v5518_v15  ;;  %v4882_v15 = vld [vmem:[%s7748_s0 + $0x1f0] sm:$0xff] }
 0x1f8   :  { %v1171_v12 = vadd.f32 %v1133_v22, %v866_v49 }
 0x1f9   :  { %v1440_v53 = vpop.f32.mrf.mxu0  ;;  %v5943_v11 = vpop.f32.mrf.mxu1 }
 0x1fa   :  { %7854 = vst [vmem:[#allocation29_spill] sm:$0xff] %v5943_v11  ;;  %v5945_v61 = vadd.f32 %v1438_v36, %v1171_v12  ;;  %v4900_v12 = vld [vmem:[%s7748_s0 + $0x168] sm:$0xff] }
 0x1fc   :  { %7855 = vst [vmem:[#allocation30_spill] sm:$0xff] %v5945_v61 }
 0x1fd   :  { %v830_v30 = vpop.f32.mrf.mxu2  ;;  %v1135_v27 = vpop.f32.mrf.mxu3 }
 0x1fe   :  { %v867_v13 = vadd.f32 %v830_v30, %v5522_v23 }
 0x200   :  { %v1172_v24 = vadd.f32 %v1135_v27, %v867_v13 }
 0x201   :  { %v1443_v36 = vpop.f32.mrf.mxu0  ;;  %v5960_v35 = vpop.f32.mrf.mxu1 }
 0x202   :  { %7856 = vst [vmem:[#allocation31_spill] sm:$0xff] %v5960_v35  ;;  %v5962_v23 = vadd.f32 %v1440_v53, %v1172_v24  ;;  %4443 = vmatmul.msk.bf16.gmra.mxu2 %vm188_vm1, %v4828_v37  ;;  %4536 = vmatmul.msk.bf16.gmra.mxu3 %vm188_vm1, %v4864_v57  ;;  %v4829_v57 = vld [vmem:[%s7748_s0 + $0x160] sm:$0xff] }
 0x204   :  { %7857 = vst [vmem:[#allocation32_spill] sm:$0xff] %v5962_v23  ;;  %4629 = vmatmul.msk.bf16.gmra.mxu0 %vm188_vm1, %v4882_v15  ;;  %4722 = vmatmul.msk.bf16.gmra.mxu1 %vm188_vm1, %v4900_v12  ;;  %v4865_v15 = vld [vmem:[%s7748_s0 + $0x168] sm:$0xff] }
 0x205   :  { %v833_v22 = vpop.f32.mrf.mxu2  ;;  %v1138_v49 = vpop.f32.mrf.mxu3 }
 0x206   :  { %v868_v30 = vadd.f32 %v833_v22, %v5542_v39  ;;  %v4883_v39 = vld [vmem:[%s7748_s0 + $0x1f8] sm:$0xff] }
 0x208   :  { %v1173_v11 = vadd.f32 %v1138_v49, %v868_v30 }
 0x209   :  { %v1445_v9 = vpop.f32.mrf.mxu0  ;;  %v5969_v27 = vpop.f32.mrf.mxu1 }
 0x20a   :  { %7858 = vst [vmem:[#allocation33_spill] sm:$0xff] %v5969_v27  ;;  %v5971_v13 = vadd.f32 %v1443_v36, %v1173_v11  ;;  %v4901_v11 = vld [vmem:[%s7748_s0 + $0x170] sm:$0xff] }
 0x20c   :  { %7859 = vst [vmem:[#allocation34_spill] sm:$0xff] %v5971_v13 }
 0x20d   :  { %v835_v53 = vpop.f32.mrf.mxu2  ;;  %v1140_v24 = vpop.f32.mrf.mxu3 }
 0x20e   :  { %v869_v37 = vadd.f32 %v835_v53, %v5546_v50 }
 0x210   :  { %v1174_v12 = vadd.f32 %v1140_v24, %v869_v37 }
 0x211   :  { %v2552_v36 = vpop.f32.mrf.mxu0  ;;  %v2856_v22 = vpop.f32.mrf.mxu1 }
 0x212   :  { %v5986_v50 = vadd.f32 %v1445_v9, %v1174_v12  ;;  %4444 = vmatmul.msk.bf16.gmra.mxu2 %vm188_vm1, %v4829_v57  ;;  %4537 = vmatmul.msk.bf16.gmra.mxu3 %vm188_vm1, %v4865_v15  ;;  %v4830_v15 = vld [vmem:[%s7748_s0 + $0x168] sm:$0xff] }
 0x214   :  { %7860 = vst [vmem:[#allocation35_spill] sm:$0xff] %v5986_v50  ;;  %4630 = vmatmul.msk.bf16.gmra.mxu0 %vm188_vm1, %v4883_v39  ;;  %4723 = vmatmul.msk.bf16.gmra.mxu1 %vm188_vm1, %v4901_v11  ;;  %v4866_v39 = vld [vmem:[%s7748_s0 + $0x170] sm:$0xff] }
 0x215   :  { %v1976_v49 = vpop.f32.mrf.mxu2  ;;  %v2248_v30 = vpop.f32.mrf.mxu3 }
 0x216   :  { %v1977_v53 = vadd.f32 %v1976_v49, %v5560_v60  ;;  %v4884_v60 = vld [vmem:[%s7748_s0 + $0x200] sm:$0xff] }
 0x218   :  { %v2328_v27 = vadd.f32 %v2248_v30, %v1977_v53 }
 0x219   :  { %v2554_v35 = vpop.f32.mrf.mxu0  ;;  %v2858_v13 = vpop.f32.mrf.mxu1 }
 0x21a   :  { %v2632_v24 = vadd.f32 %v2552_v36, %v2328_v27  ;;  %v4902_v27 = vld [vmem:[%s7748_s0 + $0x178] sm:$0xff] }
 0x21c   :  { %v5993_v37 = vadd.f32 %v2856_v22, %v2632_v24 }
 0x21d   :  { %v1978_v9 = vpop.f32.mrf.mxu2  ;;  %v2250_v12 = vpop.f32.mrf.mxu3 }
 0x21e   :  { %7861 = vst [vmem:[#allocation36_spill] sm:$0xff] %v5993_v37  ;;  %v1979_v57 = vadd.f32 %v1978_v9, %v5567_v7 }
 0x220   :  { %v2329_v11 = vadd.f32 %v2250_v12, %v1979_v57 }
 0x221   :  { %v2557_v36 = vpop.f32.mrf.mxu0  ;;  %v2861_v22 = vpop.f32.mrf.mxu1 }
 0x222   :  { %v2633_v7 = vadd.f32 %v2554_v35, %v2329_v11  ;;  %4445 = vmatmul.msk.bf16.gmra.mxu2 %vm188_vm1, %v4830_v15  ;;  %4538 = vmatmul.msk.bf16.gmra.mxu3 %vm188_vm1, %v4866_v39 }
 0x224   :  { %4631 = vmatmul.msk.bf16.gmra.mxu0 %vm188_vm1, %v4884_v60  ;;  %4724 = vmatmul.msk.bf16.gmra.mxu1 %vm188_vm1, %v4902_v27  ;;  %v6012_v49 = vadd.f32 %v2858_v13, %v2633_v7  ;;  %v4831_v60 = vld [vmem:[%s7748_s0 + $0x170] sm:$0xff]  ;;  %v4867_v13 = vld [vmem:[%s7748_s0 + $0x178] sm:$0xff]  ;;  %v4903_v27 = vld [vmem:[%s7748_s0 + $0x180] sm:$0xff] }
 0x225   :  { %v1981_v30 = vpop.f32.mrf.mxu2  ;;  %v2253_v53 = vpop.f32.mrf.mxu3 }
 0x226   :  { %7862 = vst [vmem:[#allocation37_spill] sm:$0xff] %v6012_v49  ;;  %v1982_v24 = vadd.f32 %v1981_v30, %v5584_v25  ;;  %v4885_v25 = vld [vmem:[%s7748_s0 + $0x208] sm:$0xff] }
 0x228   :  { %v2330_v9 = vadd.f32 %v2253_v53, %v1982_v24 }
 0x229   :  { %v2559_v37 = vpop.f32.mrf.mxu0  ;;  %v2863_v12 = vpop.f32.mrf.mxu1 }
 0x22a   :  { %v2634_v57 = vadd.f32 %v2557_v36, %v2330_v9 }
 0x22c   :  { %v6015_v50 = vadd.f32 %v2861_v22, %v2634_v57 }
 0x22d   :  { %v1983_v35 = vpop.f32.mrf.mxu2  ;;  %v2255_v15 = vpop.f32.mrf.mxu3 }
 0x22e   :  { %7863 = vst [vmem:[#allocation38_spill] sm:$0xff] %v6015_v50  ;;  %v1984_v39 = vadd.f32 %v1983_v35, %v5599_v43 }
 0x230   :  { %v2331_v11 = vadd.f32 %v2255_v15, %v1984_v39 }
 0x231   :  { %v2562_v36 = vpop.f32.mrf.mxu0  ;;  %v2866_v22 = vpop.f32.mrf.mxu1 }
 0x232   :  { %v2635_v43 = vadd.f32 %v2559_v37, %v2331_v11  ;;  %4446 = vmatmul.msk.bf16.gmra.mxu2 %vm188_vm1, %v4831_v60  ;;  %4539 = vmatmul.msk.bf16.gmra.mxu3 %vm188_vm1, %v4867_v13 }
 0x234   :  { %4632 = vmatmul.msk.bf16.gmra.mxu0 %vm188_vm1, %v4885_v25  ;;  %4725 = vmatmul.msk.bf16.gmra.mxu1 %vm188_vm1, %v4903_v27  ;;  %v6034_v7 = vadd.f32 %v2863_v12, %v2635_v43  ;;  %v4832_v25 = vld [vmem:[%s7748_s0 + $0x178] sm:$0xff]  ;;  %v4868_v12 = vld [vmem:[%s7748_s0 + $0x180] sm:$0xff]  ;;  %v4904_v27 = vld [vmem:[%s7748_s0 + $0x188] sm:$0xff] }
 0x235   :  { %v1986_v30 = vpop.f32.mrf.mxu2  ;;  %v2258_v53 = vpop.f32.mrf.mxu3 }
 0x236   :  { %7864 = vst [vmem:[#allocation39_spill] sm:$0xff] %v6034_v7  ;;  %v1987_v24 = vadd.f32 %v1986_v30, %v5622_v5  ;;  %v4886_v5 = vld [vmem:[%s7748_s0 + $0x210] sm:$0xff] }
 0x238   :  { %v2332_v9 = vadd.f32 %v2258_v53, %v1987_v24 }
 0x239   :  { %v2564_v57 = vpop.f32.mrf.mxu0  ;;  %v2868_v35 = vpop.f32.mrf.mxu1 }
 0x23a   :  { %v2636_v15 = vadd.f32 %v2562_v36, %v2332_v9 }
 0x23c   :  { %v6037_v39 = vadd.f32 %v2866_v22, %v2636_v15 }
 0x23d   :  { %v1988_v37 = vpop.f32.mrf.mxu2  ;;  %v2260_v60 = vpop.f32.mrf.mxu3 }
 0x23e   :  { %7865 = vst [vmem:[#allocation40_spill] sm:$0xff] %v6037_v39  ;;  %v1989_v13 = vadd.f32 %v1988_v37, %v5631_v26 }
 0x240   :  { %v2333_v11 = vadd.f32 %v2260_v60, %v1989_v13 }
 0x241   :  { %v2567_v36 = vpop.f32.mrf.mxu0  ;;  %v2871_v22 = vpop.f32.mrf.mxu1 }
 0x242   :  { %v2637_v26 = vadd.f32 %v2564_v57, %v2333_v11  ;;  %4447 = vmatmul.msk.bf16.gmra.mxu2 %vm188_vm1, %v4832_v25  ;;  %4540 = vmatmul.msk.bf16.gmra.mxu3 %vm188_vm1, %v4868_v12 }
 0x244   :  { %4633 = vmatmul.msk.bf16.gmra.mxu0 %vm188_vm1, %v4886_v5  ;;  %4726 = vmatmul.msk.bf16.gmra.mxu1 %vm188_vm1, %v4904_v27  ;;  %v6056_v43 = vadd.f32 %v2868_v35, %v2637_v26  ;;  %v4833_v5 = vld [vmem:[%s7748_s0 + $0x180] sm:$0xff]  ;;  %v4869_v35 = vld [vmem:[%s7748_s0 + $0x188] sm:$0xff]  ;;  %v4905_v27 = vld [vmem:[%s7748_s0 + $0x190] sm:$0xff] }
 0x245   :  { %v1991_v30 = vpop.f32.mrf.mxu2  ;;  %v2263_v53 = vpop.f32.mrf.mxu3 }
 0x246   :  { %7866 = vst [vmem:[#allocation41_spill] sm:$0xff] %v6056_v43  ;;  %v1992_v24 = vadd.f32 %v1991_v30, %v5648_v41  ;;  %v4887_v41 = vld [vmem:[%s7748_s0 + $0x218] sm:$0xff] }
 0x248   :  { %v2334_v9 = vadd.f32 %v2263_v53, %v1992_v24 }
 0x249   :  { %v2569_v15 = vpop.f32.mrf.mxu0  ;;  %v2873_v37 = vpop.f32.mrf.mxu1 }
 0x24a   :  { %v2638_v60 = vadd.f32 %v2567_v36, %v2334_v9 }
 0x24c   :  { %v6059_v13 = vadd.f32 %v2871_v22, %v2638_v60 }
 0x24d   :  { %v1993_v57 = vpop.f32.mrf.mxu2  ;;  %v2265_v25 = vpop.f32.mrf.mxu3 }
 0x24e   :  { %7867 = vst [vmem:[#allocation42_spill] sm:$0xff] %v6059_v13  ;;  %v1994_v12 = vadd.f32 %v1993_v57, %v5657_v56 }
 0x250   :  { %v2335_v11 = vadd.f32 %v2265_v25, %v1994_v12 }
 0x251   :  { %v2572_v36 = vpop.f32.mrf.mxu0  ;;  %v2876_v22 = vpop.f32.mrf.mxu1 }
 0x252   :  { %v2639_v56 = vadd.f32 %v2569_v15, %v2335_v11  ;;  %4448 = vmatmul.msk.bf16.gmra.mxu2 %vm188_vm1, %v4833_v5  ;;  %4541 = vmatmul.msk.bf16.gmra.mxu3 %vm188_vm1, %v4869_v35 }
 0x254   :  { %4634 = vmatmul.msk.bf16.gmra.mxu0 %vm188_vm1, %v4887_v41  ;;  %4727 = vmatmul.msk.bf16.gmra.mxu1 %vm188_vm1, %v4905_v27  ;;  %v6078_v26 = vadd.f32 %v2873_v37, %v2639_v56  ;;  %v4834_v41 = vld [vmem:[%s7748_s0 + $0x188] sm:$0xff]  ;;  %v4870_v37 = vld [vmem:[%s7748_s0 + $0x190] sm:$0xff]  ;;  %v4906_v27 = vld [vmem:[%s7748_s0 + $0x198] sm:$0xff] }
 0x255   :  { %v1996_v30 = vpop.f32.mrf.mxu2  ;;  %v2268_v53 = vpop.f32.mrf.mxu3 }
 0x256   :  { %7868 = vst [vmem:[#allocation43_spill] sm:$0xff] %v6078_v26  ;;  %v1997_v24 = vadd.f32 %v1996_v30, %v5674_v18  ;;  %v4888_v18 = vld [vmem:[%s7748_s0 + $0x220] sm:$0xff] }
 0x258   :  { %v2336_v9 = vadd.f32 %v2268_v53, %v1997_v24 }
 0x259   :  { %v2574_v60 = vpop.f32.mrf.mxu0  ;;  %v2878_v57 = vpop.f32.mrf.mxu1 }
 0x25a   :  { %v2640_v25 = vadd.f32 %v2572_v36, %v2336_v9 }
 0x25c   :  { %v6081_v12 = vadd.f32 %v2876_v22, %v2640_v25 }
 0x25d   :  { %v1998_v15 = vpop.f32.mrf.mxu2  ;;  %v2270_v5 = vpop.f32.mrf.mxu3 }
 0x25e   :  { %7869 = vst [vmem:[#allocation44_spill] sm:$0xff] %v6081_v12  ;;  %v1999_v35 = vadd.f32 %v1998_v15, %v5683_v58 }
 0x260   :  { %v2337_v11 = vadd.f32 %v2270_v5, %v1999_v35 }
 0x261   :  { %v2577_v36 = vpop.f32.mrf.mxu0  ;;  %v2881_v22 = vpop.f32.mrf.mxu1 }
 0x262   :  { %v2641_v58 = vadd.f32 %v2574_v60, %v2337_v11  ;;  %4449 = vmatmul.msk.bf16.gmra.mxu2 %vm188_vm1, %v4834_v41  ;;  %4542 = vmatmul.msk.bf16.gmra.mxu3 %vm188_vm1, %v4870_v37 }
 0x264   :  { %4635 = vmatmul.msk.bf16.gmra.mxu0 %vm188_vm1, %v4888_v18  ;;  %4728 = vmatmul.msk.bf16.gmra.mxu1 %vm188_vm1, %v4906_v27  ;;  %v6100_v56 = vadd.f32 %v2878_v57, %v2641_v58  ;;  %v4835_v18 = vld [vmem:[%s7748_s0 + $0x190] sm:$0xff]  ;;  %v4871_v57 = vld [vmem:[%s7748_s0 + $0x198] sm:$0xff]  ;;  %v4907_v27 = vld [vmem:[%s7748_s0 + $0x1a0] sm:$0xff] }
 0x265   :  { %v2001_v30 = vpop.f32.mrf.mxu2  ;;  %v2273_v53 = vpop.f32.mrf.mxu3 }
 0x266   :  { %7870 = vst [vmem:[#allocation45_spill] sm:$0xff] %v6100_v56  ;;  %v2002_v24 = vadd.f32 %v2001_v30, %v5700_v1  ;;  %v4889_v1 = vld [vmem:[%s7748_s0 + $0x228] sm:$0xff] }
 0x268   :  { %v2338_v9 = vadd.f32 %v2273_v53, %v2002_v24 }
 0x269   :  { %v2579_v25 = vpop.f32.mrf.mxu0  ;;  %v2883_v15 = vpop.f32.mrf.mxu1 }
 0x26a   :  { %v2642_v5 = vadd.f32 %v2577_v36, %v2338_v9 }
 0x26c   :  { %v6103_v35 = vadd.f32 %v2881_v22, %v2642_v5 }
 0x26d   :  { %v2003_v60 = vpop.f32.mrf.mxu2  ;;  %v2275_v41 = vpop.f32.mrf.mxu3 }
 0x26e   :  { %7871 = vst [vmem:[#allocation46_spill] sm:$0xff] %v6103_v35  ;;  %v2004_v37 = vadd.f32 %v2003_v60, %v5709_v14 }
 0x270   :  { %v2339_v11 = vadd.f32 %v2275_v41, %v2004_v37 }
 0x271   :  { %v2582_v36 = vpop.f32.mrf.mxu0  ;;  %v2886_v22 = vpop.f32.mrf.mxu1 }
 0x272   :  { %v2643_v14 = vadd.f32 %v2579_v25, %v2339_v11  ;;  %4450 = vmatmul.msk.bf16.gmra.mxu2 %vm188_vm1, %v4835_v18  ;;  %4543 = vmatmul.msk.bf16.gmra.mxu3 %vm188_vm1, %v4871_v57 }
 0x274   :  { %4636 = vmatmul.msk.bf16.gmra.mxu0 %vm188_vm1, %v4889_v1  ;;  %4729 = vmatmul.msk.bf16.gmra.mxu1 %vm188_vm1, %v4907_v27  ;;  %v6122_v58 = vadd.f32 %v2883_v15, %v2643_v14  ;;  %v4836_v1 = vld [vmem:[%s7748_s0 + $0x198] sm:$0xff]  ;;  %v4872_v15 = vld [vmem:[%s7748_s0 + $0x1a0] sm:$0xff]  ;;  %v4908_v27 = vld [vmem:[%s7748_s0 + $0x1a8] sm:$0xff] }
 0x275   :  { %v2006_v30 = vpop.f32.mrf.mxu2  ;;  %v2278_v53 = vpop.f32.mrf.mxu3 }
 0x276   :  { %7872 = vst [vmem:[#allocation47_spill] sm:$0xff] %v6122_v58  ;;  %v2007_v24 = vadd.f32 %v2006_v30, %v5726_v52  ;;  %v4890_v52 = vld [vmem:[%s7748_s0 + $0x230] sm:$0xff] }
 0x278   :  { %v2340_v9 = vadd.f32 %v2278_v53, %v2007_v24 }
 0x279   :  { %v2584_v5 = vpop.f32.mrf.mxu0  ;;  %v2888_v60 = vpop.f32.mrf.mxu1 }
 0x27a   :  { %v2644_v41 = vadd.f32 %v2582_v36, %v2340_v9 }
 0x27c   :  { %v6125_v37 = vadd.f32 %v2886_v22, %v2644_v41 }
 0x27d   :  { %v2008_v25 = vpop.f32.mrf.mxu2  ;;  %v2280_v18 = vpop.f32.mrf.mxu3 }
 0x27e   :  { %7873 = vst [vmem:[#allocation48_spill] sm:$0xff] %v6125_v37  ;;  %v2009_v57 = vadd.f32 %v2008_v25, %v5735_v4 }
 0x280   :  { %v2341_v11 = vadd.f32 %v2280_v18, %v2009_v57 }
 0x281   :  { %v2587_v36 = vpop.f32.mrf.mxu0  ;;  %v2891_v22 = vpop.f32.mrf.mxu1 }
 0x282   :  { %v2645_v4 = vadd.f32 %v2584_v5, %v2341_v11  ;;  %4451 = vmatmul.msk.bf16.gmra.mxu2 %vm188_vm1, %v4836_v1  ;;  %4544 = vmatmul.msk.bf16.gmra.mxu3 %vm188_vm1, %v4872_v15 }
 0x284   :  { %4637 = vmatmul.msk.bf16.gmra.mxu0 %vm188_vm1, %v4890_v52  ;;  %4730 = vmatmul.msk.bf16.gmra.mxu1 %vm188_vm1, %v4908_v27  ;;  %v6144_v14 = vadd.f32 %v2888_v60, %v2645_v4 }
 0x285   :  { %v2011_v30 = vpop.f32.mrf.mxu2  ;;  %v2283_v53 = vpop.f32.mrf.mxu3 }
 0x286   :  { %7874 = vst [vmem:[#allocation49_spill] sm:$0xff] %v6144_v14  ;;  %v2012_v24 = vadd.f32 %v2011_v30, %v5752_v54 }
 0x288   :  { %v2342_v9 = vadd.f32 %v2283_v53, %v2012_v24 }
 0x289   :  { %v2589_v41 = vpop.f32.mrf.mxu0  ;;  %v2893_v25 = vpop.f32.mrf.mxu1 }
 0x28a   :  { %v2646_v18 = vadd.f32 %v2587_v36, %v2342_v9  ;;  %v3064_v36 = vadd.f32 %v5586_v32, %v5569_v8 }
 0x28c   :  { %v6147_v57 = vadd.f32 %v2891_v22, %v2646_v18  ;;  %v3065_v9 = vadd.f32 %v3064_v36, %v5601_v47 }
 0x28d   :  { %v2013_v5 = vpop.f32.mrf.mxu2  ;;  %v2285_v1 = vpop.f32.mrf.mxu3 }
 0x28e   :  { %7875 = vst [vmem:[#allocation50_spill] sm:$0xff] %v6147_v57  ;;  %v2014_v15 = vadd.f32 %v2013_v5, %v5761_v55  ;;  %v3066_v18 = vadd.f32 %v3065_v9, %v5624_v6 }
 0x290   :  { %v2343_v11 = vadd.f32 %v2285_v1, %v2014_v15  ;;  %v3067_v1 = vadd.f32 %v3066_v18, %v5633_v20 }
 0x291   :  { %v2592_v52 = vpop.f32.mrf.mxu0  ;;  %v2896_v37 = vpop.f32.mrf.mxu1 }
 0x292   :  { %v2647_v27 = vadd.f32 %v2589_v41, %v2343_v11  ;;  %v3068_v11 = vadd.f32 %v3067_v1, %v5650_v0 }
 0x294   :  { %v6150_v60 = vadd.f32 %v2893_v25, %v2647_v27 }
 0x295   :  { %v2016_v4 = vpop.f32.mrf.mxu2  ;;  %v2288_v14 = vpop.f32.mrf.mxu3 }
 0x296   :  { %v2017_v54 = vadd.f32 %v2016_v4, %v5778_v28 }
 0x298   :  { %v2344_v30 = vadd.f32 %v2288_v14, %v2017_v54 }
 0x299   :  { %v2594_v53 = vpop.f32.mrf.mxu0  ;;  %v2898_v24 = vpop.f32.mrf.mxu1 }
 0x29a   :  { %v2648_v22 = vadd.f32 %v2592_v52, %v2344_v30  ;;  %v3069_v52 = vadd.f32 %v3068_v11, %v5659_v59 }
 0x29c   :  { %v6156_v55 = vadd.f32 %v2896_v37, %v2648_v22  ;;  %v3070_v37 = vadd.f32 %v3069_v52, %v5676_v17 }
 0x29d   :  { %v2018_v41 = vpop.f32.mrf.mxu2  ;;  %v2290_v25 = vpop.f32.mrf.mxu3 }
 0x29e   :  { %v2019_v5 = vadd.f32 %v2018_v41, %v5787_v63  ;;  %v3071_v63 = vadd.f32 %v3070_v37, %v5685_v33 }
 0x2a0   :  { %v2345_v28 = vadd.f32 %v2290_v25, %v2019_v5  ;;  %v3072_v41 = vadd.f32 %v3071_v63, %v5702_v40 }
 0x2a1   :  { %v2597_v14 = vpop.f32.mrf.mxu0  ;;  %v2901_v15 = vpop.f32.mrf.mxu1 }
 0x2a2   :  { %v2649_v27 = vadd.f32 %v2594_v53, %v2345_v28  ;;  %v3073_v53 = vadd.f32 %v3072_v41, %v5711_v16 }
 0x2a4   :  { %v6163_v4 = vadd.f32 %v2898_v24, %v2649_v27  ;;  %v3074_v24 = vadd.f32 %v3073_v53, %v5728_v62 }
 0x2a5   :  { %v2021_v54 = vpop.f32.mrf.mxu2  ;;  %v2293_v30 = vpop.f32.mrf.mxu3 }
 0x2a6   :  { %v2022_v36 = vadd.f32 %v2021_v54, %v5804_v31  ;;  %v3075_v31 = vadd.f32 %v3074_v24, %v5737_v48 }
 0x2a8   :  { %v2346_v22 = vadd.f32 %v2293_v30, %v2022_v36  ;;  %v3076_v54 = vadd.f32 %v3075_v31, %v5754_v19  ;;  %v7878_v31 = vld [vmem:[#allocation11_spill] sm:$0xff] }
 0x2a9   :  { %v2599_v9 = vpop.f32.mrf.mxu0  ;;  %v2903_v18 = vpop.f32.mrf.mxu1 }
 0x2aa   :  { %v2650_v25 = vadd.f32 %v2597_v14, %v2346_v22  ;;  %v3077_v14 = vadd.f32 %v3076_v54, %v5763_v42 }
 0x2ac   :  { %v6170_v5 = vadd.f32 %v2901_v15, %v2650_v25  ;;  %v3078_v15 = vadd.f32 %v3077_v14, %v5780_v46  ;;  %v7876_v25 = vld [vmem:[#allocation9_spill] sm:$0xff]  ;;  %v7879_v46 = vld [vmem:[#allocation14_spill] sm:$0xff] }
 0x2ad   :  { %v2023_v1 = vpop.f32.mrf.mxu2  ;;  %v2295_v28 = vpop.f32.mrf.mxu3 }
 0x2ae   :  { %v2024_v11 = vadd.f32 %v2023_v1, %v5813_v10  ;;  %v3079_v10 = vadd.f32 %v3078_v15, %v7876_v25 }
 0x2b0   :  { %v2347_v27 = vadd.f32 %v2295_v28, %v2024_v11  ;;  %v7877_v28 = vld [vmem:[#allocation10_spill] sm:$0xff] }
 0x2b1   :  { %v2602_v52 = vpop.f32.mrf.mxu0  ;;  %v2906_v37 = vpop.f32.mrf.mxu1  ;;  %v3080_v11 = vadd.f32 %v3079_v10, %v7877_v28 }
 0x2b2   :  { %v2651_v30 = vadd.f32 %v2599_v9, %v2347_v27 }
 0x2b3   :  { %v3081_v27 = vadd.f32 %v3080_v11, %v7878_v31 }
 0x2b4   :  { %v6177_v36 = vadd.f32 %v2903_v18, %v2651_v30 }
 0x2b5   :  { %v2026_v63 = vpop.f32.mrf.mxu2  ;;  %v2298_v22 = vpop.f32.mrf.mxu3  ;;  %v3082_v54 = vadd.f32 %v3081_v27, %v5832_v51 }
 0x2b6   :  { %v2027_v41 = vadd.f32 %v2026_v63, %v5830_v38 }
 0x2b7   :  { %v3083_v38 = vadd.f32 %v3082_v54, %v7879_v46 }
 0x2b8   :  { %v2348_v53 = vadd.f32 %v2298_v22, %v2027_v41 }
 0x2b9   :  { %v6182_v24 = vpop.f32.mrf.mxu0  ;;  %v6184_v1 = vpop.f32.mrf.mxu1  ;;  %v3084_v22 = vadd.f32 %v3083_v38, %v5858_v3  ;;  %v7881_v3 = vld [vmem:[#allocation35_spill] sm:$0xff] }
 0x2ba   :  { %v2652_v9 = vadd.f32 %v2602_v52, %v2348_v53 }
 0x2bb   :  { %v3085_v41 = vadd.f32 %v3084_v22, %v5867_v34 }
 0x2bc   :  { %v6188_v18 = vadd.f32 %v2906_v37, %v2652_v9 }
 0x2bd   :  { %v2028_v30 = vpop.f32.mrf.mxu2  ;;  %v2300_v14 = vpop.f32.mrf.mxu3  ;;  %v3086_v52 = vadd.f32 %v3085_v41, %v5884_v21 }
 0x2bf   :  { %v3087_v37 = vadd.f32 %v3086_v52, %v5893_v29  ;;  %v7880_v29 = vld [vmem:[#allocation34_spill] sm:$0xff] }
 0x2c1   :  { %v6192_v63 = vpop.f32.mrf.mxu0  ;;  %v6194_v15 = vpop.f32.mrf.mxu1  ;;  %v3088_v27 = vadd.f32 %v3087_v37, %v5910_v44  ;;  %v7882_v44 = vld [vmem:[#allocation36_spill] sm:$0xff] }
 0x2c3   :  { %v3089_v54 = vadd.f32 %v3088_v27, %v5919_v45 }
 0x2c5   :  { %v2031_v10 = vpop.f32.mrf.mxu2  ;;  %v2303_v53 = vpop.f32.mrf.mxu3  ;;  %v3090_v46 = vadd.f32 %v3089_v54, %v5936_v2 }
 0x2c7   :  { %v3091_v22 = vadd.f32 %v3090_v46, %v5945_v61 }
 0x2c9   :  { %v6200_v11 = vpop.f32.mrf.mxu0  ;;  %v6202_v9 = vpop.f32.mrf.mxu1  ;;  %v3092_v52 = vadd.f32 %v3091_v22, %v5962_v23 }
 0x2cb   :  { %v3093_v21 = vadd.f32 %v3092_v52, %v7880_v29 }
 0x2cd   :  { %v2033_v51 = vpop.f32.mrf.mxu2  ;;  %v2305_v38 = vpop.f32.mrf.mxu3  ;;  %v3094_v31 = vadd.f32 %v3093_v21, %v7881_v3 }
 0x2cf   :  { %v3095_v27 = vadd.f32 %v3094_v31, %v7882_v44 }
 0x2d1   :  { %v6208_v34 = vpop.f32.mrf.mxu0  ;;  %v6210_v41 = vpop.f32.mrf.mxu1  ;;  %v3096_v2 = vadd.f32 %v3095_v27, %v6012_v49 }
 0x2d3   :  { %v3097_v46 = vadd.f32 %v3096_v2, %v6015_v50 }
 0x2d5   :  { %v2036_v28 = vpop.f32.mrf.mxu2  ;;  %v2308_v37 = vpop.f32.mrf.mxu3  ;;  %v3098_v61 = vadd.f32 %v3097_v46, %v6034_v7 }
 0x2d7   :  { %v3099_v22 = vadd.f32 %v3098_v61, %v6037_v39 }
 0x2d9   :  { %v2614_v45 = vpop.f32.mrf.mxu0  ;;  %v6216_v54 = vpop.f32.mrf.mxu1  ;;  %v3100_v21 = vadd.f32 %v3099_v22, %v6056_v43  ;;  %v7883_v22 = vld [vmem:[#allocation48_spill] sm:$0xff] }
 0x2db   :  { %v3101_v31 = vadd.f32 %v3100_v21, %v6059_v13  ;;  %v7884_v21 = vld [vmem:[#allocation49_spill] sm:$0xff] }
 0x2dd   :  { %v2038_v25 = vpop.f32.mrf.mxu2  ;;  %v2310_v42 = vpop.f32.mrf.mxu3  ;;  %v3102_v44 = vadd.f32 %v3101_v31, %v6078_v26  ;;  %v7885_v31 = vld [vmem:[#allocation13_spill] sm:$0xff] }
 0x2de   :  { %v2029_v26 = vadd.f32 %v2028_v30, %v7885_v31 }
 0x2df   :  { %v3103_v27 = vadd.f32 %v3102_v44, %v6081_v12  ;;  %v7886_v12 = vld [vmem:[#allocation15_spill] sm:$0xff] }
 0x2e0   :  { %v2032_v48 = vadd.f32 %v2031_v10, %v7886_v12  ;;  %v2349_v62 = vadd.f32 %v2300_v14, %v2029_v26 }
 0x2e1   :  { %v2617_v52 = vpop.f32.mrf.mxu0  ;;  %v6222_v29 = vpop.f32.mrf.mxu1  ;;  %v3104_v46 = vadd.f32 %v3103_v27, %v6100_v56 }
 0x2e2   :  { %v2653_v31 = vadd.f32 %v6182_v24, %v2349_v62  ;;  %v7891_v24 = vld [vmem:[#allocation25_spill] sm:$0xff] }
 0x2e3   :  { %v3105_v61 = vadd.f32 %v3104_v46, %v6103_v35  ;;  %v7887_v46 = vld [vmem:[#allocation17_spill] sm:$0xff] }
 0x2e4   :  { %v2034_v35 = vadd.f32 %v2033_v51, %v7887_v46  ;;  %v7890_v51 = vld [vmem:[#allocation23_spill] sm:$0xff] }
 0x2e5   :  { %v2041_v3 = vpop.f32.mrf.mxu2  ;;  %v2313_v23 = vpop.f32.mrf.mxu3  ;;  %v3106_v39 = vadd.f32 %v3105_v61, %v6122_v58 }
 0x2e7   :  { %v3107_v43 = vadd.f32 %v3106_v39, %v7883_v22  ;;  %v2350_v39 = vadd.f32 %v2303_v53, %v2032_v48  ;;  %v7888_v22 = vld [vmem:[#allocation19_spill] sm:$0xff]  ;;  %v6250_v48 = vadd.f32 %v6184_v1, %v2653_v31 }
 0x2e9   :  { %v2619_v2 = vpop.f32.mrf.mxu0  ;;  %v6229_v7 = vpop.f32.mrf.mxu1  ;;  %v3108_v13 = vadd.f32 %v3107_v43, %v7884_v21  ;;  %v2037_v43 = vadd.f32 %v2036_v28, %v7888_v22  ;;  %v2654_v26 = vadd.f32 %v6192_v63, %v2350_v39 }
 0x2eb   :  { %v3109_v44 = vadd.f32 %v3108_v13, %v6147_v57  ;;  %v2351_v13 = vadd.f32 %v2305_v38, %v2034_v35  ;;  %v7889_v57 = vld [vmem:[#allocation21_spill] sm:$0xff]  ;;  %v2352_v14 = vadd.f32 %v2308_v37, %v2037_v43  ;;  %v6256_v63 = vadd.f32 %v6194_v15, %v2654_v26  ;;  %v7892_v37 = vld [vmem:[#allocation27_spill] sm:$0xff] }
 0x2ec   :  { %v2039_v12 = vadd.f32 %v2038_v25, %v7889_v57  ;;  %v7893_v43 = vld [vmem:[#allocation29_spill] sm:$0xff] }
 0x2ed   :  { %v2043_v50 = vpop.f32.mrf.mxu2  ;;  %v2315_v49 = vpop.f32.mrf.mxu3  ;;  %v3110_v56 = vadd.f32 %v3109_v44, %v6150_v60  ;;  %v2042_v44 = vadd.f32 %v2041_v3, %v7890_v51  ;;  %v2656_v3 = vadd.f32 %v6208_v34, %v2352_v14 }
 0x2ee   :  { %v2353_v35 = vadd.f32 %v2310_v42, %v2039_v12  ;;  %v2044_v57 = vadd.f32 %v2043_v50, %v7891_v24 }
 0x2ef   :  { %v3111_v16 = vadd.f32 %v3110_v56, %v6156_v55  ;;  %v2354_v38 = vadd.f32 %v2313_v23, %v2042_v44  ;;  %v6267_v15 = vadd.f32 %v6210_v41, %v2656_v3 }
 0x2f0   :  { %v2657_v39 = vadd.f32 %v2614_v45, %v2353_v35  ;;  %v2355_v42 = vadd.f32 %v2315_v49, %v2044_v57  ;;  %v7894_v45 = vld [vmem:[#allocation31_spill] sm:$0xff]  ;;  %v7895_v57 = vld [vmem:[#allocation33_spill] sm:$0xff] }
 0x2f1   :  { %v2622_v19 = vpop.f32.mrf.mxu0  ;;  %v2926_v27 = vpop.f32.mrf.mxu1  ;;  %v3112_v30 = vadd.f32 %v3111_v16, %v6163_v4  ;;  %v2655_v16 = vadd.f32 %v6200_v11, %v2351_v13  ;;  %v2658_v31 = vadd.f32 %v2617_v52, %v2354_v38 }
 0x2f2   :  { %v6271_v12 = vadd.f32 %v6216_v54, %v2657_v39 }
 0x2f3   :  { %v3113_v10 = vadd.f32 %v3112_v30, %v6170_v5  ;;  %v6262_v11 = vadd.f32 %v6202_v9, %v2655_v16  ;;  %v2659_v9 = vadd.f32 %v2619_v2, %v2355_v42  ;;  %v6276_v51 = vadd.f32 %v6222_v29, %v2658_v31 }
 0x2f5   :  { %v2046_v61 = vpop.f32.mrf.mxu2  ;;  %v2318_v58 = vpop.f32.mrf.mxu3  ;;  %v3114_v56 = vadd.f32 %v3113_v10, %v6177_v36 }
 0x2f6   :  { %v2047_v22 = vadd.f32 %v2046_v61, %v7892_v37 }
 0x2f7   :  { %v3115_v25 = vadd.f32 %v3114_v56, %v6188_v18  ;;  %v2963_v56 = vadd.f32 %v6229_v7, %v2659_v9 }
 0x2f8   :  { %v2356_v13 = vadd.f32 %v2318_v58, %v2047_v22 }
 0x2f9   :  { %v2624_v46 = vpop.f32.mrf.mxu0  ;;  %v2928_v53 = vpop.f32.mrf.mxu1  ;;  %v3116_v1 = vadd.f32 %v3115_v25, %v6250_v48 }
 0x2fa   :  { %v2660_v41 = vadd.f32 %v2622_v19, %v2356_v13 }
 0x2fb   :  { %v3117_v30 = vadd.f32 %v3116_v1, %v6256_v63 }
 0x2fc   :  { %v2964_v2 = vadd.f32 %v2926_v27, %v2660_v41 }
 0x2fd   :  { %v2048_v28 = vpop.f32.mrf.mxu2  ;;  %v2320_v62 = vpop.f32.mrf.mxu3  ;;  %v3118_v34 = vadd.f32 %v3117_v30, %v6262_v11 }
 0x2fe   :  { %v2049_v50 = vadd.f32 %v2048_v28, %v7893_v43 }
 0x2ff   :  { %v3119_v14 = vadd.f32 %v3118_v34, %v6267_v15 }
 0x300   :  { %v2357_v10 = vadd.f32 %v2320_v62, %v2049_v50 }
 0x301   :  { %v2627_v26 = vpop.f32.mrf.mxu0  ;;  %v2931_v58 = vpop.f32.mrf.mxu1  ;;  %v3120_v44 = vadd.f32 %v3119_v14, %v6271_v12 }
 0x302   :  { %v2661_v16 = vadd.f32 %v2624_v46, %v2357_v10  ;;  %v5114_v46 = vmov 512.0  }
 0x303   :  { %v3121_v54 = vadd.f32 %v3120_v44, %v6276_v51  ;;  %5110 = vrcp.f32 %v5114_v46 }
 0x304   :  { %v2965_v24 = vadd.f32 %v2928_v53, %v2661_v16 }
 0x305   :  { %v2051_v23 = vpop.f32.mrf.mxu2  ;;  %v2323_v61 = vpop.f32.mrf.mxu3  ;;  %v3122_v35 = vadd.f32 %v3121_v54, %v2963_v56 }
 0x306   :  { %v2052_v49 = vadd.f32 %v2051_v23, %v7894_v45 }
 0x307   :  { %v3123_v29 = vadd.f32 %v3122_v35, %v2964_v2 }
 0x308   :  { %v2358_v52 = vadd.f32 %v2323_v61, %v2052_v49 }
 0x309   :  { %v2629_v37 = vpop.f32.mrf.mxu0  ;;  %v3124_v22 = vadd.f32 %v3123_v29, %v2965_v24  ;;  %v2933_v39 = vpop.f32.mrf.mxu1 }
 0x30a   :  { %v2662_v28 = vadd.f32 %v2627_v26, %v2358_v52  ;;  %v5111_v50 = vpop.eup %5110 }
 0x30b   :  { %v3134_v31 = vmul.f32 512.0, %v5111_v50  ;;  %vm3138_vm2 = vweird.f32 %v5111_v50 }
 0x30c   :  { %v2966_v38 = vadd.f32 %v2931_v58, %v2662_v28 }
 0x30d   :  { %v2053_v62 = vpop.f32.mrf.mxu2  ;;  %v2325_v3 = vpop.f32.mrf.mxu3  ;;  %v3135_v13 = vsub.f32 1.0, %v3134_v31  ;;  %v7903_v31 = vld [vmem:[#allocation6_spill] sm:$0xff] }
 0x30e   :  { %v2054_v25 = vadd.f32 %v2053_v62, %v7895_v57  ;;  %v3125_v42 = vadd.f32 %v3124_v22, %v2966_v38  ;;  %v7900_v22 = vld [vmem:[#allocation3_spill] sm:$0xff] }
 0x30f   :  { %v3136_v23 = vmul.f32 %v5111_v50, %v3135_v13 }
 0x310   :  { %v2359_v19 = vadd.f32 %v2325_v3, %v2054_v25 }
 0x311   :  { %v3137_v9 = vadd.f32 %v5111_v50, %v3136_v23  ;;  %v7904_v23 = vld [vmem:[#allocation7_spill] sm:$0xff] }
 0x312   :  { %v2663_v1 = vadd.f32 %v2629_v37, %v2359_v19 }
 0x313   :  { %v6282_v45 = vsel %vm3138_vm2, %v5111_v50, %v3137_v9 }
 0x314   :  { %v2967_v7 = vadd.f32 %v2933_v39, %v2663_v1 }
 0x316   :  { %v3126_v43 = vadd.f32 %v3125_v42, %v2967_v7  ;;  %v7901_v42 = vld [vmem:[#allocation4_spill] sm:$0xff] }
 0x318   :  { %v3127_v27 = vrot.slane %v3126_v43, 4 }
 0x31a   :  { %v3128_v30 = vadd.f32 %v3127_v27, %v3126_v43  ;;  %v7902_v43 = vld [vmem:[#allocation5_spill] sm:$0xff] }
 0x31c   :  { %v3129_v53 = vrot.slane %v3128_v30, 2 }
 0x31e   :  { %v3130_v34 = vadd.f32 %v3129_v53, %v3128_v30 }
 0x320   :  { %v3131_v61 = vrot.slane %v3130_v34, 1 }
 0x322   :  { %v3132_v10 = vadd.f32 %v3131_v61, %v3130_v34 }
 0x324   :  { %v6285_v49 = vmul.f32 %v6282_v45, %v3132_v10 }
 0x326   :  { %v6288_v26 = vsub.f32 %v2963_v56, %v6285_v49  ;;  %v6291_v14 = vsub.f32 %v2964_v2, %v6285_v49  ;;  %v6294_v41 = vsub.f32 %v2965_v24, %v6285_v49  ;;  %v6297_v52 = vsub.f32 %v2966_v38, %v6285_v49 }
 0x327   :  { %v6300_v58 = vsub.f32 %v2967_v7, %v6285_v49  ;;  %v6304_v44 = vsub.f32 %v5569_v8, %v6285_v49  ;;  %v6308_v56 = vsub.f32 %v5586_v32, %v6285_v49  ;;  %v6312_v16 = vsub.f32 %v5601_v47, %v6285_v49 }
 0x328   :  { %7896 = vst [vmem:[#allocation49_spill] sm:$0xff] %v6288_v26  ;;  %v6320_v28 = vsub.f32 %v5624_v6, %v6285_v49  ;;  %v6324_v8 = vsub.f32 %v5633_v20, %v6285_v49  ;;  %v6330_v47 = vsub.f32 %v5650_v0, %v6285_v49  ;;  %v6336_v6 = vsub.f32 %v5659_v59, %v6285_v49 }
 0x329   :  { %7897 = vst [vmem:[#allocation13_spill] sm:$0xff] %v6291_v14  ;;  %v3205_v54 = vmul.f32 %v6304_v44, %v6304_v44  ;;  %v3206_v2 = vmul.f32 %v6308_v56, %v6308_v56  ;;  %v3207_v32 = vmul.f32 %v6312_v16, %v6312_v16  ;;  %v6342_v25 = vsub.f32 %v5676_v17, %v6285_v49 }
 0x32a   :  { %7898 = vst [vmem:[#allocation15_spill] sm:$0xff] %v6294_v41  ;;  %v3208_v35 = vmul.f32 %v6320_v28, %v6320_v28  ;;  %v3209_v20 = vmul.f32 %v6324_v8, %v6324_v8  ;;  %v3210_v0 = vmul.f32 %v6330_v47, %v6330_v47  ;;  %v6348_v29 = vsub.f32 %v5685_v33, %v6285_v49 }
 0x32b   :  { %7899 = vst [vmem:[#allocation17_spill] sm:$0xff] %v6297_v52  ;;  %v3269_v62 = vadd.f32 %v3206_v2, %v3205_v54  ;;  %v3211_v59 = vmul.f32 %v6336_v6, %v6336_v6  ;;  %v6354_v19 = vsub.f32 %v5702_v40, %v6285_v49  ;;  %v3212_v17 = vmul.f32 %v6342_v25, %v6342_v25  ;;  %v7905_v54 = vld [vmem:[#allocation8_spill] sm:$0xff] }
 0x32c   :  { %v6360_v1 = vsub.f32 %v7900_v22, %v6285_v49  ;;  %v3213_v33 = vmul.f32 %v6348_v29, %v6348_v29  ;;  %v6366_v7 = vsub.f32 %v7901_v42, %v6285_v49  ;;  %v6372_v27 = vsub.f32 %v7902_v43, %v6285_v49  ;;  %v7910_v43 = vld [vmem:[#allocation14_spill] sm:$0xff] }
 0x32d   :  { %v3270_v24 = vadd.f32 %v3269_v62, %v3207_v32  ;;  %v3214_v40 = vmul.f32 %v6354_v19, %v6354_v19  ;;  %v6378_v53 = vsub.f32 %v7903_v31, %v6285_v49  ;;  %v6384_v61 = vsub.f32 %v7904_v23, %v6285_v49 }
 0x32e   :  { %v3215_v50 = vmul.f32 %v6360_v1, %v6360_v1  ;;  %v3216_v13 = vmul.f32 %v6366_v7, %v6366_v7  ;;  %v3217_v9 = vmul.f32 %v6372_v27, %v6372_v27  ;;  %v6390_v2 = vsub.f32 %v7905_v54, %v6285_v49 }
 0x32f   :  { %v3271_v57 = vadd.f32 %v3270_v24, %v3208_v35  ;;  %v3218_v32 = vmul.f32 %v6378_v53, %v6378_v53  ;;  %v7906_v35 = vld [vmem:[#allocation9_spill] sm:$0xff] }
 0x330   :  { %v6396_v24 = vsub.f32 %v7906_v35, %v6285_v49  ;;  %v7913_v35 = vld [vmem:[#allocation20_spill] sm:$0xff] }
 0x331   :  { %v3272_v3 = vadd.f32 %v3271_v57, %v3209_v20  ;;  %v3219_v20 = vmul.f32 %v6384_v61, %v6384_v61 }
 0x332   :  { %v3221_v22 = vmul.f32 %v6396_v24, %v6396_v24 }
 0x333   :  { %v3273_v38 = vadd.f32 %v3272_v3, %v3210_v0  ;;  %v7907_v0 = vld [vmem:[#allocation10_spill] sm:$0xff] }
 0x334   :  { %v6402_v3 = vsub.f32 %v7907_v0, %v6285_v49 }
 0x335   :  { %v3274_v37 = vadd.f32 %v3273_v38, %v3211_v59  ;;  %v3220_v59 = vmul.f32 %v6390_v2, %v6390_v2 }
 0x337   :  { %v3275_v39 = vadd.f32 %v3274_v37, %v3212_v17  ;;  %v7908_v17 = vld [vmem:[#allocation11_spill] sm:$0xff] }
 0x338   :  { %v6408_v37 = vsub.f32 %v7908_v17, %v6285_v49 }
 0x339   :  { %v3276_v46 = vadd.f32 %v3275_v39, %v3213_v33  ;;  %v7909_v39 = vld [vmem:[#allocation12_spill] sm:$0xff] }
 0x33a   :  { %v6414_v42 = vsub.f32 %v7909_v39, %v6285_v49 }
 0x33b   :  { %v3277_v30 = vadd.f32 %v3276_v46, %v3214_v40  ;;  %v3222_v40 = vmul.f32 %v6402_v3, %v6402_v3 }
 0x33c   :  { %v3224_v23 = vmul.f32 %v6414_v42, %v6414_v42 }
 0x33d   :  { %v3278_v34 = vadd.f32 %v3277_v30, %v3215_v50  ;;  %v6420_v50 = vsub.f32 %v7910_v43, %v6285_v49  ;;  %v3223_v30 = vmul.f32 %v6408_v37, %v6408_v37  ;;  %v7916_v43 = vld [vmem:[#allocation26_spill] sm:$0xff] }
 0x33f   :  { %v3279_v10 = vadd.f32 %v3278_v34, %v3216_v13  ;;  %v7911_v13 = vld [vmem:[#allocation16_spill] sm:$0xff] }
 0x340   :  { %v6426_v34 = vsub.f32 %v7911_v13, %v6285_v49 }
 0x341   :  { %v3280_v62 = vadd.f32 %v3279_v10, %v3217_v9  ;;  %v7912_v10 = vld [vmem:[#allocation18_spill] sm:$0xff] }
 0x342   :  { %v6432_v54 = vsub.f32 %v7912_v10, %v6285_v49 }
 0x343   :  { %v3281_v57 = vadd.f32 %v3280_v62, %v3218_v32  ;;  %v3225_v32 = vmul.f32 %v6420_v50, %v6420_v50 }
 0x344   :  { %v3227_v17 = vmul.f32 %v6432_v54, %v6432_v54 }
 0x345   :  { %v3282_v38 = vadd.f32 %v3281_v57, %v3219_v20  ;;  %v6438_v20 = vsub.f32 %v7913_v35, %v6285_v49  ;;  %v3226_v57 = vmul.f32 %v6426_v34, %v6426_v34 }
 0x347   :  { %v3283_v33 = vadd.f32 %v3282_v38, %v3220_v59  ;;  %v7914_v59 = vld [vmem:[#allocation22_spill] sm:$0xff] }
 0x348   :  { %v6444_v38 = vsub.f32 %v7914_v59, %v6285_v49  ;;  %v7920_v59 = vld [vmem:[#allocation32_spill] sm:$0xff] }
 0x349   :  { %v3284_v46 = vadd.f32 %v3283_v33, %v3221_v22  ;;  %v7915_v33 = vld [vmem:[#allocation24_spill] sm:$0xff] }
 0x34a   :  { %v6450_v39 = vsub.f32 %v7915_v33, %v6285_v49 }
 0x34b   :  { %v3285_v31 = vadd.f32 %v3284_v46, %v3222_v40  ;;  %v3228_v40 = vmul.f32 %v6438_v20, %v6438_v20 }
 0x34c   :  { %v3230_v10 = vmul.f32 %v6450_v39, %v6450_v39 }
 0x34d   :  { %v3286_v9 = vadd.f32 %v3285_v31, %v3223_v30  ;;  %v6456_v30 = vsub.f32 %v7916_v43, %v6285_v49  ;;  %v3229_v31 = vmul.f32 %v6444_v38, %v6444_v38 }
 0x34f   :  { %v3287_v62 = vadd.f32 %v3286_v9, %v3224_v23  ;;  %v7917_v23 = vld [vmem:[#allocation28_spill] sm:$0xff] }
 0x350   :  { %v6462_v9 = vsub.f32 %v7917_v23, %v6285_v49 }
 0x351   :  { %v3288_v0 = vadd.f32 %v3287_v62, %v3225_v32  ;;  %v7918_v62 = vld [vmem:[#allocation30_spill] sm:$0xff] }
 0x352   :  { %v6468_v35 = vsub.f32 %v7918_v62, %v6285_v49  ;;  %v7926_v62 = vld [vmem:[#allocation36_spill] sm:$0xff] }
 0x353   :  { %v3289_v22 = vadd.f32 %v3288_v0, %v3226_v57  ;;  %v3231_v57 = vmul.f32 %v6456_v30, %v6456_v30 }
 0x354   :  { %7919 = vst [vmem:[#allocation19_spill] sm:$0xff] %v6468_v35  ;;  %v3233_v43 = vmul.f32 %v6468_v35, %v6468_v35 }
 0x355   :  { %v3290_v46 = vadd.f32 %v3289_v22, %v3227_v17  ;;  %v6474_v17 = vsub.f32 %v7920_v59, %v6285_v49  ;;  %v3232_v22 = vmul.f32 %v6462_v9, %v6462_v9  ;;  %v6492_v59 = vsub.f32 %v7926_v62, %v6285_v49  ;;  %v7932_v62 = vld [vmem:[#allocation39_spill] sm:$0xff] }
 0x357   :  { %v3291_v13 = vadd.f32 %v3290_v46, %v3228_v40  ;;  %7921 = vst [vmem:[#allocation21_spill] sm:$0xff] %v6474_v17  ;;  %v7922_v40 = vld [vmem:[#allocation34_spill] sm:$0xff] }
 0x358   :  { %v6480_v46 = vsub.f32 %v7922_v40, %v6285_v49  ;;  %7927 = vst [vmem:[#allocation27_spill] sm:$0xff] %v6492_v59  ;;  %v7928_v40 = vld [vmem:[#allocation37_spill] sm:$0xff] }
 0x359   :  { %v3292_v32 = vadd.f32 %v3291_v13, %v3229_v31  ;;  %v7924_v13 = vld [vmem:[#allocation35_spill] sm:$0xff]  ;;  %v6498_v35 = vsub.f32 %v7928_v40, %v6285_v49  ;;  %v7934_v40 = vld [vmem:[#allocation40_spill] sm:$0xff] }
 0x35a   :  { %7923 = vst [vmem:[#allocation23_spill] sm:$0xff] %v6480_v46  ;;  %v6486_v23 = vsub.f32 %v7924_v13, %v6285_v49  ;;  %v7930_v13 = vld [vmem:[#allocation38_spill] sm:$0xff] }
 0x35b   :  { %v3293_v0 = vadd.f32 %v3292_v32, %v3230_v10  ;;  %v3234_v10 = vmul.f32 %v6474_v17, %v6474_v17  ;;  %7929 = vst [vmem:[#allocation29_spill] sm:$0xff] %v6498_v35  ;;  %v6504_v17 = vsub.f32 %v7930_v13, %v6285_v49  ;;  %v7936_v13 = vld [vmem:[#allocation41_spill] sm:$0xff] }
 0x35c   :  { %7925 = vst [vmem:[#allocation25_spill] sm:$0xff] %v6486_v23 }
 0x35d   :  { %v3294_v33 = vadd.f32 %v3293_v0, %v3231_v57  ;;  %v3235_v57 = vmul.f32 %v6480_v46, %v6480_v46  ;;  %7931 = vst [vmem:[#allocation31_spill] sm:$0xff] %v6504_v17  ;;  %v6510_v46 = vsub.f32 %v7932_v62, %v6285_v49  ;;  %v7938_v62 = vld [vmem:[#allocation42_spill] sm:$0xff] }
 0x35f   :  { %v3295_v31 = vadd.f32 %v3294_v33, %v3232_v22  ;;  %v3236_v22 = vmul.f32 %v6486_v23, %v6486_v23  ;;  %7933 = vst [vmem:[#allocation33_spill] sm:$0xff] %v6510_v46  ;;  %v6516_v23 = vsub.f32 %v7934_v40, %v6285_v49  ;;  %v7940_v40 = vld [vmem:[#allocation43_spill] sm:$0xff] }
 0x361   :  { %v3296_v32 = vadd.f32 %v3295_v31, %v3233_v43  ;;  %v3237_v43 = vmul.f32 %v6492_v59, %v6492_v59  ;;  %7935 = vst [vmem:[#allocation3_spill] sm:$0xff] %v6516_v23  ;;  %v6522_v59 = vsub.f32 %v7936_v13, %v6285_v49  ;;  %v7942_v13 = vld [vmem:[#allocation44_spill] sm:$0xff] }
 0x363   :  { %v3297_v0 = vadd.f32 %v3296_v32, %v3234_v10  ;;  %v3238_v10 = vmul.f32 %v6498_v35, %v6498_v35  ;;  %7937 = vst [vmem:[#allocation4_spill] sm:$0xff] %v6522_v59  ;;  %v6528_v35 = vsub.f32 %v7938_v62, %v6285_v49  ;;  %v7943_v62 = vld [vmem:[#allocation45_spill] sm:$0xff] }
 0x365   :  { %v3298_v33 = vadd.f32 %v3297_v0, %v3235_v57  ;;  %v3239_v57 = vmul.f32 %v6504_v17, %v6504_v17  ;;  %7939 = vst [vmem:[#allocation5_spill] sm:$0xff] %v6528_v35  ;;  %v6534_v17 = vsub.f32 %v7940_v40, %v6285_v49  ;;  %v7945_v40 = vld [vmem:[#allocation46_spill] sm:$0xff] }
 0x367   :  { %v3299_v31 = vadd.f32 %v3298_v33, %v3236_v22  ;;  %v3240_v22 = vmul.f32 %v6510_v46, %v6510_v46  ;;  %7941 = vst [vmem:[#allocation6_spill] sm:$0xff] %v6534_v17  ;;  %v6540_v46 = vsub.f32 %v7942_v13, %v6285_v49  ;;  %v7946_v13 = vld [vmem:[#allocation47_spill] sm:$0xff] }
 0x369   :  { %v3300_v32 = vadd.f32 %v3299_v31, %v3237_v43  ;;  %v3241_v43 = vmul.f32 %v6516_v23, %v6516_v23  ;;  %v6546_v23 = vsub.f32 %v7943_v62, %v6285_v49  ;;  %v7947_v62 = vld [vmem:[#allocation48_spill] sm:$0xff] }
 0x36b   :  { %v3301_v0 = vadd.f32 %v3300_v32, %v3238_v10  ;;  %v3242_v10 = vmul.f32 %v6522_v59, %v6522_v59  ;;  %7944 = vst [vmem:[#allocation7_spill] sm:$0xff] %v6546_v23  ;;  %v6552_v59 = vsub.f32 %v7945_v40, %v6285_v49  ;;  %v6570_v40 = vsub.f32 %v7884_v21, %v6285_v49 }
 0x36d   :  { %v3302_v33 = vadd.f32 %v3301_v0, %v3239_v57  ;;  %v3243_v57 = vmul.f32 %v6528_v35, %v6528_v35  ;;  %v6558_v35 = vsub.f32 %v7946_v13, %v6285_v49  ;;  %v7948_v13 = vld [vmem:[#allocation50_spill] sm:$0xff]  ;;  %v3250_v21 = vmul.f32 %v6570_v40, %v6570_v40 }
 0x36f   :  { %v3303_v31 = vadd.f32 %v3302_v33, %v3240_v22  ;;  %v3244_v22 = vmul.f32 %v6534_v17, %v6534_v17  ;;  %v6564_v17 = vsub.f32 %v7947_v62, %v6285_v49  ;;  %v6582_v62 = vsub.f32 %v6150_v60, %v6285_v49 }
 0x371   :  { %v3304_v32 = vadd.f32 %v3303_v31, %v3241_v43  ;;  %v3245_v43 = vmul.f32 %v6540_v46, %v6540_v46  ;;  %v3252_v60 = vmul.f32 %v6582_v62, %v6582_v62 }
 0x373   :  { %v3305_v0 = vadd.f32 %v3304_v32, %v3242_v10  ;;  %v3246_v10 = vmul.f32 %v6546_v23, %v6546_v23  ;;  %v6576_v23 = vsub.f32 %v7948_v13, %v6285_v49  ;;  %v6594_v13 = vsub.f32 %v6163_v4, %v6285_v49 }
 0x375   :  { %v3306_v33 = vadd.f32 %v3305_v0, %v3243_v57  ;;  %v3247_v57 = vmul.f32 %v6552_v59, %v6552_v59  ;;  %v3254_v4 = vmul.f32 %v6594_v13, %v6594_v13 }
 0x377   :  { %v3307_v31 = vadd.f32 %v3306_v33, %v3244_v22  ;;  %v3248_v22 = vmul.f32 %v6558_v35, %v6558_v35 }
 0x379   :  { %v3308_v32 = vadd.f32 %v3307_v31, %v3245_v43  ;;  %v3249_v43 = vmul.f32 %v6564_v17, %v6564_v17 }
 0x37b   :  { %v3309_v0 = vadd.f32 %v3308_v32, %v3246_v10  ;;  %v6588_v32 = vsub.f32 %v6156_v55, %v6285_v49 }
 0x37d   :  { %v3310_v33 = vadd.f32 %v3309_v0, %v3247_v57  ;;  %v3251_v57 = vmul.f32 %v6576_v23, %v6576_v23  ;;  %v3253_v55 = vmul.f32 %v6588_v32, %v6588_v32 }
 0x37f   :  { %v3311_v31 = vadd.f32 %v3310_v33, %v3248_v22  ;;  %v6600_v33 = vsub.f32 %v6170_v5, %v6285_v49 }
 0x381   :  { %v3312_v10 = vadd.f32 %v3311_v31, %v3249_v43  ;;  %v6606_v31 = vsub.f32 %v6177_v36, %v6285_v49  ;;  %v3255_v5 = vmul.f32 %v6600_v33, %v6600_v33 }
 0x383   :  { %v3313_v0 = vadd.f32 %v3312_v10, %v3250_v21  ;;  %v6612_v10 = vsub.f32 %v6188_v18, %v6285_v49  ;;  %v3256_v36 = vmul.f32 %v6606_v31, %v6606_v31 }
 0x385   :  { %v3314_v22 = vadd.f32 %v3313_v0, %v3251_v57  ;;  %v6618_v0 = vsub.f32 %v6250_v48, %v6285_v49  ;;  %v3257_v18 = vmul.f32 %v6612_v10, %v6612_v10 }
 0x387   :  { %v3315_v43 = vadd.f32 %v3314_v22, %v3252_v60  ;;  %v6624_v22 = vsub.f32 %v6256_v63, %v6285_v49  ;;  %v3258_v48 = vmul.f32 %v6618_v0, %v6618_v0 }
 0x389   :  { %v3316_v21 = vadd.f32 %v3315_v43, %v3253_v55  ;;  %v6630_v43 = vsub.f32 %v6262_v11, %v6285_v49  ;;  %v3259_v63 = vmul.f32 %v6624_v22, %v6624_v22 }
 0x38b   :  { %v3317_v57 = vadd.f32 %v3316_v21, %v3254_v4  ;;  %7949 = vst [vmem:[#allocation8_spill] sm:$0xff] %v6630_v43  ;;  %v6636_v21 = vsub.f32 %v6267_v15, %v6285_v49  ;;  %v3260_v11 = vmul.f32 %v6630_v43, %v6630_v43  ;;  %v3264_v43 = vmul.f32 %v6288_v26, %v6288_v26 }
 0x38d   :  { %v3318_v60 = vadd.f32 %v3317_v57, %v3255_v5  ;;  %v6642_v57 = vsub.f32 %v6271_v12, %v6285_v49  ;;  %v3261_v15 = vmul.f32 %v6636_v21, %v6636_v21 }
 0x38f   :  { %v3319_v55 = vadd.f32 %v3318_v60, %v3256_v36  ;;  %7950 = vst [vmem:[#allocation9_spill] sm:$0xff] %v6642_v57  ;;  %v6648_v60 = vsub.f32 %v6276_v51, %v6285_v49  ;;  %v3265_v51 = vmul.f32 %v6291_v14, %v6291_v14 }
 0x391   :  { %v3320_v4 = vadd.f32 %v3319_v55, %v3257_v18  ;;  %7951 = vst [vmem:[#allocation10_spill] sm:$0xff] %v6648_v60  ;;  %v3262_v55 = vmul.f32 %v6642_v57, %v6642_v57  ;;  %v3263_v12 = vmul.f32 %v6648_v60, %v6648_v60 }
 0x393   :  { %v3321_v5 = vadd.f32 %v3320_v4, %v3258_v48 }
 0x395   :  { %v3322_v36 = vadd.f32 %v3321_v5, %v3259_v63  ;;  %v3266_v5 = vmul.f32 %v6294_v41, %v6294_v41 }
 0x397   :  { %v3323_v18 = vadd.f32 %v3322_v36, %v3260_v11  ;;  %v3267_v36 = vmul.f32 %v6297_v52, %v6297_v52 }
 0x399   :  { %v3324_v48 = vadd.f32 %v3323_v18, %v3261_v15  ;;  %v3268_v18 = vmul.f32 %v6300_v58, %v6300_v58 }
 0x39b   :  { %v3325_v4 = vadd.f32 %v3324_v48, %v3262_v55 }
 0x39d   :  { %v3326_v63 = vadd.f32 %v3325_v4, %v3263_v12 }
 0x39f   :  { %v3327_v49 = vadd.f32 %v3326_v63, %v3264_v43 }
 0x3a1   :  { %v3328_v11 = vadd.f32 %v3327_v49, %v3265_v51 }
 0x3a3   :  { %v3329_v15 = vadd.f32 %v3328_v11, %v3266_v5 }
 0x3a5   :  { %v3330_v55 = vadd.f32 %v3329_v15, %v3267_v36 }
 0x3a7   :  { %v3331_v48 = vadd.f32 %v3330_v55, %v3268_v18  ;;  %v7952_v18 = vld [vmem:[#allocation19_spill] sm:$0xff]  ;;  %v7953_v55 = vld [vmem:[#allocation21_spill] sm:$0xff] }
 0x3a9   :  { %v3332_v60 = vrot.slane %v3331_v48, 4 }
 0x3ab   :  { %v3333_v26 = vadd.f32 %v3332_v60, %v3331_v48  ;;  %v3339_v60 = vld [vmem:[%s7750_s2] sm:$0x1] }
 0x3ac   :  { %v7954_v48 = vld [vmem:[#allocation23_spill] sm:$0xff] }
 0x3ad   :  { %v3334_v12 = vrot.slane %v3333_v26, 2 }
 0x3af   :  { %v3335_v4 = vadd.f32 %v3334_v12, %v3333_v26  ;;  %v7955_v12 = vld [vmem:[#allocation25_spill] sm:$0xff] }
 0x3b1   :  { %v3336_v57 = vrot.slane %v3335_v4, 1 }
 0x3b3   :  { %v3337_v14 = vadd.f32 %v3336_v57, %v3335_v4  ;;  %v7956_v4 = vld [vmem:[#allocation27_spill] sm:$0xff] }
 0x3b5   :  { %v3338_v43 = vmul.f32 %v3337_v14, %v6282_v45 }
 0x3b7   :  { %v3340_v63 = vadd.f32 1e-05, %v3338_v43  ;;  %v7957_v43 = vld [vmem:[#allocation29_spill] sm:$0xff] }
 0x3b9   :  { %5112 = vrsqrt.f32 %v3340_v63  ;;  %vm3347_vm4 = vweird.f32 %v3340_v63 }
 0x3bf   :  { %v5113_v51 = vpop.eup %5112 }
 0x3c0   :  { %v3342_v49 = vmul.f32 %v5113_v51, %v3340_v63  ;;  %vm3348_vm3 = vweird.f32 %v5113_v51 }
 0x3c1   :  { %vm3349_vm5 = vmor %vm3347_vm4, %vm3348_vm3 }
 0x3c2   :  { %v3343_v41 = vmul.f32 %v5113_v51, %v3342_v49 }
 0x3c4   :  { %v3344_v52 = vmul.f32 0.5, %v3343_v41 }
 0x3c6   :  { %v3345_v5 = vsub.f32 1.5, %v3344_v52 }
 0x3c8   :  { %v3346_v11 = vmul.f32 %v5113_v51, %v3345_v5  ;;  %v7959_v5 = vld [vmem:[#allocation33_spill] sm:$0xff] }
 0x3ca   :  { %v3350_v26 = vsel %vm3349_vm5, %v5113_v51, %v3346_v11  ;;  %v7958_v51 = vld [vmem:[#allocation31_spill] sm:$0xff] }
 0x3cb   :  { %v3351_v36 = vmul.f32 %v3350_v26, %v3339_v60  ;;  %v7960_v60 = vld [vmem:[#allocation3_spill] sm:$0xff] }
 0x3cd   :  { %v6670_v57 = vperm.slane %v3351_v36, 0  ;;  %v7961_v36 = vld [vmem:[#allocation4_spill] sm:$0xff] }
 0x3cf   :  { %v6674_v45 = vmul.f32 %v6670_v57, %v6304_v44  ;;  %v6678_v14 = vmul.f32 %v6670_v57, %v6308_v56  ;;  %v6682_v41 = vmul.f32 %v6670_v57, %v6312_v16  ;;  %v6686_v52 = vmul.f32 %v6670_v57, %v6320_v28 }
 0x3d0   :  { %v6690_v15 = vmul.f32 %v6670_v57, %v6324_v8  ;;  %v6694_v44 = vmul.f32 %v6670_v57, %v6330_v47  ;;  %v6698_v56 = vmul.f32 %v6670_v57, %v6336_v6  ;;  %v6702_v16 = vmul.f32 %v6670_v57, %v6342_v25 }
 0x3d1   :  { %v6706_v28 = vmul.f32 %v6670_v57, %v6348_v29  ;;  %v6710_v8 = vmul.f32 %v6670_v57, %v6354_v19  ;;  %v6714_v47 = vmul.f32 %v6670_v57, %v6360_v1  ;;  %v6718_v6 = vmul.f32 %v6670_v57, %v6366_v7 }
 0x3d2   :  { %v6722_v25 = vmul.f32 %v6670_v57, %v6372_v27  ;;  %v6726_v29 = vmul.f32 %v6670_v57, %v6378_v53  ;;  %v6730_v19 = vmul.f32 %v6670_v57, %v6384_v61  ;;  %v6734_v1 = vmul.f32 %v6670_v57, %v6390_v2 }
 0x3d3   :  { %v6738_v7 = vmul.f32 %v6670_v57, %v6396_v24  ;;  %v6742_v27 = vmul.f32 %v6670_v57, %v6402_v3  ;;  %v6746_v53 = vmul.f32 %v6670_v57, %v6408_v37  ;;  %v6750_v61 = vmul.f32 %v6670_v57, %v6414_v42 }
 0x3d4   :  { %v6754_v2 = vmul.f32 %v6670_v57, %v6420_v50  ;;  %v6758_v24 = vmul.f32 %v6670_v57, %v6426_v34  ;;  %v6762_v3 = vmul.f32 %v6670_v57, %v6432_v54  ;;  %v6766_v37 = vmul.f32 %v6670_v57, %v6438_v20 }
 0x3d5   :  { %v6770_v42 = vmul.f32 %v6670_v57, %v6444_v38  ;;  %v6774_v50 = vmul.f32 %v6670_v57, %v6450_v39  ;;  %v6778_v34 = vmul.f32 %v6670_v57, %v6456_v30  ;;  %v6782_v54 = vmul.f32 %v6670_v57, %v6462_v9 }
 0x3d6   :  { %v6786_v20 = vmul.f32 %v6670_v57, %v7952_v18  ;;  %v6790_v38 = vmul.f32 %v6670_v57, %v7953_v55  ;;  %v6794_v39 = vmul.f32 %v6670_v57, %v7954_v48  ;;  %v6798_v30 = vmul.f32 %v6670_v57, %v7955_v12  ;;  %v7962_v55 = vld [vmem:[#allocation5_spill] sm:$0xff]  ;;  %v7963_v12 = vld [vmem:[#allocation6_spill] sm:$0xff] }
 0x3d7   :  { %v6802_v9 = vmul.f32 %v6670_v57, %v7956_v4  ;;  %v6806_v63 = vmul.f32 %v6670_v57, %v7957_v43  ;;  %v6810_v49 = vmul.f32 %v6670_v57, %v7958_v51  ;;  %v6814_v11 = vmul.f32 %v6670_v57, %v7959_v5  ;;  %v7964_v51 = vld [vmem:[#allocation7_spill] sm:$0xff] }
 0x3d8   :  { %v6818_v26 = vmul.f32 %v6670_v57, %v7960_v60  ;;  %v6822_v18 = vmul.f32 %v6670_v57, %v7961_v36  ;;  %v6826_v48 = vmul.f32 %v6670_v57, %v7962_v55  ;;  %v6830_v4 = vmul.f32 %v6670_v57, %v7963_v12 }
 0x3d9   :  { %v6834_v43 = vmul.f32 %v6670_v57, %v6540_v46  ;;  %v6838_v5 = vmul.f32 %v6670_v57, %v7964_v51  ;;  %v6842_v60 = vmul.f32 %v6670_v57, %v6552_v59  ;;  %v6846_v36 = vmul.f32 %v6670_v57, %v6558_v35 }
 0x3da   :  { %v6850_v55 = vmul.f32 %v6670_v57, %v6564_v17  ;;  %v6854_v46 = vmul.f32 %v6670_v57, %v6570_v40  ;;  %v6858_v12 = vmul.f32 %v6670_v57, %v6576_v23  ;;  %v6862_v59 = vmul.f32 %v6670_v57, %v6582_v62  ;;  %v6875_v40 = vld [vmem:[%s7749_s3] ss:$0 sm:$0xff] }
 0x3db   :  { %v6866_v35 = vmul.f32 %v6670_v57, %v6588_v32  ;;  %v6870_v17 = vmul.f32 %v6670_v57, %v6594_v13  ;;  %v6879_v23 = vmul.f32 %v6670_v57, %v6600_v33  ;;  %v6883_v62 = vmul.f32 %v6670_v57, %v6606_v31 }
 0x3dc   :  { %v6887_v32 = vmul.f32 %v6670_v57, %v6612_v10  ;;  %v6891_v13 = vmul.f32 %v6670_v57, %v6618_v0  ;;  %v6895_v51 = vmul.f32 %v6670_v57, %v6624_v22  ;;  %v6903_v31 = vmul.f32 %v6670_v57, %v6636_v21 }
 0x3dd   :  { %7965 = vst [vmem:[#allocation11_spill] sm:$0xff] %v6870_v17  ;;  %v7970_v17 = vld [vmem:[#allocation8_spill] sm:$0xff] }
 0x3de   :  { %7966 = vst [vmem:[#allocation12_spill] sm:$0xff] %v6883_v62  ;;  %v6899_v33 = vmul.f32 %v6670_v57, %v7970_v17  ;;  %v7973_v62 = vld [vmem:[#allocation9_spill] sm:$0xff] }
 0x3df   :  { %7967 = vst [vmem:[#allocation14_spill] sm:$0xff] %v6887_v32  ;;  %v6907_v10 = vmul.f32 %v6670_v57, %v7973_v62  ;;  %v7974_v32 = vld [vmem:[#allocation10_spill] sm:$0xff] }
 0x3e0   :  { %7968 = vst [vmem:[#allocation16_spill] sm:$0xff] %v6891_v13  ;;  %v6911_v0 = vmul.f32 %v6670_v57, %v7974_v32  ;;  %v7975_v13 = vld [vmem:[#allocation49_spill] sm:$0xff]  ;;  %v6931_v32 = vmul.f32 %v6670_v57, %v6300_v58  ;;  %v6951_v58 = vadd.f32 %v6875_v40, %v6690_v15  ;;  %v6975_v15 = vadd.f32 %v6875_v40, %v6714_v47 }
 0x3e1   :  { %7969 = vst [vmem:[#allocation18_spill] sm:$0xff] %v6895_v51  ;;  %v6915_v22 = vmul.f32 %v6670_v57, %v7975_v13  ;;  %v7976_v51 = vld [vmem:[#allocation13_spill] sm:$0xff]  ;;  %v6935_v13 = vadd.f32 %v6875_v40, %v6674_v45  ;;  %v6959_v45 = vadd.f32 %v6875_v40, %v6698_v56  ;;  %v6983_v56 = vadd.f32 %v6875_v40, %v6722_v25 }
 0x3e2   :  { %7971 = vst [vmem:[#allocation20_spill] sm:$0xff] %v6899_v33  ;;  %v6919_v17 = vmul.f32 %v6670_v57, %v7976_v51  ;;  %v7977_v33 = vld [vmem:[#allocation15_spill] sm:$0xff]  ;;  %v6939_v51 = vadd.f32 %v6875_v40, %v6678_v14  ;;  %v6963_v14 = vadd.f32 %v6875_v40, %v6702_v16  ;;  %v6987_v16 = vadd.f32 %v6875_v40, %v6726_v29 }
 0x3e3   :  { %7972 = vst [vmem:[#allocation22_spill] sm:$0xff] %v6903_v31  ;;  %v6923_v21 = vmul.f32 %v6670_v57, %v7977_v33  ;;  %v7978_v31 = vld [vmem:[#allocation17_spill] sm:$0xff]  ;;  %v6943_v33 = vadd.f32 %v6875_v40, %v6682_v41  ;;  %v6967_v41 = vadd.f32 %v6875_v40, %v6706_v28  ;;  %v6991_v28 = vadd.f32 %v6875_v40, %v6730_v19 }
 0x3e4   :  { %v6927_v62 = vmul.f32 %v6670_v57, %v7978_v31  ;;  %v6947_v31 = vadd.f32 %v6875_v40, %v6686_v52  ;;  %v6955_v57 = vadd.f32 %v6875_v40, %v6694_v44  ;;  %v6971_v52 = vadd.f32 %v6875_v40, %v6710_v8 }
 0x3e5   :  { %v6979_v44 = vadd.f32 %v6875_v40, %v6718_v6  ;;  %v6995_v8 = vadd.f32 %v6875_v40, %v6734_v1  ;;  %v6999_v47 = vadd.f32 %v6875_v40, %v6738_v7  ;;  %v7003_v6 = vadd.f32 %v6875_v40, %v6742_v27 }
 0x3e6   :  { %v7007_v25 = vadd.f32 %v6875_v40, %v6746_v53  ;;  %v7011_v29 = vadd.f32 %v6875_v40, %v6750_v61  ;;  %v7015_v19 = vadd.f32 %v6875_v40, %v6754_v2  ;;  %v7019_v1 = vadd.f32 %v6875_v40, %v6758_v24 }
 0x3e7   :  { %v7023_v7 = vadd.f32 %v6875_v40, %v6762_v3  ;;  %v7027_v27 = vadd.f32 %v6875_v40, %v6766_v37  ;;  %v7031_v53 = vadd.f32 %v6875_v40, %v6770_v42  ;;  %v7035_v61 = vadd.f32 %v6875_v40, %v6774_v50 }
 0x3e8   :  { %v7039_v2 = vadd.f32 %v6875_v40, %v6778_v34  ;;  %v7043_v24 = vadd.f32 %v6875_v40, %v6782_v54  ;;  %v7047_v3 = vadd.f32 %v6875_v40, %v6786_v20  ;;  %v7051_v37 = vadd.f32 %v6875_v40, %v6790_v38 }
 0x3e9   :  { %v7055_v42 = vadd.f32 %v6875_v40, %v6794_v39  ;;  %v7059_v50 = vadd.f32 %v6875_v40, %v6798_v30  ;;  %v7063_v34 = vadd.f32 %v6875_v40, %v6802_v9  ;;  %v7067_v54 = vadd.f32 %v6875_v40, %v6806_v63 }
 0x3ea   :  { %v7071_v20 = vadd.f32 %v6875_v40, %v6810_v49  ;;  %v7075_v38 = vadd.f32 %v6875_v40, %v6814_v11  ;;  %v7079_v39 = vadd.f32 %v6875_v40, %v6818_v26  ;;  %v7083_v30 = vadd.f32 %v6875_v40, %v6822_v18 }
 0x3eb   :  { %v7087_v9 = vadd.f32 %v6875_v40, %v6826_v48  ;;  %v7091_v63 = vadd.f32 %v6875_v40, %v6830_v4  ;;  %v7095_v49 = vadd.f32 %v6875_v40, %v6834_v43  ;;  %v7099_v11 = vadd.f32 %v6875_v40, %v6838_v5 }
 0x3ec   :  { %v7103_v26 = vadd.f32 %v6875_v40, %v6842_v60  ;;  %v7107_v18 = vadd.f32 %v6875_v40, %v6846_v36  ;;  %v7111_v48 = vadd.f32 %v6875_v40, %v6850_v55  ;;  %v7115_v4 = vadd.f32 %v6875_v40, %v6854_v46  ;;  %v7983_v36 = vld [vmem:[#allocation11_spill] sm:$0xff] }
 0x3ed   :  { %v7119_v43 = vadd.f32 %v6875_v40, %v6858_v12  ;;  %v7123_v5 = vadd.f32 %v6875_v40, %v6862_v59  ;;  %v7127_v60 = vadd.f32 %v6875_v40, %v6866_v35  ;;  %v7131_v55 = vadd.f32 %v6875_v40, %v7983_v36 }
 0x3ee   :  { %7979 = vst [vmem:[#allocation24_spill] sm:$0xff] %v7115_v4  ;;  %v7135_v46 = vadd.f32 %v6875_v40, %v6879_v23  ;;  %v7986_v4 = vld [vmem:[#allocation12_spill] sm:$0xff]  ;;  %vm3487_vm6 = vcmp.ge.f32.partialorder %v6935_v13, 0.0  ;;  %vm3488_vm7 = vcmp.ge.f32.partialorder %v6939_v51, 0.0  ;;  %vm3489_vm8 = vcmp.ge.f32.partialorder %v6943_v33, 0.0 }
 0x3ef   :  { %7980 = vst [vmem:[#allocation26_spill] sm:$0xff] %v7119_v43  ;;  %v7139_v12 = vadd.f32 %v6875_v40, %v7986_v4  ;;  %v7988_v43 = vld [vmem:[#allocation14_spill] sm:$0xff]  ;;  %vm3490_vm9 = vcmp.ge.f32.partialorder %v6947_v31, 0.0  ;;  %vm3491_vm10 = vcmp.ge.f32.partialorder %v6951_v58, 0.0  ;;  %vm3492_vm11 = vcmp.ge.f32.partialorder %v6955_v57, 0.0 }
 0x3f0   :  { %7981 = vst [vmem:[#allocation28_spill] sm:$0xff] %v7123_v5  ;;  %v7143_v59 = vadd.f32 %v6875_v40, %v7988_v43  ;;  %v7990_v5 = vld [vmem:[#allocation16_spill] sm:$0xff]  ;;  %v7163_v43 = vadd.f32 %v6875_v40, %v6907_v10  ;;  %vm3493_vm12 = vcmp.ge.f32.partialorder %v6959_v45, 0.0  ;;  %v3551_v10 = vmul.f32 0.2, %v6935_v13 }
 0x3f1   :  { %7982 = vst [vmem:[#allocation30_spill] sm:$0xff] %v7127_v60  ;;  %v7147_v35 = vadd.f32 %v6875_v40, %v7990_v5  ;;  %v7992_v60 = vld [vmem:[#allocation18_spill] sm:$0xff]  ;;  %v7167_v5 = vadd.f32 %v6875_v40, %v6911_v0  ;;  %vm3494_vm13 = vcmp.ge.f32.partialorder %v6963_v14, 0.0  ;;  %vm3495_vm14 = vcmp.ge.f32.partialorder %v6967_v41, 0.0 }
 0x3f2   :  { %7984 = vst [vmem:[#allocation32_spill] sm:$0xff] %v7131_v55  ;;  %v7151_v36 = vadd.f32 %v6875_v40, %v7992_v60  ;;  %v7994_v55 = vld [vmem:[#allocation20_spill] sm:$0xff]  ;;  %v7171_v60 = vadd.f32 %v6875_v40, %v6915_v22  ;;  %v3552_v0 = vmul.f32 0.2, %v6939_v51  ;;  %v3553_v22 = vmul.f32 0.2, %v6943_v33 }
 0x3f3   :  { %7985 = vst [vmem:[#allocation34_spill] sm:$0xff] %v7135_v46  ;;  %v7155_v23 = vadd.f32 %v6875_v40, %v7994_v55  ;;  %v7996_v46 = vld [vmem:[#allocation22_spill] sm:$0xff]  ;;  %v7175_v55 = vadd.f32 %v6875_v40, %v6919_v17  ;;  %v7195_v17 = vadd.f32 %v6875_v40, %v6927_v62  ;;  %vm3496_vm15 = vcmp.ge.f32.partialorder %v6971_v52, 0.0 }
 0x3f4   :  { %7987 = vst [vmem:[#allocation35_spill] sm:$0xff] %v7139_v12  ;;  %v7159_v4 = vadd.f32 %v6875_v40, %v7996_v46  ;;  %v7179_v46 = vadd.f32 %v6875_v40, %v6923_v21  ;;  %v3554_v21 = vmul.f32 0.2, %v6947_v31  ;;  %vm3497_vm0 = vcmp.ge.f32.partialorder %v6975_v15, 0.0 }
 0x3f5   :  { %7989 = vst [vmem:[#allocation36_spill] sm:$0xff] %v7143_v59  ;;  %v3559_v62 = vmul.f32 0.2, %v6967_v41  ;;  %vm3498_vm1 = vcmp.ge.f32.partialorder %v6979_v44, 0.0  ;;  %vm3499_vm2 = vcmp.ge.f32.partialorder %v6983_v56, 0.0  ;;  %vm3500_vm3 = vcmp.ge.f32.partialorder %v6987_v16, 0.0 }
 0x3f6   :  { %7991 = vst [vmem:[#allocation37_spill] sm:$0xff] %v7147_v35  ;;  %v7236_v35 = vsel %vm3488_vm7, %v6939_v51, %v3552_v0  ;;  %vm3501_vm4 = vcmp.ge.f32.partialorder %v6991_v28, 0.0  ;;  %vm3502_vm5 = vcmp.ge.f32.partialorder %v6995_v8, 0.0  ;;  %v7247_v59 = vmul.f32 0.2, %v7003_v6 }
 0x3f7   :  { %7993 = vst [vmem:[#allocation38_spill] sm:$0xff] %v7151_v36  ;;  %v7231_v36 = vmul.f32 0.2, %v6991_v28  ;;  %v7252_v12 = vsel %vm3489_vm8, %v6943_v33, %v3553_v22  ;;  %vm3504_vm7 = vcmp.ge.f32.partialorder %v7003_v6, 0.0  ;;  %v7257_v51 = vmul.f32 0.2, %v7007_v25 }
 0x3f8   :  { %7995 = vst [vmem:[#allocation39_spill] sm:$0xff] %v7155_v23  ;;  %v7215_v23 = vmul.f32 0.2, %v6979_v44  ;;  %v7260_v0 = vmul.f32 0.2, %v7011_v29  ;;  %vm3508_vm8 = vcmp.ge.f32.partialorder %v7019_v1, 0.0 }
 0x3f9   :  { %7997 = vst [vmem:[#allocation40_spill] sm:$0xff] %v7159_v4  ;;  %v7212_v4 = vmul.f32 0.2, %v6975_v15  ;;  %v7273_v33 = vmul.f32 0.2, %v7019_v1 }
 0x3fa   :  { %7998 = vst [vmem:[#allocation41_spill] sm:$0xff] %v7163_v43  ;;  %v3558_v43 = vmul.f32 0.2, %v6963_v14  ;;  %v7276_v22 = vmul.f32 0.2, %v7023_v7 }
 0x3fb   :  { %7999 = vst [vmem:[#allocation42_spill] sm:$0xff] %v7167_v5  ;;  %v3557_v5 = vmul.f32 0.2, %v6959_v45 }
 0x3fc   :  { %8000 = vst [vmem:[#allocation43_spill] sm:$0xff] %v7171_v60  ;;  %v7203_v60 = vadd.f32 %v6875_v40, %v6931_v32  ;;  %v7220_v40 = vsel %vm3487_vm6, %v6935_v13, %v3551_v10  ;;  %v7225_v32 = vmul.f32 0.2, %v6983_v56  ;;  %v7241_v13 = vmul.f32 0.2, %v6995_v8 }
 0x3fd   :  { %8001 = vst [vmem:[#allocation44_spill] sm:$0xff] %v7175_v55  ;;  %v3556_v55 = vmul.f32 0.2, %v6955_v57  ;;  %v7244_v10 = vmul.f32 0.2, %v6999_v47  ;;  %vm3506_vm6 = vcmp.ge.f32.partialorder %v7011_v29, 0.0 }
 0x3fe   :  { %8002 = vst [vmem:[#allocation45_spill] sm:$0xff] %v7179_v46  ;;  %v3555_v46 = vmul.f32 0.2, %v6951_v58 }
 0x3ff   :  { %8003 = vst [vmem:[#allocation46_spill] sm:$0xff] %v7195_v17  ;;  %v3560_v17 = vmul.f32 0.2, %v6971_v52 }
 0x400   :  { %8004 = vst [vmem:[#allocation47_spill] sm:$0xff] %v7203_v60  ;;  %v7228_v60 = vmul.f32 0.2, %v6987_v16 }
 0x401   :  { %8005 = vst [vmem:[#allocation48_spill] sm:$0xff] %v7244_v10  ;;  %v7263_v10 = vmul.f32 0.2, %v7015_v19 }
 0x402   :  { %8006 = vst [vmem:[#allocation50_spill] sm:$0xff] %v7247_v59  ;;  %v7268_v59 = vsel %vm3490_vm9, %v6947_v31, %v3554_v21  ;;  %v7289_v31 = vmul.f32 0.2, %v7031_v53  ;;  %v7292_v21 = vmul.f32 0.2, %v7035_v61  ;;  %vm3520_vm9 = vcmp.ge.f32.partialorder %v7067_v54, 0.0 }
 0x403   :  { %8007 = vst [vmem:[#allocation19_spill] sm:$0xff] %v7260_v0  ;;  %v7279_v0 = vmul.f32 0.2, %v7027_v27 }
 0x404   :  { %8008 = vst [vmem:[#allocation21_spill] sm:$0xff] %v7263_v10  ;;  %v7284_v10 = vsel %vm3491_vm10, %v6951_v58, %v3555_v46  ;;  %v7305_v58 = vmul.f32 0.2, %v7043_v24  ;;  %v7308_v46 = vmul.f32 0.2, %v7047_v3  ;;  %vm3515_vm10 = vcmp.ge.f32.partialorder %v7047_v3, 0.0 }
 0x405   :  { %8009 = vst [vmem:[#allocation23_spill] sm:$0xff] %v7276_v22  ;;  %v7295_v22 = vmul.f32 0.2, %v7039_v2 }
 0x406   :  { %8010 = vst [vmem:[#allocation25_spill] sm:$0xff] %v7279_v0  ;;  %v7300_v0 = vsel %vm3492_vm11, %v6955_v57, %v3556_v55  ;;  %vm3511_vm11 = vcmp.ge.f32.partialorder %v7031_v53, 0.0  ;;  %v7321_v57 = vmul.f32 0.2, %v7055_v42  ;;  %v7324_v55 = vmul.f32 0.2, %v7059_v50 }
 0x407   :  { %8011 = vst [vmem:[#allocation27_spill] sm:$0xff] %v7292_v21  ;;  %v7311_v21 = vmul.f32 0.2, %v7051_v37 }
 0x408   :  { %8012 = vst [vmem:[#allocation29_spill] sm:$0xff] %v7295_v22  ;;  %v7316_v22 = vsel %vm3493_vm12, %v6959_v45, %v3557_v5  ;;  %vm3513_vm12 = vcmp.ge.f32.partialorder %v7039_v2, 0.0  ;;  %v7335_v45 = vmul.f32 0.2, %v7067_v54  ;;  %v7338_v5 = vmul.f32 0.2, %v7071_v20 }
 0x409   :  { %8013 = vst [vmem:[#allocation31_spill] sm:$0xff] %v7308_v46  ;;  %v7327_v46 = vmul.f32 0.2, %v7063_v34 }
 0x40a   :  { %8014 = vst [vmem:[#allocation33_spill] sm:$0xff] %v7311_v21  ;;  %v3622_v21 = vsel %vm3494_vm13, %v6963_v14, %v3558_v43  ;;  %vm3516_vm13 = vcmp.ge.f32.partialorder %v7051_v37, 0.0  ;;  %v7349_v14 = vmul.f32 0.2, %v7079_v39  ;;  %v7352_v43 = vmul.f32 0.2, %v7083_v30 }
 0x40b   :  { %8015 = vst [vmem:[#allocation3_spill] sm:$0xff] %v7321_v57  ;;  %v7341_v57 = vmul.f32 0.2, %v7075_v38 }
 0x40c   :  { %8016 = vst [vmem:[#allocation4_spill] sm:$0xff] %v7327_v46  ;;  %v3623_v46 = vsel %vm3495_vm14, %v6967_v41, %v3559_v62  ;;  %vm3518_vm14 = vcmp.ge.f32.partialorder %v7059_v50, 0.0  ;;  %v7363_v41 = vmul.f32 0.2, %v7091_v63  ;;  %v7366_v62 = vmul.f32 0.2, %v7095_v49 }
 0x40d   :  { %8017 = vst [vmem:[#allocation5_spill] sm:$0xff] %v7335_v45  ;;  %v7355_v45 = vmul.f32 0.2, %v7087_v9 }
 0x40e   :  { %8018 = vst [vmem:[#allocation6_spill] sm:$0xff] %v7341_v57  ;;  %v3624_v57 = vsel %vm3496_vm15, %v6971_v52, %v3560_v17  ;;  %v7378_v52 = vmul.f32 0.2, %v7103_v26  ;;  %v3626_v17 = vsel %vm3498_vm1, %v6979_v44, %v7215_v23  ;;  %vm3522_vm15 = vcmp.ge.f32.partialorder %v7075_v38, 0.0 }
 0x40f   :  { %8019 = vst [vmem:[#allocation7_spill] sm:$0xff] %v7349_v14  ;;  %v7369_v14 = vmul.f32 0.2, %v7099_v11  ;;  %v3628_v44 = vsel %vm3500_vm3, %v6987_v16, %v7228_v60  ;;  %v4929_v23 = vpack.c.bf16 %v3622_v21, %v7316_v22  ;;  %vm3523_vm1 = vcmp.ge.f32.partialorder %v7079_v39, 0.0  ;;  %v8023_v60 = vld [vmem:[#allocation48_spill] sm:$0xff]  ;;  %v8029_v22 = vld [vmem:[#allocation26_spill] sm:$0xff] }
 0x410   :  { %8020 = vst [vmem:[#allocation8_spill] sm:$0xff] %v7355_v45  ;;  %v3625_v45 = vsel %vm3497_vm0, %v6975_v15, %v7212_v4  ;;  %v3627_v15 = vsel %vm3499_vm2, %v6983_v56, %v7225_v32  ;;  %vm3524_vm0 = vcmp.ge.f32.partialorder %v7083_v30, 0.0  ;;  %v3629_v56 = vsel %vm3501_vm4, %v6991_v28, %v7231_v36  ;;  %v8025_v36 = vld [vmem:[#allocation50_spill] sm:$0xff]  ;;  %v8026_v32 = vld [vmem:[#allocation24_spill] sm:$0xff] }
 0x411   :  { %8021 = vst [vmem:[#allocation9_spill] sm:$0xff] %v7366_v62  ;;  %v4919_v62 = vpack.c.bf16 %v7268_v59, %v7252_v12  ;;  %v7404_v12 = vmul.f32 0.2, %v7107_v18  ;;  %v3630_v16 = vsel %vm3502_vm5, %v6995_v8, %v7241_v13  ;;  %v4934_v59 = vpack.c.bf16 %v3624_v57, %v3623_v46  ;;  %v8030_v46 = vld [vmem:[#allocation21_spill] sm:$0xff]  ;;  %v8032_v57 = vld [vmem:[#allocation28_spill] sm:$0xff] }
 0x412   :  { %8022 = vst [vmem:[#allocation10_spill] sm:$0xff] %v7369_v14  ;;  %v4914_v14 = vpack.c.bf16 %v7236_v35, %v7220_v40  ;;  %v4924_v35 = vpack.c.bf16 %v7300_v0, %v7284_v10  ;;  %vm3525_vm2 = vcmp.ge.f32.partialorder %v7087_v9, 0.0  ;;  %v7420_v4 = vmul.f32 0.2, %v7111_v48  ;;  %v8028_v10 = vld [vmem:[#allocation19_spill] sm:$0xff] }
 0x413   :  { %vm8024_vm4 = vcmp.ge.f32.partialorder %v6999_v47, 0.0  ;;  %v3632_v8 = vsel %vm3504_vm7, %v7003_v6, %v8025_v36  ;;  %5071 = vst [vmem:[%s7751_s4 + $0x8] sm:$0xff] %v4919_v62   ;;  %v4939_v40 = vpack.c.bf16 %v3626_v17, %v3625_v45  ;;  %vm3527_vm5 = vcmp.ge.f32.partialorder %v7095_v49, 0.0  ;;  %v8035_v62 = vld [vmem:[#allocation25_spill] sm:$0xff]  ;;  %v8037_v17 = vld [vmem:[#allocation30_spill] sm:$0xff]  ;;  %v8045_v36 = vld [vmem:[#allocation31_spill] sm:$0xff] }
 0x414   :  { %4915 = vst [vmem:[%s7751_s4] sm:$0xff] %v4914_v14   ;;  %v3631_v28 = vsel %vm8024_vm4, %v6999_v47, %v8023_v60  ;;  %v7436_v13 = vmul.f32 0.2, %v8026_v32  ;;  %vm8027_vm4 = vcmp.ge.f32.partialorder %v7007_v25, 0.0  ;;  %v3634_v6 = vsel %vm3506_vm6, %v7011_v29, %v8028_v10  ;;  %v8033_v14 = vld [vmem:[#allocation23_spill] sm:$0xff] }
 0x415   :  { %v3633_v47 = vsel %vm8027_vm4, %v7007_v25, %v7257_v51  ;;  %5072 = vst [vmem:[%s7751_s4 + $0x10] sm:$0xff] %v4924_v35   ;;  %v4944_v0 = vpack.c.bf16 %v3628_v44, %v3627_v15  ;;  %vm3529_vm7 = vcmp.ge.f32.partialorder %v7103_v26, 0.0  ;;  %v7452_v21 = vmul.f32 0.2, %v8029_v22  ;;  %v8038_v44 = vld [vmem:[#allocation27_spill] sm:$0xff] }
 0x416   :  { %vm8031_vm4 = vcmp.ge.f32.partialorder %v7015_v19, 0.0  ;;  %v3636_v29 = vsel %vm3508_vm8, %v7019_v1, %v7273_v33  ;;  %5073 = vst [vmem:[%s7751_s4 + $0x18] sm:$0xff] %v4929_v23   ;;  %v4949_v51 = vpack.c.bf16 %v3630_v16, %v3629_v56  ;;  %v7468_v45 = vmul.f32 0.2, %v8032_v57  ;;  %v8040_v23 = vld [vmem:[#allocation32_spill] sm:$0xff]  ;;  %v8041_v16 = vld [vmem:[#allocation29_spill] sm:$0xff] }
 0x417   :  { %v3635_v25 = vsel %vm8031_vm4, %v7015_v19, %v8030_v46  ;;  %vm8034_vm4 = vcmp.ge.f32.partialorder %v7023_v7, 0.0  ;;  %vm8036_vm8 = vcmp.ge.f32.partialorder %v7027_v27, 0.0  ;;  %5074 = vst [vmem:[%s7751_s4 + $0x20] sm:$0xff] %v4934_v59   ;;  %v4954_v33 = vpack.c.bf16 %v3632_v8, %v3631_v28  ;;  %v8043_v59 = vld [vmem:[#allocation34_spill] sm:$0xff]  ;;  %v8044_v60 = vld [vmem:[#allocation35_spill] sm:$0xff]  ;;  %v8046_v8 = vld [vmem:[#allocation33_spill] sm:$0xff] }
 0x418   :  { %v3637_v19 = vsel %vm8034_vm4, %v7023_v7, %v8033_v14  ;;  %v3638_v1 = vsel %vm8036_vm8, %v7027_v27, %v8035_v62  ;;  %vm3533_vm3 = vcmp.ge.f32.partialorder %v8029_v22, 0.0  ;;  %v7484_v15 = vmul.f32 0.2, %v8037_v17  ;;  %5075 = vst [vmem:[%s7751_s4 + $0x28] sm:$0xff] %v4939_v40   ;;  %v8047_v40 = vld [vmem:[#allocation36_spill] sm:$0xff]  ;;  %v8051_v46 = vld [vmem:[#allocation38_spill] sm:$0xff] }
 0x419   :  { %v3639_v7 = vsel %vm3511_vm11, %v7031_v53, %v7289_v31  ;;  %vm8039_vm4 = vcmp.ge.f32.partialorder %v7035_v61, 0.0  ;;  %v4959_v35 = vpack.c.bf16 %v3634_v6, %v3633_v47  ;;  %vm3535_vm8 = vcmp.ge.f32.partialorder %v8037_v17, 0.0  ;;  %5076 = vst [vmem:[%s7751_s4 + $0x30] sm:$0xff] %v4944_v0   ;;  %v8048_v47 = vld [vmem:[#allocation37_spill] sm:$0xff]  ;;  %v8049_v6 = vld [vmem:[#allocation3_spill] sm:$0xff] }
 0x41a   :  { %v3640_v27 = vsel %vm8039_vm4, %v7035_v61, %v8038_v44  ;;  %v7500_v56 = vmul.f32 0.2, %v8040_v23  ;;  %v3641_v53 = vsel %vm3513_vm12, %v7039_v2, %v8041_v16  ;;  %vm8042_vm11 = vcmp.ge.f32.partialorder %v7043_v24, 0.0  ;;  %5077 = vst [vmem:[%s7751_s4 + $0x38] sm:$0xff] %v4949_v51   ;;  %v8053_v51 = vld [vmem:[#allocation4_spill] sm:$0xff]  ;;  %v8055_v14 = vld [vmem:[#allocation5_spill] sm:$0xff] }
 0x41b   :  { %v3642_v61 = vsel %vm8042_vm11, %v7043_v24, %v7305_v58  ;;  %v4964_v31 = vpack.c.bf16 %v3636_v29, %v3635_v25  ;;  %vm3537_vm4 = vcmp.ge.f32.partialorder %v8043_v59, 0.0  ;;  %vm3538_vm6 = vcmp.ge.f32.partialorder %v8044_v60, 0.0  ;;  %5078 = vst [vmem:[%s7751_s4 + $0x40] sm:$0xff] %v4954_v33   ;;  %v8052_v25 = vld [vmem:[#allocation39_spill] sm:$0xff]  ;;  %v8057_v62 = vld [vmem:[#allocation41_spill] sm:$0xff]  ;;  %v8059_v33 = vld [vmem:[#allocation6_spill] sm:$0xff] }
 0x41c   :  { %v7516_v28 = vmul.f32 0.2, %v8043_v59  ;;  %v3643_v2 = vsel %vm3515_vm10, %v7047_v3, %v8045_v36  ;;  %v3644_v24 = vsel %vm3516_vm13, %v7051_v37, %v8046_v8  ;;  %v4969_v58 = vpack.c.bf16 %v3638_v1, %v3637_v19  ;;  %5079 = vst [vmem:[%s7751_s4 + $0x48] sm:$0xff] %v4959_v35   ;;  %v8056_v19 = vld [vmem:[#allocation40_spill] sm:$0xff]  ;;  %v8060_v44 = vld [vmem:[#allocation42_spill] sm:$0xff]  ;;  %v8062_v16 = vld [vmem:[#allocation7_spill] sm:$0xff] }
 0x41d   :  { %vm3539_vm12 = vcmp.ge.f32.partialorder %v8047_v40, 0.0  ;;  %v3602_v10 = vmul.f32 0.2, %v8044_v60  ;;  %vm8050_vm10 = vcmp.ge.f32.partialorder %v7055_v42, 0.0  ;;  %v3646_v37 = vsel %vm3518_vm14, %v7059_v50, %v7324_v55  ;;  %5080 = vst [vmem:[%s7751_s4 + $0x50] sm:$0xff] %v4964_v31   ;;  %v8065_v36 = vld [vmem:[#allocation8_spill] sm:$0xff] }
 0x41e   :  { %v3645_v3 = vsel %vm8050_vm10, %v7055_v42, %v8049_v6  ;;  %v4974_v0 = vpack.c.bf16 %v3640_v27, %v3639_v7  ;;  %vm3541_vm13 = vcmp.ge.f32.partialorder %v8051_v46, 0.0  ;;  %v3603_v29 = vmul.f32 0.2, %v8047_v40  ;;  %v8061_v27 = vld [vmem:[#allocation43_spill] sm:$0xff]  ;;  %5081 = vst [vmem:[%s7751_s4 + $0x58] sm:$0xff] %v4969_v58  }
 0x41f   :  { %vm8054_vm10 = vcmp.ge.f32.partialorder %v7063_v34, 0.0  ;;  %v3648_v50 = vsel %vm3520_vm9, %v7067_v54, %v8055_v14  ;;  %v4979_v55 = vpack.c.bf16 %v3642_v61, %v3641_v53  ;;  %vm3543_vm14 = vcmp.ge.f32.partialorder %v8056_v19, 0.0  ;;  %v8063_v53 = vld [vmem:[#allocation44_spill] sm:$0xff]  ;;  %v8064_v61 = vld [vmem:[#allocation45_spill] sm:$0xff] }
 0x420   :  { %v3647_v42 = vsel %vm8054_vm10, %v7063_v34, %v8053_v51  ;;  %v3604_v1 = vmul.f32 0.2, %v8048_v47  ;;  %vm8058_vm10 = vcmp.ge.f32.partialorder %v7071_v20, 0.0  ;;  %v3650_v54 = vsel %vm3522_vm15, %v7075_v38, %v8059_v33  ;;  %5082 = vst [vmem:[%s7751_s4 + $0x60] sm:$0xff] %v4974_v0  }
 0x421   :  { %v3649_v34 = vsel %vm8058_vm10, %v7071_v20, %v7338_v5  ;;  %v4984_v7 = vpack.c.bf16 %v3644_v24, %v3643_v2  ;;  %vm3545_vm9 = vcmp.ge.f32.partialorder %v8060_v44, 0.0  ;;  %vm3546_vm11 = vcmp.ge.f32.partialorder %v8061_v27, 0.0  ;;  %v8067_v2 = vld [vmem:[#allocation46_spill] sm:$0xff]  ;;  %v8068_v24 = vld [vmem:[#allocation9_spill] sm:$0xff]  ;;  %5083 = vst [vmem:[%s7751_s4 + $0x68] sm:$0xff] %v4979_v55  }
 0x422   :  { %v3605_v35 = vmul.f32 0.2, %v8051_v46  ;;  %v3651_v20 = vsel %vm3523_vm1, %v7079_v39, %v8062_v16  ;;  %v3652_v38 = vsel %vm3524_vm0, %v7083_v30, %v7352_v43  ;;  %v4989_v5 = vpack.c.bf16 %v3646_v37, %v3645_v3 }
 0x423   :  { %vm3547_vm15 = vcmp.ge.f32.partialorder %v8063_v53, 0.0  ;;  %vm3548_vm10 = vcmp.ge.f32.partialorder %v8064_v61, 0.0  ;;  %v3606_v31 = vmul.f32 0.2, %v8052_v25  ;;  %v3653_v39 = vsel %vm3525_vm2, %v7087_v9, %v8065_v36  ;;  %v8069_v9 = vld [vmem:[#allocation10_spill] sm:$0xff]  ;;  %5084 = vst [vmem:[%s7751_s4 + $0x70] sm:$0xff] %v4984_v7  }
 0x424   :  { %vm8066_vm0 = vcmp.ge.f32.partialorder %v7091_v63, 0.0  ;;  %v4994_v43 = vpack.c.bf16 %v3648_v50, %v3647_v42  ;;  %vm3549_vm1 = vcmp.ge.f32.partialorder %v8067_v2, 0.0  ;;  %v3607_v8 = vmul.f32 0.2, %v8056_v19  ;;  %5085 = vst [vmem:[%s7751_s4 + $0x78] sm:$0xff] %v4989_v5  }
 0x425   :  { %v3654_v30 = vsel %vm8066_vm0, %v7091_v63, %v7363_v41  ;;  %v3655_v58 = vsel %vm3527_vm5, %v7095_v49, %v8068_v24  ;;  %vm8070_vm2 = vcmp.ge.f32.partialorder %v7099_v11, 0.0  ;;  %v4999_v63 = vpack.c.bf16 %v3650_v54, %v3649_v34 }
 0x426   :  { %v3656_v6 = vsel %vm8070_vm2, %v7099_v11, %v8069_v9  ;;  %v3608_v41 = vmul.f32 0.2, %v8057_v62  ;;  %v3657_v3 = vsel %vm3529_vm7, %v7103_v26, %v7378_v52  ;;  %vm8071_vm5 = vcmp.ge.f32.partialorder %v7107_v18, 0.0  ;;  %5086 = vst [vmem:[%s7751_s4 + $0x80] sm:$0xff] %v4994_v43  }
 0x427   :  { %v3658_v49 = vsel %vm8071_vm5, %v7107_v18, %v7404_v12  ;;  %v5004_v11 = vpack.c.bf16 %v3652_v38, %v3651_v20  ;;  %v3609_v37 = vmul.f32 0.2, %v8060_v44  ;;  %vm8072_vm0 = vcmp.ge.f32.partialorder %v7111_v48, 0.0  ;;  %5087 = vst [vmem:[%s7751_s4 + $0x88] sm:$0xff] %v4999_v63  }
 0x428   :  { %v3659_v0 = vsel %vm8072_vm0, %v7111_v48, %v7420_v4  ;;  %vm8073_vm7 = vcmp.ge.f32.partialorder %v8026_v32, 0.0  ;;  %v5009_v18 = vpack.c.bf16 %v3654_v30, %v3653_v39  ;;  %v3610_v52 = vmul.f32 0.2, %v8061_v27 }
 0x429   :  { %v3660_v26 = vsel %vm8073_vm7, %v8026_v32, %v7436_v13  ;;  %v3661_v12 = vsel %vm3533_vm3, %v8029_v22, %v7452_v21  ;;  %vm8074_vm2 = vcmp.ge.f32.partialorder %v8032_v57, 0.0  ;;  %v5014_v4 = vpack.c.bf16 %v3656_v6, %v3655_v58  ;;  %5088 = vst [vmem:[%s7751_s4 + $0x90] sm:$0xff] %v5004_v11  }
 0x42a   :  { %v3662_v48 = vsel %vm8074_vm2, %v8032_v57, %v7468_v45  ;;  %v3611_v32 = vmul.f32 0.2, %v8063_v53  ;;  %v3663_v13 = vsel %vm3535_vm8, %v8037_v17, %v7484_v15  ;;  %vm8075_vm3 = vcmp.ge.f32.partialorder %v8040_v23, 0.0  ;;  %5089 = vst [vmem:[%s7751_s4 + $0x98] sm:$0xff] %v5009_v18  }
 0x42b   :  { %v3664_v22 = vsel %vm8075_vm3, %v8040_v23, %v7500_v56  ;;  %v5019_v21 = vpack.c.bf16 %v3658_v49, %v3657_v3  ;;  %v3612_v57 = vmul.f32 0.2, %v8064_v61  ;;  %v3665_v45 = vsel %vm3537_vm4, %v8043_v59, %v7516_v28  ;;  %5090 = vst [vmem:[%s7751_s4 + $0xa0] sm:$0xff] %v5014_v4  }
 0x42c   :  { %v3666_v17 = vsel %vm3538_vm6, %v8044_v60, %v3602_v10  ;;  %v5024_v15 = vpack.c.bf16 %v3660_v26, %v3659_v0  ;;  %v3613_v23 = vmul.f32 0.2, %v8067_v2  ;;  %v3667_v56 = vsel %vm3539_vm12, %v8047_v40, %v3603_v29  ;;  %v8077_v60 = vld [vmem:[#allocation47_spill] sm:$0xff] }
 0x42d   :  { %vm8076_vm8 = vcmp.ge.f32.partialorder %v8048_v47, 0.0  ;;  %v5029_v59 = vpack.c.bf16 %v3662_v48, %v3661_v12  ;;  %v3614_v28 = vmul.f32 0.2, %v8077_v60  ;;  %v3669_v10 = vsel %vm3541_vm13, %v8051_v46, %v3605_v35  ;;  %5091 = vst [vmem:[%s7751_s4 + $0xa8] sm:$0xff] %v5019_v21  }
 0x42e   :  { %v3668_v51 = vsel %vm8076_vm8, %v8048_v47, %v3604_v1  ;;  %vm8078_vm6 = vcmp.ge.f32.partialorder %v8052_v25, 0.0  ;;  %v5034_v40 = vpack.c.bf16 %v3664_v22, %v3663_v13  ;;  %vm3550_vm4 = vcmp.ge.f32.partialorder %v8077_v60, 0.0  ;;  %5092 = vst [vmem:[%s7751_s4 + $0xb0] sm:$0xff] %v5024_v15  }
 0x42f   :  { %v3670_v42 = vsel %vm8078_vm6, %v8052_v25, %v3606_v31  ;;  %v3671_v47 = vsel %vm3543_vm14, %v8056_v19, %v3607_v8  ;;  %vm8079_vm12 = vcmp.ge.f32.partialorder %v8057_v62, 0.0  ;;  %v5039_v46 = vpack.c.bf16 %v3666_v17, %v3665_v45  ;;  %5093 = vst [vmem:[%s7751_s4 + $0xb8] sm:$0xff] %v5029_v59  }
 0x430   :  { %v3672_v29 = vsel %vm8079_vm12, %v8057_v62, %v3608_v41  ;;  %v3673_v25 = vsel %vm3545_vm9, %v8060_v44, %v3609_v37  ;;  %v3674_v14 = vsel %vm3546_vm11, %v8061_v27, %v3610_v52  ;;  %v5044_v50 = vpack.c.bf16 %v3668_v51, %v3667_v56  ;;  %5094 = vst [vmem:[%s7751_s4 + $0xc0] sm:$0xff] %v5034_v40  }
 0x431   :  { %v3675_v55 = vsel %vm3547_vm15, %v8063_v53, %v3611_v32  ;;  %v3676_v19 = vsel %vm3548_vm10, %v8064_v61, %v3612_v57  ;;  %v5049_v62 = vpack.c.bf16 %v3670_v42, %v3669_v10  ;;  %v3677_v1 = vsel %vm3549_vm1, %v8067_v2, %v3613_v23  ;;  %5095 = vst [vmem:[%s7751_s4 + $0xc8] sm:$0xff] %v5039_v46  }
 0x432   :  { %v3678_v34 = vsel %vm3550_vm4, %v8077_v60, %v3614_v28  ;;  %v5054_v33 = vpack.c.bf16 %v3672_v29, %v3671_v47  ;;  %v5059_v54 = vpack.c.bf16 %v3674_v14, %v3673_v25  ;;  %5096 = vst [vmem:[%s7751_s4 + $0xd0] sm:$0xff] %v5044_v50   ;;  %v5064_v7 = vpack.c.bf16 %v3676_v19, %v3675_v55 }
 0x433   :  { %5097 = vst [vmem:[%s7751_s4 + $0xd8] sm:$0xff] %v5049_v62   ;;  %v5069_v44 = vpack.c.bf16 %v3678_v34, %v3677_v1 }
 0x434   :  { %5098 = vst [vmem:[%s7751_s4 + $0xe0] sm:$0xff] %v5054_v33  }
 0x435   :  { %5099 = vst [vmem:[%s7751_s4 + $0xe8] sm:$0xff] %v5059_v54  }
 0x436   :  { %5100 = vst [vmem:[%s7751_s4 + $0xf0] sm:$0xff] %v5064_v7  }
 0x437   :  { %5101 = vst [vmem:[%s7751_s4 + $0xf8] sm:$0xff] %v5069_v44  }

// kernel: discriminator_forward.7
= control target key start
LH: loop header
LB: loop body
LE: loop exit
PB: predicated region body
PF: predicated region fallthrough
CT: control target
= control target key end

     0   :  { %vm105_vm0 = vcmask 654336   ;;  %s2580_s1 = inlined_call_operand.vmem [shape: bf16[5,80,128], index: 1, kind: input, shape index: {}]   ;;  %s2581_s0 = inlined_call_operand.vmem [shape: bf16[320,80], index: 0, kind: input, shape index: {}]   ;;  %s2582_s3 = inlined_call_operand.vmem [shape: f32[1,128], index: 3, kind: input, shape index: {}]   ;;  %s2583_s2 = inlined_call_operand.vmem [shape: f32[1,128], index: 2, kind: input, shape index: {}]   ;;  %s2584_s4 = inlined_call_operand.vmem [shape: bf16[128,128], index: 4, kind: output, shape index: {}]  }
   0x1   :  { %v1909_v0 = vld [vmem:[%s2580_s1 + $0x48] sm:$0xff]  ;;  %v1900_v1 = vld [vmem:[%s2580_s1 + $0x20] sm:$0xff]  ;;  %v1899_v3 = vld [vmem:[%s2580_s1 + $0x18] sm:$0xff] }
   0x2   :  { %2029 = vmatpush.bf16.msra.mxu2 %v1909_v0  ;;  %2034 = vmatpush.bf16.msra.mxu3 %v1900_v1  ;;  %v1908_v2 = vld [vmem:[%s2580_s1 + $0x40] sm:$0xff]  ;;  %v1907_v4 = vld [vmem:[%s2580_s1 + $0x38] sm:$0xff]  ;;  %v1898_v5 = vld [vmem:[%s2580_s1 + $0x10] sm:$0xff] }
   0x3   :  { %121 = vmatpush.bf16.msra.mxu0 %v1909_v0  ;;  %212 = vmatpush.bf16.msra.mxu1 %v1900_v1  ;;  %v1906_v6 = vld [vmem:[%s2580_s1 + $0x30] sm:$0xff]  ;;  %v1897_v7 = vld [vmem:[%s2580_s1 + $0x8] sm:$0xff]  ;;  %v1896_v9 = vld [vmem:[%s2580_s1] sm:$0xff] }
   0x4   :  { %v1905_v8 = vld [vmem:[%s2580_s1 + $0x28] sm:$0xff]  ;;  %v1918_v10 = vld [vmem:[%s2580_s1 + $0x70] sm:$0xff]  ;;  %v1927_v11 = vld [vmem:[%s2580_s1 + $0x98] sm:$0xff] }
   0x5   :  { %v1903_v12 = vld [vmem:[%s2581_s0 + $0x38] sm:$0xff]  ;;  %v1894_v13 = vld [vmem:[%s2581_s0 + $0x10] sm:$0xff]  ;;  %v1901_v14 = vld [vmem:[%s2581_s0 + $0x28] sm:$0xff] }
   0x6   :  { %2030 = vmatpush.bf16.msra.mxu2 %v1908_v2  ;;  %2035 = vmatpush.bf16.msra.mxu3 %v1899_v3  ;;  %v1892_v15 = vld [vmem:[%s2581_s0] sm:$0xff]  ;;  %v1954_v17 = vld [vmem:[%s2580_s1 + $0x48] sm:$0xff]  ;;  %v1926_v19 = vld [vmem:[%s2580_s1 + $0x90] sm:$0xff] }
   0x7   :  { %122 = vmatpush.bf16.msra.mxu0 %v1908_v2  ;;  %213 = vmatpush.bf16.msra.mxu1 %v1899_v3  ;;  %v1936_v16 = vld [vmem:[%s2580_s1 + $0xc0] sm:$0xff]  ;;  %v1917_v18 = vld [vmem:[%s2580_s1 + $0x68] sm:$0xff]  ;;  %v1935_v20 = vld [vmem:[%s2580_s1 + $0xb8] sm:$0xff] }
   0x8   :  { %v1953_v21 = vld [vmem:[%s2580_s1 + $0x40] sm:$0xff]  ;;  %v1925_v23 = vld [vmem:[%s2580_s1 + $0x88] sm:$0xff]  ;;  %v1934_v24 = vld [vmem:[%s2580_s1 + $0xb0] sm:$0xff] }
   0x9   :  { %v1916_v22 = vld [vmem:[%s2580_s1 + $0x60] sm:$0xff]  ;;  %v1952_v25 = vld [vmem:[%s2580_s1 + $0x38] sm:$0xff]  ;;  %v1933_v28 = vld [vmem:[%s2580_s1 + $0xa8] sm:$0xff] }
   0xa   :  { %2031 = vmatpush.bf16.msra.mxu2 %v1907_v4  ;;  %2036 = vmatpush.bf16.msra.mxu3 %v1898_v5  ;;  %v1915_v26 = vld [vmem:[%s2580_s1 + $0x58] sm:$0xff]  ;;  %v1924_v27 = vld [vmem:[%s2580_s1 + $0x80] sm:$0xff]  ;;  %v1951_v29 = vld [vmem:[%s2580_s1 + $0x30] sm:$0xff] }
   0xb   :  { %123 = vmatpush.bf16.msra.mxu0 %v1907_v4  ;;  %214 = vmatpush.bf16.msra.mxu1 %v1898_v5  ;;  %v1914_v30 = vld [vmem:[%s2580_s1 + $0x50] sm:$0xff]  ;;  %v1923_v31 = vld [vmem:[%s2580_s1 + $0x78] sm:$0xff]  ;;  %v1904_v32 = vld [vmem:[%s2581_s0 + $0x40] sm:$0xff] }
   0xc   :  { %v1895_v33 = vld [vmem:[%s2581_s0 + $0x18] sm:$0xff]  ;;  %v1902_v34 = vld [vmem:[%s2581_s0 + $0x30] sm:$0xff]  ;;  %v1893_v35 = vld [vmem:[%s2581_s0 + $0x8] sm:$0xff] }
   0xd   :  { %v1932_v36 = vld [vmem:[%s2580_s1 + $0xa0] sm:$0xff]  ;;  %v1950_v38 = vld [vmem:[%s2580_s1 + $0x28] sm:$0xff]  ;;  %v1963_v39 = vld [vmem:[%s2580_s1 + $0x70] sm:$0xff] }
   0xe   :  { %2032 = vmatpush.bf16.msra.mxu2 %v1906_v6  ;;  %2037 = vmatpush.bf16.msra.mxu3 %v1897_v7  ;;  %v1945_v37 = vld [vmem:[%s2580_s1 + $0x20] sm:$0xff]  ;;  %v1972_v40 = vld [vmem:[%s2580_s1 + $0x98] sm:$0xff]  ;;  %v1962_v43 = vld [vmem:[%s2580_s1 + $0x68] sm:$0xff] }
   0xf   :  { %124 = vmatpush.bf16.msra.mxu0 %v1906_v6  ;;  %215 = vmatpush.bf16.msra.mxu1 %v1897_v7  ;;  %v1981_v41 = vld [vmem:[%s2580_s1 + $0xc0] sm:$0xff]  ;;  %v1944_v42 = vld [vmem:[%s2580_s1 + $0x18] sm:$0xff]  ;;  %v1971_v44 = vld [vmem:[%s2580_s1 + $0x90] sm:$0xff] }
  0x10   :  { %v1980_v45 = vld [vmem:[%s2580_s1 + $0xb8] sm:$0xff]  ;;  %v1943_v46 = vld [vmem:[%s2580_s1 + $0x10] sm:$0xff]  ;;  %v1961_v47 = vld [vmem:[%s2580_s1 + $0x60] sm:$0xff] }
  0x11   :  { %v1910_v48 = vld [vmem:[%s2581_s0 + $0x4] sm:$0xff]  ;;  %v1919_v49 = vld [vmem:[%s2581_s0 + $0x2c] sm:$0xff]  ;;  %v1946_v51 = vld [vmem:[%s2581_s0 + $0x78] sm:$0xff] }
  0x12   :  { %2033 = vmatpush.bf16.msra.mxu2 %v1905_v8  ;;  %2038 = vmatpush.bf16.msra.mxu3 %v1896_v9  ;;  %v1928_v50 = vld [vmem:[%s2581_s0 + $0x8] sm:$0xff]  ;;  %v1979_v53 = vld [vmem:[%s2580_s1 + $0xb0] sm:$0xff]  ;;  %v1960_v55 = vld [vmem:[%s2580_s1 + $0x58] sm:$0xff] }
  0x13   :  { %125 = vmatpush.bf16.msra.mxu0 %v1905_v8  ;;  %216 = vmatpush.bf16.msra.mxu1 %v1896_v9  ;;  %v1970_v52 = vld [vmem:[%s2580_s1 + $0x88] sm:$0xff]  ;;  %v1920_v57 = vld [vmem:[%s2581_s0 + $0x34] sm:$0xff]  ;;  %v1947_v59 = vld [vmem:[%s2581_s0 + $0x80] sm:$0xff] }
  0x14   :  { %v1942_v54 = vld [vmem:[%s2580_s1 + $0x8] sm:$0xff]  ;;  %v1929_v58 = vld [vmem:[%s2581_s0 + $0x10] sm:$0xff]  ;;  %v1969_v60 = vld [vmem:[%s2580_s1 + $0x80] sm:$0xff] }
  0x15   :  { %1460 = vmatmul.msk.bf16.vlgmr.msra.gmra.mxu2 %vm105_vm0, %v1903_v12  ;;  %1500 = vmatmul.msk.bf16.vlgmr.msra.gmra.mxu3 %vm105_vm0, %v1894_v13  ;;  %v1911_v56 = vld [vmem:[%s2581_s0 + $0xc] sm:$0xff]  ;;  %v1941_v62 = vld [vmem:[%s2580_s1] sm:$0xff]  ;;  %v1968_v0 = vld [vmem:[%s2580_s1 + $0x78] sm:$0xff] }
  0x16   :  { %322 = vmatpush.bf16.msrb.mxu2 %v1918_v10  ;;  %440 = vmatpush.bf16.msrb.mxu3 %v1927_v11  ;;  %v1978_v61 = vld [vmem:[%s2580_s1 + $0xa8] sm:$0xff]  ;;  %v1959_v63 = vld [vmem:[%s2580_s1 + $0x50] sm:$0xff]  ;;  %v1921_v2 = vld [vmem:[%s2581_s0 + $0x3c] sm:$0xff] }
  0x17   :  { %1458 = vmatmul.msk.bf16.vlgmr.msra.gmra.mxu0 %vm105_vm0, %v1901_v14  ;;  %1498 = vmatmul.msk.bf16.vlgmr.msra.gmra.mxu1 %vm105_vm0, %v1892_v15  ;;  %v1912_v1 = vld [vmem:[%s2581_s0 + $0x14] sm:$0xff]  ;;  %v1948_v4 = vld [vmem:[%s2581_s0 + $0x88] sm:$0xff]  ;;  %v1977_v5 = vld [vmem:[%s2580_s1 + $0xa0] sm:$0xff] }
  0x18   :  { %558 = vmatpush.bf16.msrb.mxu0 %v1936_v16  ;;  %701 = vmatpush.bf16.msrb.mxu1 %v1954_v17  ;;  %v1930_v3 = vld [vmem:[%s2581_s0 + $0x18] sm:$0xff]  ;;  %v1922_v7 = vld [vmem:[%s2581_s0 + $0x44] sm:$0xff]  ;;  %v1949_v9 = vld [vmem:[%s2581_s0 + $0x90] sm:$0xff] }
  0x19   :  { %v1913_v6 = vld [vmem:[%s2581_s0 + $0x1c] sm:$0xff]  ;;  %v1937_v10 = vld [vmem:[%s2581_s0 + $0x50] sm:$0xff]  ;;  %v1965_v16 = vld [vmem:[%s2581_s0 + $0x84] sm:$0xff] }
  0x1a   :  { %323 = vmatpush.bf16.msrb.mxu2 %v1917_v18  ;;  %441 = vmatpush.bf16.msrb.mxu3 %v1926_v19  ;;  %v1931_v8 = vld [vmem:[%s2581_s0 + $0x20] sm:$0xff]  ;;  %v1955_v11 = vld [vmem:[%s2581_s0 + $0x54] sm:$0xff] }
  0x1b   :  { %v1964_v12 = vld [vmem:[%s2581_s0 + $0x7c] sm:$0xff]  ;;  %v1957_v19 = vld [vmem:[%s2581_s0 + $0x64] sm:$0xff] }
  0x1c   :  { %559 = vmatpush.bf16.msrb.mxu0 %v1935_v20  ;;  %702 = vmatpush.bf16.msrb.mxu1 %v1953_v21  ;;  %v1973_v13 = vld [vmem:[%s2581_s0 + $0x58] sm:$0xff]  ;;  %v1974_v17 = vld [vmem:[%s2581_s0 + $0x60] sm:$0xff]  ;;  %v1966_v20 = vld [vmem:[%s2581_s0 + $0x8c] sm:$0xff] }
  0x1d   :  { %v1938_v14 = vld [vmem:[%s2581_s0 + $0x58] sm:$0xff]  ;;  %v1939_v18 = vld [vmem:[%s2581_s0 + $0x60] sm:$0xff]  ;;  %v1975_v21 = vld [vmem:[%s2581_s0 + $0x68] sm:$0xff] }
  0x1e   :  { %324 = vmatpush.bf16.msrb.mxu2 %v1916_v22  ;;  %442 = vmatpush.bf16.msrb.mxu3 %v1925_v23  ;;  %v1956_v15 = vld [vmem:[%s2581_s0 + $0x5c] sm:$0xff] }
  0x20   :  { %560 = vmatpush.bf16.msrb.mxu0 %v1934_v24  ;;  %703 = vmatpush.bf16.msrb.mxu1 %v1952_v25 }
  0x22   :  { %325 = vmatpush.bf16.msrb.mxu2 %v1915_v26  ;;  %443 = vmatpush.bf16.msrb.mxu3 %v1924_v27 }
  0x24   :  { %561 = vmatpush.bf16.msrb.mxu0 %v1933_v28  ;;  %704 = vmatpush.bf16.msrb.mxu1 %v1951_v29 }
  0x25   :  { %1461 = vmatmul.msk.bf16.gmra.mxu2 %vm105_vm0, %v1904_v32  ;;  %1501 = vmatmul.msk.bf16.gmra.mxu3 %vm105_vm0, %v1895_v33 }
  0x26   :  { %326 = vmatpush.bf16.msrb.mxu2 %v1914_v30  ;;  %444 = vmatpush.bf16.msrb.mxu3 %v1923_v31 }
  0x27   :  { %1459 = vmatmul.msk.bf16.gmra.mxu0 %vm105_vm0, %v1902_v34  ;;  %1499 = vmatmul.msk.bf16.gmra.mxu1 %vm105_vm0, %v1893_v35  ;;  %v1940_v34 = vld [vmem:[%s2581_s0 + $0x68] sm:$0xff] }
  0x28   :  { %562 = vmatpush.bf16.msrb.mxu0 %v1932_v36  ;;  %705 = vmatpush.bf16.msrb.mxu1 %v1950_v38  ;;  %v1958_v35 = vld [vmem:[%s2581_s0 + $0x6c] sm:$0xff]  ;;  %v1967_v36 = vld [vmem:[%s2581_s0 + $0x94] sm:$0xff] }
  0x2a   :  { %792 = vmatpush.bf16.msra.mxu2 %v1945_v37  ;;  %901 = vmatpush.bf16.msra.mxu3 %v1963_v39  ;;  %v1976_v37 = vld [vmem:[%s2581_s0 + $0x70] sm:$0xff] }
  0x2c   :  { %1018 = vmatpush.bf16.msra.mxu0 %v1972_v40  ;;  %1135 = vmatpush.bf16.msra.mxu1 %v1981_v41 }
  0x2e   :  { %793 = vmatpush.bf16.msra.mxu2 %v1944_v42  ;;  %902 = vmatpush.bf16.msra.mxu3 %v1962_v43 }
  0x30   :  { %1019 = vmatpush.bf16.msra.mxu0 %v1971_v44  ;;  %1136 = vmatpush.bf16.msra.mxu1 %v1980_v45 }
  0x32   :  { %794 = vmatpush.bf16.msra.mxu2 %v1943_v46  ;;  %903 = vmatpush.bf16.msra.mxu3 %v1961_v47 }
  0x34   :  { %1020 = vmatpush.bf16.msra.mxu0 %v1970_v52  ;;  %1137 = vmatpush.bf16.msra.mxu1 %v1979_v53 }
  0x35   :  { %1548 = vmatmul.msk.bf16.vlgmr.msrb.gmra.mxu2 %vm105_vm0, %v1910_v48  ;;  %1598 = vmatmul.msk.bf16.vlgmr.msrb.gmra.mxu3 %vm105_vm0, %v1919_v49 }
  0x36   :  { %795 = vmatpush.bf16.msra.mxu2 %v1942_v54  ;;  %904 = vmatpush.bf16.msra.mxu3 %v1960_v55 }
  0x37   :  { %1648 = vmatmul.msk.bf16.vlgmr.msrb.gmra.mxu0 %vm105_vm0, %v1928_v50  ;;  %1698 = vmatmul.msk.bf16.vlgmr.msrb.gmra.mxu1 %vm105_vm0, %v1946_v51 }
  0x38   :  { %1021 = vmatpush.bf16.msra.mxu0 %v1969_v60  ;;  %1138 = vmatpush.bf16.msra.mxu1 %v1978_v61 }
  0x3a   :  { %796 = vmatpush.bf16.msra.mxu2 %v1941_v62  ;;  %905 = vmatpush.bf16.msra.mxu3 %v1959_v63 }
  0x3c   :  { %1022 = vmatpush.bf16.msra.mxu0 %v1968_v0  ;;  %1139 = vmatpush.bf16.msra.mxu1 %v1977_v5 }
  0x45   :  { %1549 = vmatmul.msk.bf16.gmra.mxu2 %vm105_vm0, %v1911_v56  ;;  %1599 = vmatmul.msk.bf16.gmra.mxu3 %vm105_vm0, %v1920_v57 }
  0x47   :  { %1649 = vmatmul.msk.bf16.gmra.mxu0 %vm105_vm0, %v1929_v58  ;;  %1699 = vmatmul.msk.bf16.gmra.mxu1 %vm105_vm0, %v1947_v59 }
  0x55   :  { %1550 = vmatmul.msk.bf16.gmra.mxu2 %vm105_vm0, %v1912_v1  ;;  %1600 = vmatmul.msk.bf16.gmra.mxu3 %vm105_vm0, %v1921_v2 }
  0x57   :  { %1650 = vmatmul.msk.bf16.gmra.mxu0 %vm105_vm0, %v1930_v3  ;;  %1700 = vmatmul.msk.bf16.gmra.mxu1 %vm105_vm0, %v1948_v4 }
  0x65   :  { %1551 = vmatmul.msk.bf16.gmra.mxu2 %vm105_vm0, %v1913_v6  ;;  %1601 = vmatmul.msk.bf16.gmra.mxu3 %vm105_vm0, %v1922_v7 }
  0x67   :  { %1651 = vmatmul.msk.bf16.gmra.mxu0 %vm105_vm0, %v1931_v8  ;;  %1701 = vmatmul.msk.bf16.gmra.mxu1 %vm105_vm0, %v1949_v9 }
  0x75   :  { %1738 = vmatmul.msk.bf16.vlgmr.msra.gmra.mxu2 %vm105_vm0, %v1937_v10  ;;  %1788 = vmatmul.msk.bf16.vlgmr.msra.gmra.mxu3 %vm105_vm0, %v1955_v11 }
  0x77   :  { %1838 = vmatmul.msk.bf16.vlgmr.msra.gmra.mxu0 %vm105_vm0, %v1964_v12  ;;  %1888 = vmatmul.msk.bf16.vlgmr.msra.gmra.mxu1 %vm105_vm0, %v1973_v13 }
  0x85   :  { %1739 = vmatmul.msk.bf16.gmra.mxu2 %vm105_vm0, %v1938_v14  ;;  %1789 = vmatmul.msk.bf16.gmra.mxu3 %vm105_vm0, %v1956_v15 }
  0x87   :  { %1839 = vmatmul.msk.bf16.gmra.mxu0 %vm105_vm0, %v1965_v16  ;;  %1889 = vmatmul.msk.bf16.gmra.mxu1 %vm105_vm0, %v1974_v17 }
  0x94   :  { %v127_v22 = vpop.f32.mrf.mxu0  ;;  %v218_v23 = vpop.f32.mrf.mxu1 }
  0x95   :  { %v219_v24 = vadd.f32 %v218_v23, %v127_v22  ;;  %1740 = vmatmul.msk.bf16.gmra.mxu2 %vm105_vm0, %v1939_v18  ;;  %1790 = vmatmul.msk.bf16.gmra.mxu3 %vm105_vm0, %v1957_v19 }
  0x97   :  { %1840 = vmatmul.msk.bf16.gmra.mxu0 %vm105_vm0, %v1966_v20  ;;  %1890 = vmatmul.msk.bf16.gmra.mxu1 %vm105_vm0, %v1975_v21 }
  0x98   :  { %v137_v25 = vpop.f32.mrf.mxu2  ;;  %v228_v26 = vpop.f32.mrf.mxu3 }
  0x99   :  { %v2365_v27 = vadd.f32 %v228_v26, %v137_v25 }
  0x9c   :  { %v129_v28 = vpop.f32.mrf.mxu0  ;;  %v220_v29 = vpop.f32.mrf.mxu1 }
  0x9d   :  { %v221_v30 = vadd.f32 %v220_v29, %v129_v28 }
  0xa0   :  { %v139_v31 = vpop.f32.mrf.mxu2  ;;  %v230_v32 = vpop.f32.mrf.mxu3 }
  0xa1   :  { %v2367_v33 = vadd.f32 %v230_v32, %v139_v31 }
  0xa4   :  { %v132_v38 = vpop.f32.mrf.mxu0  ;;  %v223_v39 = vpop.f32.mrf.mxu1 }
  0xa5   :  { %v224_v40 = vadd.f32 %v223_v39, %v132_v38  ;;  %1741 = vmatmul.msk.bf16.gmra.mxu2 %vm105_vm0, %v1940_v34  ;;  %1791 = vmatmul.msk.bf16.gmra.mxu3 %vm105_vm0, %v1958_v35 }
  0xa7   :  { %1841 = vmatmul.msk.bf16.gmra.mxu0 %vm105_vm0, %v1967_v36  ;;  %1891 = vmatmul.msk.bf16.gmra.mxu1 %vm105_vm0, %v1976_v37 }
  0xa8   :  { %v142_v41 = vpop.f32.mrf.mxu2  ;;  %v233_v42 = vpop.f32.mrf.mxu3 }
  0xa9   :  { %v234_v43 = vadd.f32 %v233_v42, %v142_v41 }
  0xac   :  { %v134_v44 = vpop.f32.mrf.mxu0  ;;  %v225_v45 = vpop.f32.mrf.mxu1 }
  0xad   :  { %v226_v46 = vadd.f32 %v225_v45, %v134_v44 }
  0xb0   :  { %v144_v47 = vpop.f32.mrf.mxu2  ;;  %v235_v48 = vpop.f32.mrf.mxu3 }
  0xb1   :  { %v236_v49 = vadd.f32 %v235_v48, %v144_v47 }
  0xb4   :  { %v564_v50 = vpop.f32.mrf.mxu0  ;;  %v2385_v51 = vpop.f32.mrf.mxu1 }
  0xb8   :  { %v328_v52 = vpop.f32.mrf.mxu2  ;;  %v446_v53 = vpop.f32.mrf.mxu3 }
  0xb9   :  { %v348_v54 = vadd.f32 %v328_v52, %v219_v24 }
  0xbb   :  { %v466_v55 = vadd.f32 %v446_v53, %v348_v54 }
  0xbc   :  { %v566_v56 = vpop.f32.mrf.mxu0  ;;  %v2387_v57 = vpop.f32.mrf.mxu1 }
  0xbd   :  { %v2389_v58 = vadd.f32 %v564_v50, %v466_v55 }
  0xc0   :  { %v330_v59 = vpop.f32.mrf.mxu2  ;;  %v448_v60 = vpop.f32.mrf.mxu3 }
  0xc1   :  { %v349_v61 = vadd.f32 %v330_v59, %v221_v30 }
  0xc3   :  { %v467_v62 = vadd.f32 %v448_v60, %v349_v61 }
  0xc4   :  { %v569_v63 = vpop.f32.mrf.mxu0  ;;  %v2391_v0 = vpop.f32.mrf.mxu1 }
  0xc5   :  { %v2393_v1 = vadd.f32 %v566_v56, %v467_v62 }
  0xc7   :  { %v1193_v2 = vadd.f32 %v2393_v1, %v2389_v58 }
  0xc8   :  { %v333_v3 = vpop.f32.mrf.mxu2  ;;  %v451_v4 = vpop.f32.mrf.mxu3 }
  0xc9   :  { %v350_v5 = vadd.f32 %v333_v3, %v224_v40 }
  0xcb   :  { %v468_v6 = vadd.f32 %v451_v4, %v350_v5 }
  0xcc   :  { %v571_v7 = vpop.f32.mrf.mxu0  ;;  %v2397_v8 = vpop.f32.mrf.mxu1 }
  0xcd   :  { %v2399_v9 = vadd.f32 %v569_v63, %v468_v6 }
  0xcf   :  { %v1194_v10 = vadd.f32 %v1193_v2, %v2399_v9 }
  0xd0   :  { %v335_v11 = vpop.f32.mrf.mxu2  ;;  %v453_v12 = vpop.f32.mrf.mxu3 }
  0xd1   :  { %v351_v13 = vadd.f32 %v335_v11, %v226_v46 }
  0xd3   :  { %v469_v14 = vadd.f32 %v453_v12, %v351_v13 }
  0xd4   :  { %v574_v15 = vpop.f32.mrf.mxu0  ;;  %v2402_v16 = vpop.f32.mrf.mxu1 }
  0xd5   :  { %v2404_v17 = vadd.f32 %v571_v7, %v469_v14 }
  0xd7   :  { %v1195_v18 = vadd.f32 %v1194_v10, %v2404_v17 }
  0xd8   :  { %v338_v19 = vpop.f32.mrf.mxu2  ;;  %v456_v20 = vpop.f32.mrf.mxu3 }
  0xd9   :  { %v352_v21 = vadd.f32 %v338_v19, %v2365_v27 }
  0xdb   :  { %v470_v22 = vadd.f32 %v456_v20, %v352_v21 }
  0xdc   :  { %v576_v23 = vpop.f32.mrf.mxu0  ;;  %v2408_v24 = vpop.f32.mrf.mxu1 }
  0xdd   :  { %v2410_v25 = vadd.f32 %v574_v15, %v470_v22 }
  0xdf   :  { %v1196_v26 = vadd.f32 %v1195_v18, %v2410_v25 }
  0xe0   :  { %v340_v28 = vpop.f32.mrf.mxu2  ;;  %v458_v29 = vpop.f32.mrf.mxu3 }
  0xe1   :  { %v353_v30 = vadd.f32 %v340_v28, %v2367_v33 }
  0xe3   :  { %v471_v31 = vadd.f32 %v458_v29, %v353_v30 }
  0xe4   :  { %v579_v32 = vpop.f32.mrf.mxu0  ;;  %v2414_v34 = vpop.f32.mrf.mxu1 }
  0xe5   :  { %v2416_v35 = vadd.f32 %v576_v23, %v471_v31 }
  0xe7   :  { %v1197_v27 = vadd.f32 %v1196_v26, %v2416_v35 }
  0xe8   :  { %v343_v36 = vpop.f32.mrf.mxu2  ;;  %v461_v37 = vpop.f32.mrf.mxu3 }
  0xe9   :  { %v354_v38 = vadd.f32 %v343_v36, %v234_v43 }
  0xeb   :  { %v472_v39 = vadd.f32 %v461_v37, %v354_v38 }
  0xec   :  { %v581_v40 = vpop.f32.mrf.mxu0  ;;  %v2419_v41 = vpop.f32.mrf.mxu1 }
  0xed   :  { %v2421_v42 = vadd.f32 %v579_v32, %v472_v39 }
  0xef   :  { %v1198_v44 = vadd.f32 %v1197_v27, %v2421_v42 }
  0xf0   :  { %v345_v33 = vpop.f32.mrf.mxu2  ;;  %v463_v45 = vpop.f32.mrf.mxu3 }
  0xf1   :  { %v355_v46 = vadd.f32 %v345_v33, %v236_v49 }
  0xf3   :  { %v473_v47 = vadd.f32 %v463_v45, %v355_v46 }
  0xf4   :  { %v1024_v48 = vpop.f32.mrf.mxu0  ;;  %v1141_v50 = vpop.f32.mrf.mxu1 }
  0xf5   :  { %v2424_v52 = vadd.f32 %v581_v40, %v473_v47 }
  0xf7   :  { %v1199_v53 = vadd.f32 %v1198_v44, %v2424_v52 }
  0xf8   :  { %v798_v54 = vpop.f32.mrf.mxu2  ;;  %v907_v43 = vpop.f32.mrf.mxu3 }
  0xf9   :  { %v799_v55 = vadd.f32 %v798_v54, %v2385_v51 }
  0xfb   :  { %v927_v56 = vadd.f32 %v907_v43, %v799_v55 }
  0xfc   :  { %v1026_v59 = vpop.f32.mrf.mxu0  ;;  %v1143_v60 = vpop.f32.mrf.mxu1 }
  0xfd   :  { %v1044_v61 = vadd.f32 %v1024_v48, %v927_v56 }
  0xff   :  { %v2428_v62 = vadd.f32 %v1141_v50, %v1044_v61 }
 0x100   :  { %v800_v63 = vpop.f32.mrf.mxu2  ;;  %v909_v2 = vpop.f32.mrf.mxu3 }
 0x101   :  { %v1200_v49 = vadd.f32 %v1199_v53, %v2428_v62  ;;  %v801_v3 = vadd.f32 %v800_v63, %v2387_v57 }
 0x103   :  { %v928_v4 = vadd.f32 %v909_v2, %v801_v3 }
 0x104   :  { %v1029_v5 = vpop.f32.mrf.mxu0  ;;  %v1146_v6 = vpop.f32.mrf.mxu1 }
 0x105   :  { %v1045_v7 = vadd.f32 %v1026_v59, %v928_v4  ;;  %v2045_v59 = vmov 128.0  }
 0x106   :  { %2041 = vrcp.f32 %v2045_v59 }
 0x107   :  { %v2432_v10 = vadd.f32 %v1143_v60, %v1045_v7 }
 0x108   :  { %v803_v11 = vpop.f32.mrf.mxu2  ;;  %v912_v51 = vpop.f32.mrf.mxu3 }
 0x109   :  { %v1201_v12 = vadd.f32 %v1200_v49, %v2432_v10  ;;  %v804_v13 = vadd.f32 %v803_v11, %v2391_v0 }
 0x10b   :  { %v929_v14 = vadd.f32 %v912_v51, %v804_v13 }
 0x10c   :  { %v1031_v15 = vpop.f32.mrf.mxu0  ;;  %v1148_v19 = vpop.f32.mrf.mxu1 }
 0x10d   :  { %v1046_v18 = vadd.f32 %v1029_v5, %v929_v14  ;;  %v2042_v49 = vpop.eup %2041 }
 0x10e   :  { %v1215_v7 = vmul.f32 128.0, %v2042_v49  ;;  %vm1219_vm1 = vweird.f32 %v2042_v49 }
 0x10f   :  { %v2436_v20 = vadd.f32 %v1146_v6, %v1046_v18 }
 0x110   :  { %v805_v21 = vpop.f32.mrf.mxu2  ;;  %v914_v57 = vpop.f32.mrf.mxu3 }
 0x111   :  { %v1202_v22 = vadd.f32 %v1201_v12, %v2436_v20  ;;  %v806_v23 = vadd.f32 %v805_v21, %v2397_v8 }
 0x113   :  { %v930_v26 = vadd.f32 %v914_v57, %v806_v23 }
 0x114   :  { %v1034_v29 = vpop.f32.mrf.mxu0  ;;  %v1151_v31 = vpop.f32.mrf.mxu1 }
 0x115   :  { %v1047_v28 = vadd.f32 %v1031_v15, %v930_v26 }
 0x117   :  { %v2440_v30 = vadd.f32 %v1148_v19, %v1047_v28 }
 0x118   :  { %v808_v32 = vpop.f32.mrf.mxu2  ;;  %v917_v0 = vpop.f32.mrf.mxu3 }
 0x119   :  { %v1203_v27 = vadd.f32 %v1202_v22, %v2440_v30  ;;  %v809_v36 = vadd.f32 %v808_v32, %v2402_v16 }
 0x11b   :  { %v931_v37 = vadd.f32 %v917_v0, %v809_v36 }
 0x11c   :  { %v1036_v40 = vpop.f32.mrf.mxu0  ;;  %v1153_v46 = vpop.f32.mrf.mxu1 }
 0x11d   :  { %v1048_v38 = vadd.f32 %v1034_v29, %v931_v37 }
 0x11f   :  { %v1165_v39 = vadd.f32 %v1151_v31, %v1048_v38 }
 0x120   :  { %v810_v44 = vpop.f32.mrf.mxu2  ;;  %v919_v33 = vpop.f32.mrf.mxu3 }
 0x121   :  { %v1204_v45 = vadd.f32 %v1203_v27, %v1165_v39  ;;  %v811_v8 = vadd.f32 %v810_v44, %v2408_v24 }
 0x123   :  { %v932_v47 = vadd.f32 %v919_v33, %v811_v8 }
 0x124   :  { %v1039_v56 = vpop.f32.mrf.mxu0  ;;  %v1156_v60 = vpop.f32.mrf.mxu1 }
 0x125   :  { %v1049_v48 = vadd.f32 %v1036_v40, %v932_v47 }
 0x127   :  { %v1166_v50 = vadd.f32 %v1153_v46, %v1049_v48 }
 0x128   :  { %v813_v53 = vpop.f32.mrf.mxu2  ;;  %v922_v54 = vpop.f32.mrf.mxu3 }
 0x129   :  { %v1205_v43 = vadd.f32 %v1204_v45, %v1166_v50  ;;  %v814_v55 = vadd.f32 %v813_v53, %v2414_v34  ;;  %v1216_v34 = vsub.f32 1.0, %v1215_v7 }
 0x12b   :  { %v933_v16 = vadd.f32 %v922_v54, %v814_v55  ;;  %v1217_v15 = vmul.f32 %v2042_v49, %v1216_v34 }
 0x12c   :  { %v1041_v6 = vpop.f32.mrf.mxu0  ;;  %v1158_v51 = vpop.f32.mrf.mxu1 }
 0x12d   :  { %v1050_v61 = vadd.f32 %v1039_v56, %v933_v16  ;;  %v1218_v21 = vadd.f32 %v2042_v49, %v1217_v15 }
 0x12f   :  { %v1167_v63 = vadd.f32 %v1156_v60, %v1050_v61  ;;  %v1220_v23 = vsel %vm1219_vm1, %v2042_v49, %v1218_v21 }
 0x130   :  { %v815_v2 = vpop.f32.mrf.mxu2  ;;  %v924_v4 = vpop.f32.mrf.mxu3 }
 0x131   :  { %v1206_v3 = vadd.f32 %v1205_v43, %v1167_v63  ;;  %v816_v24 = vadd.f32 %v815_v2, %v2419_v41 }
 0x133   :  { %v934_v5 = vadd.f32 %v924_v4, %v816_v24 }
 0x135   :  { %v1051_v11 = vadd.f32 %v1041_v6, %v934_v5 }
 0x137   :  { %v1168_v12 = vadd.f32 %v1158_v51, %v1051_v11 }
 0x139   :  { %v1207_v13 = vadd.f32 %v1206_v3, %v1168_v12 }
 0x13b   :  { %v1208_v14 = vrot.slane %v1207_v13, 4 }
 0x13d   :  { %v1209_v18 = vadd.f32 %v1208_v14, %v1207_v13 }
 0x13f   :  { %v1210_v19 = vrot.slane %v1209_v18, 2 }
 0x141   :  { %v1211_v57 = vadd.f32 %v1210_v19, %v1209_v18 }
 0x143   :  { %v1212_v22 = vrot.slane %v1211_v57, 1 }
 0x145   :  { %v1213_v26 = vadd.f32 %v1212_v22, %v1211_v57  ;;  %v1276_v22 = vld [vmem:[%s2583_s2] sm:$0x1] }
 0x147   :  { %v1221_v41 = vmul.f32 %v1220_v23, %v1213_v26 }
 0x149   :  { %v2448_v28 = vsub.f32 %v2389_v58, %v1221_v41  ;;  %v2451_v29 = vsub.f32 %v2393_v1, %v1221_v41  ;;  %v2454_v31 = vsub.f32 %v2399_v9, %v1221_v41  ;;  %v2457_v32 = vsub.f32 %v2404_v17, %v1221_v41 }
 0x14a   :  { %v2460_v0 = vsub.f32 %v2410_v25, %v1221_v41  ;;  %v2463_v27 = vsub.f32 %v2416_v35, %v1221_v41  ;;  %v2466_v36 = vsub.f32 %v2421_v42, %v1221_v41  ;;  %v2469_v58 = vsub.f32 %v2424_v52, %v1221_v41 }
 0x14b   :  { %v2472_v1 = vsub.f32 %v2428_v62, %v1221_v41  ;;  %v2475_v9 = vsub.f32 %v2432_v10, %v1221_v41  ;;  %v2478_v17 = vsub.f32 %v2436_v20, %v1221_v41  ;;  %v2481_v25 = vsub.f32 %v2440_v30, %v1221_v41 }
 0x14c   :  { %v2483_v35 = vsub.f32 %v1165_v39, %v1221_v41  ;;  %v2485_v37 = vsub.f32 %v1166_v50, %v1221_v41  ;;  %v2487_v42 = vsub.f32 %v1167_v63, %v1221_v41  ;;  %v1238_v52 = vmul.f32 %v2448_v28, %v2448_v28 }
 0x14d   :  { %v1239_v62 = vmul.f32 %v2451_v29, %v2451_v29  ;;  %v1240_v10 = vmul.f32 %v2454_v31, %v2454_v31  ;;  %v1241_v30 = vmul.f32 %v2457_v32, %v2457_v32  ;;  %v1242_v39 = vmul.f32 %v2460_v0, %v2460_v0 }
 0x14e   :  { %v1243_v44 = vmul.f32 %v2463_v27, %v2463_v27  ;;  %v1244_v45 = vmul.f32 %v2466_v36, %v2466_v36  ;;  %v1245_v46 = vmul.f32 %v2469_v58, %v2469_v58  ;;  %v1246_v48 = vmul.f32 %v2472_v1, %v2472_v1 }
 0x14f   :  { %v1254_v20 = vadd.f32 %v1239_v62, %v1238_v52  ;;  %v1247_v53 = vmul.f32 %v2475_v9, %v2475_v9  ;;  %v1248_v43 = vmul.f32 %v2478_v17, %v2478_v17  ;;  %v1249_v56 = vmul.f32 %v2481_v25, %v2481_v25 }
 0x150   :  { %v1250_v59 = vmul.f32 %v2483_v35, %v2483_v35  ;;  %v1237_v61 = vsub.f32 %v1168_v12, %v1221_v41  ;;  %v1251_v63 = vmul.f32 %v2485_v37, %v2485_v37  ;;  %v1252_v49 = vmul.f32 %v2487_v42, %v2487_v42 }
 0x151   :  { %v1255_v38 = vadd.f32 %v1254_v20, %v1240_v10 }
 0x152   :  { %v1253_v24 = vmul.f32 %v1237_v61, %v1237_v61 }
 0x153   :  { %v1256_v40 = vadd.f32 %v1255_v38, %v1241_v30  ;;  %v2040_v38 = vld [vmem:[%s2582_s3] ss:$0 sm:$0xff] }
 0x155   :  { %v1257_v33 = vadd.f32 %v1256_v40, %v1242_v39 }
 0x157   :  { %v1258_v8 = vadd.f32 %v1257_v33, %v1243_v44 }
 0x159   :  { %v1259_v47 = vadd.f32 %v1258_v8, %v1244_v45 }
 0x15b   :  { %v1260_v50 = vadd.f32 %v1259_v47, %v1245_v46 }
 0x15d   :  { %v1261_v54 = vadd.f32 %v1260_v50, %v1246_v48 }
 0x15f   :  { %v1262_v55 = vadd.f32 %v1261_v54, %v1247_v53 }
 0x161   :  { %v1263_v16 = vadd.f32 %v1262_v55, %v1248_v43 }
 0x163   :  { %v1264_v60 = vadd.f32 %v1263_v16, %v1249_v56 }
 0x165   :  { %v1265_v2 = vadd.f32 %v1264_v60, %v1250_v59 }
 0x167   :  { %v1266_v3 = vadd.f32 %v1265_v2, %v1251_v63 }
 0x169   :  { %v1267_v4 = vadd.f32 %v1266_v3, %v1252_v49 }
 0x16b   :  { %v1268_v5 = vadd.f32 %v1267_v4, %v1253_v24 }
 0x16d   :  { %v1269_v6 = vrot.slane %v1268_v5, 4 }
 0x16f   :  { %v1270_v7 = vadd.f32 %v1269_v6, %v1268_v5 }
 0x171   :  { %v1271_v11 = vrot.slane %v1270_v7, 2 }
 0x173   :  { %v1272_v51 = vadd.f32 %v1271_v11, %v1270_v7 }
 0x175   :  { %v1273_v34 = vrot.slane %v1272_v51, 1 }
 0x177   :  { %v1274_v13 = vadd.f32 %v1273_v34, %v1272_v51 }
 0x179   :  { %v1275_v14 = vmul.f32 %v1274_v13, %v1220_v23 }
 0x17b   :  { %v1277_v15 = vadd.f32 1e-05, %v1275_v14 }
 0x17d   :  { %2043 = vrsqrt.f32 %v1277_v15  ;;  %vm1284_vm3 = vweird.f32 %v1277_v15 }
 0x183   :  { %v2044_v12 = vpop.eup %2043 }
 0x184   :  { %v1279_v18 = vmul.f32 %v2044_v12, %v1277_v15  ;;  %vm1285_vm2 = vweird.f32 %v2044_v12 }
 0x185   :  { %vm1286_vm4 = vmor %vm1284_vm3, %vm1285_vm2 }
 0x186   :  { %v1280_v19 = vmul.f32 %v2044_v12, %v1279_v18 }
 0x188   :  { %v1281_v21 = vmul.f32 0.5, %v1280_v19 }
 0x18a   :  { %v1282_v57 = vsub.f32 1.5, %v1281_v21 }
 0x18c   :  { %v1283_v26 = vmul.f32 %v2044_v12, %v1282_v57 }
 0x18e   :  { %v1287_v41 = vsel %vm1286_vm4, %v2044_v12, %v1283_v26 }
 0x18f   :  { %v1288_v52 = vmul.f32 %v1287_v41, %v1276_v22 }
 0x191   :  { %v1290_v62 = vperm.slane %v1288_v52, 0 }
 0x193   :  { %v1292_v23 = vmul.f32 %v1290_v62, %v2448_v28  ;;  %v1293_v10 = vmul.f32 %v1290_v62, %v2451_v29  ;;  %v1294_v20 = vmul.f32 %v1290_v62, %v2454_v31  ;;  %v1295_v30 = vmul.f32 %v1290_v62, %v2457_v32 }
 0x194   :  { %v1296_v39 = vmul.f32 %v1290_v62, %v2460_v0  ;;  %v1297_v40 = vmul.f32 %v1290_v62, %v2463_v27  ;;  %v1298_v44 = vmul.f32 %v1290_v62, %v2466_v36  ;;  %v1299_v33 = vmul.f32 %v1290_v62, %v2469_v58 }
 0x195   :  { %v1300_v28 = vmul.f32 %v1290_v62, %v2472_v1  ;;  %v1301_v29 = vmul.f32 %v1290_v62, %v2475_v9  ;;  %v1302_v31 = vmul.f32 %v1290_v62, %v2478_v17  ;;  %v1303_v32 = vmul.f32 %v1290_v62, %v2481_v25 }
 0x196   :  { %v1304_v45 = vmul.f32 %v1290_v62, %v2483_v35  ;;  %v1305_v8 = vmul.f32 %v1290_v62, %v2485_v37  ;;  %v1306_v0 = vmul.f32 %v1290_v62, %v2487_v42  ;;  %v1307_v46 = vmul.f32 %v1290_v62, %v1237_v61 }
 0x197   :  { %v1312_v27 = vadd.f32 %v2040_v38, %v1292_v23  ;;  %v1313_v47 = vadd.f32 %v2040_v38, %v1293_v10  ;;  %v1314_v36 = vadd.f32 %v2040_v38, %v1294_v20  ;;  %v1315_v48 = vadd.f32 %v2040_v38, %v1295_v30 }
 0x198   :  { %v1316_v58 = vadd.f32 %v2040_v38, %v1296_v39  ;;  %v1317_v50 = vadd.f32 %v2040_v38, %v1297_v40  ;;  %v1318_v1 = vadd.f32 %v2040_v38, %v1298_v44  ;;  %v1319_v53 = vadd.f32 %v2040_v38, %v1299_v33 }
 0x199   :  { %v1320_v9 = vadd.f32 %v2040_v38, %v1300_v28  ;;  %v1321_v54 = vadd.f32 %v2040_v38, %v1301_v29  ;;  %v1322_v17 = vadd.f32 %v2040_v38, %v1302_v31  ;;  %v1323_v43 = vadd.f32 %v2040_v38, %v1303_v32 }
 0x19a   :  { %v1324_v25 = vadd.f32 %v2040_v38, %v1304_v45  ;;  %v1325_v55 = vadd.f32 %v2040_v38, %v1305_v8  ;;  %v1326_v35 = vadd.f32 %v2040_v38, %v1306_v0  ;;  %v1327_v56 = vadd.f32 %v2040_v38, %v1307_v46 }
 0x19b   :  { %vm1328_vm5 = vcmp.ge.f32.partialorder %v1312_v27, 0.0  ;;  %vm1329_vm6 = vcmp.ge.f32.partialorder %v1313_v47, 0.0  ;;  %vm1330_vm7 = vcmp.ge.f32.partialorder %v1314_v36, 0.0  ;;  %vm1331_vm8 = vcmp.ge.f32.partialorder %v1315_v48, 0.0 }
 0x19c   :  { %vm1332_vm9 = vcmp.ge.f32.partialorder %v1316_v58, 0.0  ;;  %vm1333_vm10 = vcmp.ge.f32.partialorder %v1317_v50, 0.0  ;;  %vm1334_vm11 = vcmp.ge.f32.partialorder %v1318_v1, 0.0  ;;  %vm1335_vm12 = vcmp.ge.f32.partialorder %v1319_v53, 0.0 }
 0x19d   :  { %vm1336_vm13 = vcmp.ge.f32.partialorder %v1320_v9, 0.0  ;;  %vm1337_vm14 = vcmp.ge.f32.partialorder %v1321_v54, 0.0  ;;  %vm1338_vm15 = vcmp.ge.f32.partialorder %v1322_v17, 0.0  ;;  %vm1339_vm0 = vcmp.ge.f32.partialorder %v1323_v43, 0.0 }
 0x19e   :  { %vm1340_vm1 = vcmp.ge.f32.partialorder %v1324_v25, 0.0  ;;  %vm1341_vm2 = vcmp.ge.f32.partialorder %v1325_v55, 0.0  ;;  %vm1342_vm3 = vcmp.ge.f32.partialorder %v1326_v35, 0.0  ;;  %vm1343_vm4 = vcmp.ge.f32.partialorder %v1327_v56, 0.0 }
 0x19f   :  { %v1344_v37 = vmul.f32 0.2, %v1312_v27  ;;  %v1345_v42 = vmul.f32 0.2, %v1313_v47  ;;  %v1346_v16 = vmul.f32 0.2, %v1314_v36 }
 0x1a0   :  { %v1347_v59 = vmul.f32 0.2, %v1315_v48  ;;  %v1348_v60 = vmul.f32 0.2, %v1316_v58  ;;  %v1349_v61 = vmul.f32 0.2, %v1317_v50 }
 0x1a1   :  { %v1350_v63 = vmul.f32 0.2, %v1318_v1  ;;  %v1351_v2 = vmul.f32 0.2, %v1319_v53  ;;  %v1352_v49 = vmul.f32 0.2, %v1320_v9  ;;  %v1360_v3 = vsel %vm1328_vm5, %v1312_v27, %v1344_v37 }
 0x1a2   :  { %v1353_v24 = vmul.f32 0.2, %v1321_v54  ;;  %v1354_v4 = vmul.f32 0.2, %v1322_v17  ;;  %v1355_v5 = vmul.f32 0.2, %v1323_v43  ;;  %v1361_v6 = vsel %vm1329_vm6, %v1313_v47, %v1345_v42 }
 0x1a3   :  { %v1356_v7 = vmul.f32 0.2, %v1324_v25  ;;  %v1357_v11 = vmul.f32 0.2, %v1325_v55  ;;  %v1358_v51 = vmul.f32 0.2, %v1326_v35  ;;  %v1362_v34 = vsel %vm1330_vm7, %v1314_v36, %v1346_v16 }
 0x1a4   :  { %v1359_v13 = vmul.f32 0.2, %v1327_v56  ;;  %v1363_v14 = vsel %vm1331_vm8, %v1315_v48, %v1347_v59  ;;  %v1364_v15 = vsel %vm1332_vm9, %v1316_v58, %v1348_v60  ;;  %v1365_v12 = vsel %vm1333_vm10, %v1317_v50, %v1349_v61 }
 0x1a5   :  { %v1366_v18 = vsel %vm1334_vm11, %v1318_v1, %v1350_v63  ;;  %v1367_v19 = vsel %vm1335_vm12, %v1319_v53, %v1351_v2  ;;  %v1368_v21 = vsel %vm1336_vm13, %v1320_v9, %v1352_v49  ;;  %v1369_v57 = vsel %vm1337_vm14, %v1321_v54, %v1353_v24 }
 0x1a6   :  { %v1370_v22 = vsel %vm1338_vm15, %v1322_v17, %v1354_v4  ;;  %v1371_v26 = vsel %vm1339_vm0, %v1323_v43, %v1355_v5  ;;  %v1372_v41 = vsel %vm1340_vm1, %v1324_v25, %v1356_v7  ;;  %v1373_v52 = vsel %vm1341_vm2, %v1325_v55, %v1357_v11 }
 0x1a7   :  { %v1374_v62 = vsel %vm1342_vm3, %v1326_v35, %v1358_v51  ;;  %v1375_v23 = vsel %vm1343_vm4, %v1327_v56, %v1359_v13  ;;  %v1985_v10 = vpack.c.bf16 %v1361_v6, %v1360_v3  ;;  %v1990_v20 = vpack.c.bf16 %v1363_v14, %v1362_v34 }
 0x1a8   :  { %v1995_v30 = vpack.c.bf16 %v1365_v12, %v1364_v15  ;;  %v2000_v38 = vpack.c.bf16 %v1367_v19, %v1366_v18  ;;  %v2005_v39 = vpack.c.bf16 %v1369_v57, %v1368_v21  ;;  %v2010_v40 = vpack.c.bf16 %v1371_v26, %v1370_v22 }
 0x1a9   :  { %1986 = vst [vmem:[%s2584_s4] sm:$0xff] %v1985_v10   ;;  %v2015_v44 = vpack.c.bf16 %v1373_v52, %v1372_v41  ;;  %v2020_v33 = vpack.c.bf16 %v1375_v23, %v1374_v62 }
 0x1aa   :  { %2022 = vst [vmem:[%s2584_s4 + $0x8] sm:$0xff] %v1990_v20  }
 0x1ab   :  { %2023 = vst [vmem:[%s2584_s4 + $0x10] sm:$0xff] %v1995_v30  }
 0x1ac   :  { %2024 = vst [vmem:[%s2584_s4 + $0x18] sm:$0xff] %v2000_v38  }
 0x1ad   :  { %2025 = vst [vmem:[%s2584_s4 + $0x20] sm:$0xff] %v2005_v39  }
 0x1ae   :  { %2026 = vst [vmem:[%s2584_s4 + $0x28] sm:$0xff] %v2010_v40  }
 0x1af   :  { %2027 = vst [vmem:[%s2584_s4 + $0x30] sm:$0xff] %v2015_v44  }
 0x1b0   :  { %2028 = vst [vmem:[%s2584_s4 + $0x38] sm:$0xff] %v2020_v33  }

// kernel: discriminator_forward.9
= control target key start
LH: loop header
LB: loop body
LE: loop exit
PB: predicated region body
PF: predicated region fallthrough
CT: control target
= control target key end

     0   :  { %s2359_s1 = inlined_call_operand.vmem [shape: bf16[2048,128], index: 1, kind: input, shape index: {}]   ;;  %s2360_s0 = inlined_call_operand.vmem [shape: bf16[2,2048], index: 0, kind: input, shape index: {}]   ;;  %s2361_s2 = inlined_call_operand.vmem [shape: f32[1,128], index: 2, kind: input, shape index: {}]   ;;  %s2362_s3 = inlined_call_operand.vmem [shape: f32[2,128], index: 3, kind: output, shape index: {}]  }
   0x1   :  { %v1817_v0 = vld [vmem:[%s2359_s1 + $0x38] sm:$0xff]  ;;  %v1816_v4 = vld [vmem:[%s2359_s1 + $0x30] sm:$0xff]  ;;  %v1815_v8 = vld [vmem:[%s2359_s1 + $0x28] sm:$0xff] }
   0x2   :  { %v1825_v1 = vld [vmem:[%s2359_s1 + $0x78] sm:$0xff]  ;;  %1080 = vmatpush.bf16.msra.mxu0 %v1817_v0  ;;  %v1824_v5 = vld [vmem:[%s2359_s1 + $0x70] sm:$0xff]  ;;  %v1823_v9 = vld [vmem:[%s2359_s1 + $0x68] sm:$0xff] }
   0x3   :  { %v1833_v2 = vld [vmem:[%s2359_s1 + $0xb8] sm:$0xff]  ;;  %1093 = vmatpush.bf16.msra.mxu1 %v1825_v1  ;;  %v1832_v6 = vld [vmem:[%s2359_s1 + $0xb0] sm:$0xff]  ;;  %v1831_v10 = vld [vmem:[%s2359_s1 + $0xa8] sm:$0xff] }
   0x4   :  { %v1841_v3 = vld [vmem:[%s2359_s1 + $0xf8] sm:$0xff]  ;;  %1106 = vmatpush.bf16.msra.mxu2 %v1833_v2  ;;  %v1840_v7 = vld [vmem:[%s2359_s1 + $0xf0] sm:$0xff]  ;;  %v1839_v11 = vld [vmem:[%s2359_s1 + $0xe8] sm:$0xff] }
   0x5   :  { %1119 = vmatpush.bf16.msra.mxu3 %v1841_v3  ;;  %v1814_v12 = vld [vmem:[%s2359_s1 + $0x20] sm:$0xff]  ;;  %v1813_v16 = vld [vmem:[%s2359_s1 + $0x18] sm:$0xff]  ;;  %v1812_v21 = vld [vmem:[%s2359_s1 + $0x10] sm:$0xff] }
   0x6   :  { %1081 = vmatpush.bf16.msra.mxu0 %v1816_v4  ;;  %v1822_v13 = vld [vmem:[%s2359_s1 + $0x60] sm:$0xff]  ;;  %v1821_v17 = vld [vmem:[%s2359_s1 + $0x58] sm:$0xff]  ;;  %v1820_v22 = vld [vmem:[%s2359_s1 + $0x50] sm:$0xff] }
   0x7   :  { %1094 = vmatpush.bf16.msra.mxu1 %v1824_v5  ;;  %v1830_v14 = vld [vmem:[%s2359_s1 + $0xa0] sm:$0xff]  ;;  %v1829_v18 = vld [vmem:[%s2359_s1 + $0x98] sm:$0xff]  ;;  %v1828_v23 = vld [vmem:[%s2359_s1 + $0x90] sm:$0xff] }
   0x8   :  { %1107 = vmatpush.bf16.msra.mxu2 %v1832_v6  ;;  %v1838_v15 = vld [vmem:[%s2359_s1 + $0xe0] sm:$0xff]  ;;  %v1837_v19 = vld [vmem:[%s2359_s1 + $0xd8] sm:$0xff]  ;;  %v1836_v24 = vld [vmem:[%s2359_s1 + $0xd0] sm:$0xff] }
   0x9   :  { %1120 = vmatpush.bf16.msra.mxu3 %v1840_v7  ;;  %v14_v20 = vld [vmem:[%s2360_s0] sm:$0xff]  ;;  %v1811_v25 = vld [vmem:[%s2359_s1 + $0x8] sm:$0xff]  ;;  %v1849_v33 = vld [vmem:[%s2359_s1 + $0x138] sm:$0xff] }
   0xa   :  { %1082 = vmatpush.bf16.msra.mxu0 %v1815_v8  ;;  %277 = vst [vmem:[#allocation1] ss:$9 sm:$0xff] %v14_v20  ;;  %v1819_v26 = vld [vmem:[%s2359_s1 + $0x48] sm:$0xff]  ;;  %v1810_v29 = vld [vmem:[%s2359_s1] sm:$0xff]  ;;  %v1857_v34 = vld [vmem:[%s2359_s1 + $0x178] sm:$0xff] }
   0xb   :  { %1095 = vmatpush.bf16.msra.mxu1 %v1823_v9  ;;  %v1827_v27 = vld [vmem:[%s2359_s1 + $0x88] sm:$0xff]  ;;  %v1818_v30 = vld [vmem:[%s2359_s1 + $0x40] sm:$0xff]  ;;  %v1865_v35 = vld [vmem:[%s2359_s1 + $0x1b8] sm:$0xff] }
   0xc   :  { %1108 = vmatpush.bf16.msra.mxu2 %v1831_v10  ;;  %v1835_v28 = vld [vmem:[%s2359_s1 + $0xc8] sm:$0xff]  ;;  %v1826_v31 = vld [vmem:[%s2359_s1 + $0x80] sm:$0xff]  ;;  %v1873_v36 = vld [vmem:[%s2359_s1 + $0x1f8] sm:$0xff] }
   0xd   :  { %1121 = vmatpush.bf16.msra.mxu3 %v1839_v11  ;;  %v1834_v32 = vld [vmem:[%s2359_s1 + $0xc0] sm:$0xff]  ;;  %v1848_v37 = vld [vmem:[%s2359_s1 + $0x130] sm:$0xff]  ;;  %v1847_v45 = vld [vmem:[%s2359_s1 + $0x128] sm:$0xff] }
   0xe   :  { %1083 = vmatpush.bf16.msra.mxu0 %v1814_v12  ;;  %v1856_v40 = vld [vmem:[%s2359_s1 + $0x170] sm:$0xff]  ;;  %v1855_v46 = vld [vmem:[%s2359_s1 + $0x168] sm:$0xff]  ;;  %v1846_v54 = vld [vmem:[%s2359_s1 + $0x120] sm:$0xff] }
   0xf   :  { %1096 = vmatpush.bf16.msra.mxu1 %v1822_v13  ;;  %v1864_v43 = vld [vmem:[%s2359_s1 + $0x1b0] sm:$0xff]  ;;  %v1863_v47 = vld [vmem:[%s2359_s1 + $0x1a8] sm:$0xff]  ;;  %v1854_v55 = vld [vmem:[%s2359_s1 + $0x160] sm:$0xff] }
  0x10   :  { %1109 = vmatpush.bf16.msra.mxu2 %v1830_v14  ;;  %v1872_v44 = vld [vmem:[%s2359_s1 + $0x1f0] sm:$0xff]  ;;  %v1871_v48 = vld [vmem:[%s2359_s1 + $0x1e8] sm:$0xff]  ;;  %v1862_v56 = vld [vmem:[%s2359_s1 + $0x1a0] sm:$0xff] }
  0x11   :  { %1122 = vmatpush.bf16.msra.mxu3 %v1838_v15  ;;  %v280_v38 = vld [vmem:[#allocation1 + $0x12] sm:$0xff]  ;;  %v278_v39 = vld [vmem:[#allocation1] sm:$0xff]  ;;  %v279_v42 = vld [vmem:[#allocation1 + $0x9] sm:$0xff] }
  0x12   :  { %1084 = vmatpush.bf16.msra.mxu0 %v1813_v16  ;;  %v281_v41 = vld [vmem:[#allocation1 + $0x1b] sm:$0xff]  ;;  %v15_v49 = vld [vmem:[%s2360_s0 + $0x8] sm:$0xff]  ;;  %v1844_v62 = vld [vmem:[%s2359_s1 + $0x110] sm:$0xff] }
  0x13   :  { %1097 = vmatpush.bf16.msra.mxu1 %v1821_v17  ;;  %v284_v50 = vld [vmem:[#allocation1 + $0x36] sm:$0xff]  ;;  %v282_v51 = vld [vmem:[#allocation1 + $0x24] sm:$0xff]  ;;  %v283_v53 = vld [vmem:[#allocation1 + $0x2d] sm:$0xff] }
  0x14   :  { %1110 = vmatpush.bf16.msra.mxu2 %v1829_v18  ;;  %v285_v52 = vld [vmem:[#allocation1 + $0x3f] sm:$0xff]  ;;  %v1852_v63 = vld [vmem:[%s2359_s1 + $0x150] sm:$0xff]  ;;  %v1843_v2 = vld [vmem:[%s2359_s1 + $0x108] sm:$0xff] }
  0x15   :  { %1123 = vmatpush.bf16.msra.mxu3 %v1837_v19  ;;  %287 = vst [vmem:[#allocation1] ss:$9 sm:$0xff] %v15_v49  ;;  %v1870_v57 = vld [vmem:[%s2359_s1 + $0x1e0] sm:$0xff]  ;;  %v1845_v58 = vld [vmem:[%s2359_s1 + $0x118] sm:$0xff]  ;;  %v1860_v0 = vld [vmem:[%s2359_s1 + $0x190] sm:$0xff] }
  0x16   :  { %1085 = vmatpush.bf16.msra.mxu0 %v1812_v21  ;;  %v1853_v59 = vld [vmem:[%s2359_s1 + $0x158] sm:$0xff]  ;;  %v1868_v1 = vld [vmem:[%s2359_s1 + $0x1d0] sm:$0xff]  ;;  %v1851_v3 = vld [vmem:[%s2359_s1 + $0x148] sm:$0xff] }
  0x17   :  { %1098 = vmatpush.bf16.msra.mxu1 %v1820_v22  ;;  %v1861_v60 = vld [vmem:[%s2359_s1 + $0x198] sm:$0xff]  ;;  %v1859_v4 = vld [vmem:[%s2359_s1 + $0x188] sm:$0xff]  ;;  %v1842_v6 = vld [vmem:[%s2359_s1 + $0x100] sm:$0xff] }
  0x18   :  { %1111 = vmatpush.bf16.msra.mxu2 %v1828_v23  ;;  %v1869_v61 = vld [vmem:[%s2359_s1 + $0x1d8] sm:$0xff]  ;;  %v1867_v5 = vld [vmem:[%s2359_s1 + $0x1c8] sm:$0xff]  ;;  %v1850_v7 = vld [vmem:[%s2359_s1 + $0x140] sm:$0xff] }
  0x19   :  { %1124 = vmatpush.bf16.msra.mxu3 %v1836_v24  ;;  %v1858_v8 = vld [vmem:[%s2359_s1 + $0x180] sm:$0xff]  ;;  %v1881_v10 = vld [vmem:[%s2359_s1 + $0x238] sm:$0xff]  ;;  %v1880_v14 = vld [vmem:[%s2359_s1 + $0x230] sm:$0xff] }
  0x1a   :  { %1086 = vmatpush.bf16.msra.mxu0 %v1811_v25  ;;  %v1866_v9 = vld [vmem:[%s2359_s1 + $0x1c0] sm:$0xff]  ;;  %v1889_v11 = vld [vmem:[%s2359_s1 + $0x278] sm:$0xff]  ;;  %v1888_v15 = vld [vmem:[%s2359_s1 + $0x270] sm:$0xff] }
  0x1b   :  { %1099 = vmatpush.bf16.msra.mxu1 %v1819_v26  ;;  %v1897_v12 = vld [vmem:[%s2359_s1 + $0x2b8] sm:$0xff]  ;;  %v1896_v16 = vld [vmem:[%s2359_s1 + $0x2b0] sm:$0xff]  ;;  %v1879_v18 = vld [vmem:[%s2359_s1 + $0x228] sm:$0xff] }
  0x1c   :  { %1112 = vmatpush.bf16.msra.mxu2 %v1827_v27  ;;  %v1905_v13 = vld [vmem:[%s2359_s1 + $0x2f8] sm:$0xff]  ;;  %v1904_v17 = vld [vmem:[%s2359_s1 + $0x2f0] sm:$0xff]  ;;  %v1887_v19 = vld [vmem:[%s2359_s1 + $0x268] sm:$0xff] }
  0x1d   :  { %1125 = vmatpush.bf16.msra.mxu3 %v1835_v28  ;;  %v1895_v20 = vld [vmem:[%s2359_s1 + $0x2a8] sm:$0xff]  ;;  %v1878_v22 = vld [vmem:[%s2359_s1 + $0x220] sm:$0xff]  ;;  %v1877_v26 = vld [vmem:[%s2359_s1 + $0x218] sm:$0xff] }
  0x1e   :  { %1087 = vmatpush.bf16.msra.mxu0 %v1810_v29  ;;  %v1903_v21 = vld [vmem:[%s2359_s1 + $0x2e8] sm:$0xff]  ;;  %v1886_v23 = vld [vmem:[%s2359_s1 + $0x260] sm:$0xff]  ;;  %v1885_v27 = vld [vmem:[%s2359_s1 + $0x258] sm:$0xff] }
  0x1f   :  { %1100 = vmatpush.bf16.msra.mxu1 %v1818_v30  ;;  %v1894_v24 = vld [vmem:[%s2359_s1 + $0x2a0] sm:$0xff]  ;;  %v1893_v28 = vld [vmem:[%s2359_s1 + $0x298] sm:$0xff]  ;;  %v1876_v30 = vld [vmem:[%s2359_s1 + $0x210] sm:$0xff] }
  0x20   :  { %1113 = vmatpush.bf16.msra.mxu2 %v1826_v31  ;;  %v1902_v25 = vld [vmem:[%s2359_s1 + $0x2e0] sm:$0xff]  ;;  %v1901_v29 = vld [vmem:[%s2359_s1 + $0x2d8] sm:$0xff]  ;;  %v1884_v31 = vld [vmem:[%s2359_s1 + $0x250] sm:$0xff] }
  0x21   :  { %1126 = vmatpush.bf16.msra.mxu3 %v1834_v32  ;;  %1088 = vmatmul.bf16.vlgmr.msra.gmra.mxu0 %v278_v39  ;;  %v1892_v32 = vld [vmem:[%s2359_s1 + $0x290] sm:$0xff]  ;;  %v1882_v39 = vld [vmem:[%s2359_s1 + $0x240] sm:$0xff] }
  0x22   :  { %1132 = vmatpush.bf16.msrb.mxu0 %v1849_v33  ;;  %1101 = vmatmul.bf16.vlgmr.msra.gmra.mxu1 %v279_v42  ;;  %v1900_v33 = vld [vmem:[%s2359_s1 + $0x2d0] sm:$0xff]  ;;  %v1913_v42 = vld [vmem:[%s2359_s1 + $0x338] sm:$0xff] }
  0x23   :  { %1145 = vmatpush.bf16.msrb.mxu1 %v1857_v34  ;;  %1114 = vmatmul.bf16.vlgmr.msra.gmra.mxu2 %v280_v38  ;;  %v1875_v34 = vld [vmem:[%s2359_s1 + $0x208] sm:$0xff]  ;;  %v1874_v38 = vld [vmem:[%s2359_s1 + $0x200] sm:$0xff] }
  0x24   :  { %1158 = vmatpush.bf16.msrb.mxu2 %v1865_v35  ;;  %1127 = vmatmul.bf16.vlgmr.msra.gmra.mxu3 %v281_v41  ;;  %v1883_v35 = vld [vmem:[%s2359_s1 + $0x248] sm:$0xff]  ;;  %v1898_v41 = vld [vmem:[%s2359_s1 + $0x2c0] sm:$0xff] }
  0x25   :  { %1171 = vmatpush.bf16.msrb.mxu3 %v1873_v36  ;;  %v1891_v36 = vld [vmem:[%s2359_s1 + $0x288] sm:$0xff]  ;;  %v291_v49 = vld [vmem:[#allocation1 + $0x1b] sm:$0xff] }
  0x26   :  { %1133 = vmatpush.bf16.msrb.mxu0 %v1848_v37  ;;  %v1899_v37 = vld [vmem:[%s2359_s1 + $0x2c8] sm:$0xff] }
  0x27   :  { %1146 = vmatpush.bf16.msrb.mxu1 %v1856_v40  ;;  %v1890_v40 = vld [vmem:[%s2359_s1 + $0x280] sm:$0xff] }
  0x28   :  { %1159 = vmatpush.bf16.msrb.mxu2 %v1864_v43  ;;  %v1921_v43 = vld [vmem:[%s2359_s1 + $0x378] sm:$0xff] }
  0x29   :  { %1172 = vmatpush.bf16.msrb.mxu3 %v1872_v44  ;;  %v1929_v44 = vld [vmem:[%s2359_s1 + $0x3b8] sm:$0xff] }
  0x2a   :  { %1134 = vmatpush.bf16.msrb.mxu0 %v1847_v45  ;;  %v1937_v45 = vld [vmem:[%s2359_s1 + $0x3f8] sm:$0xff] }
  0x2b   :  { %1147 = vmatpush.bf16.msrb.mxu1 %v1855_v46  ;;  %v288_v46 = vld [vmem:[#allocation1] sm:$0xff] }
  0x2c   :  { %1160 = vmatpush.bf16.msrb.mxu2 %v1863_v47  ;;  %v290_v47 = vld [vmem:[#allocation1 + $0x12] sm:$0xff] }
  0x2d   :  { %1173 = vmatpush.bf16.msrb.mxu3 %v1871_v48  ;;  %v289_v48 = vld [vmem:[#allocation1 + $0x9] sm:$0xff] }
  0x2e   :  { %1135 = vmatpush.bf16.msrb.mxu0 %v1846_v54  ;;  %v1911_v54 = vld [vmem:[%s2359_s1 + $0x328] sm:$0xff] }
  0x2f   :  { %1148 = vmatpush.bf16.msrb.mxu1 %v1854_v55  ;;  %v1919_v55 = vld [vmem:[%s2359_s1 + $0x368] sm:$0xff] }
  0x30   :  { %1161 = vmatpush.bf16.msrb.mxu2 %v1862_v56  ;;  %v1927_v56 = vld [vmem:[%s2359_s1 + $0x3a8] sm:$0xff] }
  0x31   :  { %1174 = vmatpush.bf16.msrb.mxu3 %v1870_v57  ;;  %v1935_v57 = vld [vmem:[%s2359_s1 + $0x3e8] sm:$0xff] }
  0x32   :  { %1136 = vmatpush.bf16.msrb.mxu0 %v1845_v58  ;;  %v1910_v58 = vld [vmem:[%s2359_s1 + $0x320] sm:$0xff] }
  0x33   :  { %1149 = vmatpush.bf16.msrb.mxu1 %v1853_v59  ;;  %v1918_v59 = vld [vmem:[%s2359_s1 + $0x360] sm:$0xff] }
  0x34   :  { %1162 = vmatpush.bf16.msrb.mxu2 %v1861_v60  ;;  %v1926_v60 = vld [vmem:[%s2359_s1 + $0x3a0] sm:$0xff] }
  0x35   :  { %1175 = vmatpush.bf16.msrb.mxu3 %v1869_v61  ;;  %v1934_v61 = vld [vmem:[%s2359_s1 + $0x3e0] sm:$0xff] }
  0x36   :  { %1137 = vmatpush.bf16.msrb.mxu0 %v1844_v62  ;;  %v1909_v62 = vld [vmem:[%s2359_s1 + $0x318] sm:$0xff] }
  0x37   :  { %1150 = vmatpush.bf16.msrb.mxu1 %v1852_v63  ;;  %v1917_v63 = vld [vmem:[%s2359_s1 + $0x358] sm:$0xff] }
  0x38   :  { %1163 = vmatpush.bf16.msrb.mxu2 %v1860_v0  ;;  %v1925_v0 = vld [vmem:[%s2359_s1 + $0x398] sm:$0xff] }
  0x39   :  { %1176 = vmatpush.bf16.msrb.mxu3 %v1868_v1  ;;  %v1933_v1 = vld [vmem:[%s2359_s1 + $0x3d8] sm:$0xff] }
  0x3a   :  { %1138 = vmatpush.bf16.msrb.mxu0 %v1843_v2  ;;  %v1908_v2 = vld [vmem:[%s2359_s1 + $0x310] sm:$0xff] }
  0x3b   :  { %1151 = vmatpush.bf16.msrb.mxu1 %v1851_v3  ;;  %v1916_v3 = vld [vmem:[%s2359_s1 + $0x350] sm:$0xff] }
  0x3c   :  { %1164 = vmatpush.bf16.msrb.mxu2 %v1859_v4  ;;  %v1924_v4 = vld [vmem:[%s2359_s1 + $0x390] sm:$0xff] }
  0x3d   :  { %1177 = vmatpush.bf16.msrb.mxu3 %v1867_v5  ;;  %v1932_v5 = vld [vmem:[%s2359_s1 + $0x3d0] sm:$0xff] }
  0x3e   :  { %1139 = vmatpush.bf16.msrb.mxu0 %v1842_v6  ;;  %v1907_v6 = vld [vmem:[%s2359_s1 + $0x308] sm:$0xff] }
  0x3f   :  { %1152 = vmatpush.bf16.msrb.mxu1 %v1850_v7  ;;  %v1915_v7 = vld [vmem:[%s2359_s1 + $0x348] sm:$0xff] }
  0x40   :  { %1165 = vmatpush.bf16.msrb.mxu2 %v1858_v8  ;;  %v1923_v8 = vld [vmem:[%s2359_s1 + $0x388] sm:$0xff] }
  0x41   :  { %1178 = vmatpush.bf16.msrb.mxu3 %v1866_v9  ;;  %1140 = vmatmul.bf16.vlgmr.msrb.gmra.mxu0 %v282_v51  ;;  %v1920_v51 = vld [vmem:[%s2359_s1 + $0x370] sm:$0xff]  ;;  %v1931_v9 = vld [vmem:[%s2359_s1 + $0x3c8] sm:$0xff] }
  0x42   :  { %1184 = vmatpush.bf16.msra.mxu0 %v1881_v10  ;;  %1153 = vmatmul.bf16.vlgmr.msrb.gmra.mxu1 %v283_v53  ;;  %v1936_v53 = vld [vmem:[%s2359_s1 + $0x3f0] sm:$0xff]  ;;  %v1906_v10 = vld [vmem:[%s2359_s1 + $0x300] sm:$0xff] }
  0x43   :  { %1197 = vmatpush.bf16.msra.mxu1 %v1889_v11  ;;  %1166 = vmatmul.bf16.vlgmr.msrb.gmra.mxu2 %v284_v50  ;;  %v1912_v50 = vld [vmem:[%s2359_s1 + $0x330] sm:$0xff]  ;;  %v1914_v11 = vld [vmem:[%s2359_s1 + $0x340] sm:$0xff] }
  0x44   :  { %1210 = vmatpush.bf16.msra.mxu2 %v1897_v12  ;;  %1179 = vmatmul.bf16.vlgmr.msrb.gmra.mxu3 %v285_v52  ;;  %v1928_v52 = vld [vmem:[%s2359_s1 + $0x3b0] sm:$0xff]  ;;  %v1922_v12 = vld [vmem:[%s2359_s1 + $0x380] sm:$0xff] }
  0x45   :  { %1223 = vmatpush.bf16.msra.mxu3 %v1905_v13  ;;  %v1930_v13 = vld [vmem:[%s2359_s1 + $0x3c0] sm:$0xff] }
  0x46   :  { %1185 = vmatpush.bf16.msra.mxu0 %v1880_v14  ;;  %v292_v14 = vld [vmem:[#allocation1 + $0x24] sm:$0xff] }
  0x47   :  { %1198 = vmatpush.bf16.msra.mxu1 %v1888_v15  ;;  %v293_v15 = vld [vmem:[#allocation1 + $0x2d] sm:$0xff] }
  0x48   :  { %1211 = vmatpush.bf16.msra.mxu2 %v1896_v16  ;;  %v294_v16 = vld [vmem:[#allocation1 + $0x36] sm:$0xff] }
  0x49   :  { %1224 = vmatpush.bf16.msra.mxu3 %v1904_v17  ;;  %v295_v17 = vld [vmem:[#allocation1 + $0x3f] sm:$0xff] }
  0x4a   :  { %1186 = vmatpush.bf16.msra.mxu0 %v1879_v18  ;;  %v1938_v18 = vld [vmem:[%s2361_s2] ss:$0 sm:$0xff] }
  0x4b   :  { %1199 = vmatpush.bf16.msra.mxu1 %v1887_v19 }
  0x4c   :  { %1212 = vmatpush.bf16.msra.mxu2 %v1895_v20 }
  0x4d   :  { %1225 = vmatpush.bf16.msra.mxu3 %v1903_v21 }
  0x4e   :  { %1187 = vmatpush.bf16.msra.mxu0 %v1878_v22 }
  0x4f   :  { %1200 = vmatpush.bf16.msra.mxu1 %v1886_v23 }
  0x50   :  { %1213 = vmatpush.bf16.msra.mxu2 %v1894_v24 }
  0x51   :  { %1226 = vmatpush.bf16.msra.mxu3 %v1902_v25 }
  0x52   :  { %1188 = vmatpush.bf16.msra.mxu0 %v1877_v26 }
  0x53   :  { %1201 = vmatpush.bf16.msra.mxu1 %v1885_v27 }
  0x54   :  { %1214 = vmatpush.bf16.msra.mxu2 %v1893_v28 }
  0x55   :  { %1227 = vmatpush.bf16.msra.mxu3 %v1901_v29 }
  0x56   :  { %1189 = vmatpush.bf16.msra.mxu0 %v1876_v30 }
  0x57   :  { %1202 = vmatpush.bf16.msra.mxu1 %v1884_v31 }
  0x58   :  { %1215 = vmatpush.bf16.msra.mxu2 %v1892_v32 }
  0x59   :  { %1228 = vmatpush.bf16.msra.mxu3 %v1900_v33 }
  0x5a   :  { %1190 = vmatpush.bf16.msra.mxu0 %v1875_v34 }
  0x5b   :  { %1203 = vmatpush.bf16.msra.mxu1 %v1883_v35 }
  0x5c   :  { %1216 = vmatpush.bf16.msra.mxu2 %v1891_v36 }
  0x5d   :  { %1229 = vmatpush.bf16.msra.mxu3 %v1899_v37 }
  0x5e   :  { %1191 = vmatpush.bf16.msra.mxu0 %v1874_v38 }
  0x5f   :  { %1204 = vmatpush.bf16.msra.mxu1 %v1882_v39 }
  0x60   :  { %1217 = vmatpush.bf16.msra.mxu2 %v1890_v40 }
  0x61   :  { %1230 = vmatpush.bf16.msra.mxu3 %v1898_v41  ;;  %1192 = vmatmul.bf16.vlgmr.msra.gmra.mxu0 %v288_v46 }
  0x62   :  { %1236 = vmatpush.bf16.msrb.mxu0 %v1913_v42  ;;  %1205 = vmatmul.bf16.vlgmr.msra.gmra.mxu1 %v289_v48 }
  0x63   :  { %1249 = vmatpush.bf16.msrb.mxu1 %v1921_v43  ;;  %1218 = vmatmul.bf16.vlgmr.msra.gmra.mxu2 %v290_v47 }
  0x64   :  { %1262 = vmatpush.bf16.msrb.mxu2 %v1929_v44  ;;  %1231 = vmatmul.bf16.vlgmr.msra.gmra.mxu3 %v291_v49 }
  0x65   :  { %1275 = vmatpush.bf16.msrb.mxu3 %v1937_v45 }
  0x66   :  { %1237 = vmatpush.bf16.msrb.mxu0 %v1912_v50 }
  0x67   :  { %1250 = vmatpush.bf16.msrb.mxu1 %v1920_v51 }
  0x68   :  { %1263 = vmatpush.bf16.msrb.mxu2 %v1928_v52 }
  0x69   :  { %1276 = vmatpush.bf16.msrb.mxu3 %v1936_v53 }
  0x6a   :  { %1238 = vmatpush.bf16.msrb.mxu0 %v1911_v54 }
  0x6b   :  { %1251 = vmatpush.bf16.msrb.mxu1 %v1919_v55 }
  0x6c   :  { %1264 = vmatpush.bf16.msrb.mxu2 %v1927_v56 }
  0x6d   :  { %1277 = vmatpush.bf16.msrb.mxu3 %v1935_v57 }
  0x6e   :  { %1239 = vmatpush.bf16.msrb.mxu0 %v1910_v58 }
  0x6f   :  { %1252 = vmatpush.bf16.msrb.mxu1 %v1918_v59 }
  0x70   :  { %1265 = vmatpush.bf16.msrb.mxu2 %v1926_v60 }
  0x71   :  { %1278 = vmatpush.bf16.msrb.mxu3 %v1934_v61 }
  0x72   :  { %1240 = vmatpush.bf16.msrb.mxu0 %v1909_v62 }
  0x73   :  { %1253 = vmatpush.bf16.msrb.mxu1 %v1917_v63 }
  0x74   :  { %1266 = vmatpush.bf16.msrb.mxu2 %v1925_v0 }
  0x75   :  { %1279 = vmatpush.bf16.msrb.mxu3 %v1933_v1 }
  0x76   :  { %1241 = vmatpush.bf16.msrb.mxu0 %v1908_v2 }
  0x77   :  { %1254 = vmatpush.bf16.msrb.mxu1 %v1916_v3 }
  0x78   :  { %1267 = vmatpush.bf16.msrb.mxu2 %v1924_v4 }
  0x79   :  { %1280 = vmatpush.bf16.msrb.mxu3 %v1932_v5 }
  0x7a   :  { %1242 = vmatpush.bf16.msrb.mxu0 %v1907_v6 }
  0x7b   :  { %1255 = vmatpush.bf16.msrb.mxu1 %v1915_v7 }
  0x7c   :  { %1268 = vmatpush.bf16.msrb.mxu2 %v1923_v8 }
  0x7d   :  { %1281 = vmatpush.bf16.msrb.mxu3 %v1931_v9 }
  0x7e   :  { %1243 = vmatpush.bf16.msrb.mxu0 %v1906_v10 }
  0x7f   :  { %1256 = vmatpush.bf16.msrb.mxu1 %v1914_v11 }
  0x80   :  { %1269 = vmatpush.bf16.msrb.mxu2 %v1922_v12 }
  0x81   :  { %1282 = vmatpush.bf16.msrb.mxu3 %v1930_v13  ;;  %1244 = vmatmul.bf16.vlgmr.msrb.gmra.mxu0 %v292_v14 }
  0x82   :  { %1257 = vmatmul.bf16.vlgmr.msrb.gmra.mxu1 %v293_v15 }
  0x83   :  { %1270 = vmatmul.bf16.vlgmr.msrb.gmra.mxu2 %v294_v16 }
  0x84   :  { %1283 = vmatmul.bf16.vlgmr.msrb.gmra.mxu3 %v295_v17 }
  0x9e   :  { %v1089_v19 = vpop.f32.mrf.mxu0 }
  0x9f   :  { %v1090_v20 = vadd.f32 %v1938_v18, %v1089_v19  ;;  %v1102_v21 = vpop.f32.mrf.mxu1 }
  0xa1   :  { %v1103_v22 = vadd.f32 %v1102_v21, %v1090_v20 }
  0xa6   :  { %v1115_v23 = vpop.f32.mrf.mxu2  ;;  %v1091_v26 = vpop.f32.mrf.mxu0 }
  0xa7   :  { %v1116_v24 = vadd.f32 %v1115_v23, %v1103_v22  ;;  %v1128_v25 = vpop.f32.mrf.mxu3  ;;  %v1104_v28 = vpop.f32.mrf.mxu1 }
  0xa9   :  { %v1129_v27 = vadd.f32 %v1128_v25, %v1116_v24 }
  0xae   :  { %v1117_v29 = vpop.f32.mrf.mxu2 }
  0xaf   :  { %v1130_v30 = vpop.f32.mrf.mxu3 }
  0xbe   :  { %v1141_v31 = vpop.f32.mrf.mxu0 }
  0xbf   :  { %v1154_v32 = vpop.f32.mrf.mxu1  ;;  %v1142_v41 = vadd.f32 %v1141_v31, %v1129_v27 }
  0xc1   :  { %v1155_v45 = vadd.f32 %v1154_v32, %v1142_v41 }
  0xc6   :  { %v1167_v33 = vpop.f32.mrf.mxu2  ;;  %v1143_v35 = vpop.f32.mrf.mxu0 }
  0xc7   :  { %v1180_v34 = vpop.f32.mrf.mxu3  ;;  %v1156_v36 = vpop.f32.mrf.mxu1  ;;  %v1168_v47 = vadd.f32 %v1167_v33, %v1155_v45 }
  0xc9   :  { %v1181_v50 = vadd.f32 %v1180_v34, %v1168_v47 }
  0xce   :  { %v1169_v37 = vpop.f32.mrf.mxu2 }
  0xcf   :  { %v1182_v38 = vpop.f32.mrf.mxu3 }
  0xde   :  { %v1193_v39 = vpop.f32.mrf.mxu0 }
  0xdf   :  { %v1206_v40 = vpop.f32.mrf.mxu1  ;;  %v1194_v51 = vadd.f32 %v1193_v39, %v1181_v50 }
  0xe1   :  { %v1207_v52 = vadd.f32 %v1206_v40, %v1194_v51 }
  0xe6   :  { %v1219_v42 = vpop.f32.mrf.mxu2  ;;  %v1195_v44 = vpop.f32.mrf.mxu0 }
  0xe7   :  { %v1232_v43 = vpop.f32.mrf.mxu3  ;;  %v1208_v46 = vpop.f32.mrf.mxu1  ;;  %v1220_v53 = vadd.f32 %v1219_v42, %v1207_v52 }
  0xe9   :  { %v1233_v54 = vadd.f32 %v1232_v43, %v1220_v53 }
  0xee   :  { %v1221_v48 = vpop.f32.mrf.mxu2 }
  0xef   :  { %v1234_v49 = vpop.f32.mrf.mxu3 }
  0xfe   :  { %v1245_v55 = vpop.f32.mrf.mxu0 }
  0xff   :  { %v1258_v56 = vpop.f32.mrf.mxu1  ;;  %v1246_v57 = vadd.f32 %v1245_v55, %v1233_v54 }
 0x101   :  { %v1259_v58 = vadd.f32 %v1258_v56, %v1246_v57 }
 0x106   :  { %v1271_v59 = vpop.f32.mrf.mxu2  ;;  %v1247_v62 = vpop.f32.mrf.mxu0 }
 0x107   :  { %v1284_v60 = vpop.f32.mrf.mxu3  ;;  %v1272_v61 = vadd.f32 %v1271_v59, %v1259_v58  ;;  %v1260_v63 = vpop.f32.mrf.mxu1 }
 0x109   :  { %v1285_v0 = vadd.f32 %v1284_v60, %v1272_v61 }
 0x10b   :  { %v1288_v1 = vsub.f32 0.0, %v1285_v0 }
 0x10d   :  { %v1289_v2 = vmul.f32 1.442695, %v1288_v1 }
 0x10e   :  { %v1273_v3 = vpop.f32.mrf.mxu2 }
 0x10f   :  { %v1286_v4 = vpop.f32.mrf.mxu3  ;;  %1939 = vpow2.f32 %v1289_v2 }
 0x115   :  { %v1940_v5 = vpop.eup %1939 }
 0x116   :  { %v1291_v6 = vadd.f32 1.0, %v1940_v5 }
 0x118   :  { %1941 = vrcp.f32 %v1291_v6 }
 0x11e   :  { %v1942_v7 = vpop.eup %1941 }
 0x11f   :  { %1293 = vst [vmem:[%s2362_s3] sm:$0x3] %v1942_v7 }

// kernel: discriminator_forward.8
= control target key start
LH: loop header
LB: loop body
LE: loop exit
PB: predicated region body
PF: predicated region fallthrough
CT: control target
= control target key end

     0   :  { %vm132_vm0 = vcmask 261120   ;;  %vm301_vm1 = vcmask 1045504   ;;  %s2626_s1 = inlined_call_operand.vmem [shape: bf16[5,160,128], index: 1, kind: input, shape index: {}]   ;;  %s2627_s0 = inlined_call_operand.vmem [shape: bf16[96,160], index: 0, kind: input, shape index: {}]   ;;  %s2628_s3 = inlined_call_operand.vmem [shape: f32[1,128], index: 3, kind: input, shape index: {}]   ;;  %s2629_s2 = inlined_call_operand.vmem [shape: f32[1,128], index: 2, kind: input, shape index: {}]   ;;  %s2630_s4 = inlined_call_operand.vmem [shape: bf16[32,128], index: 4, kind: output, shape index: {}]  }
   0x1   :  { %v2030_v0 = vld [vmem:[%s2626_s1 + $0x88] sm:$0xff]  ;;  %v2032_v1 = vld [vmem:[%s2626_s1 + $0x98] sm:$0xff]  ;;  %v2029_v4 = vld [vmem:[%s2626_s1 + $0x80] sm:$0xff] }
   0x2   :  { %v2018_v2 = vld [vmem:[%s2626_s1 + $0x38] sm:$0xff]  ;;  %v2020_v3 = vld [vmem:[%s2626_s1 + $0x48] sm:$0xff]  ;;  %136 = vmatpush.bf16.msra.mxu0 %v2030_v0  ;;  %156 = vmatpush.bf16.msra.mxu1 %v2032_v1  ;;  %v2031_v5 = vld [vmem:[%s2626_s1 + $0x90] sm:$0xff] }
   0x3   :  { %v2017_v6 = vld [vmem:[%s2626_s1 + $0x30] sm:$0xff]  ;;  %236 = vmatpush.bf16.msra.mxu2 %v2018_v2  ;;  %256 = vmatpush.bf16.msra.mxu3 %v2020_v3  ;;  %v2019_v7 = vld [vmem:[%s2626_s1 + $0x40] sm:$0xff]  ;;  %v1464_v9 = vld [vmem:[%s2627_s0 + $0x8] sm:$0xf0] }
   0x4   :  { %v2009_v8 = vld [vmem:[%s2627_s0 + $0x4] sm:$0xf]  ;;  %v2040_v10 = vld [vmem:[%s2626_s1 + $0xd8] sm:$0xff]  ;;  %v2042_v11 = vld [vmem:[%s2626_s1 + $0xe8] sm:$0xff] }
   0x5   :  { %v1467_v12 = vor.u32 %v2009_v8, %v1464_v9  ;;  %v2028_v13 = vld [vmem:[%s2626_s1 + $0x78] sm:$0xff]  ;;  %v2016_v15 = vld [vmem:[%s2626_s1 + $0x28] sm:$0xff]  ;;  %v1415_v16 = vld [vmem:[%s2627_s0 + $0x20] sm:$0xf0] }
   0x6   :  { %137 = vmatpush.bf16.msra.mxu0 %v2029_v4  ;;  %157 = vmatpush.bf16.msra.mxu1 %v2031_v5  ;;  %v2021_v14 = vld [vmem:[%s2627_s0 + $0x1c] sm:$0xf]  ;;  %v2039_v17 = vld [vmem:[%s2626_s1 + $0xd0] sm:$0xff]  ;;  %v2041_v18 = vld [vmem:[%s2626_s1 + $0xe0] sm:$0xff] }
   0x7   :  { %237 = vmatpush.bf16.msra.mxu2 %v2017_v6  ;;  %257 = vmatpush.bf16.msra.mxu3 %v2019_v7  ;;  %v1418_v19 = vor.u32 %v2021_v14, %v1415_v16  ;;  %v2052_v20 = vld [vmem:[%s2626_s1 + $0x128] sm:$0xff]  ;;  %v2027_v21 = vld [vmem:[%s2626_s1 + $0x70] sm:$0xff]  ;;  %v264_v22 = vld [vmem:[%s2627_s0] sm:$0xcc] }
   0x8   :  { %v2231_v23 = vld [vmem:[%s2627_s0 + $0x8] sm:$0xff]  ;;  %v2015_v24 = vld [vmem:[%s2626_s1 + $0x20] sm:$0xff]  ;;  %v266_v25 = vld [vmem:[%s2627_s0 + $0x10] sm:$0x33]  ;;  %v292_v26 = vunpack.c.h.b16 %v264_v22  ;;  %v291_v47 = vunpack.c.l.b16 %v264_v22 }
   0x9   :  { %1459 = vmatmul.msk.bf16.vlgmr.msra.gmra.mxu1 %vm132_vm0, %v1418_v19  ;;  %v294_v27 = vunpack.c.h.b16 %v2231_v23  ;;  %v2038_v28 = vld [vmem:[%s2626_s1 + $0xc8] sm:$0xff]  ;;  %v296_v29 = vunpack.c.h.b16 %v266_v25  ;;  %v2051_v30 = vld [vmem:[%s2626_s1 + $0x120] sm:$0xff]  ;;  %v2014_v32 = vld [vmem:[%s2626_s1 + $0x18] sm:$0xff]  ;;  %v293_v48 = vunpack.c.l.b16 %v2231_v23  ;;  %v295_v49 = vunpack.c.l.b16 %v266_v25 }
   0xa   :  { %372 = vmatpush.bf16.msrb.mxu1 %v2040_v10  ;;  %1508 = vmatmul.msk.bf16.vlgmr.msra.gmra.mxu3 %vm132_vm0, %v1467_v12  ;;  %v2026_v31 = vld [vmem:[%s2626_s1 + $0x68] sm:$0xff]  ;;  %v2037_v35 = vld [vmem:[%s2626_s1 + $0xc0] sm:$0xff]  ;;  %v2050_v36 = vld [vmem:[%s2626_s1 + $0x118] sm:$0xff] }
   0xb   :  { %392 = vmatpush.bf16.msrb.mxu3 %v2042_v11  ;;  %138 = vmatpush.bf16.msra.mxu0 %v2028_v13  ;;  %v298_v33 = vpack.c.b16 %v294_v27, %v292_v26  ;;  %v300_v34 = vpack.c.b16 %v296_v29, %v296_v29  ;;  %v2025_v37 = vld [vmem:[%s2626_s1 + $0x60] sm:$0xff]  ;;  %v2013_v38 = vld [vmem:[%s2626_s1 + $0x10] sm:$0xff]  ;;  %v2036_v41 = vld [vmem:[%s2626_s1 + $0xb8] sm:$0xff]  ;;  %v297_v61 = vpack.c.b16 %v293_v48, %v291_v47 }
   0xc   :  { %238 = vmatpush.bf16.msra.mxu2 %v2016_v15  ;;  %v2049_v42 = vld [vmem:[%s2626_s1 + $0x110] sm:$0xff]  ;;  %v2024_v43 = vld [vmem:[%s2626_s1 + $0x58] sm:$0xff]  ;;  %v2012_v45 = vld [vmem:[%s2626_s1 + $0x8] sm:$0xff]  ;;  %v299_v62 = vpack.c.b16 %v295_v49, %v295_v49 }
   0xd   :  { %v305_v39 = vrot.slane %v298_v33, 2  ;;  %v306_v40 = vrot.slane %v300_v34, 2  ;;  %v2035_v46 = vld [vmem:[%s2626_s1 + $0xb0] sm:$0xff]  ;;  %v2048_v50 = vld [vmem:[%s2626_s1 + $0x108] sm:$0xff]  ;;  %v2011_v52 = vld [vmem:[%s2626_s1] sm:$0xff]  ;;  %v302_v8 = vrot.slane %v297_v61, 2 }
   0xe   :  { %373 = vmatpush.bf16.msrb.mxu1 %v2039_v17  ;;  %v2023_v51 = vld [vmem:[%s2626_s1 + $0x50] sm:$0xff]  ;;  %v1413_v53 = vld [vmem:[%s2627_s0 + $0x18] sm:$0xf]  ;;  %v2022_v54 = vld [vmem:[%s2627_s0 + $0x1c] sm:$0xf0]  ;;  %v303_v9 = vrot.slane %v299_v62, 2 }
   0xf   :  { %393 = vmatpush.bf16.msrb.mxu3 %v2041_v18  ;;  %139 = vmatpush.bf16.msra.mxu0 %v2027_v21  ;;  %v307_v44 = vsel %vm301_vm1, %v305_v39, %v306_v40  ;;  %v2303_v55 = vld [vmem:[%s2627_s0 + $0x28] sm:$0x33]  ;;  %v1462_v57 = vld [vmem:[%s2627_s0] sm:$0xf]  ;;  %v2062_v60 = vld [vmem:[%s2626_s1 + $0x178] sm:$0xff]  ;;  %v1414_v0 = vor.u32 %v2022_v54, %v1413_v53 }
  0x10   :  { %239 = vmatpush.bf16.msra.mxu2 %v2015_v24  ;;  %v2086_v56 = vld [vmem:[%s2626_s1 + $0x88] sm:$0xff]  ;;  %v2047_v63 = vld [vmem:[%s2626_s1 + $0x100] sm:$0xff]  ;;  %v433_v1 = vunpack.c.l.b16 %v2303_v55  ;;  %v1592_v3 = vld [vmem:[%s2627_s0 + $0x18] sm:$0xc]  ;;  %v304_v15 = vsel %vm301_vm1, %v302_v8, %v303_v9  ;;  %v434_v34 = vunpack.c.h.b16 %v2303_v55 }
  0x11   :  { %v2010_v58 = vld [vmem:[%s2627_s0 + $0x4] sm:$0xf0]  ;;  %v2044_v4 = vld [vmem:[%s2627_s0 + $0x1c] sm:$0xf0]  ;;  %v2061_v7 = vld [vmem:[%s2626_s1 + $0x170] sm:$0xff] }
  0x12   :  { %374 = vmatpush.bf16.msrb.mxu1 %v2038_v28  ;;  %v2034_v59 = vld [vmem:[%s2626_s1 + $0xa8] sm:$0xff]  ;;  %v1463_v2 = vor.u32 %v2010_v58, %v1462_v57  ;;  %v2085_v5 = vld [vmem:[%s2626_s1 + $0x80] sm:$0xff]  ;;  %v2046_v10 = vld [vmem:[%s2626_s1 + $0xf8] sm:$0xff]  ;;  %v1593_v12 = vor.u32 %v2044_v4, %v1592_v3  ;;  %v437_v13 = vpack.c.b16 %v433_v1, %v433_v1 }
  0x13   :  { %509 = vmatpush.bf16.msra.mxu3 %v2052_v20  ;;  %140 = vmatpush.bf16.msra.mxu0 %v2026_v31  ;;  %v2033_v6 = vld [vmem:[%s2626_s1 + $0xa0] sm:$0xff]  ;;  %v2064_v11 = vld [vmem:[%s2626_s1 + $0x188] sm:$0xff]  ;;  %v2084_v14 = vld [vmem:[%s2626_s1 + $0x78] sm:$0xff] }
  0x14   :  { %240 = vmatpush.bf16.msra.mxu2 %v2014_v32  ;;  %v2060_v16 = vld [vmem:[%s2626_s1 + $0x168] sm:$0xff]  ;;  %v2045_v17 = vld [vmem:[%s2626_s1 + $0xf0] sm:$0xff]  ;;  %v439_v18 = vrot.slane %v1593_v12, 2  ;;  %v440_v19 = vrot.slane %v437_v13, 2  ;;  %v2063_v20 = vld [vmem:[%s2626_s1 + $0x180] sm:$0xff] }
  0x15   :  { %v2054_v21 = vld [vmem:[%s2626_s1 + $0x138] sm:$0xff]  ;;  %v2083_v24 = vld [vmem:[%s2626_s1 + $0x70] sm:$0xff]  ;;  %v2059_v25 = vld [vmem:[%s2626_s1 + $0x160] sm:$0xff] }
  0x16   :  { %375 = vmatpush.bf16.msrb.mxu1 %v2037_v35  ;;  %v2088_v22 = vld [vmem:[%s2626_s1 + $0x98] sm:$0xff]  ;;  %v441_v26 = vsel %vm301_vm1, %v439_v18, %v440_v19  ;;  %v2053_v28 = vld [vmem:[%s2626_s1 + $0x130] sm:$0xff]  ;;  %v2082_v31 = vld [vmem:[%s2626_s1 + $0x68] sm:$0xff] }
  0x17   :  { %510 = vmatpush.bf16.msra.mxu3 %v2051_v30  ;;  %141 = vmatpush.bf16.msra.mxu0 %v2025_v37  ;;  %v2087_v29 = vld [vmem:[%s2626_s1 + $0x90] sm:$0xff]  ;;  %v2074_v30 = vld [vmem:[%s2626_s1 + $0x38] sm:$0xff]  ;;  %v2076_v55 = vld [vmem:[%s2626_s1 + $0x48] sm:$0xff] }
  0x18   :  { %241 = vmatpush.bf16.msra.mxu2 %v2013_v38  ;;  %v2058_v32 = vld [vmem:[%s2626_s1 + $0x158] sm:$0xff]  ;;  %v539_v33 = vld [vmem:[%s2627_s0 + $0x10] sm:$0xff]  ;;  %v2081_v38 = vld [vmem:[%s2626_s1 + $0x60] sm:$0xff] }
  0x19   :  { %v2043_v35 = vld [vmem:[%s2627_s0 + $0x1c] sm:$0xc]  ;;  %v2073_v37 = vld [vmem:[%s2626_s1 + $0x30] sm:$0xff]  ;;  %v563_v39 = vunpack.c.h.b16 %v539_v33  ;;  %v1722_v57 = vld [vmem:[%s2627_s0 + $0x48] sm:$0xf] }
  0x1a   :  { %376 = vmatpush.bf16.msrb.mxu1 %v2036_v41  ;;  %1569 = vmatmul.msk.bf16.vlgmr.msrb.gmra.mxu3 %vm132_vm0, %v307_v44  ;;  %v2057_v40 = vld [vmem:[%s2626_s1 + $0x150] sm:$0xff]  ;;  %v2072_v44 = vld [vmem:[%s2626_s1 + $0x28] sm:$0xff]  ;;  %v2096_v47 = vld [vmem:[%s2626_s1 + $0xd8] sm:$0xff] }
  0x1b   :  { %511 = vmatpush.bf16.msra.mxu3 %v2050_v36  ;;  %142 = vmatpush.bf16.msra.mxu0 %v2024_v43  ;;  %v1594_v36 = vld [vmem:[%s2627_s0 + $0x20] sm:$0xf0]  ;;  %v565_v43 = vpack.c.b16 %v563_v39, %v294_v27  ;;  %v2079_v53 = vld [vmem:[%s2626_s1 + $0x50] sm:$0xff]  ;;  %v2099_v61 = vld [vmem:[%s2627_s0 + $0x4c] sm:$0xc] }
  0x1c   :  { %242 = vmatpush.bf16.msra.mxu2 %v2012_v45  ;;  %v1597_v41 = vor.u32 %v2043_v35, %v1594_v36  ;;  %v2056_v45 = vld [vmem:[%s2626_s1 + $0x148] sm:$0xff]  ;;  %v2071_v27 = vld [vmem:[%s2626_s1 + $0x20] sm:$0xff]  ;;  %v2095_v54 = vld [vmem:[%s2626_s1 + $0xd0] sm:$0xff] }
  0x1d   :  { %v2078_v58 = vld [vmem:[%s2627_s0 + $0x4c] sm:$0xf0]  ;;  %v1903_v62 = vld [vmem:[%s2627_s0 + $0x50] sm:$0xf0]  ;;  %v2070_v1 = vld [vmem:[%s2626_s1 + $0x18] sm:$0xff] }
  0x1e   :  { %377 = vmatpush.bf16.msrb.mxu1 %v2035_v46  ;;  %v2080_v46 = vld [vmem:[%s2626_s1 + $0x58] sm:$0xff]  ;;  %v442_v49 = vrot.slane %v1597_v41, 2  ;;  %v2094_v3 = vld [vmem:[%s2626_s1 + $0xc8] sm:$0xff]  ;;  %v1723_v4 = vor.u32 %v2078_v58, %v1722_v57  ;;  %v2075_v23 = vld [vmem:[%s2626_s1 + $0x40] sm:$0xff] }
  0x1f   :  { %512 = vmatpush.bf16.msra.mxu3 %v2049_v42  ;;  %143 = vmatpush.bf16.msra.mxu0 %v2023_v51  ;;  %v438_v42 = vpack.c.b16 %v434_v34, %v434_v34  ;;  %v2055_v51 = vld [vmem:[%s2626_s1 + $0x140] sm:$0xff]  ;;  %v2100_v8 = vld [vmem:[%s2627_s0 + $0x4c] sm:$0xf0]  ;;  %v2068_v34 = vld [vmem:[%s2626_s1 + $0x8] sm:$0xff] }
  0x20   :  { %243 = vmatpush.bf16.msra.mxu2 %v2011_v52  ;;  %v562_v52 = vunpack.c.l.b16 %v539_v33  ;;  %v2097_v9 = vld [vmem:[%s2626_s1 + $0xe0] sm:$0xff]  ;;  %v2069_v18 = vld [vmem:[%s2626_s1 + $0x10] sm:$0xff]  ;;  %v2092_v35 = vld [vmem:[%s2626_s1 + $0xb8] sm:$0xff] }
  0x21   :  { %v2116_v39 = vld [vmem:[%s2626_s1 + $0x168] sm:$0xff]  ;;  %v2091_v41 = vld [vmem:[%s2626_s1 + $0xb0] sm:$0xff] }
  0x22   :  { %378 = vmatpush.bf16.msrb.mxu1 %v2034_v59  ;;  %144 = vmatmul.bf16.vlgmr.msra.gmra.mxu0 %v1414_v0  ;;  %v1044_v59 = vld [vmem:[%s2627_s0 + $0x58] sm:$0x33]  ;;  %v564_v0 = vpack.c.b16 %v562_v52, %v293_v48 }
  0x23   :  { %513 = vmatpush.bf16.msra.mxu3 %v2048_v50  ;;  %778 = vmatpush.bf16.msrb.mxu0 %v2086_v56  ;;  %v443_v50 = vrot.slane %v438_v42, 2  ;;  %v1771_v42 = vld [vmem:[%s2627_s0 + $0x30] sm:$0xf] }
  0x24   :  { %630 = vmatpush.bf16.msrb.mxu2 %v2062_v60  ;;  %v2098_v60 = vld [vmem:[%s2626_s1 + $0xe8] sm:$0xff] }
  0x25   :  { %244 = vmatmul.bf16.vlgmr.msra.gmra.mxu2 %v1463_v2  ;;  %v444_v56 = vsel %vm301_vm1, %v442_v49, %v443_v50  ;;  %v1906_v2 = vor.u32 %v2099_v61, %v1903_v62  ;;  %v2104_v61 = vld [vmem:[%s2626_s1 + $0x108] sm:$0xff]  ;;  %v2114_v62 = vld [vmem:[%s2626_s1 + $0x158] sm:$0xff] }
  0x26   :  { %379 = vmatpush.bf16.msrb.mxu1 %v2033_v6  ;;  %v1072_v6 = vunpack.c.l.b16 %v1044_v59 }
  0x27   :  { %514 = vmatpush.bf16.msra.mxu3 %v2047_v63  ;;  %779 = vmatpush.bf16.msrb.mxu0 %v2085_v5  ;;  %v1073_v63 = vunpack.c.h.b16 %v1044_v59  ;;  %v1081_v48 = vrot.slane %v1906_v2, 2  ;;  %v2120_v2 = vld [vmem:[%s2626_s1 + $0x188] sm:$0xff] }
  0x28   :  { %631 = vmatpush.bf16.msrb.mxu2 %v2061_v7  ;;  %v1901_v7 = vld [vmem:[%s2627_s0 + $0x48] sm:$0xc] }
  0x29   :  { %380 = vmatmul.bf16.vlgmr.msrb.gmra.mxu1 %v304_v15  ;;  %v1077_v5 = vpack.c.b16 %v1073_v63, %v1073_v63  ;;  %v1902_v13 = vor.u32 %v2100_v8, %v1901_v7  ;;  %v906_v15 = vld [vmem:[%s2627_s0 + $0x30] sm:$0xcc]  ;;  %v2089_v63 = vld [vmem:[%s2626_s1 + $0xa0] sm:$0xff] }
  0x2a   :  { %650 = vmatpush.bf16.msra.mxu1 %v2064_v11  ;;  %v2118_v11 = vld [vmem:[%s2626_s1 + $0x178] sm:$0xff]  ;;  %v1178_v7 = vld [vmem:[%s2627_s0 + $0x40] sm:$0xff]  ;;  %v2101_v8 = vld [vmem:[%s2626_s1 + $0xf0] sm:$0xff] }
  0x2b   :  { %515 = vmatpush.bf16.msra.mxu3 %v2046_v10  ;;  %780 = vmatpush.bf16.msrb.mxu0 %v2084_v14  ;;  %v2108_v10 = vld [vmem:[%s2626_s1 + $0x128] sm:$0xff]  ;;  %v1082_v12 = vrot.slane %v1077_v5, 2  ;;  %v1076_v14 = vpack.c.b16 %v1072_v6, %v1072_v6  ;;  %v2119_v6 = vld [vmem:[%s2626_s1 + $0x180] sm:$0xff] }
  0x2c   :  { %632 = vmatpush.bf16.msrb.mxu2 %v2060_v16  ;;  %v2489_v16 = vld [vmem:[%s2627_s0 + $0x38] sm:$0xff] }
  0x2d   :  { %v2498_v19 = vsel %vm301_vm1, %v1081_v48, %v1082_v12  ;;  %v934_v49 = vunpack.c.l.b16 %v2489_v16  ;;  %v2112_v48 = vld [vmem:[%s2626_s1 + $0x148] sm:$0xff]  ;;  %v1201_v12 = vunpack.c.h.b16 %v1178_v7 }
  0x2e   :  { %651 = vmatpush.bf16.msra.mxu1 %v2063_v20  ;;  %v1078_v20 = vrot.slane %v1902_v13, 2 }
  0x2f   :  { %516 = vmatpush.bf16.msra.mxu3 %v2045_v17  ;;  %781 = vmatpush.bf16.msrb.mxu0 %v2083_v24  ;;  %v908_v17 = vld [vmem:[%s2627_s0 + $0x40] sm:$0x33]  ;;  %v2077_v24 = vld [vmem:[%s2627_s0 + $0x4c] sm:$0xf] }
  0x30   :  { %633 = vmatpush.bf16.msrb.mxu2 %v2059_v25  ;;  %v1724_v25 = vld [vmem:[%s2627_s0 + $0x50] sm:$0xf0]  ;;  %v936_v50 = vunpack.c.l.b16 %v908_v17 }
  0x31   :  { %v1727_v33 = vor.u32 %v2077_v24, %v1724_v25 }
  0x32   :  { %798 = vmatpush.bf16.msrb.mxu1 %v2088_v22  ;;  %517 = vmatmul.bf16.vlgmr.msra.gmra.mxu3 %v441_v26  ;;  %v2093_v22 = vld [vmem:[%s2626_s1 + $0xc0] sm:$0xff]  ;;  %v933_v26 = vunpack.c.h.b16 %v906_v15  ;;  %v940_v58 = vpack.c.b16 %v936_v50, %v936_v50 }
  0x33   :  { %529 = vmatpush.bf16.msrb.mxu3 %v2054_v21  ;;  %782 = vmatpush.bf16.msrb.mxu0 %v2082_v31  ;;  %v1079_v21 = vrot.slane %v1076_v14, 2  ;;  %v2107_v31 = vld [vmem:[%s2626_s1 + $0x120] sm:$0xff] }
  0x34   :  { %634 = vmatpush.bf16.msrb.mxu2 %v2058_v32  ;;  %v2117_v32 = vld [vmem:[%s2626_s1 + $0x170] sm:$0xff] }
  0x36   :  { %799 = vmatpush.bf16.msrb.mxu1 %v2087_v29  ;;  %v937_v29 = vunpack.c.h.b16 %v908_v17 }
  0x37   :  { %530 = vmatpush.bf16.msrb.mxu3 %v2053_v28  ;;  %783 = vmatpush.bf16.msrb.mxu0 %v2081_v38  ;;  %v935_v28 = vunpack.c.h.b16 %v2489_v16  ;;  %v2106_v38 = vld [vmem:[%s2626_s1 + $0x118] sm:$0xff] }
  0x38   :  { %635 = vmatpush.bf16.msrb.mxu2 %v2057_v40  ;;  %v2067_v40 = vld [vmem:[%s2626_s1] sm:$0xff] }
  0x39   :  { %1699 = vmatmul.msk.bf16.vlgmr.msra.gmra.mxu1 %vm132_vm0, %v565_v43  ;;  %v939_v36 = vpack.c.b16 %v935_v28, %v933_v26  ;;  %v2066_v43 = vld [vmem:[%s2627_s0 + $0x34] sm:$0xf0]  ;;  %v1203_v13 = vpack.c.b16 %v1201_v12, %v935_v28  ;;  %v2138_v12 = vmov 32.0  }
  0x3a   :  { %1012 = vmatpush.bf16.msra.mxu1 %v2096_v47  ;;  %v932_v47 = vunpack.c.l.b16 %v906_v15  ;;  %v1772_v52 = vor.u32 %v2066_v43, %v1771_v42  ;;  %2134 = vrcp.f32 %v2138_v12 }
  0x3b   :  { %878 = vmatpush.bf16.msra.mxu3 %v2074_v30  ;;  %784 = vmatpush.bf16.msrb.mxu0 %v2080_v46  ;;  %v2511_v30 = vsel %vm301_vm1, %v1078_v20, %v1079_v21  ;;  %v2110_v46 = vld [vmem:[%s2626_s1 + $0x138] sm:$0xff] }
  0x3c   :  { %636 = vmatpush.bf16.msrb.mxu2 %v2056_v45  ;;  %v1773_v45 = vld [vmem:[%s2627_s0 + $0x38] sm:$0xf0]  ;;  %v938_v57 = vpack.c.b16 %v934_v49, %v932_v47 }
  0x3e   :  { %1013 = vmatpush.bf16.msra.mxu1 %v2095_v54  ;;  %v2115_v54 = vld [vmem:[%s2626_s1 + $0x160] sm:$0xff] }
  0x3f   :  { %879 = vmatpush.bf16.msra.mxu3 %v2073_v37  ;;  %785 = vmatpush.bf16.msrb.mxu0 %v2079_v53  ;;  %v941_v37 = vpack.c.b16 %v937_v29, %v937_v29  ;;  %v2105_v53 = vld [vmem:[%s2626_s1 + $0x110] sm:$0xff] }
  0x40   :  { %637 = vmatpush.bf16.msrb.mxu2 %v2055_v51 }
  0x41   :  { %v946_v51 = vrot.slane %v941_v37, 2 }
  0x42   :  { %1638 = vmatmul.msk.bf16.vlgmr.msrb.gmra.mxu3 %vm132_vm0, %v444_v56  ;;  %786 = vmatmul.bf16.vlgmr.msrb.gmra.mxu0 %v1723_v4  ;;  %v2090_v56 = vld [vmem:[%s2626_s1 + $0xa8] sm:$0xff]  ;;  %v2113_v4 = vld [vmem:[%s2626_s1 + $0x150] sm:$0xff] }
  0x43   :  { %880 = vmatpush.bf16.msra.mxu3 %v2072_v44  ;;  %1032 = vmatpush.bf16.msra.mxu0 %v2098_v60  ;;  %v2065_v44 = vld [vmem:[%s2627_s0 + $0x34] sm:$0xf] }
  0x44   :  { %898 = vmatpush.bf16.msra.mxu2 %v2076_v55  ;;  %1014 = vmatpush.bf16.msra.mxu1 %v2094_v3  ;;  %v1776_v55 = vor.u32 %v2065_v44, %v1773_v45  ;;  %v2109_v60 = vld [vmem:[%s2626_s1 + $0x130] sm:$0xff]  ;;  %v2103_v3 = vld [vmem:[%s2626_s1 + $0x100] sm:$0xff] }
  0x45   :  { %638 = vmatmul.bf16.vlgmr.msrb.gmra.mxu2 %v564_v0  ;;  %v942_v0 = vrot.slane %v938_v57, 2 }
  0x47   :  { %881 = vmatpush.bf16.msra.mxu3 %v2071_v27  ;;  %1033 = vmatpush.bf16.msra.mxu0 %v2097_v9  ;;  %v945_v27 = vrot.slane %v939_v36, 2  ;;  %v1200_v9 = vunpack.c.l.b16 %v1178_v7 }
  0x48   :  { %899 = vmatpush.bf16.msra.mxu2 %v2075_v23  ;;  %1015 = vmatpush.bf16.msra.mxu1 %v2093_v22  ;;  %v2102_v23 = vld [vmem:[%s2626_s1 + $0xf8] sm:$0xff] }
  0x49   :  { %1768 = vmatmul.msk.bf16.vlgmr.msrb.gmra.mxu1 %vm132_vm0, %v1727_v33  ;;  %v947_v59 = vsel %vm301_vm1, %v945_v27, %v946_v51 }
  0x4b   :  { %882 = vmatpush.bf16.msra.mxu3 %v2070_v1  ;;  %1268 = vmatpush.bf16.msrb.mxu0 %v2118_v11  ;;  %v943_v1 = vrot.slane %v940_v58, 2  ;;  %v1202_v11 = vpack.c.b16 %v1200_v9, %v934_v49 }
  0x4c   :  { %1148 = vmatpush.bf16.msrb.mxu2 %v2108_v10  ;;  %1016 = vmatpush.bf16.msra.mxu1 %v2092_v35  ;;  %v2111_v10 = vld [vmem:[%s2626_s1 + $0x140] sm:$0xff] }
  0x4d   :  { %v944_v5 = vsel %vm301_vm1, %v942_v0, %v943_v1 }
  0x4f   :  { %883 = vmatpush.bf16.msra.mxu3 %v2069_v18  ;;  %1269 = vmatpush.bf16.msrb.mxu0 %v2117_v32 }
  0x50   :  { %1149 = vmatpush.bf16.msrb.mxu2 %v2107_v31  ;;  %1017 = vmatpush.bf16.msra.mxu1 %v2091_v41 }
  0x52   :  { %1878 = vmatmul.msk.bf16.vlgmr.msra.gmra.mxu0 %vm132_vm0, %v947_v59 }
  0x53   :  { %884 = vmatpush.bf16.msra.mxu3 %v2068_v34  ;;  %1270 = vmatpush.bf16.msrb.mxu0 %v2116_v39 }
  0x54   :  { %1150 = vmatpush.bf16.msrb.mxu2 %v2106_v38  ;;  %1018 = vmatpush.bf16.msra.mxu1 %v2090_v56 }
  0x55   :  { %1817 = vmatmul.msk.bf16.vlgmr.msra.gmra.mxu2 %vm132_vm0, %v1776_v55 }
  0x57   :  { %885 = vmatpush.bf16.msra.mxu3 %v2067_v40  ;;  %1271 = vmatpush.bf16.msrb.mxu0 %v2115_v54 }
  0x58   :  { %1151 = vmatpush.bf16.msrb.mxu2 %v2105_v53  ;;  %1019 = vmatpush.bf16.msra.mxu1 %v2089_v63 }
  0x5a   :  { %886 = vmatmul.bf16.vlgmr.msra.gmra.mxu3 %v1772_v52 }
  0x5b   :  { %1168 = vmatpush.bf16.msrb.mxu3 %v2110_v46  ;;  %1272 = vmatpush.bf16.msrb.mxu0 %v2114_v62 }
  0x5c   :  { %1152 = vmatpush.bf16.msrb.mxu2 %v2104_v61  ;;  %1288 = vmatpush.bf16.msrb.mxu1 %v2120_v2 }
  0x5d   :  { %1020 = vmatmul.bf16.vlgmr.msra.gmra.mxu1 %v944_v5 }
  0x5f   :  { %1169 = vmatpush.bf16.msrb.mxu3 %v2109_v60  ;;  %1273 = vmatpush.bf16.msrb.mxu0 %v2113_v4 }
  0x60   :  { %1153 = vmatpush.bf16.msrb.mxu2 %v2103_v3  ;;  %1289 = vmatpush.bf16.msrb.mxu1 %v2119_v6 }
  0x63   :  { %1274 = vmatpush.bf16.msrb.mxu0 %v2112_v48 }
  0x64   :  { %1154 = vmatpush.bf16.msrb.mxu2 %v2102_v23 }
  0x67   :  { %1275 = vmatpush.bf16.msrb.mxu0 %v2111_v10 }
  0x68   :  { %1155 = vmatpush.bf16.msrb.mxu2 %v2101_v8 }
  0x6a   :  { %1947 = vmatmul.msk.bf16.vlgmr.msrb.gmra.mxu3 %vm132_vm0, %v2498_v19  ;;  %1276 = vmatmul.bf16.vlgmr.msrb.gmra.mxu0 %v1202_v11 }
  0x6b   :  { %1156 = vmatmul.bf16.vlgmr.msrb.gmra.mxu2 %v2511_v30 }
  0x6d   :  { %2008 = vmatmul.msk.bf16.vlgmr.msrb.gmra.mxu1 %vm132_vm0, %v1203_v13 }
  0x86   :  { %v159_v15 = vpop.f32.mrf.mxu1 }
  0x8d   :  { %v259_v14 = vpop.f32.mrf.mxu3 }
  0x8e   :  { %v161_v18 = vpop.f32.mrf.mxu1 }
  0x95   :  { %v261_v17 = vpop.f32.mrf.mxu3 }
  0x9d   :  { %v395_v20 = vpop.f32.mrf.mxu3 }
  0x9f   :  { %v145_v21 = vpop.f32.mrf.mxu0 }
  0xa0   :  { %v160_v22 = vadd.f32 %v159_v15, %v145_v21 }
  0xa5   :  { %v397_v29 = vpop.f32.mrf.mxu3 }
  0xa6   :  { %v381_v24 = vpop.f32.mrf.mxu1 }
  0xa7   :  { %v396_v19 = vadd.f32 %v395_v20, %v381_v24  ;;  %v147_v30 = vpop.f32.mrf.mxu0  ;;  %v2135_v20 = vpop.eup %2134 }
  0xa8   :  { %v245_v25 = vpop.f32.mrf.mxu2  ;;  %v162_v33 = vadd.f32 %v161_v18, %v147_v30  ;;  %vm1318_vm2 = vweird.f32 %v2135_v20 }
  0xa9   :  { %v246_v26 = vadd.f32 %v245_v25, %v160_v22 }
  0xab   :  { %v260_v31 = vadd.f32 %v259_v14, %v246_v26 }
  0xad   :  { %v400_v32 = vadd.f32 %v396_v19, %v260_v31  ;;  %v1314_v31 = vmul.f32 32.0, %v2135_v20 }
  0xae   :  { %v383_v16 = vpop.f32.mrf.mxu1 }
  0xaf   :  { %v398_v45 = vadd.f32 %v397_v29, %v383_v16 }
  0xb0   :  { %v247_v28 = vpop.f32.mrf.mxu2 }
  0xb1   :  { %v248_v34 = vadd.f32 %v247_v28, %v162_v33  ;;  %v1315_v28 = vsub.f32 1.0, %v1314_v31 }
  0xb3   :  { %v262_v36 = vadd.f32 %v261_v17, %v248_v34 }
  0xb5   :  { %v518_v35 = vpop.f32.mrf.mxu3  ;;  %v401_v49 = vadd.f32 %v398_v45, %v262_v36  ;;  %v1316_v36 = vmul.f32 %v2135_v20, %v1315_v28 }
  0xb6   :  { %v653_v37 = vpop.f32.mrf.mxu1 }
  0xbd   :  { %v520_v38 = vpop.f32.mrf.mxu3 }
  0xbe   :  { %v655_v39 = vpop.f32.mrf.mxu1 }
  0xbf   :  { %v787_v40 = vpop.f32.mrf.mxu0 }
  0xc5   :  { %v532_v41 = vpop.f32.mrf.mxu3 }
  0xc6   :  { %v533_v43 = vadd.f32 %v532_v41, %v518_v35  ;;  %v801_v44 = vpop.f32.mrf.mxu1 }
  0xc7   :  { %v789_v46 = vpop.f32.mrf.mxu0  ;;  %v802_v3 = vadd.f32 %v801_v44, %v787_v40 }
  0xc8   :  { %v639_v42 = vpop.f32.mrf.mxu2  ;;  %v537_v27 = vadd.f32 %v533_v43, %v400_v32 }
  0xc9   :  { %v654_v51 = vadd.f32 %v653_v37, %v639_v42 }
  0xcb   :  { %v658_v55 = vadd.f32 %v654_v51, %v537_v27 }
  0xcd   :  { %v534_v47 = vpop.f32.mrf.mxu3 }
  0xce   :  { %v535_v50 = vadd.f32 %v534_v47, %v520_v38  ;;  %v803_v57 = vpop.f32.mrf.mxu1 }
  0xcf   :  { %v1035_v59 = vpop.f32.mrf.mxu0  ;;  %v804_v6 = vadd.f32 %v803_v57, %v789_v46 }
  0xd0   :  { %v538_v52 = vadd.f32 %v535_v50, %v401_v49  ;;  %v641_v53 = vpop.f32.mrf.mxu2 }
  0xd1   :  { %v656_v54 = vadd.f32 %v655_v39, %v641_v53  ;;  %v1317_v39 = vadd.f32 %v2135_v20, %v1316_v36 }
  0xd3   :  { %v659_v56 = vadd.f32 %v656_v54, %v538_v52  ;;  %v1319_v42 = vsel %vm1318_vm2, %v2135_v20, %v1317_v39 }
  0xd5   :  { %v1304_v58 = vadd.f32 %v659_v56, %v658_v55 }
  0xd7   :  { %v1037_v63 = vpop.f32.mrf.mxu0 }
  0xd8   :  { %v901_v61 = vpop.f32.mrf.mxu2 }
  0xda   :  { %v1021_v62 = vpop.f32.mrf.mxu1 }
  0xdb   :  { %v1036_v48 = vadd.f32 %v1035_v59, %v1021_v62 }
  0xdd   :  { %v887_v60 = vpop.f32.mrf.mxu3 }
  0xde   :  { %v888_v4 = vadd.f32 %v887_v60, %v802_v3 }
  0xe0   :  { %v903_v1 = vpop.f32.mrf.mxu2  ;;  %v902_v23 = vadd.f32 %v901_v61, %v888_v4 }
  0xe2   :  { %v1023_v2 = vpop.f32.mrf.mxu1  ;;  %v1040_v13 = vadd.f32 %v1036_v48, %v902_v23 }
  0xe3   :  { %v1038_v15 = vadd.f32 %v1037_v63, %v1023_v2 }
  0xe5   :  { %v889_v0 = vpop.f32.mrf.mxu3 }
  0xe6   :  { %v890_v10 = vadd.f32 %v889_v0, %v804_v6 }
  0xe7   :  { %v1277_v7 = vpop.f32.mrf.mxu0 }
  0xe8   :  { %v904_v14 = vadd.f32 %v903_v1, %v890_v10 }
  0xea   :  { %v1291_v9 = vpop.f32.mrf.mxu1  ;;  %v1041_v19 = vadd.f32 %v1038_v15, %v904_v14 }
  0xeb   :  { %v1292_v18 = vadd.f32 %v1291_v9, %v1277_v7 }
  0xed   :  { %v1171_v5 = vpop.f32.mrf.mxu3 }
  0xee   :  { %v1157_v8 = vpop.f32.mrf.mxu2 }
  0xef   :  { %v1172_v11 = vadd.f32 %v1171_v5, %v1157_v8  ;;  %v1279_v29 = vpop.f32.mrf.mxu0  ;;  %v1339_v5 = vld [vmem:[%s2629_s2] sm:$0x1] }
  0xf0   :  { %v2133_v8 = vld [vmem:[%s2628_s3] ss:$0 sm:$0xff] }
  0xf1   :  { %v1176_v17 = vadd.f32 %v1172_v11, %v1040_v13 }
  0xf2   :  { %v1293_v24 = vpop.f32.mrf.mxu1 }
  0xf3   :  { %v1296_v25 = vadd.f32 %v1292_v18, %v1176_v17  ;;  %v1294_v32 = vadd.f32 %v1293_v24, %v1279_v29 }
  0xf5   :  { %v1173_v21 = vpop.f32.mrf.mxu3  ;;  %v1305_v33 = vadd.f32 %v1304_v58, %v1296_v25 }
  0xf6   :  { %v1159_v22 = vpop.f32.mrf.mxu2 }
  0xf7   :  { %v1174_v26 = vadd.f32 %v1173_v21, %v1159_v22 }
  0xf9   :  { %v1177_v30 = vadd.f32 %v1174_v26, %v1041_v19 }
  0xfb   :  { %v1297_v16 = vadd.f32 %v1294_v32, %v1177_v30 }
  0xfd   :  { %v1306_v34 = vadd.f32 %v1305_v33, %v1297_v16 }
  0xff   :  { %v1307_v35 = vrot.slane %v1306_v34, 4 }
 0x101   :  { %v1308_v37 = vadd.f32 %v1307_v35, %v1306_v34 }
 0x103   :  { %v1309_v38 = vrot.slane %v1308_v37, 2 }
 0x105   :  { %v1310_v40 = vadd.f32 %v1309_v38, %v1308_v37 }
 0x107   :  { %v1311_v41 = vrot.slane %v1310_v40, 1 }
 0x109   :  { %v1312_v43 = vadd.f32 %v1311_v41, %v1310_v40 }
 0x10b   :  { %v1320_v44 = vmul.f32 %v1319_v42, %v1312_v43 }
 0x10d   :  { %v1321_v45 = vsub.f32 %v658_v55, %v1320_v44  ;;  %v1322_v46 = vsub.f32 %v659_v56, %v1320_v44  ;;  %v1323_v47 = vsub.f32 %v1296_v25, %v1320_v44  ;;  %v1324_v49 = vsub.f32 %v1297_v16, %v1320_v44 }
 0x10f   :  { %v1325_v50 = vmul.f32 %v1321_v45, %v1321_v45  ;;  %v1326_v27 = vmul.f32 %v1322_v46, %v1322_v46  ;;  %v1327_v51 = vmul.f32 %v1323_v47, %v1323_v47  ;;  %v1328_v53 = vmul.f32 %v1324_v49, %v1324_v49 }
 0x111   :  { %v1329_v52 = vadd.f32 %v1326_v27, %v1325_v50 }
 0x113   :  { %v1330_v54 = vadd.f32 %v1329_v52, %v1327_v51 }
 0x115   :  { %v1331_v57 = vadd.f32 %v1330_v54, %v1328_v53 }
 0x117   :  { %v1332_v58 = vrot.slane %v1331_v57, 4 }
 0x119   :  { %v1333_v59 = vadd.f32 %v1332_v58, %v1331_v57 }
 0x11b   :  { %v1334_v60 = vrot.slane %v1333_v59, 2 }
 0x11d   :  { %v1335_v61 = vadd.f32 %v1334_v60, %v1333_v59 }
 0x11f   :  { %v1336_v62 = vrot.slane %v1335_v61, 1 }
 0x121   :  { %v1337_v63 = vadd.f32 %v1336_v62, %v1335_v61 }
 0x123   :  { %v1338_v0 = vmul.f32 %v1337_v63, %v1319_v42 }
 0x125   :  { %v1340_v1 = vadd.f32 1e-05, %v1338_v0 }
 0x127   :  { %2136 = vrsqrt.f32 %v1340_v1  ;;  %vm1347_vm4 = vweird.f32 %v1340_v1 }
 0x12d   :  { %v2137_v55 = vpop.eup %2136 }
 0x12e   :  { %v1342_v56 = vmul.f32 %v2137_v55, %v1340_v1  ;;  %vm1348_vm3 = vweird.f32 %v2137_v55 }
 0x12f   :  { %vm1349_vm5 = vmor %vm1347_vm4, %vm1348_vm3 }
 0x130   :  { %v1343_v2 = vmul.f32 %v2137_v55, %v1342_v56 }
 0x132   :  { %v1344_v3 = vmul.f32 0.5, %v1343_v2 }
 0x134   :  { %v1345_v4 = vsub.f32 1.5, %v1344_v3 }
 0x136   :  { %v1346_v6 = vmul.f32 %v2137_v55, %v1345_v4 }
 0x138   :  { %v1350_v23 = vsel %vm1349_vm5, %v2137_v55, %v1346_v6 }
 0x139   :  { %v1351_v48 = vmul.f32 %v1350_v23, %v1339_v5 }
 0x13b   :  { %v1353_v7 = vperm.slane %v1351_v48, 0 }
 0x13d   :  { %v1355_v9 = vmul.f32 %v1353_v7, %v1321_v45  ;;  %v1356_v10 = vmul.f32 %v1353_v7, %v1322_v46  ;;  %v1357_v11 = vmul.f32 %v1353_v7, %v1323_v47  ;;  %v1358_v12 = vmul.f32 %v1353_v7, %v1324_v49 }
 0x13f   :  { %v1363_v13 = vadd.f32 %v2133_v8, %v1355_v9  ;;  %v1364_v14 = vadd.f32 %v2133_v8, %v1356_v10  ;;  %v1365_v15 = vadd.f32 %v2133_v8, %v1357_v11  ;;  %v1366_v17 = vadd.f32 %v2133_v8, %v1358_v12 }
 0x141   :  { %vm1367_vm6 = vcmp.ge.f32.partialorder %v1363_v13, 0.0  ;;  %vm1368_vm7 = vcmp.ge.f32.partialorder %v1364_v14, 0.0  ;;  %vm1369_vm8 = vcmp.ge.f32.partialorder %v1365_v15, 0.0  ;;  %vm1370_vm9 = vcmp.ge.f32.partialorder %v1366_v17, 0.0 }
 0x142   :  { %v1371_v18 = vmul.f32 0.2, %v1363_v13  ;;  %v1372_v20 = vmul.f32 0.2, %v1364_v14  ;;  %v1373_v21 = vmul.f32 0.2, %v1365_v15 }
 0x143   :  { %v1374_v22 = vmul.f32 0.2, %v1366_v17 }
 0x144   :  { %v1375_v24 = vsel %vm1367_vm6, %v1363_v13, %v1371_v18  ;;  %v1376_v19 = vsel %vm1368_vm7, %v1364_v14, %v1372_v20  ;;  %v1377_v25 = vsel %vm1369_vm8, %v1365_v15, %v1373_v21 }
 0x145   :  { %v1378_v26 = vsel %vm1370_vm9, %v1366_v17, %v1374_v22  ;;  %v2124_v29 = vpack.c.bf16 %v1376_v19, %v1375_v24 }
 0x146   :  { %v2129_v31 = vpack.c.bf16 %v1378_v26, %v1377_v25 }
 0x147   :  { %2125 = vst [vmem:[%s2630_s4] sm:$0xff] %v2124_v29  }
 0x148   :  { %2131 = vst [vmem:[%s2630_s4 + $0x8] sm:$0xff] %v2129_v31  }

</bundles_post_ra>
